<compile_context>
chip_gen: v7x
topology: tpu7x:2x2x1
jax: 0.10.0
libtpu: 0.0.40
codegen_flags: <defaults>
</compile_context>

<pallas_src>
import numpy as np
import jax
import jax.numpy as jnp
from jax.experimental import pallas as pl
from jax.experimental.pallas import tpu as pltpu


# ----------------------------------------------------------------------------
# Bilinear interpolation matrix (PyTorch F.interpolate, align_corners=True)
# ----------------------------------------------------------------------------
def _bilinear_matrix(out_size: int, in_size: int) -> np.ndarray:
    M = np.zeros((out_size, in_size), dtype=np.float32)
    if out_size == 1 or in_size == 1:
        M[:, 0] = 1.0
        return M
    src = np.arange(out_size, dtype=np.float64) * (in_size - 1) / (out_size - 1)
    i0 = np.clip(np.floor(src).astype(np.int64), 0, in_size - 1)
    i1 = np.clip(i0 + 1, 0, in_size - 1)
    frac = (src - i0).astype(np.float32)
    rows = np.arange(out_size)
    M[rows, i0] += (1.0 - frac)
    M[rows, i1] += frac
    return M


def _pick_n_tile(n: int, px: int, target_rows: int = 256, max_tile: int = 8) -> int:
    """Largest divisor of n (<= max_tile) such that n_tile*px ~ target_rows."""
    cap = min(n, max_tile, max(1, -(-target_rows // px)))
    t = 1
    for d in range(1, cap + 1):
        if n % d == 0:
            t = d
    return t


# ----------------------------------------------------------------------------
# Fused Pallas kernel.  One grid step = n_tile batch elements.
# ----------------------------------------------------------------------------
def _decoder2_kernel(x_ref, xl_ref, ry_ref, rx_ref,
                     w0_ref, b0_ref,
                     wse1_ref, wse2_ref, bse2_ref,
                     w1_ref, b1_ref,
                     wr1a_ref, wr1b_ref, br1_ref,
                     wr2_ref, br2_ref,
                     wp_ref, bp_ref,
                     out_ref, up_ref):
    n_tile, px, cx = x_ref.shape
    hl, hx = ry_ref.shape            # H interp matrix
    wl, wx = rx_ref.shape            # W interp matrix
    pl_rows = hl * wl
    c0 = w0_ref.shape[1]
    bf16 = jnp.bfloat16

    # ---- conv0 (1x1, BN scale folded into weights) + shift + ReLU ----------
    # x rows are W-major within each sample: row = w*Hx + h.
    x = x_ref[...].reshape(n_tile * px, cx)                       # bf16
    y = jnp.dot(x, w0_ref[...], preferred_element_type=jnp.float32)
    y = jnp.maximum(y + b0_ref[...], 0.0)                         # [n_tile*px, c0] f32

    # interpolation operands (hoisted out of the per-sample loop)
    ryb = jnp.broadcast_to(ry_ref[...], (wx, hl, hx))             # [Wx, Hl, Hx] bf16
    rxb = jnp.broadcast_to(rx_ref[...], (hl, wl, wx))             # [Hl, Wl, Wx] bf16

    # ---- per-sample: SE gate + separable bilinear upsample ------------------
    for b in range(n_tile):
        yb = y[b * px:(b + 1) * px, :]                            # [px, c0] f32
        # SE: global avg pool -> 1x1 -> ReLU -> 1x1(+bias) -> sigmoid
        m = jnp.mean(yb, axis=0, keepdims=True)                   # [1, c0] f32
        s = jnp.maximum(jnp.dot(m.astype(bf16), wse1_ref[...],
                                preferred_element_type=jnp.float32), 0.0)
        s = jnp.dot(s.astype(bf16), wse2_ref[...],
                    preferred_element_type=jnp.float32) + bse2_ref[...]
        gate = 1.0 + 1.0 / (1.0 + jnp.exp(-s))                    # out + se(out)*out
        yb = yb * gate                                            # [px, c0] f32

        # separable bilinear upsample (align_corners=True)
        y3 = yb.reshape(wx, hx, c0).astype(bf16)                  # [Wx, Hx, C0]
        # stage 1: H upsample, batched over Wx
        u1 = jnp.einsum("wmh,whc->wmc", ryb, y3,
                        preferred_element_type=jnp.float32)       # [Wx, Hl, C0] f32
        # swap the two leading dims so stage 2 can batch over Hl
        u1 = pltpu.einshape("wmc->mwc", u1)                       # [Hl, Wx, C0]
        # stage 2: W upsample, batched over Hl
        u2 = jnp.einsum("mlw,mwc->mlc", rxb, u1.astype(bf16),
                        preferred_element_type=jnp.float32)       # [Hl, Wl, C0] f32
        up_ref[b * pl_rows:(b + 1) * pl_rows, :] = (
            u2.reshape(pl_rows, c0).astype(bf16))                 # H-major rows

    # ---- decoder.conv1 on xl (H-major rows), padded to 128 channels ---------
    xl = xl_ref[...].reshape(n_tile * pl_rows, xl_ref.shape[2])   # bf16
    xlp = jnp.dot(xl, w1_ref[...], preferred_element_type=jnp.float32)
    xlp = jnp.maximum(xlp + b1_ref[...], 0.0).astype(bf16)        # [rows, 128]

    # ---- decoder.refine[0]: conv on concat([up, xlp]) as two matmuls --------
    up = up_ref[...]                                              # [rows, c0] bf16
    r1 = (jnp.dot(up, wr1a_ref[...], preferred_element_type=jnp.float32)
          + jnp.dot(xlp, wr1b_ref[...], preferred_element_type=jnp.float32))
    r1 = jnp.maximum(r1 + br1_ref[...], 0.0).astype(bf16)

    # ---- decoder.refine[3] ---------------------------------------------------
    r2 = jnp.dot(r1, wr2_ref[...], preferred_element_type=jnp.float32)
    r2 = jnp.maximum(r2 + br2_ref[...], 0.0).astype(bf16)

    # ---- pred_conv (Dropout2d identity in eval), 128 padded output lanes ----
    pred = (jnp.dot(r2, wp_ref[...], preferred_element_type=jnp.float32)
            + bp_ref[...])                                        # [rows, 128] f32
    out_ref[...] = pred.reshape(n_tile, pl_rows, wp_ref.shape[1])


# ----------------------------------------------------------------------------
# Parameter preparation: fold BN scale into weights, pad lanes, cast to bf16
# ----------------------------------------------------------------------------
_PARAM_ORDER = ["w0", "b0", "wse1", "wse2", "bse2", "w1", "b1",
                "wr1a", "wr1b", "br1", "wr2", "br2", "wp", "bp"]


def prepare_params(p, num_classes):
    bf16 = jnp.bfloat16
    f32 = jnp.float32
    out = {}
    # conv0 + BN
    out["w0"] = (p["w0"] * p["bn0s"]).astype(bf16)
    out["b0"] = p["bn0b"].astype(f32)
    # SE
    out["wse1"] = p["wse1"].astype(bf16)
    out["wse2"] = p["wse2"].astype(bf16)
    out["bse2"] = p["bse2"].astype(f32)
    # decoder.conv1 + BN  (48 output channels zero-padded to 128)
    w1 = p["w1"] * p["bn1s"]
    c1 = w1.shape[1]
    c1_pad = -(-c1 // 128) * 128
    out["w1"] = jnp.pad(w1, ((0, 0), (0, c1_pad - c1))).astype(bf16)
    out["b1"] = jnp.pad(p["bn1b"], ((0, 0), (0, c1_pad - c1))).astype(f32)
    # decoder.refine[0] (concat conv split) + BN
    out["wr1a"] = (p["wr1a"] * p["bnr1s"]).astype(bf16)
    wr1b = p["wr1b"] * p["bnr1s"]
    out["wr1b"] = jnp.pad(wr1b, ((0, c1_pad - c1), (0, 0))).astype(bf16)
    out["br1"] = p["bnr1b"].astype(f32)
    # decoder.refine[3] + BN
    out["wr2"] = (p["wr2"] * p["bnr2s"]).astype(bf16)
    out["br2"] = p["bnr2b"].astype(f32)
    # pred_conv (output channels padded to a full 128-lane width)
    nc = p["wp"].shape[1]
    nc_pad = -(-nc // 128) * 128
    out["wp"] = jnp.pad(p["wp"], ((0, 0), (0, nc_pad - nc))).astype(bf16)
    out["bp"] = jnp.pad(p["bp"], ((0, 0), (0, nc_pad - nc))).astype(f32)
    return out


# ----------------------------------------------------------------------------
# Wrapper: layout plumbing + pallas_call
# ----------------------------------------------------------------------------
def decoder_module2_forward(x, xl, prep, num_classes):
    N, Cx, Hx, Wx = x.shape
    Nl, Cl, Hl, Wl = xl.shape
    assert N == Nl
    Px, Pl = Hx * Wx, Hl * Wl
    c0 = prep["w0"].shape[1]
    nc_pad = prep["wp"].shape[1]

    # deep feature: W-major flattening (row = w*Hx + h) so the H-upsample stage
    # is a leading-dim-batched matmul inside the kernel.
    x_flat = (jnp.transpose(x, (0, 3, 2, 1))
              .reshape(N, Px, Cx).astype(jnp.bfloat16))
    # low-level feature / output: natural H-major flattening (row = h*Wl + w).
    xl_flat = (jnp.transpose(xl, (0, 2, 3, 1))
               .reshape(N, Pl, Cl).astype(jnp.bfloat16))

    # separable bilinear interpolation matrices (bf16 matmul operands)
    ry = jnp.asarray(_bilinear_matrix(Hl, Hx)).astype(jnp.bfloat16)
    rx = jnp.asarray(_bilinear_matrix(Wl, Wx)).astype(jnp.bfloat16)

    n_tile = _pick_n_tile(N, Px)
    grid = (N // n_tile,)

    weights = [prep[k] for k in _PARAM_ORDER]

    def full_spec(a):
        nd = a.ndim
        return pl.BlockSpec(a.shape, lambda b, _nd=nd: (0,) * _nd)

    in_specs = ([pl.BlockSpec((n_tile, Px, Cx), lambda b: (b, 0, 0)),
                 pl.BlockSpec((n_tile, Pl, Cl), lambda b: (b, 0, 0)),
                 full_spec(ry), full_spec(rx)]
                + [full_spec(w) for w in weights])

    out = pl.pallas_call(
        _decoder2_kernel,
        grid=grid,
        in_specs=in_specs,
        out_specs=pl.BlockSpec((n_tile, Pl, nc_pad), lambda b: (b, 0, 0)),
        out_shape=jax.ShapeDtypeStruct((N, Pl, nc_pad), jnp.float32),
        scratch_shapes=[pltpu.VMEM((n_tile * Pl, c0), jnp.bfloat16)],
        compiler_params=pltpu.CompilerParams(dimension_semantics=("parallel",)),
    )(x_flat, xl_flat, ry, rx, *weights)

    out = out[..., :num_classes]                                   # drop lane padding
    return jnp.transpose(out.reshape(N, Hl, Wl, num_classes), (0, 3, 1, 2))


# ----------------------------------------------------------------------------
# Deterministic parameter init (synthetic; shapes follow the PyTorch __init__)
# ----------------------------------------------------------------------------
def init_params(key, num_classes, Cx=512, C0=256, Cl=256, C1=48,
                Cmid=256, Cout=256):
    ks = iter(jax.random.split(key, 32))

    def w(cin, cout):
        return (jax.random.normal(next(ks), (cin, cout), jnp.float32)
                / np.sqrt(cin).astype(np.float32))

    def bn(c):
        gamma = 1.0 + 0.1 * jax.random.normal(next(ks), (1, c), jnp.float32)
        beta = 0.1 * jax.random.normal(next(ks), (1, c), jnp.float32)
        mean = 0.1 * jax.random.normal(next(ks), (1, c), jnp.float32)
        var = jnp.abs(1.0 + 0.1 * jax.random.normal(next(ks), (1, c), jnp.float32))
        scale = gamma / jnp.sqrt(var + 1e-5)
        shift = beta - mean * scale
        return scale, shift

    p = {}
    p["w0"] = w(Cx, C0)
    p["bn0s"], p["bn0b"] = bn(C0)
    p["wse1"] = w(C0, C0)
    p["wse2"] = w(C0, C0)
    p["bse2"] = 0.1 * jax.random.normal(next(ks), (1, C0), jnp.float32)
    p["w1"] = w(Cl, C1)
    p["bn1s"], p["bn1b"] = bn(C1)
    wr1 = w(C0 + C1, Cmid)
    p["wr1a"], p["wr1b"] = wr1[:C0], wr1[C0:]
    p["bnr1s"], p["bnr1b"] = bn(Cmid)
    p["wr2"] = w(Cmid, Cout)
    p["bnr2s"], p["bnr2b"] = bn(Cout)
    p["wp"] = w(Cout, num_classes)
    p["bp"] = 0.1 * jax.random.normal(next(ks), (1, num_classes), jnp.float32)
    return p


# ----------------------------------------------------------------------------
# Pure-JAX reference mirroring the kernel's bf16/f32 math (no Pallas)
# ----------------------------------------------------------------------------
def reference_forward(x, xl, prep, num_classes):
    bf16 = jnp.bfloat16
    N, Cx, Hx, Wx = x.shape
    _, Cl, Hl, Wl = xl.shape

    xf = jnp.transpose(x, (0, 2, 3, 1)).astype(bf16)               # [N,Hx,Wx,Cx]
    xlf = (jnp.transpose(xl, (0, 2, 3, 1))
           .reshape(N, Hl * Wl, Cl).astype(bf16))

    y = jnp.einsum("nhwc,cd->nhwd", xf, prep["w0"],
                   preferred_element_type=jnp.float32)
    y = jnp.maximum(y + prep["b0"], 0.0)                           # f32
    m = jnp.mean(y, axis=(1, 2))                                   # [N, C0]
    s = jnp.maximum(jnp.dot(m.astype(bf16), prep["wse1"],
                            preferred_element_type=jnp.float32), 0.0)
    s = jnp.dot(s.astype(bf16), prep["wse2"],
                preferred_element_type=jnp.float32) + prep["bse2"]
    gate = 1.0 + 1.0 / (1.0 + jnp.exp(-s))
    y = (y * gate[:, None, None, :]).astype(bf16)

    ry = jnp.asarray(_bilinear_matrix(Hl, Hx)).astype(bf16)
    rx = jnp.asarray(_bilinear_matrix(Wl, Wx)).astype(bf16)
    u1 = jnp.einsum("mh,nhwc->nmwc", ry, y,
                    preferred_element_type=jnp.float32).astype(bf16)
    up = jnp.einsum("lw,nmwc->nmlc", rx, u1,
                    preferred_element_type=jnp.float32)            # [N,Hl,Wl,C0]
    up = up.reshape(N, Hl * Wl, -1).astype(bf16)

    xlp = jnp.einsum("npc,cd->npd", xlf, prep["w1"],
                     preferred_element_type=jnp.float32)
    xlp = jnp.maximum(xlp + prep["b1"], 0.0).astype(bf16)

    r1 = (jnp.einsum("npc,cd->npd", up, prep["wr1a"],
                     preferred_element_type=jnp.float32)
          + jnp.einsum("npc,cd->npd", xlp, prep["wr1b"],
                       preferred_element_type=jnp.float32))
    r1 = jnp.maximum(r1 + prep["br1"], 0.0).astype(bf16)
    r2 = jnp.einsum("npc,cd->npd", r1, prep["wr2"],
                    preferred_element_type=jnp.float32)
    r2 = jnp.maximum(r2 + prep["br2"], 0.0).astype(bf16)
    pred = (jnp.einsum("npc,cd->npd", r2, prep["wp"],
                       preferred_element_type=jnp.float32) + prep["bp"])
    pred = pred[..., :num_classes]
    return jnp.transpose(pred.reshape(N, Hl, Wl, num_classes), (0, 3, 1, 2))


if __name__ == "__main__":
    key = jax.random.PRNGKey(0)
    kx, kxl, kp = jax.random.split(key, 3)

    N, Hx, Wx, Hl, Wl = 2, 8, 8, 16, 16
    NUM_CLASSES = 8

    # x is the deep feature (512 ch), xl the low-level feature (256 ch)
    x = jax.random.normal(kx, (N, 512, Hx, Wx), jnp.float32)
    xl = jax.random.normal(kxl, (N, 256, Hl, Wl), jnp.float32)

    raw = init_params(kp, NUM_CLASSES)
    prep = prepare_params(raw, NUM_CLASSES)

    out = decoder_module2_forward(x, xl, prep, NUM_CLASSES)
    out = jax.block_until_ready(out)
    assert out.shape == (N, NUM_CLASSES, Hl, Wl)

    ref = reference_forward(x, xl, prep, NUM_CLASSES)
    np.testing.assert_allclose(np.asarray(out), np.asarray(ref),
                               atol=2e-3, rtol=2e-3)

    print("KERNEL_OK")
</pallas_src>

<mosaic_0001>
module attributes {stable_mosaic.version = 11 : i64} {
  func.func @_decoder2_kernel(%arg0: i32, %arg1: memref<2x64x512xbf16, #tpu.memory_space<vmem>>, %arg2: memref<2x256x256xbf16, #tpu.memory_space<vmem>>, %arg3: memref<16x8xbf16, #tpu.memory_space<vmem>>, %arg4: memref<16x8xbf16, #tpu.memory_space<vmem>>, %arg5: memref<512x256xbf16, #tpu.memory_space<vmem>>, %arg6: memref<1x256xf32, #tpu.memory_space<vmem>>, %arg7: memref<256x256xbf16, #tpu.memory_space<vmem>>, %arg8: memref<256x256xbf16, #tpu.memory_space<vmem>>, %arg9: memref<1x256xf32, #tpu.memory_space<vmem>>, %arg10: memref<256x128xbf16, #tpu.memory_space<vmem>>, %arg11: memref<1x128xf32, #tpu.memory_space<vmem>>, %arg12: memref<256x256xbf16, #tpu.memory_space<vmem>>, %arg13: memref<128x256xbf16, #tpu.memory_space<vmem>>, %arg14: memref<1x256xf32, #tpu.memory_space<vmem>>, %arg15: memref<256x256xbf16, #tpu.memory_space<vmem>>, %arg16: memref<1x256xf32, #tpu.memory_space<vmem>>, %arg17: memref<256x128xbf16, #tpu.memory_space<vmem>>, %arg18: memref<1x128xf32, #tpu.memory_space<vmem>>, %arg19: memref<2x256x128xf32, #tpu.memory_space<vmem>>, %arg20: memref<512x256xbf16, #tpu.memory_space<vmem>>) attributes {dimension_semantics = [#tpu.dimension_semantics<parallel>], iteration_bounds = array<i64: 1>, scalar_prefetch = 0 : i64, scratch_operands = 1 : i64, tpu.core_type = #tpu.core_type<tc>, window_params = [{transform_indices = @transform_0, window_bounds = array<i64: 2, 64, 512>}, {transform_indices = @transform_1, window_bounds = array<i64: 2, 256, 256>}, {pipeline_mode = #tpu.pipeline_mode<synchronous>, transform_indices = @transform_2, window_bounds = array<i64: 16, 8>}, {pipeline_mode = #tpu.pipeline_mode<synchronous>, transform_indices = @transform_3, window_bounds = array<i64: 16, 8>}, {pipeline_mode = #tpu.pipeline_mode<synchronous>, transform_indices = @transform_4, window_bounds = array<i64: 512, 256>}, {pipeline_mode = #tpu.pipeline_mode<synchronous>, transform_indices = @transform_5, window_bounds = array<i64: 1, 256>}, {pipeline_mode = #tpu.pipeline_mode<synchronous>, transform_indices = @transform_6, window_bounds = array<i64: 256, 256>}, {pipeline_mode = #tpu.pipeline_mode<synchronous>, transform_indices = @transform_7, window_bounds = array<i64: 256, 256>}, {pipeline_mode = #tpu.pipeline_mode<synchronous>, transform_indices = @transform_8, window_bounds = array<i64: 1, 256>}, {pipeline_mode = #tpu.pipeline_mode<synchronous>, transform_indices = @transform_9, window_bounds = array<i64: 256, 128>}, {pipeline_mode = #tpu.pipeline_mode<synchronous>, transform_indices = @transform_10, window_bounds = array<i64: 1, 128>}, {pipeline_mode = #tpu.pipeline_mode<synchronous>, transform_indices = @transform_11, window_bounds = array<i64: 256, 256>}, {pipeline_mode = #tpu.pipeline_mode<synchronous>, transform_indices = @transform_12, window_bounds = array<i64: 128, 256>}, {pipeline_mode = #tpu.pipeline_mode<synchronous>, transform_indices = @transform_13, window_bounds = array<i64: 1, 256>}, {pipeline_mode = #tpu.pipeline_mode<synchronous>, transform_indices = @transform_14, window_bounds = array<i64: 256, 256>}, {pipeline_mode = #tpu.pipeline_mode<synchronous>, transform_indices = @transform_15, window_bounds = array<i64: 1, 256>}, {pipeline_mode = #tpu.pipeline_mode<synchronous>, transform_indices = @transform_16, window_bounds = array<i64: 256, 128>}, {pipeline_mode = #tpu.pipeline_mode<synchronous>, transform_indices = @transform_17, window_bounds = array<i64: 1, 128>}, {transform_indices = @transform_18, window_bounds = array<i64: 2, 256, 128>}]} {
    %c0 = arith.constant 0 : index
    %c0_0 = arith.constant 0 : index
    %c0_1 = arith.constant 0 : index
    %0 = vector.load %arg1[%c0, %c0_0, %c0_1] : memref<2x64x512xbf16, #tpu.memory_space<vmem>>, vector<2x64x512xbf16>
    %1 = vector.shape_cast %0 : vector<2x64x512xbf16> to vector<128x512xbf16>
    %c0_2 = arith.constant 0 : index
    %c0_3 = arith.constant 0 : index
    %2 = vector.load %arg5[%c0_2, %c0_3] : memref<512x256xbf16, #tpu.memory_space<vmem>>, vector<512x256xbf16>
    %cst = arith.constant dense<0.000000e+00> : vector<128x256xf32>
    %3 = tpu.matmul %1, %2, %cst {dimension_numbers = #tpu.dot_dimension_numbers<[1], [0], [0], [1], [0, 0, 1, 1], [], []>} : vector<128x512xbf16>, vector<512x256xbf16>, vector<128x256xf32> -> vector<128x256xf32>
    %c0_4 = arith.constant 0 : index
    %c0_5 = arith.constant 0 : index
    %4 = vector.load %arg6[%c0_4, %c0_5] : memref<1x256xf32, #tpu.memory_space<vmem>>, vector<1x256xf32>
    %5 = vector.broadcast %4 : vector<1x256xf32> to vector<128x256xf32>
    %6 = arith.addf %3, %5 : vector<128x256xf32>
    %cst_6 = arith.constant 0.000000e+00 : f32
    %7 = vector.broadcast %cst_6 : f32 to vector<128x256xf32>
    %8 = arith.maximumf %6, %7 : vector<128x256xf32>
    %c0_7 = arith.constant 0 : index
    %c0_8 = arith.constant 0 : index
    %9 = vector.load %arg3[%c0_7, %c0_8] : memref<16x8xbf16, #tpu.memory_space<vmem>>, vector<16x8xbf16>
    %10 = vector.shape_cast %9 : vector<16x8xbf16> to vector<1x16x8xbf16>
    %11 = vector.broadcast %10 : vector<1x16x8xbf16> to vector<8x16x8xbf16>
    %c0_9 = arith.constant 0 : index
    %c0_10 = arith.constant 0 : index
    %12 = vector.load %arg4[%c0_9, %c0_10] : memref<16x8xbf16, #tpu.memory_space<vmem>>, vector<16x8xbf16>
    %13 = vector.shape_cast %12 : vector<16x8xbf16> to vector<1x16x8xbf16>
    %14 = vector.broadcast %13 : vector<1x16x8xbf16> to vector<16x16x8xbf16>
    %15 = vector.extract_strided_slice %8 {offsets = [0, 0], sizes = [64, 256], strides = [1, 1]} : vector<128x256xf32> to vector<64x256xf32>
    %cst_11 = arith.constant dense<0.000000e+00> : vector<256xf32>
    %16 = vector.multi_reduction <add>, %15, %cst_11 [0] : vector<64x256xf32> to vector<256xf32>
    %17 = vector.shape_cast %16 : vector<256xf32> to vector<1x256xf32>
    %cst_12 = arith.constant 6.400000e+01 : f32
    %18 = vector.broadcast %cst_12 : f32 to vector<1x256xf32>
    %19 = arith.divf %17, %18 : vector<1x256xf32>
    %20 = arith.truncf %19 : vector<1x256xf32> to vector<1x256xbf16>
    %c0_13 = arith.constant 0 : index
    %c0_14 = arith.constant 0 : index
    %21 = vector.load %arg7[%c0_13, %c0_14] : memref<256x256xbf16, #tpu.memory_space<vmem>>, vector<256x256xbf16>
    %cst_15 = arith.constant dense<0.000000e+00> : vector<1x256xf32>
    %22 = tpu.matmul %20, %21, %cst_15 {dimension_numbers = #tpu.dot_dimension_numbers<[1], [0], [0], [1], [0, 0, 1, 1], [], []>} : vector<1x256xbf16>, vector<256x256xbf16>, vector<1x256xf32> -> vector<1x256xf32>
    %cst_16 = arith.constant 0.000000e+00 : f32
    %23 = vector.broadcast %cst_16 : f32 to vector<1x256xf32>
    %24 = arith.maximumf %22, %23 : vector<1x256xf32>
    %25 = arith.truncf %24 : vector<1x256xf32> to vector<1x256xbf16>
    %c0_17 = arith.constant 0 : index
    %c0_18 = arith.constant 0 : index
    %26 = vector.load %arg8[%c0_17, %c0_18] : memref<256x256xbf16, #tpu.memory_space<vmem>>, vector<256x256xbf16>
    %cst_19 = arith.constant dense<0.000000e+00> : vector<1x256xf32>
    %27 = tpu.matmul %25, %26, %cst_19 {dimension_numbers = #tpu.dot_dimension_numbers<[1], [0], [0], [1], [0, 0, 1, 1], [], []>} : vector<1x256xbf16>, vector<256x256xbf16>, vector<1x256xf32> -> vector<1x256xf32>
    %c0_20 = arith.constant 0 : index
    %c0_21 = arith.constant 0 : index
    %28 = vector.load %arg9[%c0_20, %c0_21] : memref<1x256xf32, #tpu.memory_space<vmem>>, vector<1x256xf32>
    %29 = arith.addf %27, %28 : vector<1x256xf32>
    %cst_22 = arith.constant 0.000000e+00 : f32
    %30 = vector.broadcast %cst_22 : f32 to vector<1x256xf32>
    %31 = arith.subf %30, %29 : vector<1x256xf32>
    %32 = math.exp %31 : vector<1x256xf32>
    %cst_23 = arith.constant 1.000000e+00 : f32
    %33 = vector.broadcast %cst_23 : f32 to vector<1x256xf32>
    %34 = arith.addf %33, %32 : vector<1x256xf32>
    %cst_24 = arith.constant 1.000000e+00 : f32
    %35 = vector.broadcast %cst_24 : f32 to vector<1x256xf32>
    %36 = arith.divf %35, %34 : vector<1x256xf32>
    %cst_25 = arith.constant 1.000000e+00 : f32
    %37 = vector.broadcast %cst_25 : f32 to vector<1x256xf32>
    %38 = arith.addf %37, %36 : vector<1x256xf32>
    %39 = vector.broadcast %38 : vector<1x256xf32> to vector<64x256xf32>
    %40 = arith.mulf %15, %39 : vector<64x256xf32>
    %41 = vector.shape_cast %40 : vector<64x256xf32> to vector<8x8x256xf32>
    %42 = arith.truncf %41 : vector<8x8x256xf32> to vector<8x8x256xbf16>
    "tpu.trace_start"() <{level = 10 : i32, message = "wmh,whc->wmc"}> : () -> ()
    %cst_26 = arith.constant dense<0.000000e+00> : vector<8x16x256xf32>
    %43 = tpu.matmul %11, %42, %cst_26 {dimension_numbers = #tpu.dot_dimension_numbers<[2], [1], [1], [2], [0, 0, 0, 1, 1, 2], [0], [0]>} : vector<8x16x8xbf16>, vector<8x8x256xbf16>, vector<8x16x256xf32> -> vector<8x16x256xf32>
    "tpu.trace_stop"() : () -> ()
    %44 = tpu.transpose %43, [1, 0, 2] : vector<8x16x256xf32> -> vector<16x8x256xf32>
    %45 = arith.truncf %44 : vector<16x8x256xf32> to vector<16x8x256xbf16>
    "tpu.trace_start"() <{level = 10 : i32, message = "mlw,mwc->mlc"}> : () -> ()
    %cst_27 = arith.constant dense<0.000000e+00> : vector<16x16x256xf32>
    %46 = tpu.matmul %14, %45, %cst_27 {dimension_numbers = #tpu.dot_dimension_numbers<[2], [1], [1], [2], [0, 0, 0, 1, 1, 2], [0], [0]>} : vector<16x16x8xbf16>, vector<16x8x256xbf16>, vector<16x16x256xf32> -> vector<16x16x256xf32>
    "tpu.trace_stop"() : () -> ()
    %47 = vector.shape_cast %46 : vector<16x16x256xf32> to vector<256x256xf32>
    %48 = arith.truncf %47 : vector<256x256xf32> to vector<256x256xbf16>
    %c0_28 = arith.constant 0 : index
    %c0_29 = arith.constant 0 : index
    %49 = vector.load %arg20[%c0_28, %c0_29] : memref<512x256xbf16, #tpu.memory_space<vmem>>, vector<256x256xbf16>
    tpu.vector_store %arg20[%c0_28, %c0_29], %48 {strides = array<i32>} : memref<512x256xbf16, #tpu.memory_space<vmem>>, vector<256x256xbf16>,
    %50 = vector.extract_strided_slice %8 {offsets = [64, 0], sizes = [64, 256], strides = [1, 1]} : vector<128x256xf32> to vector<64x256xf32>
    %cst_30 = arith.constant dense<0.000000e+00> : vector<256xf32>
    %51 = vector.multi_reduction <add>, %50, %cst_30 [0] : vector<64x256xf32> to vector<256xf32>
    %52 = vector.shape_cast %51 : vector<256xf32> to vector<1x256xf32>
    %cst_31 = arith.constant 6.400000e+01 : f32
    %53 = vector.broadcast %cst_31 : f32 to vector<1x256xf32>
    %54 = arith.divf %52, %53 : vector<1x256xf32>
    %55 = arith.truncf %54 : vector<1x256xf32> to vector<1x256xbf16>
    %c0_32 = arith.constant 0 : index
    %c0_33 = arith.constant 0 : index
    %56 = vector.load %arg7[%c0_32, %c0_33] : memref<256x256xbf16, #tpu.memory_space<vmem>>, vector<256x256xbf16>
    %cst_34 = arith.constant dense<0.000000e+00> : vector<1x256xf32>
    %57 = tpu.matmul %55, %56, %cst_34 {dimension_numbers = #tpu.dot_dimension_numbers<[1], [0], [0], [1], [0, 0, 1, 1], [], []>} : vector<1x256xbf16>, vector<256x256xbf16>, vector<1x256xf32> -> vector<1x256xf32>
    %cst_35 = arith.constant 0.000000e+00 : f32
    %58 = vector.broadcast %cst_35 : f32 to vector<1x256xf32>
    %59 = arith.maximumf %57, %58 : vector<1x256xf32>
    %60 = arith.truncf %59 : vector<1x256xf32> to vector<1x256xbf16>
    %c0_36 = arith.constant 0 : index
    %c0_37 = arith.constant 0 : index
    %61 = vector.load %arg8[%c0_36, %c0_37] : memref<256x256xbf16, #tpu.memory_space<vmem>>, vector<256x256xbf16>
    %cst_38 = arith.constant dense<0.000000e+00> : vector<1x256xf32>
    %62 = tpu.matmul %60, %61, %cst_38 {dimension_numbers = #tpu.dot_dimension_numbers<[1], [0], [0], [1], [0, 0, 1, 1], [], []>} : vector<1x256xbf16>, vector<256x256xbf16>, vector<1x256xf32> -> vector<1x256xf32>
    %c0_39 = arith.constant 0 : index
    %c0_40 = arith.constant 0 : index
    %63 = vector.load %arg9[%c0_39, %c0_40] : memref<1x256xf32, #tpu.memory_space<vmem>>, vector<1x256xf32>
    %64 = arith.addf %62, %63 : vector<1x256xf32>
    %cst_41 = arith.constant 0.000000e+00 : f32
    %65 = vector.broadcast %cst_41 : f32 to vector<1x256xf32>
    %66 = arith.subf %65, %64 : vector<1x256xf32>
    %67 = math.exp %66 : vector<1x256xf32>
    %cst_42 = arith.constant 1.000000e+00 : f32
    %68 = vector.broadcast %cst_42 : f32 to vector<1x256xf32>
    %69 = arith.addf %68, %67 : vector<1x256xf32>
    %cst_43 = arith.constant 1.000000e+00 : f32
    %70 = vector.broadcast %cst_43 : f32 to vector<1x256xf32>
    %71 = arith.divf %70, %69 : vector<1x256xf32>
    %cst_44 = arith.constant 1.000000e+00 : f32
    %72 = vector.broadcast %cst_44 : f32 to vector<1x256xf32>
    %73 = arith.addf %72, %71 : vector<1x256xf32>
    %74 = vector.broadcast %73 : vector<1x256xf32> to vector<64x256xf32>
    %75 = arith.mulf %50, %74 : vector<64x256xf32>
    %76 = vector.shape_cast %75 : vector<64x256xf32> to vector<8x8x256xf32>
    %77 = arith.truncf %76 : vector<8x8x256xf32> to vector<8x8x256xbf16>
    "tpu.trace_start"() <{level = 10 : i32, message = "wmh,whc->wmc"}> : () -> ()
    %cst_45 = arith.constant dense<0.000000e+00> : vector<8x16x256xf32>
    %78 = tpu.matmul %11, %77, %cst_45 {dimension_numbers = #tpu.dot_dimension_numbers<[2], [1], [1], [2], [0, 0, 0, 1, 1, 2], [0], [0]>} : vector<8x16x8xbf16>, vector<8x8x256xbf16>, vector<8x16x256xf32> -> vector<8x16x256xf32>
    "tpu.trace_stop"() : () -> ()
    %79 = tpu.transpose %78, [1, 0, 2] : vector<8x16x256xf32> -> vector<16x8x256xf32>
    %80 = arith.truncf %79 : vector<16x8x256xf32> to vector<16x8x256xbf16>
    "tpu.trace_start"() <{level = 10 : i32, message = "mlw,mwc->mlc"}> : () -> ()
    %cst_46 = arith.constant dense<0.000000e+00> : vector<16x16x256xf32>
    %81 = tpu.matmul %14, %80, %cst_46 {dimension_numbers = #tpu.dot_dimension_numbers<[2], [1], [1], [2], [0, 0, 0, 1, 1, 2], [0], [0]>} : vector<16x16x8xbf16>, vector<16x8x256xbf16>, vector<16x16x256xf32> -> vector<16x16x256xf32>
    "tpu.trace_stop"() : () -> ()
    %82 = vector.shape_cast %81 : vector<16x16x256xf32> to vector<256x256xf32>
    %83 = arith.truncf %82 : vector<256x256xf32> to vector<256x256xbf16>
    %c256 = arith.constant 256 : index
    %c0_47 = arith.constant 0 : index
    %84 = vector.load %arg20[%c256, %c0_47] : memref<512x256xbf16, #tpu.memory_space<vmem>>, vector<256x256xbf16>
    tpu.vector_store %arg20[%c256, %c0_47], %83 {strides = array<i32>} : memref<512x256xbf16, #tpu.memory_space<vmem>>, vector<256x256xbf16>,
    %c0_48 = arith.constant 0 : index
    %c0_49 = arith.constant 0 : index
    %c0_50 = arith.constant 0 : index
    %85 = vector.load %arg2[%c0_48, %c0_49, %c0_50] : memref<2x256x256xbf16, #tpu.memory_space<vmem>>, vector<2x256x256xbf16>
    %86 = vector.shape_cast %85 : vector<2x256x256xbf16> to vector<512x256xbf16>
    %c0_51 = arith.constant 0 : index
    %c0_52 = arith.constant 0 : index
    %87 = vector.load %arg10[%c0_51, %c0_52] : memref<256x128xbf16, #tpu.memory_space<vmem>>, vector<256x128xbf16>
    %cst_53 = arith.constant dense<0.000000e+00> : vector<512x128xf32>
    %88 = tpu.matmul %86, %87, %cst_53 {dimension_numbers = #tpu.dot_dimension_numbers<[1], [0], [0], [1], [0, 0, 1, 1], [], []>} : vector<512x256xbf16>, vector<256x128xbf16>, vector<512x128xf32> -> vector<512x128xf32>
    %c0_54 = arith.constant 0 : index
    %c0_55 = arith.constant 0 : index
    %89 = vector.load %arg11[%c0_54, %c0_55] : memref<1x128xf32, #tpu.memory_space<vmem>>, vector<1x128xf32>
    %90 = vector.broadcast %89 : vector<1x128xf32> to vector<512x128xf32>
    %91 = arith.addf %88, %90 : vector<512x128xf32>
    %cst_56 = arith.constant 0.000000e+00 : f32
    %92 = vector.broadcast %cst_56 : f32 to vector<512x128xf32>
    %93 = arith.maximumf %91, %92 : vector<512x128xf32>
    %94 = arith.truncf %93 : vector<512x128xf32> to vector<512x128xbf16>
    %c0_57 = arith.constant 0 : index
    %c0_58 = arith.constant 0 : index
    %95 = vector.load %arg20[%c0_57, %c0_58] : memref<512x256xbf16, #tpu.memory_space<vmem>>, vector<512x256xbf16>
    %c0_59 = arith.constant 0 : index
    %c0_60 = arith.constant 0 : index
    %96 = vector.load %arg12[%c0_59, %c0_60] : memref<256x256xbf16, #tpu.memory_space<vmem>>, vector<256x256xbf16>
    %cst_61 = arith.constant dense<0.000000e+00> : vector<512x256xf32>
    %97 = tpu.matmul %95, %96, %cst_61 {dimension_numbers = #tpu.dot_dimension_numbers<[1], [0], [0], [1], [0, 0, 1, 1], [], []>} : vector<512x256xbf16>, vector<256x256xbf16>, vector<512x256xf32> -> vector<512x256xf32>
    %c0_62 = arith.constant 0 : index
    %c0_63 = arith.constant 0 : index
    %98 = vector.load %arg13[%c0_62, %c0_63] : memref<128x256xbf16, #tpu.memory_space<vmem>>, vector<128x256xbf16>
    %cst_64 = arith.constant dense<0.000000e+00> : vector<512x256xf32>
    %99 = tpu.matmul %94, %98, %cst_64 {dimension_numbers = #tpu.dot_dimension_numbers<[1], [0], [0], [1], [0, 0, 1, 1], [], []>} : vector<512x128xbf16>, vector<128x256xbf16>, vector<512x256xf32> -> vector<512x256xf32>
    %100 = arith.addf %97, %99 : vector<512x256xf32>
    %c0_65 = arith.constant 0 : index
    %c0_66 = arith.constant 0 : index
    %101 = vector.load %arg14[%c0_65, %c0_66] : memref<1x256xf32, #tpu.memory_space<vmem>>, vector<1x256xf32>
    %102 = vector.broadcast %101 : vector<1x256xf32> to vector<512x256xf32>
    %103 = arith.addf %100, %102 : vector<512x256xf32>
    %cst_67 = arith.constant 0.000000e+00 : f32
    %104 = vector.broadcast %cst_67 : f32 to vector<512x256xf32>
    %105 = arith.maximumf %103, %104 : vector<512x256xf32>
    %106 = arith.truncf %105 : vector<512x256xf32> to vector<512x256xbf16>
    %c0_68 = arith.constant 0 : index
    %c0_69 = arith.constant 0 : index
    %107 = vector.load %arg15[%c0_68, %c0_69] : memref<256x256xbf16, #tpu.memory_space<vmem>>, vector<256x256xbf16>
    %cst_70 = arith.constant dense<0.000000e+00> : vector<512x256xf32>
    %108 = tpu.matmul %106, %107, %cst_70 {dimension_numbers = #tpu.dot_dimension_numbers<[1], [0], [0], [1], [0, 0, 1, 1], [], []>} : vector<512x256xbf16>, vector<256x256xbf16>, vector<512x256xf32> -> vector<512x256xf32>
    %c0_71 = arith.constant 0 : index
    %c0_72 = arith.constant 0 : index
    %109 = vector.load %arg16[%c0_71, %c0_72] : memref<1x256xf32, #tpu.memory_space<vmem>>, vector<1x256xf32>
    %110 = vector.broadcast %109 : vector<1x256xf32> to vector<512x256xf32>
    %111 = arith.addf %108, %110 : vector<512x256xf32>
    %cst_73 = arith.constant 0.000000e+00 : f32
    %112 = vector.broadcast %cst_73 : f32 to vector<512x256xf32>
    %113 = arith.maximumf %111, %112 : vector<512x256xf32>
    %114 = arith.truncf %113 : vector<512x256xf32> to vector<512x256xbf16>
    %c0_74 = arith.constant 0 : index
    %c0_75 = arith.constant 0 : index
    %115 = vector.load %arg17[%c0_74, %c0_75] : memref<256x128xbf16, #tpu.memory_space<vmem>>, vector<256x128xbf16>
    %cst_76 = arith.constant dense<0.000000e+00> : vector<512x128xf32>
    %116 = tpu.matmul %114, %115, %cst_76 {dimension_numbers = #tpu.dot_dimension_numbers<[1], [0], [0], [1], [0, 0, 1, 1], [], []>} : vector<512x256xbf16>, vector<256x128xbf16>, vector<512x128xf32> -> vector<512x128xf32>
    %c0_77 = arith.constant 0 : index
    %c0_78 = arith.constant 0 : index
    %117 = vector.load %arg18[%c0_77, %c0_78] : memref<1x128xf32, #tpu.memory_space<vmem>>, vector<1x128xf32>
    %118 = vector.broadcast %117 : vector<1x128xf32> to vector<512x128xf32>
    %119 = arith.addf %116, %118 : vector<512x128xf32>
    %120 = vector.shape_cast %119 : vector<512x128xf32> to vector<2x256x128xf32>
    %c0_79 = arith.constant 0 : index
    %c0_80 = arith.constant 0 : index
    %c0_81 = arith.constant 0 : index
    %121 = vector.load %arg19[%c0_79, %c0_80, %c0_81] : memref<2x256x128xf32, #tpu.memory_space<vmem>>, vector<2x256x128xf32>
    tpu.vector_store %arg19[%c0_79, %c0_80, %c0_81], %120 {strides = array<i32>} : memref<2x256x128xf32, #tpu.memory_space<vmem>>, vector<2x256x128xf32>,
    return
  }
  func.func @transform_0(%arg0: i32) -> (i32, i32, i32) {
    %c0_i32 = arith.constant 0 : i32
    %c0_i32_0 = arith.constant 0 : i32
    %c0_i32_1 = arith.constant 0 : i32
    return %arg0, %c0_i32, %c0_i32_0 : i32, i32, i32
  }
  func.func @transform_1(%arg0: i32) -> (i32, i32, i32) {
    %c0_i32 = arith.constant 0 : i32
    %c0_i32_0 = arith.constant 0 : i32
    %c0_i32_1 = arith.constant 0 : i32
    return %arg0, %c0_i32, %c0_i32_0 : i32, i32, i32
  }
  func.func @transform_2(%arg0: i32) -> (i32, i32) {
    %c0_i32 = arith.constant 0 : i32
    %c0_i32_0 = arith.constant 0 : i32
    %c0_i32_1 = arith.constant 0 : i32
    return %c0_i32, %c0_i32_0 : i32, i32
  }
  func.func @transform_3(%arg0: i32) -> (i32, i32) {
    %c0_i32 = arith.constant 0 : i32
    %c0_i32_0 = arith.constant 0 : i32
    %c0_i32_1 = arith.constant 0 : i32
    return %c0_i32, %c0_i32_0 : i32, i32
  }
  func.func @transform_4(%arg0: i32) -> (i32, i32) {
    %c0_i32 = arith.constant 0 : i32
    %c0_i32_0 = arith.constant 0 : i32
    %c0_i32_1 = arith.constant 0 : i32
    return %c0_i32, %c0_i32_0 : i32, i32
  }
  func.func @transform_5(%arg0: i32) -> (i32, i32) {
    %c0_i32 = arith.constant 0 : i32
    %c0_i32_0 = arith.constant 0 : i32
    %c0_i32_1 = arith.constant 0 : i32
    return %c0_i32, %c0_i32_0 : i32, i32
  }
  func.func @transform_6(%arg0: i32) -> (i32, i32) {
    %c0_i32 = arith.constant 0 : i32
    %c0_i32_0 = arith.constant 0 : i32
    %c0_i32_1 = arith.constant 0 : i32
    return %c0_i32, %c0_i32_0 : i32, i32
  }
  func.func @transform_7(%arg0: i32) -> (i32, i32) {
    %c0_i32 = arith.constant 0 : i32
    %c0_i32_0 = arith.constant 0 : i32
    %c0_i32_1 = arith.constant 0 : i32
    return %c0_i32, %c0_i32_0 : i32, i32
  }
  func.func @transform_8(%arg0: i32) -> (i32, i32) {
    %c0_i32 = arith.constant 0 : i32
    %c0_i32_0 = arith.constant 0 : i32
    %c0_i32_1 = arith.constant 0 : i32
    return %c0_i32, %c0_i32_0 : i32, i32
  }
  func.func @transform_9(%arg0: i32) -> (i32, i32) {
    %c0_i32 = arith.constant 0 : i32
    %c0_i32_0 = arith.constant 0 : i32
    %c0_i32_1 = arith.constant 0 : i32
    return %c0_i32, %c0_i32_0 : i32, i32
  }
  func.func @transform_10(%arg0: i32) -> (i32, i32) {
    %c0_i32 = arith.constant 0 : i32
    %c0_i32_0 = arith.constant 0 : i32
    %c0_i32_1 = arith.constant 0 : i32
    return %c0_i32, %c0_i32_0 : i32, i32
  }
  func.func @transform_11(%arg0: i32) -> (i32, i32) {
    %c0_i32 = arith.constant 0 : i32
    %c0_i32_0 = arith.constant 0 : i32
    %c0_i32_1 = arith.constant 0 : i32
    return %c0_i32, %c0_i32_0 : i32, i32
  }
  func.func @transform_12(%arg0: i32) -> (i32, i32) {
    %c0_i32 = arith.constant 0 : i32
    %c0_i32_0 = arith.constant 0 : i32
    %c0_i32_1 = arith.constant 0 : i32
    return %c0_i32, %c0_i32_0 : i32, i32
  }
  func.func @transform_13(%arg0: i32) -> (i32, i32) {
    %c0_i32 = arith.constant 0 : i32
    %c0_i32_0 = arith.constant 0 : i32
    %c0_i32_1 = arith.constant 0 : i32
    return %c0_i32, %c0_i32_0 : i32, i32
  }
  func.func @transform_14(%arg0: i32) -> (i32, i32) {
    %c0_i32 = arith.constant 0 : i32
    %c0_i32_0 = arith.constant 0 : i32
    %c0_i32_1 = arith.constant 0 : i32
    return %c0_i32, %c0_i32_0 : i32, i32
  }
  func.func @transform_15(%arg0: i32) -> (i32, i32) {
    %c0_i32 = arith.constant 0 : i32
    %c0_i32_0 = arith.constant 0 : i32
    %c0_i32_1 = arith.constant 0 : i32
    return %c0_i32, %c0_i32_0 : i32, i32
  }
  func.func @transform_16(%arg0: i32) -> (i32, i32) {
    %c0_i32 = arith.constant 0 : i32
    %c0_i32_0 = arith.constant 0 : i32
    %c0_i32_1 = arith.constant 0 : i32
    return %c0_i32, %c0_i32_0 : i32, i32
  }
  func.func @transform_17(%arg0: i32) -> (i32, i32) {
    %c0_i32 = arith.constant 0 : i32
    %c0_i32_0 = arith.constant 0 : i32
    %c0_i32_1 = arith.constant 0 : i32
    return %c0_i32, %c0_i32_0 : i32, i32
  }
  func.func @transform_18(%arg0: i32) -> (i32, i32, i32) {
    %c0_i32 = arith.constant 0 : i32
    %c0_i32_0 = arith.constant 0 : i32
    %c0_i32_1 = arith.constant 0 : i32
    return %arg0, %c0_i32, %c0_i32_0 : i32, i32, i32
  }
}

</mosaic_0001>

<bundles_post_ra>
// kernel: tpu_custom_call.1
= control target key start
LH: loop header
LB: loop body
LE: loop exit
PB: predicated region body
PF: predicated region fallthrough
CT: control target
= control target key end

     0   :  { %s13516_s0 = inlined_call_operand.hbm [shape: bf16[2,64,512], index: 0, kind: input, shape index: {}]   ;;  %s13517_s1 = inlined_call_operand.hbm [shape: bf16[2,256,256], index: 1, kind: input, shape index: {}]   ;;  %s13518_s2 = inlined_call_operand.vmem [shape: bf16[16,8], index: 2, kind: input, shape index: {}]   ;;  %s13519_s3 = inlined_call_operand.vmem [shape: bf16[16,8], index: 3, kind: input, shape index: {}]   ;;  %s13520_s4 = inlined_call_operand.hbm [shape: bf16[512,256], index: 4, kind: input, shape index: {}]   ;;  %s13521_s5 = inlined_call_operand.vmem [shape: f32[1,256], index: 5, kind: input, shape index: {}]   ;;  %s13522_s6 = inlined_call_operand.hbm [shape: bf16[256,256], index: 6, kind: input, shape index: {}]   ;;  %s13523_s7 = inlined_call_operand.hbm [shape: bf16[256,256], index: 7, kind: input, shape index: {}]   ;;  %s13524_s8 = inlined_call_operand.vmem [shape: f32[1,256], index: 8, kind: input, shape index: {}]   ;;  %s13525_s9 = inlined_call_operand.hbm [shape: bf16[256,128], index: 9, kind: input, shape index: {}]   ;;  %s13526_s10 = inlined_call_operand.vmem [shape: f32[1,128], index: 10, kind: input, shape index: {}]   ;;  %s13527_s11 = inlined_call_operand.hbm [shape: bf16[256,256], index: 11, kind: input, shape index: {}]   ;;  %s13528_s12 = inlined_call_operand.hbm [shape: bf16[128,256], index: 12, kind: input, shape index: {}]   ;;  %s13529_s13 = inlined_call_operand.vmem [shape: f32[1,256], index: 13, kind: input, shape index: {}]   ;;  %s13530_s14 = inlined_call_operand.hbm [shape: bf16[256,256], index: 14, kind: input, shape index: {}]   ;;  %s13531_s15 = inlined_call_operand.vmem [shape: f32[1,256], index: 15, kind: input, shape index: {}]   ;;  %s13532_s16 = inlined_call_operand.hbm [shape: bf16[256,128], index: 16, kind: input, shape index: {}]   ;;  %s13533_s17 = inlined_call_operand.vmem [shape: f32[1,128], index: 17, kind: input, shape index: {}]   ;;  %s13534_s18 = inlined_call_operand.hbm [shape: f32[2,256,128], index: 18, kind: output, shape index: {}]  }
   0x1   :  { %13660 = sst [smem:[#allocation113_spill]] %s13516_s0 }
   0x2   :  { %13661 = sst [smem:[#allocation114_spill]] %s13517_s1 }
   0x3   :  { %13662 = sst [smem:[#allocation115_spill]] %s13518_s2 }
   0x4   :  { %13663 = sst [smem:[#allocation116_spill]] %s13533_s17 }
   0x5   :  { %13664 = sst [smem:[#allocation117_spill]] %s13534_s18 }
   0x6   :  { %23 = vsyncpa [#allocation4], 0 }
   0x7   :  { %24 = vsyncpa [#allocation7], 0 }
   0x8   :  { %25 = vsyncpa [#allocation10], 0 }
   0x9   :  { %26 = vsyncpa [#allocation13], 0 }
   0xa   :  { %27 = vsyncpa [#allocation16], 0 }
   0xb   :  { %28 = vsyncpa [#allocation19], 0 }
   0xc   :  { %29 = vsyncpa [#allocation5], 0  ;;  %s10972_s27 = smov [#allocation6]   ;;  %s13665_s0 = sld [smem:[#allocation114_spill]] }
   0xd   :  { %s47_s28 = sshll.u32 %s10972_s27, 4  ;;  %s48_s28 = int_to_ptr.vmem [resolvable:$true] %s47_s28 }
  0x12   :  { %s10716_s19 = scalar_lea.hbm %s13665_s0, 8192 }
  0x13   :  { %p10717_p0 = scmp.ne.s32.totalorder %s13665_s0, %s10716_s19  ;;  %p10720_p1 = scmp.lt.u32.totalorder %s10716_s19, %s13665_s0 }
  0x15   :  { %p10722_p2 = pnand %p10720_p1, %p10717_p0 }
  0x17   :  { %10725 = shalt.err (!%p10722_p2)
}
  0x18   :  { %s10726_s2 = scalar_lea.vmem %s48_s28, 8192  ;;  %p10731_p4 = scmp.lt.s32.totalorder %s48_s28, %s48_s28 }
  0x19   :  { %p10727_p3 = scmp.ne.s32.totalorder %s48_s28, %s10726_s2  ;;  %p10732_p5 = scmp.lt.s32.totalorder %s10726_s2, %s10726_s2 }
  0x1b   :  { %p10733_p6 = por %p10732_p5, %p10731_p4 }
  0x1d   :  { %p10734_p7 = pnand %p10733_p6, %p10727_p3 }
  0x1f   :  { %10737 = shalt.err (!%p10734_p7)
}
  0x20   :  { %s10973_s23 = smov 128   ;;  %s10974_s24 = smov 8  }
  0x21   :  { %53 = dma.hbm_to_vmem [thread:$0]  %s13665_s0, 8192, %s48_s28, [#allocation7], %s10973_s23, %s10973_s23, %s10974_s24  }
  0x22   :  { %s10975_s27 = smov [#allocation9]   ;;  %s10976_s30 = smov [#allocation12]  }
  0x23   :  { %s77_s29 = sshll.u32 %s10975_s27, 4  ;;  %s103_s19 = sshll.u32 %s10976_s30, 4  ;;  %s78_s29 = int_to_ptr.vmem [resolvable:$true] %s77_s29  ;;  %s104_s19 = int_to_ptr.vmem [resolvable:$true] %s103_s19 }
  0x24   :  { %s10738_s21 = scalar_lea.hbm %s13522_s6, 4096 }
  0x25   :  { %p10739_p8 = scmp.ne.s32.totalorder %s13522_s6, %s10738_s21  ;;  %p10742_p9 = scmp.lt.u32.totalorder %s10738_s21, %s13522_s6 }
  0x27   :  { %p10744_p10 = pnand %p10742_p9, %p10739_p8 }
  0x29   :  { %10747 = shalt.err (!%p10744_p10)
}
  0x2a   :  { %s10748_s28 = scalar_lea.vmem %s78_s29, 4096  ;;  %p10753_p12 = scmp.lt.s32.totalorder %s78_s29, %s78_s29 }
  0x2b   :  { %p10749_p11 = scmp.ne.s32.totalorder %s78_s29, %s10748_s28  ;;  %p10754_p13 = scmp.lt.s32.totalorder %s10748_s28, %s10748_s28 }
  0x2d   :  { %p10755_p0 = por %p10754_p13, %p10753_p12 }
  0x2f   :  { %p10756_p1 = pnand %p10755_p0, %p10749_p11 }
  0x31   :  { %10759 = shalt.err (!%p10756_p1)
}
  0x32   :  { %83 = dma.hbm_to_vmem [thread:$0]  %s13522_s6, 4096, %s78_s29, [#allocation10], %s10973_s23, %s10973_s23, %s10974_s24  }
  0x33   :  { %s10760_s18 = scalar_lea.hbm %s13525_s9, 2048 }
  0x34   :  { %p10761_p2 = scmp.ne.s32.totalorder %s13525_s9, %s10760_s18  ;;  %p10764_p3 = scmp.lt.u32.totalorder %s10760_s18, %s13525_s9 }
  0x36   :  { %p10766_p4 = pnand %p10764_p3, %p10761_p2 }
  0x38   :  { %10769 = shalt.err (!%p10766_p4)
}
  0x39   :  { %s10770_s21 = scalar_lea.vmem %s104_s19, 2048  ;;  %p10775_p6 = scmp.lt.s32.totalorder %s104_s19, %s104_s19 }
  0x3a   :  { %p10771_p5 = scmp.ne.s32.totalorder %s104_s19, %s10770_s21  ;;  %p10776_p7 = scmp.lt.s32.totalorder %s10770_s21, %s10770_s21 }
  0x3c   :  { %p10777_p8 = por %p10776_p7, %p10775_p6 }
  0x3e   :  { %p10778_p9 = pnand %p10777_p8, %p10771_p5 }
  0x40   :  { %10781 = shalt.err (!%p10778_p9)
}
  0x41   :  { %s13539_s6 = smov 64   ;;  %s10978_s29 = smov 4  }
  0x42   :  { %109 = dma.hbm_to_vmem [thread:$0]  %s13525_s9, 2048, %s104_s19, [#allocation13], %s13539_s6, %s13539_s6, %s10978_s29  }
  0x43   :  { %s10979_s28 = smov [#allocation15]   ;;  %s10980_s25 = smov [#allocation3]  }
  0x44   :  { %s129_s0 = sshll.u32 %s10979_s28, 4  ;;  %s35_s26 = sshll.u32 %s10980_s25, 4  ;;  %s130_s0 = int_to_ptr.vmem [resolvable:$true] %s129_s0  ;;  %s36_s26 = int_to_ptr.vmem [resolvable:$true] %s35_s26 }
  0x45   :  { %s10782_s27 = scalar_lea.hbm %s13528_s12, 2048 }
  0x46   :  { %p10783_p10 = scmp.ne.s32.totalorder %s13528_s12, %s10782_s27  ;;  %p10786_p11 = scmp.lt.u32.totalorder %s10782_s27, %s13528_s12 }
  0x48   :  { %p10788_p12 = pnand %p10786_p11, %p10783_p10 }
  0x4a   :  { %10791 = shalt.err (!%p10788_p12)
}
  0x4b   :  { %s10792_s9 = scalar_lea.vmem %s130_s0, 2048  ;;  %p10797_p0 = scmp.lt.s32.totalorder %s130_s0, %s130_s0 }
  0x4c   :  { %p10793_p13 = scmp.ne.s32.totalorder %s130_s0, %s10792_s9  ;;  %p10798_p1 = scmp.lt.s32.totalorder %s10792_s9, %s10792_s9 }
  0x4e   :  { %p10799_p2 = por %p10798_p1, %p10797_p0 }
  0x50   :  { %p10800_p3 = pnand %p10799_p2, %p10793_p13 }
  0x52   :  { %10803 = shalt.err (!%p10800_p3)
}
  0x53   :  { %135 = dma.hbm_to_vmem [thread:$0]  %s13528_s12, 2048, %s130_s0, [#allocation16], %s10973_s23, %s10973_s23, %s10974_s24  }
  0x54   :  { %s13666_s25 = sld [smem:[#allocation113_spill]] }
  0x5a   :  { %s10804_s17 = scalar_lea.hbm %s13666_s25, 4096 }
  0x5b   :  { %p10805_p4 = scmp.ne.s32.totalorder %s13666_s25, %s10804_s17  ;;  %p10808_p5 = scmp.lt.u32.totalorder %s10804_s17, %s13666_s25 }
  0x5d   :  { %p10810_p6 = pnand %p10808_p5, %p10805_p4 }
  0x5f   :  { %10813 = shalt.err (!%p10810_p6)
}
  0x60   :  { %s10814_s20 = scalar_lea.vmem %s36_s26, 4096  ;;  %p10819_p8 = scmp.lt.s32.totalorder %s36_s26, %s36_s26 }
  0x61   :  { %p10815_p7 = scmp.ne.s32.totalorder %s36_s26, %s10814_s20  ;;  %p10820_p9 = scmp.lt.s32.totalorder %s10814_s20, %s10814_s20 }
  0x63   :  { %p10821_p10 = por %p10820_p9, %p10819_p8 }
  0x65   :  { %p10822_p11 = pnand %p10821_p10, %p10815_p7 }
  0x67   :  { %10825 = shalt.err (!%p10822_p11)
}
  0x68   :  { %s10981_s12 = smov 256   ;;  %s10982_s0 = smov 16  }
  0x69   :  { %41 = dma.hbm_to_vmem [thread:$0]  %s13666_s25, 4096, %s36_s26, [#allocation4], %s10981_s12, %s10981_s12, %s10982_s0  }
  0x6a   :  { %s10983_s19 = smov [#allocation8]   ;;  %s10984_s2 = smov [#allocation11]  }
  0x6b   :  { %s63_s22 = sshll.u32 %s10983_s19, 4  ;;  %s89_s28 = sshll.u32 %s10984_s2, 4  ;;  %s64_s22 = int_to_ptr.vmem [resolvable:$true] %s63_s22  ;;  %s90_s28 = int_to_ptr.vmem [resolvable:$true] %s89_s28 }
  0x6c   :  { %s10826_s27 = scalar_lea.hbm %s13520_s4, 8192 }
  0x6d   :  { %p10827_p12 = scmp.ne.s32.totalorder %s13520_s4, %s10826_s27  ;;  %p10830_p13 = scmp.lt.u32.totalorder %s10826_s27, %s13520_s4 }
  0x6f   :  { %p10832_p0 = pnand %p10830_p13, %p10827_p12 }
  0x71   :  { %10835 = shalt.err (!%p10832_p0)
}
  0x72   :  { %s10836_s26 = scalar_lea.vmem %s64_s22, 8192  ;;  %p10841_p2 = scmp.lt.s32.totalorder %s64_s22, %s64_s22 }
  0x73   :  { %p10837_p1 = scmp.ne.s32.totalorder %s64_s22, %s10836_s26  ;;  %p10842_p3 = scmp.lt.s32.totalorder %s10836_s26, %s10836_s26 }
  0x75   :  { %p10843_p4 = por %p10842_p3, %p10841_p2 }
  0x77   :  { %p10844_p5 = pnand %p10843_p4, %p10837_p1 }
  0x79   :  { %10847 = shalt.err (!%p10844_p5)
}
  0x7a   :  { %69 = dma.hbm_to_vmem [thread:$0]  %s13520_s4, 8192, %s64_s22, [#allocation7], %s10973_s23, %s10973_s23, %s10974_s24  }
  0x7b   :  { %s10848_s21 = scalar_lea.hbm %s13523_s7, 4096 }
  0x7c   :  { %p10849_p6 = scmp.ne.s32.totalorder %s13523_s7, %s10848_s21  ;;  %p10852_p7 = scmp.lt.u32.totalorder %s10848_s21, %s13523_s7 }
  0x7e   :  { %p10854_p8 = pnand %p10852_p7, %p10849_p6 }
  0x80   :  { %10857 = shalt.err (!%p10854_p8)
}
  0x81   :  { %s10858_s18 = scalar_lea.vmem %s90_s28, 4096  ;;  %p10863_p10 = scmp.lt.s32.totalorder %s90_s28, %s90_s28 }
  0x82   :  { %p10859_p9 = scmp.ne.s32.totalorder %s90_s28, %s10858_s18  ;;  %p10864_p11 = scmp.lt.s32.totalorder %s10858_s18, %s10858_s18 }
  0x84   :  { %p10865_p12 = por %p10864_p11, %p10863_p10 }
  0x86   :  { %p10866_p13 = pnand %p10865_p12, %p10859_p9 }
  0x88   :  { %10869 = shalt.err (!%p10866_p13)
}
  0x89   :  { %95 = dma.hbm_to_vmem [thread:$0]  %s13523_s7, 4096, %s90_s28, [#allocation10], %s10973_s23, %s10973_s23, %s10974_s24  }
  0x8a   :  { %s10985_s27 = smov [#allocation14]   ;;  %s10986_s1 = smov [#allocation17]  }
  0x8b   :  { %s117_s30 = sshll.u32 %s10985_s27, 4  ;;  %s143_s20 = sshll.u32 %s10986_s1, 4  ;;  %s118_s30 = int_to_ptr.vmem [resolvable:$true] %s117_s30  ;;  %s144_s20 = int_to_ptr.vmem [resolvable:$true] %s143_s20 }
  0x8c   :  { %s10870_s12 = scalar_lea.hbm %s13527_s11, 4096 }
  0x8d   :  { %p10871_p0 = scmp.ne.s32.totalorder %s13527_s11, %s10870_s12  ;;  %p10874_p1 = scmp.lt.u32.totalorder %s10870_s12, %s13527_s11 }
  0x8f   :  { %p10876_p2 = pnand %p10874_p1, %p10871_p0 }
  0x91   :  { %10879 = shalt.err (!%p10876_p2)
}
  0x92   :  { %s10880_s7 = scalar_lea.vmem %s118_s30, 4096  ;;  %p10885_p4 = scmp.lt.s32.totalorder %s118_s30, %s118_s30 }
  0x93   :  { %p10881_p3 = scmp.ne.s32.totalorder %s118_s30, %s10880_s7  ;;  %p10886_p5 = scmp.lt.s32.totalorder %s10880_s7, %s10880_s7 }
  0x95   :  { %p10887_p6 = por %p10886_p5, %p10885_p4 }
  0x97   :  { %p10888_p7 = pnand %p10887_p6, %p10881_p3 }
  0x99   :  { %10891 = shalt.err (!%p10888_p7)
}
  0x9a   :  { %123 = dma.hbm_to_vmem [thread:$0]  %s13527_s11, 4096, %s118_s30, [#allocation13], %s10973_s23, %s10973_s23, %s10974_s24  }
  0x9b   :  { %s10892_s18 = scalar_lea.hbm %s13530_s14, 4096 }
  0x9c   :  { %p10893_p8 = scmp.ne.s32.totalorder %s13530_s14, %s10892_s18  ;;  %p10896_p9 = scmp.lt.u32.totalorder %s10892_s18, %s13530_s14 }
  0x9e   :  { %p10898_p10 = pnand %p10896_p9, %p10893_p8 }
  0xa0   :  { %10901 = shalt.err (!%p10898_p10)
}
  0xa1   :  { %s10902_s26 = scalar_lea.vmem %s144_s20, 4096  ;;  %p10907_p12 = scmp.lt.s32.totalorder %s144_s20, %s144_s20 }
  0xa2   :  { %p10903_p11 = scmp.ne.s32.totalorder %s144_s20, %s10902_s26  ;;  %p10908_p13 = scmp.lt.s32.totalorder %s10902_s26, %s10902_s26 }
  0xa4   :  { %p10909_p0 = por %p10908_p13, %p10907_p12 }
  0xa6   :  { %p10910_p1 = pnand %p10909_p0, %p10903_p11 }
  0xa8   :  { %10913 = shalt.err (!%p10910_p1)
}
  0xa9   :  { %149 = dma.hbm_to_vmem [thread:$0]  %s13530_s14, 4096, %s144_s20, [#allocation16], %s10973_s23, %s10973_s23, %s10974_s24  }
  0xaa   :  { %s10987_s25 = smov [#allocation18]   ;;  %s10914_s21 = scalar_lea.hbm %s13532_s16, 2048 }
  0xab   :  { %s157_s12 = sshll.u32 %s10987_s25, 4  ;;  %p10915_p2 = scmp.ne.s32.totalorder %s13532_s16, %s10914_s21  ;;  %s158_s12 = int_to_ptr.vmem [resolvable:$true] %s157_s12 }
  0xac   :  { %p10918_p3 = scmp.lt.u32.totalorder %s10914_s21, %s13532_s16 }
  0xae   :  { %p10920_p4 = pnand %p10918_p3, %p10915_p2 }
  0xb0   :  { %10923 = shalt.err (!%p10920_p4)
}
  0xb1   :  { %s10924_s2 = scalar_lea.vmem %s158_s12, 2048  ;;  %p10929_p6 = scmp.lt.s32.totalorder %s158_s12, %s158_s12 }
  0xb2   :  { %p10925_p5 = scmp.ne.s32.totalorder %s158_s12, %s10924_s2  ;;  %p10930_p7 = scmp.lt.s32.totalorder %s10924_s2, %s10924_s2 }
  0xb4   :  { %p10931_p8 = por %p10930_p7, %p10929_p6 }
  0xb6   :  { %p10932_p9 = pnand %p10931_p8, %p10925_p5 }
  0xb8   :  { %10935 = shalt.err (!%p10932_p9)
}
  0xb9   :  { %s13667_s14 = smov 64  }
  0xba   :  { %163 = dma.hbm_to_vmem [thread:$0]  %s13532_s16, 2048, %s158_s12, [#allocation19], %s13667_s14, %s13667_s14, %s10978_s29  }
  0xbb   :  { %10958 = dma.done.wait [#allocation4], 4096  }
  0xbc   :  { %10959 = vsyncadd [#allocation4], 4294963200 }
  0xbd   :  { %10960 = dma.done.wait [#allocation7], 16384  }
  0xbe   :  { %10961 = vsyncadd [#allocation7], 4294950912 }
  0xbf   :  { %10962 = dma.done.wait [#allocation10], 8192  }
  0xc0   :  { %10963 = vsyncadd [#allocation10], 4294959104 }
  0xc1   :  { %10964 = dma.done.wait [#allocation13], 6144  }
  0xc2   :  { %10965 = vsyncadd [#allocation13], 4294961152 }
  0xc3   :  { %10966 = dma.done.wait [#allocation16], 6144  }
  0xc4   :  { %10967 = vsyncadd [#allocation16], 4294961152 }
  0xc5   :  { %10968 = dma.done.wait [#allocation19], 2048  }
  0xc6   :  { %10969 = vsyncadd [#allocation19], 4294965248  ;;  %v10111_v0 = vld [vmem:[#allocation8 + $0x4] ss:$8 sps:$4 sm:$0xff]   ;;  %v10113_v1 = vld [vmem:[#allocation8] ss:$8 sps:$4 sm:$0xff]  }
  0xc7   :  { %785 = vmatprep.subr.bf16.mxu0 %v10111_v0  ;;  %v10114_v2 = vld [vmem:[#allocation8 + $0x14] ss:$8 sps:$4 sm:$0xff]   ;;  %v10116_v3 = vld [vmem:[#allocation8 + $0x10] ss:$8 sps:$4 sm:$0xff]   ;;  %v10117_v4 = vld [vmem:[#allocation8 + $0x24] ss:$8 sps:$4 sm:$0xff]  }
  0xc8   :  { %786 = vmatpush1.bf16.msra.mxu0 %v10113_v1  ;;  %v10119_v5 = vld [vmem:[#allocation8 + $0x20] ss:$8 sps:$4 sm:$0xff]   ;;  %v10120_v6 = vld [vmem:[#allocation8 + $0x34] ss:$8 sps:$4 sm:$0xff]   ;;  %v10122_v7 = vld [vmem:[#allocation8 + $0x30] ss:$8 sps:$4 sm:$0xff]  }
  0xc9   :  { %787 = vmatprep.subr.bf16.mxu0 %v10114_v2  ;;  %v10123_v8 = vld [vmem:[#allocation8 + $0x44] ss:$8 sps:$4 sm:$0xff]   ;;  %v10125_v9 = vld [vmem:[#allocation8 + $0x40] ss:$8 sps:$4 sm:$0xff]   ;;  %v10126_v10 = vld [vmem:[#allocation8 + $0x54] ss:$8 sps:$4 sm:$0xff]  }
  0xca   :  { %v10128_v11 = vld [vmem:[#allocation8 + $0x50] ss:$8 sps:$4 sm:$0xff]   ;;  %v10129_v12 = vld [vmem:[#allocation8 + $0x64] ss:$8 sps:$4 sm:$0xff]   ;;  %v10131_v14 = vld [vmem:[#allocation8 + $0x60] ss:$8 sps:$4 sm:$0xff]  }
  0xcb   :  { %v10161_v13 = vld [vmem:[#allocation3 + $0x4] ss:$16 sps:$4 sm:$0xff]   ;;  %v10134_v16 = vld [vmem:[#allocation8 + $0x70] ss:$8 sps:$4 sm:$0xff]   ;;  %v10137_v18 = vld [vmem:[#allocation8 + $0x80] ss:$8 sps:$4 sm:$0xff]  }
  0xcc   :  { %788 = vmatpush1.bf16.msra.mxu0 %v10116_v3  ;;  %v10132_v15 = vld [vmem:[#allocation8 + $0x74] ss:$8 sps:$4 sm:$0xff]   ;;  %817 = vmatprep.mubr.bf16.mxu0 %v10161_v13  ;;  %v10135_v17 = vld [vmem:[#allocation8 + $0x84] ss:$8 sps:$4 sm:$0xff]   ;;  %v10140_v20 = vld [vmem:[#allocation8 + $0x90] ss:$8 sps:$4 sm:$0xff]  }
  0xcd   :  { %789 = vmatprep.subr.bf16.mxu0 %v10117_v4  ;;  %v10138_v19 = vld [vmem:[#allocation8 + $0x94] ss:$8 sps:$4 sm:$0xff]   ;;  %v10141_v21 = vld [vmem:[#allocation8 + $0xa4] ss:$8 sps:$4 sm:$0xff]   ;;  %v10143_v22 = vld [vmem:[#allocation8 + $0xa0] ss:$8 sps:$4 sm:$0xff]  }
  0xce   :  { %v10144_v23 = vld [vmem:[#allocation8 + $0xb4] ss:$8 sps:$4 sm:$0xff]   ;;  %v10146_v24 = vld [vmem:[#allocation8 + $0xb0] ss:$8 sps:$4 sm:$0xff]   ;;  %v10147_v25 = vld [vmem:[#allocation8 + $0xc4] ss:$8 sps:$4 sm:$0xff]  }
  0xcf   :  { %v10149_v26 = vld [vmem:[#allocation8 + $0xc0] ss:$8 sps:$4 sm:$0xff]   ;;  %v10150_v27 = vld [vmem:[#allocation8 + $0xd4] ss:$8 sps:$4 sm:$0xff]   ;;  %v10152_v28 = vld [vmem:[#allocation8 + $0xd0] ss:$8 sps:$4 sm:$0xff]  }
  0xd0   :  { %790 = vmatpush1.bf16.msra.mxu0 %v10119_v5  ;;  %v10153_v29 = vld [vmem:[#allocation8 + $0xe4] ss:$8 sps:$4 sm:$0xff]   ;;  %v10155_v30 = vld [vmem:[#allocation8 + $0xe0] ss:$8 sps:$4 sm:$0xff]   ;;  %v10156_v31 = vld [vmem:[#allocation8 + $0xf4] ss:$8 sps:$4 sm:$0xff]  }
  0xd1   :  { %791 = vmatprep.subr.bf16.mxu0 %v10120_v6  ;;  %v10158_v32 = vld [vmem:[#allocation8 + $0xf0] ss:$8 sps:$4 sm:$0xff]   ;;  %v10164_v33 = vld [vmem:[#allocation8 + $0x104] ss:$8 sps:$4 sm:$0xff]   ;;  %v10162_v35 = vld [vmem:[#allocation8 + $0x100] ss:$8 sps:$4 sm:$0xff]  }
  0xd2   :  { %v10159_v34 = vld [vmem:[#allocation3] ss:$16 sps:$4 sm:$0xff]   ;;  %v10167_v36 = vld [vmem:[#allocation8 + $0x114] ss:$8 sps:$4 sm:$0xff]   ;;  %v10255_v38 = vld [vmem:[#allocation9 + $0x4] ss:$8 sps:$4 sm:$0xff]  }
  0xd3   :  { %v10168_v37 = vld [vmem:[#allocation3 + $0x24] ss:$16 sps:$4 sm:$0xff]   ;;  %v10257_v39 = vld [vmem:[#allocation9] ss:$8 sps:$4 sm:$0xff]   ;;  %1270 = vmatprep.subr.bf16.mxu1 %v10255_v38  ;;  %v10165_v41 = vld [vmem:[#allocation8 + $0x110] ss:$8 sps:$4 sm:$0xff]  }
  0xd4   :  { %792 = vmatpush1.bf16.msra.mxu0 %v10122_v7  ;;  %v10258_v40 = vld [vmem:[#allocation9 + $0x14] ss:$8 sps:$4 sm:$0xff]   ;;  %v10173_v42 = vld [vmem:[#allocation8 + $0x124] ss:$8 sps:$4 sm:$0xff]   ;;  %v10170_v43 = vld [vmem:[#allocation3 + $0x20] ss:$16 sps:$4 sm:$0xff]   ;;  %1271 = vmatpush1.bf16.msra.mxu1 %v10257_v39 }
  0xd5   :  { %793 = vmatprep.subr.bf16.mxu0 %v10123_v8  ;;  %v10260_v44 = vld [vmem:[#allocation9 + $0x10] ss:$8 sps:$4 sm:$0xff]   ;;  %v10171_v45 = vld [vmem:[#allocation8 + $0x120] ss:$8 sps:$4 sm:$0xff]   ;;  %v10177_v46 = vld [vmem:[#allocation3 + $0x44] ss:$16 sps:$4 sm:$0xff]   ;;  %1272 = vmatprep.subr.bf16.mxu1 %v10258_v40 }
  0xd6   :  { %v10261_v47 = vld [vmem:[#allocation9 + $0x24] ss:$8 sps:$4 sm:$0xff]   ;;  %v10176_v48 = vld [vmem:[#allocation8 + $0x134] ss:$8 sps:$4 sm:$0xff]   ;;  %v10263_v49 = vld [vmem:[#allocation9 + $0x20] ss:$8 sps:$4 sm:$0xff]  }
  0xd7   :  { %v10264_v50 = vld [vmem:[#allocation9 + $0x34] ss:$8 sps:$4 sm:$0xff]   ;;  %v10174_v51 = vld [vmem:[#allocation8 + $0x130] ss:$8 sps:$4 sm:$0xff]   ;;  %v10182_v52 = vld [vmem:[#allocation8 + $0x144] ss:$8 sps:$4 sm:$0xff]  }
  0xd8   :  { %794 = vmatpush1.bf16.msra.mxu0 %v10125_v9  ;;  %1273 = vmatpush1.bf16.msra.mxu1 %v10260_v44  ;;  %v10179_v53 = vld [vmem:[#allocation3 + $0x40] ss:$16 sps:$4 sm:$0xff]   ;;  %v10186_v55 = vld [vmem:[#allocation3 + $0x64] ss:$16 sps:$4 sm:$0xff]   ;;  %v10254_v38 = vld [vmem:[#allocation3 + $0xe8] ss:$16 sps:$4 sm:$0xff]  }
  0xd9   :  { %795 = vmatprep.subr.bf16.mxu0 %v10126_v10  ;;  %1274 = vmatprep.subr.bf16.mxu1 %v10261_v47  ;;  %v10180_v54 = vld [vmem:[#allocation8 + $0x140] ss:$8 sps:$4 sm:$0xff]   ;;  %v10185_v56 = vld [vmem:[#allocation8 + $0x154] ss:$8 sps:$4 sm:$0xff]   ;;  %v10183_v57 = vld [vmem:[#allocation8 + $0x150] ss:$8 sps:$4 sm:$0xff]  }
  0xda   :  { %v10191_v58 = vld [vmem:[#allocation8 + $0x164] ss:$8 sps:$4 sm:$0xff]   ;;  %v10188_v59 = vld [vmem:[#allocation3 + $0x60] ss:$16 sps:$4 sm:$0xff]   ;;  %v10194_v62 = vld [vmem:[#allocation8 + $0x174] ss:$8 sps:$4 sm:$0xff]  }
  0xdb   :  { %v10189_v60 = vld [vmem:[#allocation8 + $0x160] ss:$8 sps:$4 sm:$0xff]   ;;  %v10195_v61 = vld [vmem:[#allocation3 + $0x84] ss:$16 sps:$4 sm:$0xff]   ;;  %v10192_v63 = vld [vmem:[#allocation8 + $0x170] ss:$8 sps:$4 sm:$0xff]  }
  0xdc   :  { %796 = vmatpush1.bf16.msra.mxu0 %v10128_v11  ;;  %1275 = vmatpush1.bf16.msra.mxu1 %v10263_v49  ;;  %v10200_v0 = vld [vmem:[#allocation8 + $0x184] ss:$8 sps:$4 sm:$0xff]   ;;  %v10197_v1 = vld [vmem:[#allocation3 + $0x80] ss:$16 sps:$4 sm:$0xff]   ;;  %v10203_v4 = vld [vmem:[#allocation8 + $0x194] ss:$8 sps:$4 sm:$0xff]  }
  0xdd   :  { %797 = vmatprep.subr.bf16.mxu0 %v10129_v12  ;;  %1276 = vmatprep.subr.bf16.mxu1 %v10264_v50  ;;  %v10198_v2 = vld [vmem:[#allocation8 + $0x180] ss:$8 sps:$4 sm:$0xff]   ;;  %v10204_v3 = vld [vmem:[#allocation3 + $0xa4] ss:$16 sps:$4 sm:$0xff]   ;;  %v10201_v5 = vld [vmem:[#allocation8 + $0x190] ss:$8 sps:$4 sm:$0xff]  }
  0xde   :  { %v10209_v6 = vld [vmem:[#allocation8 + $0x1a4] ss:$8 sps:$4 sm:$0xff]   ;;  %v10206_v7 = vld [vmem:[#allocation3 + $0xa0] ss:$16 sps:$4 sm:$0xff]   ;;  %v10212_v10 = vld [vmem:[#allocation8 + $0x1b4] ss:$8 sps:$4 sm:$0xff]  }
  0xdf   :  { %v10207_v8 = vld [vmem:[#allocation8 + $0x1a0] ss:$8 sps:$4 sm:$0xff]   ;;  %v10213_v9 = vld [vmem:[#allocation3 + $0xc4] ss:$16 sps:$4 sm:$0xff]   ;;  %v10210_v11 = vld [vmem:[#allocation8 + $0x1b0] ss:$8 sps:$4 sm:$0xff]  }
  0xe0   :  { %798 = vmatpush1.bf16.msra.mxu0 %v10131_v14  ;;  %v10218_v12 = vld [vmem:[#allocation8 + $0x1c4] ss:$8 sps:$4 sm:$0xff]   ;;  %v10215_v13 = vld [vmem:[#allocation3 + $0xc0] ss:$16 sps:$4 sm:$0xff]   ;;  %v10282_v50 = vld [vmem:[#allocation9 + $0x94] ss:$8 sps:$4 sm:$0xff]  }
  0xe1   :  { %799 = vmatprep.subr.bf16.mxu0 %v10132_v15  ;;  %v10216_v14 = vld [vmem:[#allocation8 + $0x1c0] ss:$8 sps:$4 sm:$0xff]   ;;  %v10222_v15 = vld [vmem:[#allocation3 + $0xe4] ss:$16 sps:$4 sm:$0xff]   ;;  %v10266_v39 = vld [vmem:[#allocation9 + $0x30] ss:$8 sps:$4 sm:$0xff]  }
  0xe2   :  { %1277 = vmatpush1.bf16.msra.mxu1 %v10266_v39  ;;  %v10267_v40 = vld [vmem:[#allocation9 + $0x44] ss:$8 sps:$4 sm:$0xff]   ;;  %v10278_v47 = vld [vmem:[#allocation9 + $0x70] ss:$8 sps:$4 sm:$0xff]   ;;  %v10281_v49 = vld [vmem:[#allocation9 + $0x80] ss:$8 sps:$4 sm:$0xff]  }
  0xe3   :  { %1278 = vmatprep.subr.bf16.mxu1 %v10267_v40  ;;  %v10273_v44 = vld [vmem:[#allocation9 + $0x64] ss:$8 sps:$4 sm:$0xff]   ;;  %vm1623_vm0 = vcmask 1043456   ;;  %s13675_s27 = sld [smem:[#allocation115_spill]]  ;;  %vm1619_vm1 = vcmask 64512   ;;  %s13997_s2 = sld [smem:[#allocation116_spill]] }
  0xe4   :  { %800 = vmatpush1.bf16.msra.mxu0 %v10134_v16  ;;  %v10221_v16 = vld [vmem:[#allocation8 + $0x1d4] ss:$8 sps:$4 sm:$0xff]   ;;  %s10991_s14 = smov [#allocation20]  }
  0xe5   :  { %801 = vmatprep.subr.bf16.mxu0 %v10135_v17  ;;  %v10219_v17 = vld [vmem:[#allocation8 + $0x1d0] ss:$8 sps:$4 sm:$0xff]   ;;  %s9366_s20 = sshll.u32 %s10991_s14, 4  ;;  %s9367_s20 = int_to_ptr.vmem [resolvable:$true] %s9366_s20 }
  0xe6   :  { %s10936_s17 = scalar_lea.vmem %s9367_s20, 8192  ;;  %p10941_p11 = scmp.lt.s32.totalorder %s9367_s20, %s9367_s20 }
  0xe7   :  { %p10937_p10 = scmp.ne.s32.totalorder %s9367_s20, %s10936_s17  ;;  %p10942_p12 = scmp.lt.s32.totalorder %s10936_s17, %s10936_s17 }
  0xe8   :  { %802 = vmatpush1.bf16.msra.mxu0 %v10137_v18  ;;  %v10227_v18 = vld [vmem:[#allocation8 + $0x1e4] ss:$8 sps:$4 sm:$0xff]  }
  0xe9   :  { %803 = vmatprep.subr.bf16.mxu0 %v10138_v19  ;;  %v10224_v19 = vld [vmem:[#allocation3 + $0xe0] ss:$16 sps:$4 sm:$0xff]   ;;  %p10943_p13 = por %p10942_p12, %p10941_p11 }
  0xeb   :  { %p10944_p0 = pnand %p10943_p13, %p10937_p10 }
  0xec   :  { %804 = vmatpush1.bf16.msra.mxu0 %v10140_v20  ;;  %v10225_v20 = vld [vmem:[#allocation8 + $0x1e0] ss:$8 sps:$4 sm:$0xff]  }
  0xed   :  { %805 = vmatprep.subr.bf16.mxu0 %v10141_v21  ;;  %v10233_v21 = vld [vmem:[#allocation3 + $0xc] ss:$16 sps:$4 sm:$0xff]  }
  0xf0   :  { %806 = vmatpush1.bf16.msra.mxu0 %v10143_v22  ;;  %v10230_v22 = vld [vmem:[#allocation8 + $0x1f4] ss:$8 sps:$4 sm:$0xff]  }
  0xf1   :  { %807 = vmatprep.subr.bf16.mxu0 %v10144_v23  ;;  %v10228_v23 = vld [vmem:[#allocation8 + $0x1f0] ss:$8 sps:$4 sm:$0xff]  }
  0xf4   :  { %808 = vmatpush1.bf16.msra.mxu0 %v10146_v24  ;;  %v10231_v24 = vld [vmem:[#allocation3 + $0x8] ss:$16 sps:$4 sm:$0xff]  }
  0xf5   :  { %809 = vmatprep.subr.bf16.mxu0 %v10147_v25  ;;  %v10234_v25 = vld [vmem:[#allocation3 + $0x2c] ss:$16 sps:$4 sm:$0xff]  }
  0xf8   :  { %810 = vmatpush1.bf16.msra.mxu0 %v10149_v26  ;;  %v10236_v26 = vld [vmem:[#allocation3 + $0x28] ss:$16 sps:$4 sm:$0xff]  }
  0xf9   :  { %811 = vmatprep.subr.bf16.mxu0 %v10150_v27  ;;  %v10237_v27 = vld [vmem:[#allocation3 + $0x4c] ss:$16 sps:$4 sm:$0xff]  }
  0xfc   :  { %812 = vmatpush1.bf16.msra.mxu0 %v10152_v28  ;;  %v10239_v28 = vld [vmem:[#allocation3 + $0x48] ss:$16 sps:$4 sm:$0xff]  }
  0xfd   :  { %813 = vmatprep.subr.bf16.mxu0 %v10153_v29  ;;  %v10240_v29 = vld [vmem:[#allocation3 + $0x6c] ss:$16 sps:$4 sm:$0xff]  }
 0x100   :  { %814 = vmatpush1.bf16.msra.mxu0 %v10155_v30  ;;  %v10242_v30 = vld [vmem:[#allocation3 + $0x68] ss:$16 sps:$4 sm:$0xff]  }
 0x101   :  { %815 = vmatprep.subr.bf16.mxu0 %v10156_v31  ;;  %v10243_v31 = vld [vmem:[#allocation3 + $0x8c] ss:$16 sps:$4 sm:$0xff]  }
 0x104   :  { %816 = vmatpush1.bf16.msra.mxu0 %v10158_v32  ;;  %v10245_v32 = vld [vmem:[#allocation3 + $0x88] ss:$16 sps:$4 sm:$0xff]  }
 0x105   :  { %898 = vmatprep.subr.bf16.mxu0 %v10164_v33  ;;  %v10246_v33 = vld [vmem:[#allocation3 + $0xac] ss:$16 sps:$4 sm:$0xff]  }
 0x107   :  { %818 = vmatmul.mubr.bf16.vlgmr.msra.gmra.mrb[0].mxu0 %v10159_v34  ;;  %v10248_v34 = vld [vmem:[#allocation3 + $0xa8] ss:$16 sps:$4 sm:$0xff]  }
 0x108   :  { %899 = vmatpush1.bf16.msra.mxu0 %v10162_v35  ;;  %827 = vmatprep.mubr.bf16.mxu0 %v10168_v37  ;;  %v10249_v35 = vld [vmem:[#allocation3 + $0xcc] ss:$16 sps:$4 sm:$0xff]  }
 0x109   :  { %900 = vmatprep.subr.bf16.mxu0 %v10167_v36  ;;  %v10251_v36 = vld [vmem:[#allocation3 + $0xc8] ss:$16 sps:$4 sm:$0xff]   ;;  %v10252_v37 = vld [vmem:[#allocation3 + $0xec] ss:$16 sps:$4 sm:$0xff]  }
 0x10c   :  { %901 = vmatpush1.bf16.msra.mxu0 %v10165_v41  ;;  %v10269_v41 = vld [vmem:[#allocation9 + $0x40] ss:$8 sps:$4 sm:$0xff]  }
 0x10d   :  { %902 = vmatprep.subr.bf16.mxu0 %v10173_v42  ;;  %1279 = vmatpush1.bf16.msra.mxu1 %v10269_v41  ;;  %v10270_v42 = vld [vmem:[#allocation9 + $0x54] ss:$8 sps:$4 sm:$0xff]  }
 0x10e   :  { %1280 = vmatprep.subr.bf16.mxu1 %v10270_v42 }
 0x10f   :  { %828 = vmatmul.mubr.bf16.gmra.mrb[4].mxu0 %v10170_v43  ;;  %v10272_v43 = vld [vmem:[#allocation9 + $0x50] ss:$8 sps:$4 sm:$0xff]  }
 0x110   :  { %903 = vmatpush1.bf16.msra.mxu0 %v10171_v45  ;;  %837 = vmatprep.mubr.bf16.mxu0 %v10177_v46  ;;  %v10275_v45 = vld [vmem:[#allocation9 + $0x60] ss:$8 sps:$4 sm:$0xff]   ;;  %v10276_v46 = vld [vmem:[#allocation9 + $0x74] ss:$8 sps:$4 sm:$0xff]  }
 0x111   :  { %904 = vmatprep.subr.bf16.mxu0 %v10176_v48  ;;  %1281 = vmatpush1.bf16.msra.mxu1 %v10272_v43  ;;  %v10279_v48 = vld [vmem:[#allocation9 + $0x84] ss:$8 sps:$4 sm:$0xff]  }
 0x112   :  { %1282 = vmatprep.subr.bf16.mxu1 %v10273_v44 }
 0x114   :  { %905 = vmatpush1.bf16.msra.mxu0 %v10174_v51  ;;  %v10284_v51 = vld [vmem:[#allocation9 + $0x90] ss:$8 sps:$4 sm:$0xff]  }
 0x115   :  { %906 = vmatprep.subr.bf16.mxu0 %v10182_v52  ;;  %1283 = vmatpush1.bf16.msra.mxu1 %v10275_v45  ;;  %v10285_v52 = vld [vmem:[#allocation9 + $0xa4] ss:$8 sps:$4 sm:$0xff]  }
 0x116   :  { %1284 = vmatprep.subr.bf16.mxu1 %v10276_v46 }
 0x117   :  { %838 = vmatmul.mubr.bf16.gmra.mrb[8].mxu0 %v10179_v53  ;;  %v10287_v53 = vld [vmem:[#allocation9 + $0xa0] ss:$8 sps:$4 sm:$0xff]  }
 0x118   :  { %907 = vmatpush1.bf16.msra.mxu0 %v10180_v54  ;;  %847 = vmatprep.mubr.bf16.mxu0 %v10186_v55  ;;  %v10288_v54 = vld [vmem:[#allocation9 + $0xb4] ss:$8 sps:$4 sm:$0xff]   ;;  %v10290_v55 = vld [vmem:[#allocation9 + $0xb0] ss:$8 sps:$4 sm:$0xff]  }
 0x119   :  { %908 = vmatprep.subr.bf16.mxu0 %v10185_v56  ;;  %1285 = vmatpush1.bf16.msra.mxu1 %v10278_v47  ;;  %v10291_v56 = vld [vmem:[#allocation9 + $0xc4] ss:$8 sps:$4 sm:$0xff]  }
 0x11a   :  { %1286 = vmatprep.subr.bf16.mxu1 %v10279_v48 }
 0x11c   :  { %909 = vmatpush1.bf16.msra.mxu0 %v10183_v57  ;;  %v10293_v57 = vld [vmem:[#allocation9 + $0xc0] ss:$8 sps:$4 sm:$0xff]  }
 0x11d   :  { %910 = vmatprep.subr.bf16.mxu0 %v10191_v58  ;;  %1287 = vmatpush1.bf16.msra.mxu1 %v10281_v49  ;;  %v10294_v58 = vld [vmem:[#allocation9 + $0xd4] ss:$8 sps:$4 sm:$0xff]  }
 0x11e   :  { %1288 = vmatprep.subr.bf16.mxu1 %v10282_v50 }
 0x11f   :  { %848 = vmatmul.mubr.bf16.gmra.mrb[12].mxu0 %v10188_v59  ;;  %v10296_v59 = vld [vmem:[#allocation9 + $0xd0] ss:$8 sps:$4 sm:$0xff]  }
 0x120   :  { %911 = vmatpush1.bf16.msra.mxu0 %v10189_v60  ;;  %857 = vmatprep.mubr.bf16.mxu0 %v10195_v61  ;;  %v10297_v60 = vld [vmem:[#allocation9 + $0xe4] ss:$8 sps:$4 sm:$0xff]   ;;  %v10299_v61 = vld [vmem:[#allocation9 + $0xe0] ss:$8 sps:$4 sm:$0xff]  }
 0x121   :  { %912 = vmatprep.subr.bf16.mxu0 %v10194_v62  ;;  %1289 = vmatpush1.bf16.msra.mxu1 %v10284_v51  ;;  %v10300_v62 = vld [vmem:[#allocation9 + $0xf4] ss:$8 sps:$4 sm:$0xff]  }
 0x122   :  { %1290 = vmatprep.subr.bf16.mxu1 %v10285_v52 }
 0x124   :  { %913 = vmatpush1.bf16.msra.mxu0 %v10192_v63  ;;  %v10302_v63 = vld [vmem:[#allocation9 + $0xf0] ss:$8 sps:$4 sm:$0xff]  }
 0x125   :  { %914 = vmatprep.subr.bf16.mxu0 %v10200_v0  ;;  %1291 = vmatpush1.bf16.msra.mxu1 %v10287_v53  ;;  %v10305_v0 = vld [vmem:[#allocation11 + $0x4] ss:$8 sps:$4 sm:$0xff]  }
 0x126   :  { %1292 = vmatprep.subr.bf16.mxu1 %v10288_v54 }
 0x127   :  { %858 = vmatmul.mubr.bf16.gmra.mrb[16].mxu0 %v10197_v1  ;;  %v295_v1 = vlaneseq }
 0x128   :  { %915 = vmatpush1.bf16.msra.mxu0 %v10198_v2  ;;  %867 = vmatprep.mubr.bf16.mxu0 %v10204_v3 }
 0x129   :  { %916 = vmatprep.subr.bf16.mxu0 %v10203_v4  ;;  %1293 = vmatpush1.bf16.msra.mxu1 %v10290_v55  ;;  %v11234_v2 = vshrl.u32 %v295_v1, 7 }
 0x12a   :  { %1294 = vmatprep.subr.bf16.mxu1 %v10291_v56 }
 0x12b   :  { %v11237_v4 = vsub.s32 0, %v11234_v2 }
 0x12c   :  { %917 = vmatpush1.bf16.msra.mxu0 %v10201_v5 }
 0x12d   :  { %918 = vmatprep.subr.bf16.mxu0 %v10209_v6  ;;  %1295 = vmatpush1.bf16.msra.mxu1 %v10293_v57  ;;  %13668 = vst [vmem:[#allocation28_spill] sm:$0xff] %v11237_v4  ;;  %v293_v6 = vld [vmem:[%s13521_s5] sm:$0x3] }
 0x12e   :  { %1296 = vmatprep.subr.bf16.mxu1 %v10294_v58 }
 0x12f   :  { %868 = vmatmul.mubr.bf16.gmra.mrb[20].mxu0 %v10206_v7  ;;  %v11243_v7 = vsub.s32 1, %v11234_v2 }
 0x130   :  { %919 = vmatpush1.bf16.msra.mxu0 %v10207_v8  ;;  %877 = vmatprep.mubr.bf16.mxu0 %v10213_v9 }
 0x131   :  { %920 = vmatprep.subr.bf16.mxu0 %v10212_v10  ;;  %1297 = vmatpush1.bf16.msra.mxu1 %v10296_v59  ;;  %13669 = vst [vmem:[#allocation29_spill] sm:$0xff] %v11243_v7  ;;  %v11246_v10 = vrot.slane %v293_v6, %v11237_v4 }
 0x132   :  { %1298 = vmatprep.subr.bf16.mxu1 %v10297_v60 }
 0x134   :  { %921 = vmatpush1.bf16.msra.mxu0 %v10210_v11  ;;  %v11249_v11 = vrot.slane %v293_v6, %v11243_v7 }
 0x135   :  { %922 = vmatprep.subr.bf16.mxu0 %v10218_v12  ;;  %1299 = vmatpush1.bf16.msra.mxu1 %v10299_v61 }
 0x136   :  { %1300 = vmatprep.subr.bf16.mxu1 %v10300_v62 }
 0x137   :  { %878 = vmatmul.mubr.bf16.gmra.mrb[24].mxu0 %v10215_v13 }
 0x138   :  { %923 = vmatpush1.bf16.msra.mxu0 %v10216_v14  ;;  %887 = vmatprep.mubr.bf16.mxu0 %v10222_v15 }
 0x139   :  { %924 = vmatprep.subr.bf16.mxu0 %v10221_v16  ;;  %1301 = vmatpush1.bf16.msra.mxu1 %v10302_v63 }
 0x13a   :  { %1519 = vmatprep.subr.bf16.mxu1 %v10305_v0 }
 0x13c   :  { %925 = vmatpush1.bf16.msra.mxu0 %v10219_v17 }
 0x13d   :  { %926 = vmatprep.subr.bf16.mxu0 %v10227_v18 }
 0x13f   :  { %888 = vmatmul.mubr.bf16.gmra.mrb[28].mxu0 %v10224_v19 }
 0x140   :  { %927 = vmatpush1.bf16.msra.mxu0 %v10225_v20  ;;  %930 = vmatprep.mubr.bf16.mxu0 %v10233_v21 }
 0x141   :  { %928 = vmatprep.subr.bf16.mxu0 %v10230_v22 }
 0x144   :  { %929 = vmatpush1.bf16.msra.mxu0 %v10228_v23 }
 0x147   :  { %931 = vmatmul.mubr.bf16.vlgmr.msra.gmra.mrb[0].mxu0 %v10231_v24 }
 0x148   :  { %940 = vmatprep.mubr.bf16.mxu0 %v10234_v25 }
 0x14f   :  { %941 = vmatmul.mubr.bf16.gmra.mrb[4].mxu0 %v10236_v26 }
 0x150   :  { %950 = vmatprep.mubr.bf16.mxu0 %v10237_v27 }
 0x157   :  { %951 = vmatmul.mubr.bf16.gmra.mrb[8].mxu0 %v10239_v28 }
 0x158   :  { %960 = vmatprep.mubr.bf16.mxu0 %v10240_v29 }
 0x15f   :  { %961 = vmatmul.mubr.bf16.gmra.mrb[12].mxu0 %v10242_v30 }
 0x160   :  { %970 = vmatprep.mubr.bf16.mxu0 %v10243_v31 }
 0x167   :  { %971 = vmatmul.mubr.bf16.gmra.mrb[16].mxu0 %v10245_v32 }
 0x168   :  { %980 = vmatprep.mubr.bf16.mxu0 %v10246_v33 }
 0x16f   :  { %981 = vmatmul.mubr.bf16.gmra.mrb[20].mxu0 %v10248_v34 }
 0x170   :  { %990 = vmatprep.mubr.bf16.mxu0 %v10249_v35 }
 0x177   :  { %991 = vmatmul.mubr.bf16.gmra.mrb[24].mxu0 %v10251_v36 }
 0x178   :  { %1000 = vmatprep.mubr.bf16.mxu0 %v10252_v37 }
 0x17f   :  { %1001 = vmatmul.mubr.bf16.gmra.mrb[28].mxu0 %v10254_v38 }
 0x21a   :  { %v932_v3 = vpop.f32.mrb[0].mxu0 }
 0x21b   :  { %v934_v5 = vpop.f32.mrb[1].mxu0  ;;  %v11258_v15 = vadd.f32 %v932_v3, %v11246_v10 }
 0x21c   :  { %v936_v8 = vpop.f32.mrb[2].mxu0  ;;  %v11264_v18 = vadd.f32 %v934_v5, %v11249_v11 }
 0x21d   :  { %v938_v9 = vpop.f32.mrb[3].mxu0  ;;  %v11252_v12 = vadd.f32 %v936_v8, %v11246_v10  ;;  %v1011_v24 = vmax.f32 %v11258_v15, 0.0 }
 0x21e   :  { %v11255_v13 = vadd.f32 %v938_v9, %v11249_v11  ;;  %v1012_v27 = vmax.f32 %v11264_v18, 0.0 }
 0x21f   :  { %v1013_v21 = vmax.f32 %v11252_v12, 0.0 }
 0x220   :  { %v1014_v23 = vmax.f32 %v11255_v13, 0.0  ;;  %v10351_v13 = vld [vmem:[%s13675_s27] sm:$0xff]  }
 0x221   :  { %v1047_v30 = vadd.f32 %v1013_v21, %v1011_v24 }
 0x222   :  { %v942_v14 = vpop.f32.mrb[4].mxu0  ;;  %v1060_v31 = vadd.f32 %v1014_v23, %v1012_v27 }
 0x223   :  { %v11261_v16 = vadd.f32 %v942_v14, %v11246_v10  ;;  %v944_v17 = vpop.f32.mrb[5].mxu0 }
 0x224   :  { %v11267_v19 = vadd.f32 %v944_v17, %v11249_v11  ;;  %v946_v20 = vpop.f32.mrb[6].mxu0 }
 0x225   :  { %v948_v22 = vpop.f32.mrb[7].mxu0  ;;  %v1015_v25 = vmax.f32 %v11261_v16, 0.0  ;;  %v11274_v26 = vadd.f32 %v946_v20, %v11246_v10 }
 0x226   :  { %v1016_v28 = vmax.f32 %v11267_v19, 0.0  ;;  %v11279_v29 = vadd.f32 %v948_v22, %v11249_v11 }
 0x227   :  { %v1048_v33 = vadd.f32 %v1047_v30, %v1015_v25  ;;  %v13546_v34 = vmax.f32 %v11274_v26, 0.0 }
 0x228   :  { %v1061_v37 = vadd.f32 %v1060_v31, %v1016_v28  ;;  %v1018_v38 = vmax.f32 %v11279_v29, 0.0 }
 0x229   :  { %v1049_v46 = vadd.f32 %v1048_v33, %v13546_v34 }
 0x22a   :  { %v952_v32 = vpop.f32.mrb[8].mxu0  ;;  %v1062_v47 = vadd.f32 %v1061_v37, %v1018_v38 }
 0x22b   :  { %v11293_v35 = vadd.f32 %v952_v32, %v11246_v10  ;;  %v954_v36 = vpop.f32.mrb[9].mxu0 }
 0x22c   :  { %v11299_v39 = vadd.f32 %v954_v36, %v11249_v11  ;;  %v956_v40 = vpop.f32.mrb[10].mxu0 }
 0x22d   :  { %v13544_v41 = vmax.f32 %v11293_v35, 0.0  ;;  %v11303_v42 = vadd.f32 %v956_v40, %v11246_v10  ;;  %v958_v43 = vpop.f32.mrb[11].mxu0 }
 0x22e   :  { %v13545_v44 = vmax.f32 %v11299_v39, 0.0  ;;  %v11307_v45 = vadd.f32 %v958_v43, %v11249_v11 }
 0x22f   :  { %v1050_v48 = vadd.f32 %v1049_v46, %v13544_v41  ;;  %v13542_v49 = vmax.f32 %v11303_v42, 0.0 }
 0x230   :  { %v1063_v50 = vadd.f32 %v1062_v47, %v13545_v44  ;;  %v13543_v51 = vmax.f32 %v11307_v45, 0.0 }
 0x231   :  { %v1051_v57 = vadd.f32 %v1050_v48, %v13542_v49 }
 0x232   :  { %v962_v52 = vpop.f32.mrb[12].mxu0  ;;  %v1064_v61 = vadd.f32 %v1063_v50, %v13543_v51 }
 0x233   :  { %v11320_v53 = vadd.f32 %v962_v52, %v11246_v10  ;;  %v964_v54 = vpop.f32.mrb[13].mxu0 }
 0x234   :  { %v11323_v55 = vadd.f32 %v964_v54, %v11249_v11  ;;  %v966_v56 = vpop.f32.mrb[14].mxu0 }
 0x235   :  { %v13540_v58 = vmax.f32 %v11320_v53, 0.0  ;;  %v11329_v59 = vadd.f32 %v966_v56, %v11246_v10  ;;  %v968_v60 = vpop.f32.mrb[15].mxu0 }
 0x236   :  { %v13541_v62 = vmax.f32 %v11323_v55, 0.0  ;;  %v11335_v63 = vadd.f32 %v968_v60, %v11249_v11 }
 0x237   :  { %v1052_v0 = vadd.f32 %v1051_v57, %v13540_v58  ;;  %v1025_v1 = vmax.f32 %v11329_v59, 0.0 }
 0x238   :  { %v1065_v3 = vadd.f32 %v1064_v61, %v13541_v62  ;;  %v1026_v5 = vmax.f32 %v11335_v63, 0.0 }
 0x239   :  { %v1053_v6 = vadd.f32 %v1052_v0, %v1025_v1 }
 0x23a   :  { %v1066_v8 = vadd.f32 %v1065_v3, %v1026_v5  ;;  %v972_v9 = vpop.f32.mrb[16].mxu0 }
 0x23b   :  { %v1054_v14 = vrot.slane %v1053_v6, 4  ;;  %v11348_v17 = vadd.f32 %v972_v9, %v11246_v10  ;;  %v974_v20 = vpop.f32.mrb[17].mxu0 }
 0x23c   :  { %v11351_v22 = vadd.f32 %v974_v20, %v11249_v11  ;;  %v976_v30 = vpop.f32.mrb[18].mxu0  ;;  %v1067_v31 = vrot.slane %v1066_v8, 4 }
 0x23d   :  { %v1055_v32 = vadd.f32 %v1054_v14, %v1053_v6  ;;  %v11354_v33 = vadd.f32 %v976_v30, %v11246_v10  ;;  %v978_v36 = vpop.f32.mrb[19].mxu0 }
 0x23e   :  { %13670 = vst [vmem:[#allocation30_spill] sm:$0xff] %v11351_v22  ;;  %v11357_v37 = vadd.f32 %v978_v36, %v11249_v11  ;;  %v1068_v40 = vadd.f32 %v1067_v31, %v1066_v8 }
 0x23f   :  { %v1056_v43 = vrot.slane %v1055_v32, 2 }
 0x240   :  { %13671 = vst [vmem:[#allocation31_spill] sm:$0xff] %v11357_v37  ;;  %v1069_v46 = vrot.slane %v1068_v40, 2 }
 0x241   :  { %v1057_v47 = vadd.f32 %v1056_v43, %v1055_v32  ;;  %v10303_v32 = vld [vmem:[#allocation11] ss:$8 sps:$4 sm:$0xff]  }
 0x242   :  { %v982_v48 = vpop.f32.mrb[20].mxu0  ;;  %v1070_v50 = vadd.f32 %v1069_v46, %v1068_v40  ;;  %v10308_v46 = vld [vmem:[#allocation11 + $0x14] ss:$8 sps:$4 sm:$0xff]  }
 0x243   :  { %v11360_v52 = vadd.f32 %v982_v48, %v11246_v10  ;;  %v984_v54 = vpop.f32.mrb[21].mxu0  ;;  %v1058_v56 = vrot.slane %v1057_v47, 1 }
 0x244   :  { %v11363_v57 = vadd.f32 %v984_v54, %v11249_v11  ;;  %v986_v60 = vpop.f32.mrb[22].mxu0  ;;  %v1071_v61 = vrot.slane %v1070_v50, 1 }
 0x245   :  { %v11366_v0 = vadd.f32 %v986_v60, %v11246_v10  ;;  %v988_v3 = vpop.f32.mrb[23].mxu0  ;;  %v1059_v6 = vadd.f32 %v1058_v56, %v1057_v47  ;;  %v10306_v60 = vld [vmem:[#allocation11 + $0x10] ss:$8 sps:$4 sm:$0xff]  }
 0x246   :  { %v11369_v8 = vadd.f32 %v988_v3, %v11249_v11  ;;  %v1072_v9 = vadd.f32 %v1071_v61, %v1070_v50  ;;  %v10311_v61 = vld [vmem:[#allocation11 + $0x24] ss:$8 sps:$4 sm:$0xff]  }
 0x247   :  { %v1074_v14 = vmul.f32 0.015625, %v1059_v6  ;;  %v10309_v6 = vld [vmem:[#allocation11 + $0x20] ss:$8 sps:$4 sm:$0xff]  }
 0x248   :  { %v1075_v20 = vmul.f32 0.015625, %v1072_v9 }
 0x249   :  { %v1076_v43 = vpack.c.bf16 %v1074_v14, %v1074_v14 }
 0x24a   :  { %v992_v30 = vpop.f32.mrb[24].mxu0  ;;  %v1077_v31 = vpack.c.bf16 %v1075_v20, %v1075_v20  ;;  %v10314_v20 = vld [vmem:[#allocation11 + $0x34] ss:$8 sps:$4 sm:$0xff]  }
 0x24b   :  { %v11372_v36 = vadd.f32 %v992_v30, %v11246_v10  ;;  %v994_v40 = vpop.f32.mrb[25].mxu0 }
 0x24c   :  { %v11375_v48 = vadd.f32 %v994_v40, %v11249_v11  ;;  %v996_v54 = vpop.f32.mrb[26].mxu0  ;;  %1302 = vmatprep.mubr.bf16.mxu1 %v1077_v31 }
 0x24d   :  { %v11378_v47 = vadd.f32 %v996_v54, %v11246_v10  ;;  %v998_v50 = vpop.f32.mrb[27].mxu0  ;;  %1303 = vmatmul.mubr.bf16.vlgmr.msra.gmra.mrb[0].mxu1 %v1076_v43  ;;  %v10317_v54 = vld [vmem:[#allocation11 + $0x44] ss:$8 sps:$4 sm:$0xff]  }
 0x24e   :  { %v11381_v56 = vadd.f32 %v998_v50, %v11249_v11  ;;  %1520 = vmatpush1.bf16.msra.mxu1 %v10303_v32  ;;  %v10315_v50 = vld [vmem:[#allocation11 + $0x40] ss:$8 sps:$4 sm:$0xff]  }
 0x24f   :  { %13672 = vst [vmem:[#allocation32_spill] sm:$0xff] %v11378_v47  ;;  %1521 = vmatprep.subr.bf16.mxu1 %v10308_v46  ;;  %v10312_v46 = vld [vmem:[#allocation11 + $0x30] ss:$8 sps:$4 sm:$0xff]  }
 0x252   :  { %v1002_v3 = vpop.f32.mrb[28].mxu0  ;;  %1522 = vmatpush1.bf16.msra.mxu1 %v10306_v60  ;;  %v10320_v60 = vld [vmem:[#allocation11 + $0x54] ss:$8 sps:$4 sm:$0xff]  }
 0x253   :  { %v11384_v9 = vadd.f32 %v1002_v3, %v11246_v10  ;;  %v1004_v14 = vpop.f32.mrb[29].mxu0  ;;  %1523 = vmatprep.subr.bf16.mxu1 %v10311_v61  ;;  %v10318_v61 = vld [vmem:[#allocation11 + $0x50] ss:$8 sps:$4 sm:$0xff]   ;;  %v10323_v3 = vld [vmem:[#allocation11 + $0x64] ss:$8 sps:$4 sm:$0xff]  }
 0x254   :  { %v11387_v30 = vadd.f32 %v1004_v14, %v11249_v11  ;;  %v1006_v31 = vpop.f32.mrb[30].mxu0  ;;  %v10321_v14 = vld [vmem:[#allocation11 + $0x60] ss:$8 sps:$4 sm:$0xff]  }
 0x255   :  { %13673 = vst [vmem:[#allocation33_spill] sm:$0xff] %v11384_v9  ;;  %v11390_v40 = vadd.f32 %v1006_v31, %v11246_v10  ;;  %v1008_v32 = vpop.f32.mrb[31].mxu0  ;;  %v10326_v10 = vld [vmem:[#allocation11 + $0x74] ss:$8 sps:$4 sm:$0xff]   ;;  %v10324_v31 = vld [vmem:[#allocation11 + $0x70] ss:$8 sps:$4 sm:$0xff]  }
 0x256   :  { %v11393_v43 = vadd.f32 %v1008_v32, %v11249_v11  ;;  %1524 = vmatpush1.bf16.msra.mxu1 %v10309_v6  ;;  %v10329_v11 = vld [vmem:[#allocation11 + $0x84] ss:$8 sps:$4 sm:$0xff]   ;;  %v10327_v6 = vld [vmem:[#allocation11 + $0x80] ss:$8 sps:$4 sm:$0xff]   ;;  %v10330_v32 = vld [vmem:[#allocation11 + $0x90] ss:$8 sps:$4 sm:$0xff]  }
 0x257   :  { %13674 = vst [vmem:[#allocation34_spill] sm:$0xff] %v11390_v40  ;;  %1525 = vmatprep.subr.bf16.mxu1 %v10314_v20  ;;  %v10332_v20 = vld [vmem:[#allocation11 + $0x94] ss:$8 sps:$4 sm:$0xff]  }
 0x25a   :  { %1526 = vmatpush1.bf16.msra.mxu1 %v10312_v46  ;;  %v10335_v46 = vld [vmem:[#allocation11 + $0xa4] ss:$8 sps:$4 sm:$0xff]  }
 0x25b   :  { %1527 = vmatprep.subr.bf16.mxu1 %v10317_v54  ;;  %v10333_v54 = vld [vmem:[#allocation11 + $0xa0] ss:$8 sps:$4 sm:$0xff]  }
 0x25e   :  { %1528 = vmatpush1.bf16.msra.mxu1 %v10315_v50  ;;  %v10338_v50 = vld [vmem:[#allocation11 + $0xb4] ss:$8 sps:$4 sm:$0xff]  }
 0x25f   :  { %1529 = vmatprep.subr.bf16.mxu1 %v10320_v60  ;;  %v10336_v60 = vld [vmem:[#allocation11 + $0xb0] ss:$8 sps:$4 sm:$0xff]  }
 0x262   :  { %1530 = vmatpush1.bf16.msra.mxu1 %v10318_v61  ;;  %v10341_v61 = vld [vmem:[#allocation11 + $0xc4] ss:$8 sps:$4 sm:$0xff]  }
 0x263   :  { %1531 = vmatprep.subr.bf16.mxu1 %v10323_v3  ;;  %v10339_v3 = vld [vmem:[#allocation11 + $0xc0] ss:$8 sps:$4 sm:$0xff]  }
 0x266   :  { %1532 = vmatpush1.bf16.msra.mxu1 %v10321_v14  ;;  %v10344_v14 = vld [vmem:[#allocation11 + $0xd4] ss:$8 sps:$4 sm:$0xff]  }
 0x267   :  { %1533 = vmatprep.subr.bf16.mxu1 %v10326_v10  ;;  %v10342_v10 = vld [vmem:[#allocation11 + $0xd0] ss:$8 sps:$4 sm:$0xff]  }
 0x26a   :  { %1534 = vmatpush1.bf16.msra.mxu1 %v10324_v31  ;;  %v10347_v31 = vld [vmem:[#allocation11 + $0xe4] ss:$8 sps:$4 sm:$0xff]  }
 0x26b   :  { %1535 = vmatprep.subr.bf16.mxu1 %v10329_v11  ;;  %v10345_v11 = vld [vmem:[#allocation11 + $0xe0] ss:$8 sps:$4 sm:$0xff]  }
 0x26e   :  { %1536 = vmatpush1.bf16.msra.mxu1 %v10327_v6  ;;  %v10350_v6 = vld [vmem:[#allocation11 + $0xf4] ss:$8 sps:$4 sm:$0xff]  }
 0x26f   :  { %1537 = vmatprep.subr.bf16.mxu1 %v10332_v20  ;;  %v10348_v20 = vld [vmem:[#allocation11 + $0xf0] ss:$8 sps:$4 sm:$0xff]  }
 0x272   :  { %1538 = vmatpush1.bf16.msra.mxu1 %v10330_v32 }
 0x273   :  { %1539 = vmatprep.subr.bf16.mxu1 %v10335_v46 }
 0x276   :  { %1540 = vmatpush1.bf16.msra.mxu1 %v10333_v54 }
 0x277   :  { %1541 = vmatprep.subr.bf16.mxu1 %v10338_v50 }
 0x27a   :  { %1542 = vmatpush1.bf16.msra.mxu1 %v10336_v60 }
 0x27b   :  { %1543 = vmatprep.subr.bf16.mxu1 %v10341_v61 }
 0x27e   :  { %1544 = vmatpush1.bf16.msra.mxu1 %v10339_v3  ;;  %v13547_v3 = vmov 0  }
 0x27f   :  { %1545 = vmatprep.subr.bf16.mxu1 %v10344_v14  ;;  %2005 = vmatprep.mubr.bf16.mxu0 %v13547_v3  ;;  %v1347_v14 = vld [vmem:[%s13524_s8] sm:$0x3] }
 0x282   :  { %1546 = vmatpush1.bf16.msra.mxu1 %v10342_v10  ;;  %v1512_v10 = vrot.slane %v1347_v14, %v11237_v4 }
 0x283   :  { %1547 = vmatprep.subr.bf16.mxu1 %v10347_v31  ;;  %v1516_v31 = vrot.slane %v1347_v14, %v11243_v7 }
 0x286   :  { %1548 = vmatpush1.bf16.msra.mxu1 %v10345_v11 }
 0x287   :  { %1549 = vmatprep.subr.bf16.mxu1 %v10350_v6 }
 0x28a   :  { %1550 = vmatpush1.bf16.msra.mxu1 %v10348_v20 }
 0x320   :  { %v1304_v32 = vpop.f32.mrb[0].mxu1 }
 0x321   :  { %v1311_v46 = vmax.f32 %v1304_v32, 0.0  ;;  %v1306_v54 = vpop.f32.mrb[1].mxu1 }
 0x322   :  { %v1312_v50 = vmax.f32 %v1306_v54, 0.0  ;;  %v1308_v60 = vpop.f32.mrb[2].mxu1 }
 0x323   :  { %v1309_v58 = vpop.f32.mrb[3].mxu1  ;;  %v1313_v62 = vpack.c.bf16 %v1311_v46, %v1311_v46 }
 0x324   :  { %v1314_v61 = vpack.c.bf16 %v1312_v50, %v1312_v50 }
 0x326   :  { %1551 = vmatprep.mubr.bf16.mxu1 %v1314_v61 }
 0x327   :  { %1552 = vmatmul.mubr.bf16.vlgmr.msra.gmra.mrb[4].mxu1 %v1313_v62 }
 0x328   :  { %1662 = vmatprep.mubr.bf16.mxu1 %v13547_v3 }
 0x3fa   :  { %v1553_v11 = vpop.f32.mrb[4].mxu1 }
 0x3fb   :  { %v1554_v6 = vadd.f32 %v1553_v11, %v1512_v10  ;;  %v1555_v58 = vpop.f32.mrb[5].mxu1 }
 0x3fc   :  { %v1556_v20 = vadd.f32 %v1555_v58, %v1516_v31  ;;  %v1557_v32 = vpop.f32.mrb[6].mxu1 }
 0x3fd   :  { %v1560_v46 = vsub.f32 0.0, %v1554_v6  ;;  %v1558_v62 = vpop.f32.mrb[7].mxu1 }
 0x3fe   :  { %v1561_v54 = vsub.f32 0.0, %v1556_v20  ;;  %v13677_v62 = vmax.f32 %v11299_v39, 0.0 }
 0x3ff   :  { %v1562_v50 = vmul.f32 1.442695, %v1560_v46 }
 0x400   :  { %v1564_v60 = vmul.f32 1.442695, %v1561_v54 }
 0x401   :  { %10697 = vpow2.f32 %v1562_v50  ;;  %v13678_v50 = vmax.f32 %v11293_v35, 0.0 }
 0x402   :  { %10699 = vpow2.f32 %v1564_v60 }
 0x40b   :  { %v10698_v61 = vpop.eup %10697 }
 0x40c   :  { %v10700_v49 = vpop.eup %10699  ;;  %v1566_v51 = vadd.f32 1.0, %v10698_v61  ;;  %v13679_v61 = vmax.f32 %v11307_v45, 0.0 }
 0x40d   :  { %v1567_v41 = vadd.f32 1.0, %v10700_v49 }
 0x40e   :  { %10701 = vrcp.f32 %v1566_v51 }
 0x40f   :  { %10703 = vrcp.f32 %v1567_v41 }
 0x418   :  { %v10702_v44 = vpop.eup %10701 }
 0x419   :  { %v10704_v14 = vpop.eup %10703  ;;  %v1572_v34 = vadd.f32 1.0, %v10702_v44 }
 0x41a   :  { %v1573_v10 = vadd.f32 1.0, %v10704_v14 }
 0x41b   :  { %v11403_v31 = vrot.slane %v1572_v34, %v11237_v4 }
 0x41c   :  { %v1581_v11 = vrot.slane %v1573_v10, %v11237_v4 }
 0x41d   :  { %v1582_v6 = vmul.f32 %v11403_v31, %v1011_v24  ;;  %v1596_v49 = vmul.f32 %v11403_v31, %v1025_v1  ;;  %v1584_v51 = vmul.f32 %v11403_v31, %v1013_v21  ;;  %v1586_v63 = vmul.f32 %v11403_v31, %v1015_v25 }
 0x41e   :  { %v1583_v41 = vmul.f32 %v1581_v11, %v1012_v27  ;;  %v1597_v44 = vmul.f32 %v1581_v11, %v1026_v5  ;;  %v1585_v34 = vmul.f32 %v1581_v11, %v1014_v23  ;;  %v1587_v21 = vmul.f32 %v1581_v11, %v1016_v28 }
 0x41f   :  { %v1598_v15 = vpack.c.bf16 %v1582_v6, %v1582_v6  ;;  %v1612_v58 = vpack.c.bf16 %v1596_v49, %v1596_v49  ;;  %v1600_v12 = vpack.c.bf16 %v1584_v51, %v1584_v51  ;;  %v1602_v19 = vpack.c.bf16 %v1586_v63, %v1586_v63 }
 0x420   :  { %v1599_v24 = vpack.c.bf16 %v1583_v41, %v1583_v41  ;;  %v1613_v20 = vpack.c.bf16 %v1597_v44, %v1597_v44  ;;  %v1601_v18 = vpack.c.bf16 %v1585_v34, %v1585_v34  ;;  %v1603_v27 = vpack.c.bf16 %v1587_v21, %v1587_v21 }
 0x421   :  { %v1625_v59 = vsel %vm1623_vm0, %v1598_v15, 0  ;;  %v1968_v1 = vsel %vm1623_vm0, %v1612_v58, 0  ;;  %v1674_v23 = vsel %vm1623_vm0, %v1600_v12, 0  ;;  %v1589_v28 = vmul.f32 %v1581_v11, %v1018_v38 }
 0x422   :  { %9544 = vmatprep.subr.msk.bf16.mxu1 %vm1623_vm0, %v1599_v24  ;;  %9558 = vmatprep.subr.msk.bf16.mxu0 %vm1623_vm0, %v1613_v20  ;;  %v1723_v5 = vsel %vm1623_vm0, %v1602_v19, 0  ;;  %v13676_v25 = vmax.f32 %v11274_v26, 0.0  ;;  %v1591_v54 = vmul.f32 %v1581_v11, %v13677_v62  ;;  %v1590_v26 = vmul.f32 %v11403_v31, %v13678_v50 }
 0x423   :  { %1631 = vmatpush1.bf16.msra.mxu1 %v1625_v59  ;;  %1974 = vmatpush1.bf16.msra.mxu0 %v1968_v1  ;;  %v1605_v16 = vpack.c.bf16 %v1589_v28, %v1589_v28  ;;  %v1593_v14 = vmul.f32 %v1581_v11, %v13679_v61  ;;  %v13680_v6 = vmax.f32 %v11303_v42, 0.0  ;;  %v13681_v41 = vmax.f32 %v11323_v55, 0.0 }
 0x424   :  { %9546 = vmatprep.subr.msk.bf16.mxu1 %vm1623_vm0, %v1601_v18  ;;  %v1588_v32 = vmul.f32 %v11403_v31, %v13676_v25  ;;  %v1607_v38 = vpack.c.bf16 %v1591_v54, %v1591_v54  ;;  %v1606_v60 = vpack.c.bf16 %v1590_v26, %v1590_v26  ;;  %v13682_v51 = vmax.f32 %v11320_v53, 0.0 }
 0x425   :  { %v1609_v10 = vpack.c.bf16 %v1593_v14, %v1593_v14  ;;  %v1592_v35 = vmul.f32 %v11403_v31, %v13680_v6  ;;  %v1595_v44 = vmul.f32 %v1581_v11, %v13681_v41 }
 0x426   :  { %9545 = vmatmul.mubr.msk.bf16.vlgmr.msra.gmra.mrb[8].mxu1 %vm1619_vm1, %v10351_v13  ;;  %9559 = vmatmul.mubr.msk.bf16.vlgmr.msra.gmra.mrb[32].mxu0 %vm1619_vm1, %v10351_v13  ;;  %v1604_v46 = vpack.c.bf16 %v1588_v32, %v1588_v32  ;;  %v1821_v39 = vsel %vm1623_vm0, %v1606_v60, 0  ;;  %v1594_v42 = vmul.f32 %v11403_v31, %v13682_v51 }
 0x427   :  { %1680 = vmatpush1.bf16.msra.mxu1 %v1674_v23  ;;  %1711 = vmatprep.mubr.bf16.mxu1 %v13547_v3  ;;  %v1608_v49 = vpack.c.bf16 %v1592_v35, %v1592_v35  ;;  %v1611_v34 = vpack.c.bf16 %v1595_v44, %v1595_v44 }
 0x428   :  { %9548 = vmatprep.subr.msk.bf16.mxu1 %vm1623_vm0, %v1603_v27  ;;  %2687 = vmatprep.mubr.bf16.mxu0 %v13547_v3  ;;  %v1772_v29 = vsel %vm1623_vm0, %v1604_v46, 0  ;;  %v1610_v15 = vpack.c.bf16 %v1594_v42, %v1594_v42  ;;  %v10989_v27 = vmov 1983009808  }
 0x429   :  { %v1870_v45 = vsel %vm1623_vm0, %v1608_v49, 0 }
 0x42a   :  { %v1919_v55 = vsel %vm1623_vm0, %v1610_v15, 0 }
 0x42e   :  { %9547 = vmatmul.mubr.msk.bf16.vlgmr.msra.gmra.mrb[12].mxu1 %vm1619_vm1, %v10351_v13 }
 0x42f   :  { %1729 = vmatpush1.bf16.msra.mxu1 %v1723_v5  ;;  %1760 = vmatprep.mubr.bf16.mxu1 %v13547_v3 }
 0x430   :  { %9550 = vmatprep.subr.msk.bf16.mxu1 %vm1623_vm0, %v1605_v16 }
 0x436   :  { %9549 = vmatmul.mubr.msk.bf16.vlgmr.msra.gmra.mrb[16].mxu1 %vm1619_vm1, %v10351_v13 }
 0x437   :  { %1778 = vmatpush1.bf16.msra.mxu1 %v1772_v29  ;;  %1809 = vmatprep.mubr.bf16.mxu1 %v13547_v3 }
 0x438   :  { %9552 = vmatprep.subr.msk.bf16.mxu1 %vm1623_vm0, %v1607_v38 }
 0x43e   :  { %9551 = vmatmul.mubr.msk.bf16.vlgmr.msra.gmra.mrb[20].mxu1 %vm1619_vm1, %v10351_v13 }
 0x43f   :  { %1827 = vmatpush1.bf16.msra.mxu1 %v1821_v39  ;;  %1858 = vmatprep.mubr.bf16.mxu1 %v13547_v3 }
 0x440   :  { %9554 = vmatprep.subr.msk.bf16.mxu1 %vm1623_vm0, %v1609_v10 }
 0x446   :  { %9553 = vmatmul.mubr.msk.bf16.vlgmr.msra.gmra.mrb[24].mxu1 %vm1619_vm1, %v10351_v13 }
 0x447   :  { %1876 = vmatpush1.bf16.msra.mxu1 %v1870_v45  ;;  %1907 = vmatprep.mubr.bf16.mxu1 %v13547_v3 }
 0x448   :  { %9556 = vmatprep.subr.msk.bf16.mxu1 %vm1623_vm0, %v1611_v34 }
 0x44e   :  { %9555 = vmatmul.mubr.msk.bf16.vlgmr.msra.gmra.mrb[28].mxu1 %vm1619_vm1, %v10351_v13 }
 0x44f   :  { %1925 = vmatpush1.bf16.msra.mxu1 %v1919_v55  ;;  %1956 = vmatprep.mubr.bf16.mxu1 %v13547_v3 }
 0x456   :  { %9557 = vmatmul.mubr.msk.bf16.vlgmr.msra.gmra.mrb[32].mxu1 %vm1619_vm1, %v10351_v13  ;;  %v2019_v13 = vunpack.c.l.s4 %v10989_v27 }
 0x457   :  { %2638 = vmatprep.mubr.bf16.mxu1 %v13547_v3  ;;  %v13550_v3 = vmax.f32 %v11351_v22, 0.0 }
 0x458   :  { %v2020_v63 = vunpack.c.0.s8 %v2019_v13 }
 0x45a   :  { %v11490_v38 = vsub.s32 %v2020_v63, %v11234_v2 }
 0x45c   :  { %13683 = vst [vmem:[#allocation35_spill] sm:$0xff] %v11490_v38 }
 0x4f9   :  { %v1664_v53 = vpop.f32.mrb[8].mxu1  ;;  %v11481_v11 = vpop.f32.mrb[32].mxu0 }
 0x4fa   :  { %v1666_v31 = vpop.f32.mrb[9].mxu1  ;;  %v11483_v58 = vpop.f32.mrb[33].mxu0 }
 0x4fb   :  { %v1668_v24 = vpop.f32.mrb[10].mxu1  ;;  %v11485_v20 = vpop.f32.mrb[34].mxu0 }
 0x4fc   :  { %v1670_v59 = vpop.f32.mrb[11].mxu1  ;;  %v11487_v1 = vpop.f32.mrb[35].mxu0 }
 0x501   :  { %v1713_v18 = vpop.f32.mrb[12].mxu1 }
 0x502   :  { %v1715_v12 = vpop.f32.mrb[13].mxu1 }
 0x503   :  { %v1717_v21 = vpop.f32.mrb[14].mxu1 }
 0x504   :  { %v1719_v23 = vpop.f32.mrb[15].mxu1 }
 0x509   :  { %v1762_v19 = vpop.f32.mrb[16].mxu1 }
 0x50a   :  { %v2016_v28 = vcombine.low %v1664_v53, %v1762_v19  ;;  %v2017_v5 = vcombine.high %v1664_v53, %v1762_v19  ;;  %v1764_v16 = vpop.f32.mrb[17].mxu1 }
 0x50b   :  { %v2288_v25 = vcombine.low %v1666_v31, %v1764_v16  ;;  %v2289_v32 = vcombine.high %v1666_v31, %v1764_v16  ;;  %v1766_v46 = vpop.f32.mrb[18].mxu1 }
 0x50c   :  { %v2152_v62 = vcombine.low %v1668_v24, %v1766_v46  ;;  %v2153_v54 = vcombine.high %v1668_v24, %v1766_v46  ;;  %v1768_v29 = vpop.f32.mrb[19].mxu1  ;;  %v11493_v60 = vrot.slane %v2016_v28, %v11490_v38  ;;  %v11496_v61 = vrot.slane %v2017_v5, %v11490_v38 }
 0x50d   :  { %v2424_v50 = vcombine.low %v1670_v59, %v1768_v29  ;;  %v2425_v26 = vcombine.high %v1670_v59, %v1768_v29  ;;  %v11499_v39 = vrot.slane %v2288_v25, %v11490_v38  ;;  %v11502_v10 = vrot.slane %v2289_v32, %v11490_v38 }
 0x50e   :  { %v11505_v41 = vrot.slane %v2152_v62, %v11490_v38  ;;  %v11508_v44 = vrot.slane %v2153_v54, %v11490_v38  ;;  %v10990_v62 = vmov 1934713408  }
 0x50f   :  { %v2083_v54 = vunpack.c.l.s4 %v10990_v62  ;;  %v11539_v29 = vrot.slane %v2424_v50, %v11490_v38 }
 0x511   :  { %v1811_v14 = vpop.f32.mrb[20].mxu1 }
 0x512   :  { %v2032_v6 = vcombine.low %v1713_v18, %v1811_v14  ;;  %v2033_v35 = vcombine.high %v1713_v18, %v1811_v14  ;;  %v1813_v49 = vpop.f32.mrb[21].mxu1 }
 0x513   :  { %v2304_v45 = vcombine.low %v1715_v12, %v1813_v49  ;;  %v2305_v34 = vcombine.high %v1715_v12, %v1813_v49  ;;  %v1815_v51 = vpop.f32.mrb[22].mxu1 }
 0x514   :  { %v2040_v42 = vrot.slane %v2032_v6, %v11490_v38  ;;  %v11512_v15 = vrot.slane %v2033_v35, %v11490_v38  ;;  %v2168_v55 = vcombine.low %v1717_v21, %v1815_v51  ;;  %v2169_v53 = vcombine.high %v1717_v21, %v1815_v51  ;;  %v1817_v31 = vpop.f32.mrb[23].mxu1 }
 0x515   :  { %v2312_v24 = vrot.slane %v2304_v45, %v11490_v38  ;;  %v2319_v59 = vrot.slane %v2305_v34, %v11490_v38  ;;  %v2440_v18 = vcombine.low %v1719_v23, %v1817_v31  ;;  %v2441_v27 = vcombine.high %v1719_v23, %v1817_v31 }
 0x516   :  { %v2080_v13 = vcombine.low %v11493_v60, %v2040_v42  ;;  %v2081_v63 = vcombine.high %v11493_v60, %v2040_v42  ;;  %v2096_v12 = vcombine.low %v11496_v61, %v11512_v15  ;;  %v11527_v23 = vrot.slane %v2168_v55, %v11490_v38 }
 0x517   :  { %v2352_v28 = vcombine.low %v11499_v39, %v2312_v24  ;;  %v2353_v21 = vcombine.high %v11499_v39, %v2312_v24  ;;  %v2368_v5 = vcombine.low %v11502_v10, %v2319_v59  ;;  %v2369_v16 = vcombine.high %v11502_v10, %v2319_v59 }
 0x518   :  { %v11530_v25 = vrot.slane %v2169_v53, %v11490_v38  ;;  %v11533_v32 = vrot.slane %v2440_v18, %v11490_v38  ;;  %v11536_v46 = vrot.slane %v2441_v27, %v11490_v38  ;;  %v11542_v60 = vrot.slane %v2425_v26, %v11490_v38 }
 0x519   :  { %v1860_v14 = vpop.f32.mrb[24].mxu1  ;;  %v2084_v55 = vunpack.c.0.s8 %v2083_v54  ;;  %v13549_v27 = vmax.f32 %v11357_v37, 0.0 }
 0x51a   :  { %v1862_v49 = vpop.f32.mrb[25].mxu1 }
 0x51b   :  { %v1864_v51 = vpop.f32.mrb[26].mxu1  ;;  %v11563_v18 = vsub.s32 %v2084_v55, %v11234_v2  ;;  %v11577_v2 = vadd.f32 %v13549_v27, %v13550_v3 }
 0x51c   :  { %v1866_v42 = vpop.f32.mrb[27].mxu1 }
 0x51d   :  { %v2360_v55 = vrot.slane %v2352_v28, %v11563_v18 }
 0x521   :  { %v1909_v53 = vpop.f32.mrb[28].mxu1 }
 0x522   :  { %v1911_v31 = vpop.f32.mrb[29].mxu1  ;;  %v2064_v24 = vcombine.low %v1909_v53, %v11481_v11  ;;  %v2065_v59 = vcombine.high %v1909_v53, %v11481_v11  ;;  %v2367_v53 = vrot.slane %v2353_v21, %v11563_v18 }
 0x523   :  { %v1913_v62 = vpop.f32.mrb[30].mxu1  ;;  %v2336_v35 = vcombine.low %v1911_v31, %v11483_v58  ;;  %v2337_v6 = vcombine.high %v1911_v31, %v11483_v58  ;;  %v2088_v58 = vrot.slane %v2080_v13, %v11563_v18  ;;  %v11584_v31 = vrot.slane %v2368_v5, %v11563_v18 }
 0x524   :  { %v1915_v34 = vpop.f32.mrb[31].mxu1  ;;  %v2200_v45 = vcombine.low %v1913_v62, %v11485_v20  ;;  %v2201_v54 = vcombine.high %v1913_v62, %v11485_v20  ;;  %v2095_v20 = vrot.slane %v2081_v63, %v11563_v18  ;;  %v11587_v62 = vrot.slane %v2096_v12, %v11563_v18 }
 0x525   :  { %v2472_v10 = vcombine.low %v1915_v34, %v11487_v1  ;;  %v2473_v11 = vcombine.high %v1915_v34, %v11487_v1  ;;  %v11590_v1 = vrot.slane %v2369_v16, %v11563_v18  ;;  %v2072_v34 = vrot.slane %v2064_v24, %v11490_v38 }
 0x526   :  { %v11594_v27 = vrot.slane %v2065_v59, %v11490_v38  ;;  %v2344_v13 = vrot.slane %v2336_v35, %v11490_v38  ;;  %v11598_v28 = vrot.slane %v2337_v6, %v11490_v38  ;;  %v11601_v21 = vrot.slane %v2200_v45, %v11490_v38 }
 0x527   :  { %v11604_v12 = vrot.slane %v2201_v54, %v11490_v38  ;;  %v11607_v24 = vrot.slane %v2472_v10, %v11490_v38  ;;  %v11610_v59 = vrot.slane %v2473_v11, %v11490_v38 }
 0x529   :  { %v1958_v63 = vpop.f32.mrb[32].mxu1 }
 0x52a   :  { %v2048_v5 = vcombine.low %v1860_v14, %v1958_v63  ;;  %v2049_v16 = vcombine.high %v1860_v14, %v1958_v63  ;;  %v1960_v3 = vpop.f32.mrb[33].mxu1 }
 0x52b   :  { %v2320_v35 = vcombine.low %v1862_v49, %v1960_v3  ;;  %v2321_v26 = vcombine.high %v1862_v49, %v1960_v3  ;;  %v1962_v6 = vpop.f32.mrb[34].mxu1 }
 0x52c   :  { %v2056_v39 = vrot.slane %v2048_v5, %v11490_v38  ;;  %v2063_v45 = vrot.slane %v2049_v16, %v11490_v38  ;;  %v2184_v50 = vcombine.low %v1864_v51, %v1962_v6  ;;  %v2185_v19 = vcombine.high %v1864_v51, %v1962_v6  ;;  %v1964_v54 = vpop.f32.mrb[35].mxu1 }
 0x52d   :  { %v2328_v37 = vrot.slane %v2320_v35, %v11490_v38  ;;  %v2335_v14 = vrot.slane %v2321_v26, %v11490_v38  ;;  %v2456_v63 = vcombine.low %v1866_v42, %v1964_v54  ;;  %v2457_v10 = vcombine.high %v1866_v42, %v1964_v54 }
 0x52e   :  { %v2112_v22 = vcombine.low %v2056_v39, %v2072_v34  ;;  %v2113_v7 = vcombine.high %v2056_v39, %v2072_v34  ;;  %v2128_v11 = vcombine.low %v2063_v45, %v11594_v27  ;;  %v2129_v3 = vcombine.high %v2063_v45, %v11594_v27 }
 0x52f   :  { %v2384_v49 = vcombine.low %v2328_v37, %v2344_v13  ;;  %v2385_v4 = vcombine.high %v2328_v37, %v2344_v13  ;;  %v2400_v5 = vcombine.low %v2335_v14, %v11598_v28  ;;  %v2401_v16 = vcombine.high %v2335_v14, %v11598_v28 }
 0x530   :  { %v11621_v51 = vrot.slane %v2184_v50, %v11490_v38  ;;  %v11624_v35 = vrot.slane %v2185_v19, %v11490_v38  ;;  %v11627_v26 = vrot.slane %v2456_v63, %v11490_v38  ;;  %v11630_v39 = vrot.slane %v2457_v10, %v11490_v38 }
 0x531   :  { %v2392_v42 = vrot.slane %v2384_v49, %v11563_v18  ;;  %v2120_v37 = vrot.slane %v2112_v22, %v11563_v18  ;;  %v2399_v27 = vrot.slane %v2385_v4, %v11563_v18  ;;  %v2127_v34 = vrot.slane %v2113_v7, %v11563_v18 }
 0x532   :  { %v2520_v6 = vcombine.low %v11627_v26, %v11607_v24  ;;  %v2521_v4 = vcombine.high %v11627_v26, %v11607_v24  ;;  %v2536_v7 = vcombine.low %v11630_v39, %v11610_v59  ;;  %v2537_v22 = vcombine.high %v11630_v39, %v11610_v59 }
 0x533   :  { %v2416_v45 = vcombine.low %v2360_v55, %v2392_v42  ;;  %v2417_v54 = vcombine.high %v2360_v55, %v2392_v42  ;;  %v2144_v14 = vcombine.low %v2088_v58, %v2120_v37  ;;  %v2145_v63 = vcombine.high %v2088_v58, %v2120_v37 }
 0x534   :  { %v2418_v10 = vcombine.low %v2367_v53, %v2399_v27  ;;  %v2419_v49 = vcombine.high %v2367_v53, %v2399_v27  ;;  %v2146_v13 = vcombine.low %v2095_v20, %v2127_v34  ;;  %v2147_v28 = vcombine.high %v2095_v20, %v2127_v34  ;;  %v11659_v53 = vld [vmem:[%s13519_s3] sm:$0xff]  }
 0x535   :  { %v2561_v19 = vpack.c.bf16 %v2416_v45, %v2416_v45  ;;  %v2563_v50 = vpack.c.bf16 %v2417_v54, %v2417_v54  ;;  %v2560_v38 = vpack.c.bf16 %v2144_v14, %v2144_v14  ;;  %v2562_v40 = vpack.c.bf16 %v2145_v63, %v2145_v63 }
 0x536   :  { %v2565_v9 = vpack.c.bf16 %v2418_v10, %v2418_v10  ;;  %v2567_v24 = vpack.c.bf16 %v2419_v49, %v2419_v49  ;;  %v2564_v26 = vpack.c.bf16 %v2146_v13, %v2146_v13  ;;  %v2566_v47 = vpack.c.bf16 %v2147_v28, %v2147_v28 }
 0x537   :  { %9561 = vmatprep.subr.msk.bf16.mxu1 %vm1623_vm0, %v2561_v19  ;;  %9563 = vmatprep.subr.msk.bf16.mxu0 %vm1623_vm0, %v2563_v50  ;;  %v2601_v55 = vsel %vm1623_vm0, %v2560_v38, 0  ;;  %v2650_v58 = vsel %vm1623_vm0, %v2562_v40, 0  ;;  %v2408_v20 = vrot.slane %v2400_v5, %v11563_v18  ;;  %v2136_v42 = vrot.slane %v2128_v11, %v11563_v18 }
 0x538   :  { %2607 = vmatpush1.bf16.msra.mxu1 %v2601_v55  ;;  %2656 = vmatpush1.bf16.msra.mxu0 %v2650_v58  ;;  %v2415_v37 = vrot.slane %v2401_v16, %v11563_v18  ;;  %v13684_v27 = vcombine.high %v11496_v61, %v11512_v15  ;;  %v2143_v40 = vrot.slane %v2129_v3, %v11563_v18  ;;  %v2748_v15 = vsel %vm1623_vm0, %v2566_v47, 0 }
 0x539   :  { %9565 = vmatprep.subr.msk.bf16.mxu1 %vm1623_vm0, %v2565_v9  ;;  %9567 = vmatprep.subr.msk.bf16.mxu0 %vm1623_vm0, %v2567_v24  ;;  %v2420_v34 = vcombine.low %v11584_v31, %v2408_v20  ;;  %v2421_v5 = vcombine.high %v11584_v31, %v2408_v20  ;;  %v2148_v11 = vcombine.low %v11587_v62, %v2136_v42  ;;  %v2699_v9 = vsel %vm1623_vm0, %v2564_v26, 0 }
 0x53a   :  { %v2111_v38 = vrot.slane %v13684_v27, %v11563_v18  ;;  %v2149_v50 = vcombine.high %v11587_v62, %v2136_v42  ;;  %v2422_v16 = vcombine.low %v11590_v1, %v2415_v37  ;;  %v2423_v19 = vcombine.high %v11590_v1, %v2415_v37 }
 0x53b   :  { %9562 = vmatmul.mubr.msk.bf16.vlgmr.msra.gmra.mrb[36].mxu1 %vm1619_vm1, %v11659_v53  ;;  %9564 = vmatmul.mubr.msk.bf16.vlgmr.msra.gmra.mrb[36].mxu0 %vm1619_vm1, %v11659_v53  ;;  %v2569_v31 = vpack.c.bf16 %v2420_v34, %v2420_v34  ;;  %v2571_v3 = vpack.c.bf16 %v2421_v5, %v2421_v5  ;;  %v13685_v62 = vcombine.low %v11539_v29, %v11533_v32  ;;  %v13571_v47 = vmax.f32 %v11363_v57, 0.0 }
 0x53c   :  { %v11677_v61 = vcombine.low %v2111_v38, %v2143_v40  ;;  %2705 = vmatpush1.bf16.msra.mxu1 %v2699_v9  ;;  %2754 = vmatpush1.bf16.msra.mxu0 %v2748_v15  ;;  %v13686_v13 = vcombine.low %v11505_v41, %v11527_v23  ;;  %v13687_v45 = vcombine.high %v11539_v29, %v11533_v32  ;;  %v13689_v24 = vmov 0  }
 0x53d   :  { %v2496_v1 = vrot.slane %v13685_v62, %v11563_v18  ;;  %9569 = vmatprep.subr.msk.bf16.mxu1 %vm1623_vm0, %v2569_v31  ;;  %9571 = vmatprep.subr.msk.bf16.mxu0 %vm1623_vm0, %v2571_v3  ;;  %v2151_v14 = vcombine.high %v2111_v38, %v2143_v40  ;;  %v2528_v63 = vrot.slane %v2520_v6, %v11563_v18  ;;  %v13570_v40 = vmax.f32 %v11369_v8, 0.0 }
 0x53e   :  { %v2224_v28 = vrot.slane %v13686_v13, %v11563_v18  ;;  %v2503_v54 = vrot.slane %v13687_v45, %v11563_v18  ;;  %v13688_v10 = vcombine.high %v11505_v41, %v11527_v23  ;;  %2736 = vmatprep.mubr.bf16.mxu1 %v13689_v24  ;;  %2785 = vmatprep.mubr.bf16.mxu0 %v13689_v24  ;;  %v13569_v31 = vmax.f32 %v11375_v48, 0.0 }
 0x53f   :  { %v13690_v32 = vcombine.low %v11621_v51, %v11601_v21  ;;  %v2535_v26 = vrot.slane %v2521_v4, %v11563_v18  ;;  %v13691_v6 = vcombine.high %v11621_v51, %v11601_v21  ;;  %v2568_v58 = vpack.c.bf16 %v2148_v11, %v2148_v11 }
 0x540   :  { %v2231_v49 = vrot.slane %v13688_v10, %v11563_v18  ;;  %v2570_v20 = vpack.c.bf16 %v2149_v50, %v2149_v50  ;;  %v2552_v41 = vcombine.low %v2496_v1, %v2528_v63  ;;  %v2553_v23 = vcombine.high %v2496_v1, %v2528_v63 }
 0x541   :  { %v2256_v29 = vrot.slane %v13690_v32, %v11563_v18  ;;  %v2263_v55 = vrot.slane %v13691_v6, %v11563_v18  ;;  %v11720_v27 = vcombine.low %v2503_v54, %v2535_v26  ;;  %v11722_v38 = vcombine.high %v2503_v54, %v2535_v26 }
 0x542   :  { %v3462_v4 = vadd.f32 %v11577_v2, %v13571_v47  ;;  %v2573_v51 = vpack.c.bf16 %v2422_v16, %v2422_v16  ;;  %v2575_v34 = vpack.c.bf16 %v2423_v19, %v2423_v19  ;;  %v13692_v5 = vcombine.low %v11542_v60, %v11536_v46 }
 0x543   :  { %v11716_v42 = vcombine.low %v2224_v28, %v2256_v29  ;;  %v11718_v37 = vcombine.high %v2224_v28, %v2256_v29  ;;  %v11728_v21 = vcombine.low %v2231_v49, %v2263_v55  ;;  %v13693_v50 = vcombine.low %v11508_v44, %v11530_v25  ;;  %9566 = vmatmul.mubr.msk.bf16.vlgmr.msra.gmra.mrb[40].mxu1 %vm1619_vm1, %v11659_v53 }
 0x544   :  { %v2512_v11 = vrot.slane %v13692_v5, %v11563_v18  ;;  %9568 = vmatmul.mubr.msk.bf16.vlgmr.msra.gmra.mrb[40].mxu0 %vm1619_vm1, %v11659_v53  ;;  %v2797_v2 = vsel %vm1623_vm0, %v2568_v58, 0  ;;  %v2846_v16 = vsel %vm1623_vm0, %v2570_v20, 0  ;;  %v11744_v19 = vcombine.high %v2231_v49, %v2263_v55  ;;  %2834 = vmatprep.mubr.bf16.mxu1 %v13689_v24 }
 0x545   :  { %v2240_v9 = vrot.slane %v13693_v50, %v11563_v18  ;;  %v2544_v15 = vrot.slane %v2536_v7, %v11563_v18  ;;  %2803 = vmatpush1.bf16.msra.mxu1 %v2797_v2  ;;  %2852 = vmatpush1.bf16.msra.mxu0 %v2846_v16  ;;  %v13694_v3 = vcombine.low %v11624_v35, %v11604_v12  ;;  %v13568_v49 = vmax.f32 %v11381_v56, 0.0 }
 0x546   :  { %v13695_v1 = vcombine.high %v11542_v60, %v11536_v46  ;;  %v2551_v28 = vrot.slane %v2537_v22, %v11563_v18  ;;  %v3463_v7 = vadd.f32 %v3462_v4, %v13570_v40  ;;  %9573 = vmatprep.subr.msk.bf16.mxu1 %vm1623_vm0, %v2573_v51  ;;  %9575 = vmatprep.subr.msk.bf16.mxu0 %vm1623_vm0, %v2575_v34  ;;  %v13564_v4 = vmax.f32 %v11393_v43, 0.0 }
 0x547   :  { %v2272_v62 = vrot.slane %v13694_v3, %v11563_v18  ;;  %v2556_v45 = vcombine.low %v2512_v11, %v2544_v15  ;;  %v2557_v54 = vcombine.high %v2512_v11, %v2544_v15  ;;  %2883 = vmatprep.mubr.bf16.mxu0 %v13689_v24  ;;  %v2572_v59 = vpack.c.bf16 %v11677_v61, %v11677_v61 }
 0x548   :  { %v2519_v13 = vrot.slane %v13695_v1, %v11563_v18  ;;  %v2574_v39 = vpack.c.bf16 %v2151_v14, %v2151_v14  ;;  %v3464_v10 = vadd.f32 %v3463_v7, %v13569_v31  ;;  %v13696_v32 = vcombine.high %v11508_v44, %v11530_v25 }
 0x549   :  { %v11769_v46 = vcombine.low %v2240_v9, %v2272_v62  ;;  %v11771_v60 = vcombine.high %v2240_v9, %v2272_v62  ;;  %v13697_v26 = vcombine.high %v11624_v35, %v11604_v12  ;;  %v13565_v61 = vmax.f32 %v11387_v30, 0.0 }
 0x54a   :  { %v11773_v63 = vcombine.low %v2519_v13, %v2551_v28  ;;  %v11777_v22 = vcombine.high %v2519_v13, %v2551_v28  ;;  %v2247_v29 = vrot.slane %v13696_v32, %v11563_v18  ;;  %v2895_v44 = vsel %vm1623_vm0, %v2572_v59, 0  ;;  %v10358_v32 = vld [vmem:[#allocation9 + $0x14] ss:$8 sps:$4 sm:$0xff]  }
 0x54b   :  { %v2279_v6 = vrot.slane %v13697_v26, %v11563_v18  ;;  %9570 = vmatmul.mubr.msk.bf16.vlgmr.msra.gmra.mrb[44].mxu1 %vm1619_vm1, %v11659_v53  ;;  %v2944_v25 = vsel %vm1623_vm0, %v2574_v39, 0  ;;  %v2577_v58 = vpack.c.bf16 %v2552_v41, %v2552_v41  ;;  %v2579_v20 = vpack.c.bf16 %v2553_v23, %v2553_v23  ;;  %v10356_v26 = vld [vmem:[#allocation9 + $0x10] ss:$8 sps:$4 sm:$0xff]  }
 0x54c   :  { %9572 = vmatmul.mubr.msk.bf16.vlgmr.msra.gmra.mrb[44].mxu0 %vm1619_vm1, %v11659_v53  ;;  %v3465_v12 = vadd.f32 %v3464_v10, %v13568_v49  ;;  %2901 = vmatpush1.bf16.msra.mxu1 %v2895_v44  ;;  %v2576_v41 = vpack.c.bf16 %v11716_v42, %v11716_v42  ;;  %v2578_v23 = vpack.c.bf16 %v11718_v37, %v11718_v37  ;;  %v10353_v10 = vld [vmem:[#allocation9] ss:$8 sps:$4 sm:$0xff]   ;;  %v13574_v44 = vmax.f32 %v11354_v33, 0.0 }
 0x54d   :  { %v11791_v14 = vcombine.low %v2247_v29, %v2279_v6  ;;  %v11793_v55 = vcombine.high %v2247_v29, %v2279_v6  ;;  %2950 = vmatpush1.bf16.msra.mxu0 %v2944_v25  ;;  %9577 = vmatprep.subr.msk.bf16.mxu1 %vm1623_vm0, %v2577_v58  ;;  %v2581_v11 = vpack.c.bf16 %v11720_v27, %v11720_v27  ;;  %v10361_v6 = vld [vmem:[#allocation9 + $0x24] ss:$8 sps:$4 sm:$0xff]   ;;  %v10362_v25 = vld [vmem:[#allocation9 + $0x30] ss:$8 sps:$4 sm:$0xff]   ;;  %v13575_v58 = vmax.f32 %v11348_v17, 0.0 }
 0x54e   :  { %9579 = vmatprep.subr.msk.bf16.mxu0 %vm1623_vm0, %v2579_v20  ;;  %v3466_v35 = vadd.f32 %v3465_v12, %v13565_v61  ;;  %2932 = vmatprep.mubr.bf16.mxu1 %v13689_v24  ;;  %v2993_v34 = vsel %vm1623_vm0, %v2576_v41, 0  ;;  %v3042_v5 = vsel %vm1623_vm0, %v2578_v23, 0  ;;  %v2583_v42 = vpack.c.bf16 %v11722_v38, %v11722_v38  ;;  %v10367_v12 = vld [vmem:[#allocation9 + $0x44] ss:$8 sps:$4 sm:$0xff]  }
 0x54f   :  { %2981 = vmatprep.mubr.bf16.mxu0 %v13689_v24  ;;  %v2580_v50 = vpack.c.bf16 %v11728_v21, %v11728_v21  ;;  %v2582_v27 = vpack.c.bf16 %v11744_v19, %v11744_v19  ;;  %v2585_v16 = vpack.c.bf16 %v2556_v45, %v2556_v45  ;;  %v2587_v15 = vpack.c.bf16 %v2557_v54, %v2557_v54 }
 0x550   :  { %v3467_v51 = vadd.f32 %v3466_v35, %v13564_v4  ;;  %v2584_v19 = vpack.c.bf16 %v11769_v46, %v11769_v46  ;;  %v2586_v3 = vpack.c.bf16 %v11771_v60, %v11771_v60  ;;  %v2589_v28 = vpack.c.bf16 %v11773_v63, %v11773_v63  ;;  %v10355_v60 = vld [vmem:[#allocation9 + $0x4] ss:$8 sps:$4 sm:$0xff]   ;;  %v10365_v35 = vld [vmem:[#allocation9 + $0x40] ss:$8 sps:$4 sm:$0xff]  }
 0x551   :  { %v3091_v38 = vsel %vm1623_vm0, %v2580_v50, 0  ;;  %v3140_v2 = vsel %vm1623_vm0, %v2582_v27, 0  ;;  %v2591_v7 = vpack.c.bf16 %v11777_v22, %v11777_v22  ;;  %v2588_v54 = vpack.c.bf16 %v11791_v14, %v11791_v14  ;;  %v10359_v14 = vld [vmem:[#allocation9 + $0x20] ss:$8 sps:$4 sm:$0xff]  }
 0x552   :  { %v3468_v37 = vrot.slane %v3467_v51, 4  ;;  %v3189_v1 = vsel %vm1623_vm0, %v2584_v19, 0  ;;  %v3238_v13 = vsel %vm1623_vm0, %v2586_v3, 0  ;;  %v2590_v46 = vpack.c.bf16 %v11793_v55, %v11793_v55  ;;  %v10364_v55 = vld [vmem:[#allocation9 + $0x34] ss:$8 sps:$4 sm:$0xff]   ;;  %v13698_v50 = vld [vmem:[#allocation32_spill] sm:$0xff] }
 0x553   :  { %9574 = vmatmul.mubr.msk.bf16.vlgmr.msra.gmra.mrb[48].mxu1 %vm1619_vm1, %v11659_v53  ;;  %v3287_v59 = vsel %vm1623_vm0, %v2588_v54, 0  ;;  %v13573_v20 = vmax.f32 %v11360_v52, 0.0  ;;  %v13572_v23 = vmax.f32 %v11366_v0, 0.0  ;;  %v13566_v27 = vmax.f32 %v13698_v50, 0.0  ;;  %v13700_v3 = vld [vmem:[#allocation34_spill] sm:$0xff] }
 0x554   :  { %9576 = vmatmul.mubr.msk.bf16.vlgmr.msra.gmra.mrb[48].mxu0 %vm1619_vm1, %v11659_v53  ;;  %2999 = vmatpush1.bf16.msra.mxu1 %v2993_v34  ;;  %v3469_v9 = vadd.f32 %v3468_v37, %v3467_v51  ;;  %v3336_v39 = vsel %vm1623_vm0, %v2590_v46, 0  ;;  %v10370_v51 = vld [vmem:[#allocation9 + $0x54] ss:$8 sps:$4 sm:$0xff]   ;;  %v13567_v34 = vmax.f32 %v11372_v36, 0.0  ;;  %v10385_v46 = vld [vmem:[#allocation9 + $0xa4] ss:$8 sps:$4 sm:$0xff]  }
 0x555   :  { %3048 = vmatpush1.bf16.msra.mxu0 %v3042_v5  ;;  %9581 = vmatprep.subr.msk.bf16.mxu1 %vm1623_vm0, %v2581_v11  ;;  %v10368_v5 = vld [vmem:[#allocation9 + $0x50] ss:$8 sps:$4 sm:$0xff]  }
 0x556   :  { %9583 = vmatprep.subr.msk.bf16.mxu0 %vm1623_vm0, %v2583_v42  ;;  %3030 = vmatprep.mubr.bf16.mxu1 %v13689_v24  ;;  %v3470_v21 = vrot.slane %v3469_v9, 2  ;;  %v10373_v42 = vld [vmem:[#allocation9 + $0x64] ss:$8 sps:$4 sm:$0xff]  }
 0x557   :  { %3079 = vmatprep.mubr.bf16.mxu0 %v13689_v24 }
 0x558   :  { %v3471_v62 = vadd.f32 %v3470_v21, %v3469_v9  ;;  %v10371_v9 = vld [vmem:[#allocation9 + $0x60] ss:$8 sps:$4 sm:$0xff]   ;;  %v10374_v21 = vld [vmem:[#allocation9 + $0x70] ss:$8 sps:$4 sm:$0xff]  }
 0x55a   :  { %v3472_v45 = vrot.slane %v3471_v62, 1 }
 0x55b   :  { %9578 = vmatmul.mubr.msk.bf16.vlgmr.msra.gmra.mrb[52].mxu1 %vm1619_vm1, %v11659_v53 }
 0x55c   :  { %9580 = vmatmul.mubr.msk.bf16.vlgmr.msra.gmra.mrb[52].mxu0 %vm1619_vm1, %v11659_v53  ;;  %3097 = vmatpush1.bf16.msra.mxu1 %v3091_v38  ;;  %v3473_v63 = vadd.f32 %v3472_v45, %v3471_v62  ;;  %v13699_v38 = vld [vmem:[#allocation33_spill] sm:$0xff]  ;;  %v13562_v62 = vmax.f32 %v13700_v3, 0.0  ;;  %v10380_v45 = vld [vmem:[#allocation9 + $0x90] ss:$8 sps:$4 sm:$0xff]  }
 0x55d   :  { %3146 = vmatpush1.bf16.msra.mxu0 %v3140_v2  ;;  %9585 = vmatprep.subr.msk.bf16.mxu1 %vm1623_vm0, %v2585_v16  ;;  %v13563_v2 = vmax.f32 %v13699_v38, 0.0  ;;  %v10376_v16 = vld [vmem:[#allocation9 + $0x74] ss:$8 sps:$4 sm:$0xff]  }
 0x55e   :  { %9587 = vmatprep.subr.msk.bf16.mxu0 %vm1623_vm0, %v2587_v15  ;;  %3128 = vmatprep.mubr.bf16.mxu1 %v13689_v24  ;;  %v3475_v22 = vmul.f32 0.015625, %v3473_v63 }
 0x55f   :  { %3177 = vmatprep.mubr.bf16.mxu0 %v13689_v24 }
 0x560   :  { %v3477_v29 = vpack.c.bf16 %v3475_v22, %v3475_v22 }
 0x563   :  { %9582 = vmatmul.mubr.msk.bf16.vlgmr.msra.gmra.mrb[56].mxu1 %vm1619_vm1, %v11659_v53 }
 0x564   :  { %9584 = vmatmul.mubr.msk.bf16.vlgmr.msra.gmra.mrb[56].mxu0 %vm1619_vm1, %v11659_v53  ;;  %3195 = vmatpush1.bf16.msra.mxu1 %v3189_v1  ;;  %v10379_v1 = vld [vmem:[#allocation9 + $0x84] ss:$8 sps:$4 sm:$0xff]  }
 0x565   :  { %3244 = vmatpush1.bf16.msra.mxu0 %v3238_v13  ;;  %9589 = vmatprep.subr.msk.bf16.mxu1 %vm1623_vm0, %v2589_v28  ;;  %v10377_v13 = vld [vmem:[#allocation9 + $0x80] ss:$8 sps:$4 sm:$0xff]  }
 0x566   :  { %9591 = vmatprep.subr.msk.bf16.mxu0 %vm1623_vm0, %v2591_v7  ;;  %3226 = vmatprep.mubr.bf16.mxu1 %v13689_v24  ;;  %v10382_v7 = vld [vmem:[#allocation9 + $0x94] ss:$8 sps:$4 sm:$0xff]  }
 0x567   :  { %3275 = vmatprep.mubr.bf16.mxu0 %v13689_v24 }
 0x56b   :  { %9586 = vmatmul.mubr.msk.bf16.vlgmr.msra.gmra.mrb[60].mxu1 %vm1619_vm1, %v11659_v53 }
 0x56c   :  { %9588 = vmatmul.mubr.msk.bf16.vlgmr.msra.gmra.mrb[60].mxu0 %vm1619_vm1, %v11659_v53  ;;  %3293 = vmatpush1.bf16.msra.mxu1 %v3287_v59  ;;  %v10388_v59 = vld [vmem:[#allocation9 + $0xb4] ss:$8 sps:$4 sm:$0xff]  }
 0x56d   :  { %3342 = vmatpush1.bf16.msra.mxu0 %v3336_v39  ;;  %3324 = vmatprep.mubr.bf16.mxu1 %v13689_v24  ;;  %v10386_v39 = vld [vmem:[#allocation9 + $0xb0] ss:$8 sps:$4 sm:$0xff]  }
 0x56e   :  { %3670 = vmatprep.subr.bf16.mxu1 %v10355_v60  ;;  %3373 = vmatprep.mubr.bf16.mxu0 %v13689_v24  ;;  %v10383_v60 = vld [vmem:[#allocation9 + $0xa0] ss:$8 sps:$4 sm:$0xff]  }
 0x573   :  { %9590 = vmatmul.mubr.msk.bf16.vlgmr.msra.gmra.mrb[64].mxu1 %vm1619_vm1, %v11659_v53 }
 0x574   :  { %9592 = vmatmul.mubr.msk.bf16.vlgmr.msra.gmra.mrb[64].mxu0 %vm1619_vm1, %v11659_v53  ;;  %3671 = vmatpush1.bf16.msra.mxu1 %v10353_v10  ;;  %v3448_v53 = vadd.f32 %v13574_v44, %v13575_v58  ;;  %v10391_v10 = vld [vmem:[#allocation9 + $0xc4] ss:$8 sps:$4 sm:$0xff]  }
 0x575   :  { %3702 = vmatprep.mubr.bf16.mxu1 %v3477_v29  ;;  %3672 = vmatprep.subr.bf16.mxu1 %v10358_v32  ;;  %v10389_v32 = vld [vmem:[#allocation9 + $0xc0] ss:$8 sps:$4 sm:$0xff]  }
 0x576   :  { %v3449_v41 = vadd.f32 %v3448_v53, %v13573_v20 }
 0x578   :  { %3673 = vmatpush1.bf16.msra.mxu1 %v10356_v26  ;;  %v3450_v11 = vadd.f32 %v3449_v41, %v13572_v23  ;;  %v10394_v26 = vld [vmem:[#allocation9 + $0xd4] ss:$8 sps:$4 sm:$0xff]  }
 0x579   :  { %3674 = vmatprep.subr.bf16.mxu1 %v10361_v6  ;;  %v10392_v6 = vld [vmem:[#allocation9 + $0xd0] ss:$8 sps:$4 sm:$0xff]  }
 0x57a   :  { %v3451_v37 = vadd.f32 %v3450_v11, %v13567_v34  ;;  %v10403_v11 = vld [vmem:[#allocation11 + $0x4] ss:$8 sps:$4 sm:$0xff]  }
 0x57b   :  { %3919 = vmatprep.subr.bf16.mxu0 %v10403_v11 }
 0x57c   :  { %3675 = vmatpush1.bf16.msra.mxu1 %v10359_v14  ;;  %v3452_v15 = vadd.f32 %v3451_v37, %v13566_v27  ;;  %v10397_v14 = vld [vmem:[#allocation9 + $0xe4] ss:$8 sps:$4 sm:$0xff]   ;;  %v10406_v37 = vld [vmem:[#allocation11 + $0x14] ss:$8 sps:$4 sm:$0xff]  }
 0x57d   :  { %3676 = vmatprep.subr.bf16.mxu1 %v10364_v55 }
 0x57e   :  { %v3453_v19 = vadd.f32 %v3452_v15, %v13563_v2  ;;  %v10412_v15 = vld [vmem:[#allocation11 + $0x34] ss:$8 sps:$4 sm:$0xff]  }
 0x580   :  { %3677 = vmatpush1.bf16.msra.mxu1 %v10362_v25  ;;  %v3454_v28 = vadd.f32 %v3453_v19, %v13562_v62  ;;  %v10395_v25 = vld [vmem:[#allocation9 + $0xe0] ss:$8 sps:$4 sm:$0xff]   ;;  %v10415_v19 = vld [vmem:[#allocation11 + $0x44] ss:$8 sps:$4 sm:$0xff]  }
 0x581   :  { %3678 = vmatprep.subr.bf16.mxu1 %v10367_v12  ;;  %v10400_v12 = vld [vmem:[#allocation9 + $0xf4] ss:$8 sps:$4 sm:$0xff]  }
 0x582   :  { %v3455_v54 = vrot.slane %v3454_v28, 4 }
 0x584   :  { %3679 = vmatpush1.bf16.msra.mxu1 %v10365_v35  ;;  %v3456_v63 = vadd.f32 %v3455_v54, %v3454_v28  ;;  %v10398_v35 = vld [vmem:[#allocation9 + $0xf0] ss:$8 sps:$4 sm:$0xff]   ;;  %v10424_v54 = vld [vmem:[#allocation11 + $0x74] ss:$8 sps:$4 sm:$0xff]  }
 0x585   :  { %3680 = vmatprep.subr.bf16.mxu1 %v10370_v51  ;;  %v10416_v28 = vld [vmem:[#allocation11 + $0x50] ss:$8 sps:$4 sm:$0xff]  }
 0x586   :  { %v3457_v22 = vrot.slane %v3456_v63, 2 }
 0x588   :  { %3681 = vmatpush1.bf16.msra.mxu1 %v10368_v5  ;;  %v3458_v29 = vadd.f32 %v3457_v22, %v3456_v63  ;;  %v10401_v5 = vld [vmem:[#allocation11] ss:$8 sps:$4 sm:$0xff]   ;;  %v10433_v22 = vld [vmem:[#allocation11 + $0xa4] ss:$8 sps:$4 sm:$0xff]  }
 0x589   :  { %3682 = vmatprep.subr.bf16.mxu1 %v10373_v42  ;;  %3920 = vmatpush1.bf16.msra.mxu0 %v10401_v5  ;;  %v10404_v42 = vld [vmem:[#allocation11 + $0x10] ss:$8 sps:$4 sm:$0xff]   ;;  %v10425_v63 = vld [vmem:[#allocation11 + $0x80] ss:$8 sps:$4 sm:$0xff]  }
 0x58a   :  { %v3459_v55 = vrot.slane %v3458_v29, 1  ;;  %3921 = vmatprep.subr.bf16.mxu0 %v10406_v37 }
 0x58c   :  { %3683 = vmatpush1.bf16.msra.mxu1 %v10371_v9  ;;  %v3460_v53 = vadd.f32 %v3459_v55, %v3458_v29  ;;  %v10409_v9 = vld [vmem:[#allocation11 + $0x24] ss:$8 sps:$4 sm:$0xff]   ;;  %v10434_v29 = vld [vmem:[#allocation11 + $0xb0] ss:$8 sps:$4 sm:$0xff]  }
 0x58d   :  { %3684 = vmatprep.subr.bf16.mxu1 %v10376_v16  ;;  %3922 = vmatpush1.bf16.msra.mxu0 %v10404_v42  ;;  %v10407_v16 = vld [vmem:[#allocation11 + $0x20] ss:$8 sps:$4 sm:$0xff]   ;;  %v10440_v55 = vld [vmem:[#allocation11 + $0xd0] ss:$8 sps:$4 sm:$0xff]  }
 0x58e   :  { %v3474_v41 = vmul.f32 0.015625, %v3460_v53  ;;  %3923 = vmatprep.subr.bf16.mxu0 %v10409_v9  ;;  %v10446_v53 = vld [vmem:[#allocation11 + $0xf0] ss:$8 sps:$4 sm:$0xff]  }
 0x590   :  { %3685 = vmatpush1.bf16.msra.mxu1 %v10374_v21  ;;  %v3476_v51 = vpack.c.bf16 %v3474_v41, %v3474_v41  ;;  %v10410_v21 = vld [vmem:[#allocation11 + $0x30] ss:$8 sps:$4 sm:$0xff]  }
 0x591   :  { %3686 = vmatprep.subr.bf16.mxu1 %v10379_v1  ;;  %3924 = vmatpush1.bf16.msra.mxu0 %v10407_v16  ;;  %v10413_v1 = vld [vmem:[#allocation11 + $0x40] ss:$8 sps:$4 sm:$0xff]  }
 0x592   :  { %3925 = vmatprep.subr.bf16.mxu0 %v10412_v15 }
 0x594   :  { %3687 = vmatpush1.bf16.msra.mxu1 %v10377_v13  ;;  %v10418_v13 = vld [vmem:[#allocation11 + $0x54] ss:$8 sps:$4 sm:$0xff]  }
 0x595   :  { %3688 = vmatprep.subr.bf16.mxu1 %v10382_v7  ;;  %3926 = vmatpush1.bf16.msra.mxu0 %v10410_v21  ;;  %v10421_v7 = vld [vmem:[#allocation11 + $0x64] ss:$8 sps:$4 sm:$0xff]  }
 0x596   :  { %3927 = vmatprep.subr.bf16.mxu0 %v10415_v19 }
 0x598   :  { %3689 = vmatpush1.bf16.msra.mxu1 %v10380_v45  ;;  %v10419_v45 = vld [vmem:[#allocation11 + $0x60] ss:$8 sps:$4 sm:$0xff]  }
 0x599   :  { %3690 = vmatprep.subr.bf16.mxu1 %v10385_v46  ;;  %3928 = vmatpush1.bf16.msra.mxu0 %v10413_v1  ;;  %v10422_v46 = vld [vmem:[#allocation11 + $0x70] ss:$8 sps:$4 sm:$0xff]  }
 0x59a   :  { %3929 = vmatprep.subr.bf16.mxu0 %v10418_v13 }
 0x59c   :  { %3691 = vmatpush1.bf16.msra.mxu1 %v10383_v60  ;;  %v10427_v60 = vld [vmem:[#allocation11 + $0x84] ss:$8 sps:$4 sm:$0xff]  }
 0x59d   :  { %3692 = vmatprep.subr.bf16.mxu1 %v10388_v59  ;;  %3930 = vmatpush1.bf16.msra.mxu0 %v10416_v28  ;;  %v10430_v59 = vld [vmem:[#allocation11 + $0x94] ss:$8 sps:$4 sm:$0xff]  }
 0x59e   :  { %3931 = vmatprep.subr.bf16.mxu0 %v10421_v7 }
 0x5a0   :  { %3693 = vmatpush1.bf16.msra.mxu1 %v10386_v39  ;;  %v10428_v39 = vld [vmem:[#allocation11 + $0x90] ss:$8 sps:$4 sm:$0xff]  }
 0x5a1   :  { %3694 = vmatprep.subr.bf16.mxu1 %v10391_v10  ;;  %3932 = vmatpush1.bf16.msra.mxu0 %v10419_v45  ;;  %v10431_v10 = vld [vmem:[#allocation11 + $0xa0] ss:$8 sps:$4 sm:$0xff]  }
 0x5a2   :  { %3933 = vmatprep.subr.bf16.mxu0 %v10424_v54 }
 0x5a4   :  { %3695 = vmatpush1.bf16.msra.mxu1 %v10389_v32  ;;  %v10436_v32 = vld [vmem:[#allocation11 + $0xb4] ss:$8 sps:$4 sm:$0xff]  }
 0x5a5   :  { %3696 = vmatprep.subr.bf16.mxu1 %v10394_v26  ;;  %3934 = vmatpush1.bf16.msra.mxu0 %v10422_v46  ;;  %v10439_v26 = vld [vmem:[#allocation11 + $0xc4] ss:$8 sps:$4 sm:$0xff]  }
 0x5a6   :  { %3935 = vmatprep.subr.bf16.mxu0 %v10427_v60 }
 0x5a8   :  { %3697 = vmatpush1.bf16.msra.mxu1 %v10392_v6  ;;  %v10437_v6 = vld [vmem:[#allocation11 + $0xc0] ss:$8 sps:$4 sm:$0xff]  }
 0x5a9   :  { %3698 = vmatprep.subr.bf16.mxu1 %v10397_v14  ;;  %3936 = vmatpush1.bf16.msra.mxu0 %v10425_v63  ;;  %v10442_v14 = vld [vmem:[#allocation11 + $0xd4] ss:$8 sps:$4 sm:$0xff]  }
 0x5aa   :  { %3937 = vmatprep.subr.bf16.mxu0 %v10430_v59 }
 0x5ac   :  { %3699 = vmatpush1.bf16.msra.mxu1 %v10395_v25  ;;  %v10445_v25 = vld [vmem:[#allocation11 + $0xe4] ss:$8 sps:$4 sm:$0xff]  }
 0x5ad   :  { %3700 = vmatprep.subr.bf16.mxu1 %v10400_v12  ;;  %3938 = vmatpush1.bf16.msra.mxu0 %v10428_v39  ;;  %v10443_v12 = vld [vmem:[#allocation11 + $0xe0] ss:$8 sps:$4 sm:$0xff]  }
 0x5ae   :  { %3939 = vmatprep.subr.bf16.mxu0 %v10433_v22 }
 0x5b0   :  { %3701 = vmatpush1.bf16.msra.mxu1 %v10398_v35  ;;  %v10448_v35 = vld [vmem:[#allocation11 + $0xf4] ss:$8 sps:$4 sm:$0xff]  }
 0x5b1   :  { %3940 = vmatpush1.bf16.msra.mxu0 %v10431_v10 }
 0x5b2   :  { %3941 = vmatprep.subr.bf16.mxu0 %v10436_v32 }
 0x5b3   :  { %3703 = vmatmul.mubr.bf16.vlgmr.msra.gmra.mrb[68].mxu1 %v3476_v51 }
 0x5b4   :  { %4052 = vmatprep.mubr.bf16.mxu1 %v13689_v24 }
 0x5b5   :  { %3942 = vmatpush1.bf16.msra.mxu0 %v10434_v29 }
 0x5b6   :  { %3943 = vmatprep.subr.bf16.mxu0 %v10439_v26 }
 0x5b9   :  { %3944 = vmatpush1.bf16.msra.mxu0 %v10437_v6 }
 0x5ba   :  { %3945 = vmatprep.subr.bf16.mxu0 %v10442_v14 }
 0x5bd   :  { %3946 = vmatpush1.bf16.msra.mxu0 %v10440_v55 }
 0x5be   :  { %3947 = vmatprep.subr.bf16.mxu0 %v10445_v25 }
 0x5c1   :  { %3948 = vmatpush1.bf16.msra.mxu0 %v10443_v12 }
 0x5c2   :  { %3949 = vmatprep.subr.bf16.mxu0 %v10448_v35 }
 0x5c5   :  { %3950 = vmatpush1.bf16.msra.mxu0 %v10446_v53 }
 0x60e   :  { %v11903_v41 = vpop.f32.mrb[36].mxu1  ;;  %v11905_v51 = vpop.f32.mrb[36].mxu0 }
 0x60f   :  { %v11907_v5 = vpop.f32.mrb[37].mxu1  ;;  %v11909_v11 = vpop.f32.mrb[37].mxu0 }
 0x610   :  { %v11911_v42 = vpop.f32.mrb[38].mxu1  ;;  %v11913_v37 = vpop.f32.mrb[38].mxu0 }
 0x611   :  { %v11917_v16 = vpop.f32.mrb[39].mxu1  ;;  %v11921_v21 = vpop.f32.mrb[39].mxu0 }
 0x616   :  { %v11927_v13 = vpop.f32.mrb[40].mxu1 }
 0x617   :  { %13701 = vst [vmem:[#allocation32_spill] sm:$0xff] %v11927_v13  ;;  %v11929_v28 = vpop.f32.mrb[40].mxu0  ;;  %v11931_v7 = vpop.f32.mrb[41].mxu1 }
 0x618   :  { %13702 = vst [vmem:[#allocation33_spill] sm:$0xff] %v11929_v28  ;;  %v11933_v45 = vpop.f32.mrb[41].mxu0  ;;  %v11935_v54 = vpop.f32.mrb[42].mxu1 }
 0x619   :  { %13703 = vst [vmem:[#allocation34_spill] sm:$0xff] %v11933_v45  ;;  %13704 = vst [vmem:[#allocation36_spill] sm:$0xff] %v11935_v54  ;;  %v11937_v46 = vpop.f32.mrb[42].mxu0  ;;  %v11941_v63 = vpop.f32.mrb[43].mxu1 }
 0x61a   :  { %13705 = vst [vmem:[#allocation37_spill] sm:$0xff] %v11937_v46  ;;  %v11945_v39 = vpop.f32.mrb[43].mxu0 }
 0x61b   :  { %13706 = vst [vmem:[#allocation38_spill] sm:$0xff] %v11945_v39 }
 0x61e   :  { %v11951_v32 = vpop.f32.mrb[44].mxu1 }
 0x61f   :  { %13707 = vst [vmem:[#allocation39_spill] sm:$0xff] %v11951_v32  ;;  %v11953_v29 = vpop.f32.mrb[44].mxu0  ;;  %v11955_v26 = vpop.f32.mrb[45].mxu1 }
 0x620   :  { %13708 = vst [vmem:[#allocation40_spill] sm:$0xff] %v11953_v29  ;;  %13709 = vst [vmem:[#allocation41_spill] sm:$0xff] %v11955_v26  ;;  %v11957_v6 = vpop.f32.mrb[45].mxu0  ;;  %v11959_v14 = vpop.f32.mrb[46].mxu1 }
 0x621   :  { %13710 = vst [vmem:[#allocation42_spill] sm:$0xff] %v11957_v6  ;;  %13711 = vst [vmem:[#allocation43_spill] sm:$0xff] %v11959_v14  ;;  %v11961_v55 = vpop.f32.mrb[46].mxu0  ;;  %v11965_v12 = vpop.f32.mrb[47].mxu1 }
 0x622   :  { %13712 = vst [vmem:[#allocation44_spill] sm:$0xff] %v11961_v55  ;;  %13713 = vst [vmem:[#allocation45_spill] sm:$0xff] %v11965_v12  ;;  %v11969_v35 = vpop.f32.mrb[47].mxu0 }
 0x623   :  { %13714 = vst [vmem:[#allocation46_spill] sm:$0xff] %v11969_v35 }
 0x626   :  { %v11975_v60 = vpop.f32.mrb[48].mxu1 }
 0x627   :  { %13715 = vst [vmem:[#allocation47_spill] sm:$0xff] %v11975_v60  ;;  %v11977_v22 = vpop.f32.mrb[48].mxu0  ;;  %v11979_v15 = vpop.f32.mrb[49].mxu1 }
 0x628   :  { %13716 = vst [vmem:[#allocation48_spill] sm:$0xff] %v11977_v22  ;;  %13717 = vst [vmem:[#allocation49_spill] sm:$0xff] %v11979_v15  ;;  %v11981_v25 = vpop.f32.mrb[49].mxu0  ;;  %v11983_v1 = vpop.f32.mrb[50].mxu1 }
 0x629   :  { %13718 = vst [vmem:[#allocation50_spill] sm:$0xff] %v11981_v25  ;;  %13719 = vst [vmem:[#allocation51_spill] sm:$0xff] %v11983_v1  ;;  %v11985_v9 = vpop.f32.mrb[50].mxu0  ;;  %v11989_v19 = vpop.f32.mrb[51].mxu1 }
 0x62a   :  { %13720 = vst [vmem:[#allocation52_spill] sm:$0xff] %v11985_v9  ;;  %13721 = vst [vmem:[#allocation53_spill] sm:$0xff] %v11989_v19  ;;  %v11993_v59 = vpop.f32.mrb[51].mxu0 }
 0x62b   :  { %13722 = vst [vmem:[#allocation54_spill] sm:$0xff] %v11993_v59 }
 0x62e   :  { %v11999_v4 = vpop.f32.mrb[52].mxu1 }
 0x62f   :  { %13723 = vst [vmem:[#allocation55_spill] sm:$0xff] %v11999_v4  ;;  %v12001_v61 = vpop.f32.mrb[52].mxu0  ;;  %v12003_v27 = vpop.f32.mrb[53].mxu1 }
 0x630   :  { %13724 = vst [vmem:[#allocation56_spill] sm:$0xff] %v12001_v61  ;;  %13725 = vst [vmem:[#allocation57_spill] sm:$0xff] %v12003_v27  ;;  %v12005_v53 = vpop.f32.mrb[53].mxu0  ;;  %v12007_v34 = vpop.f32.mrb[54].mxu1 }
 0x631   :  { %13726 = vst [vmem:[#allocation58_spill] sm:$0xff] %v12005_v53  ;;  %13727 = vst [vmem:[#allocation59_spill] sm:$0xff] %v12007_v34  ;;  %v12009_v49 = vpop.f32.mrb[54].mxu0  ;;  %v12013_v31 = vpop.f32.mrb[55].mxu1 }
 0x632   :  { %13728 = vst [vmem:[#allocation60_spill] sm:$0xff] %v12009_v49  ;;  %13729 = vst [vmem:[#allocation61_spill] sm:$0xff] %v12013_v31  ;;  %v12017_v62 = vpop.f32.mrb[55].mxu0 }
 0x633   :  { %13730 = vst [vmem:[#allocation62_spill] sm:$0xff] %v12017_v62 }
 0x636   :  { %v12023_v23 = vpop.f32.mrb[56].mxu1 }
 0x637   :  { %13731 = vst [vmem:[#allocation63_spill] sm:$0xff] %v12023_v23  ;;  %v12025_v20 = vpop.f32.mrb[56].mxu0  ;;  %v12027_v44 = vpop.f32.mrb[57].mxu1 }
 0x638   :  { %13732 = vst [vmem:[#allocation64_spill] sm:$0xff] %v12025_v20  ;;  %13733 = vst [vmem:[#allocation65_spill] sm:$0xff] %v12027_v44  ;;  %v12029_v10 = vpop.f32.mrb[57].mxu0  ;;  %v12031_v58 = vpop.f32.mrb[58].mxu1 }
 0x639   :  { %13734 = vst [vmem:[#allocation66_spill] sm:$0xff] %v12029_v10  ;;  %13735 = vst [vmem:[#allocation67_spill] sm:$0xff] %v12031_v58  ;;  %v12033_v4 = vpop.f32.mrb[58].mxu0  ;;  %v12037_v61 = vpop.f32.mrb[59].mxu1  ;;  %v3747_v10 = vld [vmem:[%s13524_s8] sm:$0x3] }
 0x63a   :  { %13736 = vst [vmem:[#allocation68_spill] sm:$0xff] %v12033_v4  ;;  %13737 = vst [vmem:[#allocation69_spill] sm:$0xff] %v12037_v61  ;;  %v12041_v40 = vpop.f32.mrb[59].mxu0 }
 0x63b   :  { %13738 = vst [vmem:[#allocation70_spill] sm:$0xff] %v12041_v40 }
 0x63e   :  { %v12047_v62 = vpop.f32.mrb[60].mxu1 }
 0x63f   :  { %13739 = vst [vmem:[#allocation71_spill] sm:$0xff] %v12047_v62  ;;  %v12049_v34 = vpop.f32.mrb[60].mxu0  ;;  %v12051_v27 = vpop.f32.mrb[61].mxu1 }
 0x640   :  { %13740 = vst [vmem:[#allocation72_spill] sm:$0xff] %v12049_v34  ;;  %13741 = vst [vmem:[#allocation73_spill] sm:$0xff] %v12051_v27  ;;  %v12053_v2 = vpop.f32.mrb[61].mxu0  ;;  %v12055_v23 = vpop.f32.mrb[62].mxu1 }
 0x641   :  { %13742 = vst [vmem:[#allocation74_spill] sm:$0xff] %v12053_v2  ;;  %13743 = vst [vmem:[#allocation75_spill] sm:$0xff] %v12055_v23  ;;  %v12057_v58 = vpop.f32.mrb[62].mxu0  ;;  %v12061_v20 = vpop.f32.mrb[63].mxu1 }
 0x642   :  { %13744 = vst [vmem:[#allocation76_spill] sm:$0xff] %v12057_v58  ;;  %13745 = vst [vmem:[#allocation77_spill] sm:$0xff] %v12061_v20  ;;  %v12065_v49 = vpop.f32.mrb[63].mxu0  ;;  %v13755_v58 = vld [vmem:[#allocation28_spill] sm:$0xff] }
 0x643   :  { %13746 = vst [vmem:[#allocation78_spill] sm:$0xff] %v12065_v49 }
 0x646   :  { %v12071_v40 = vpop.f32.mrb[64].mxu1 }
 0x647   :  { %13747 = vst [vmem:[#allocation79_spill] sm:$0xff] %v12071_v40  ;;  %v12073_v44 = vpop.f32.mrb[64].mxu0  ;;  %v12075_v61 = vpop.f32.mrb[65].mxu1 }
 0x648   :  { %13748 = vst [vmem:[#allocation80_spill] sm:$0xff] %v12073_v44  ;;  %13749 = vst [vmem:[#allocation81_spill] sm:$0xff] %v12075_v61  ;;  %v12077_v47 = vpop.f32.mrb[65].mxu0  ;;  %v12079_v62 = vpop.f32.mrb[66].mxu1  ;;  %v3912_v44 = vrot.slane %v3747_v10, %v13755_v58 }
 0x649   :  { %13750 = vst [vmem:[#allocation82_spill] sm:$0xff] %v12077_v47  ;;  %13751 = vst [vmem:[#allocation83_spill] sm:$0xff] %v12079_v62  ;;  %v12081_v23 = vpop.f32.mrb[66].mxu0  ;;  %v12085_v34 = vpop.f32.mrb[67].mxu1 }
 0x64a   :  { %13752 = vst [vmem:[#allocation84_spill] sm:$0xff] %v12081_v23  ;;  %13753 = vst [vmem:[#allocation85_spill] sm:$0xff] %v12085_v34  ;;  %v12089_v4 = vpop.f32.mrb[67].mxu0  ;;  %v13756_v23 = vld [vmem:[#allocation29_spill] sm:$0xff] }
 0x64b   :  { %13754 = vst [vmem:[#allocation86_spill] sm:$0xff] %v12089_v4  ;;  %v3916_v2 = vrot.slane %v3747_v10, %v13756_v23 }
 0x686   :  { %v3704_v49 = vpop.f32.mrb[68].mxu1 }
 0x687   :  { %v3711_v27 = vmax.f32 %v3704_v49, 0.0  ;;  %v3706_v20 = vpop.f32.mrb[69].mxu1 }
 0x688   :  { %v3712_v31 = vmax.f32 %v3706_v20, 0.0  ;;  %v3708_v22 = vpop.f32.mrb[70].mxu1 }
 0x689   :  { %v3709_v9 = vpop.f32.mrb[71].mxu1  ;;  %v3713_v40 = vpack.c.bf16 %v3711_v27, %v3711_v27 }
 0x68a   :  { %v3714_v53 = vpack.c.bf16 %v3712_v31, %v3712_v31 }
 0x68c   :  { %3951 = vmatprep.mubr.bf16.mxu0 %v3714_v53 }
 0x68d   :  { %3952 = vmatmul.mubr.bf16.vlgmr.msra.gmra.mrb[68].mxu0 %v3713_v40 }
 0x68e   :  { %4101 = vmatprep.mubr.bf16.mxu0 %v13689_v24 }
 0x760   :  { %v3953_v47 = vpop.f32.mrb[68].mxu0 }
 0x761   :  { %v3954_v49 = vadd.f32 %v3953_v47, %v3912_v44  ;;  %v3955_v4 = vpop.f32.mrb[69].mxu0 }
 0x762   :  { %v3956_v20 = vadd.f32 %v3955_v4, %v3916_v2  ;;  %v3957_v22 = vpop.f32.mrb[70].mxu0  ;;  %v13757_v2 = vmax.f32 %v11348_v17, 0.0  ;;  %v13766_v17 = vmax.f32 %v11369_v8, 0.0 }
 0x763   :  { %v3960_v9 = vsub.f32 0.0, %v3954_v49  ;;  %v3958_v31 = vpop.f32.mrb[71].mxu0 }
 0x764   :  { %v3961_v27 = vsub.f32 0.0, %v3956_v20  ;;  %v13758_v20 = vmax.f32 %v11354_v33, 0.0 }
 0x765   :  { %v3962_v53 = vmul.f32 1.442695, %v3960_v9  ;;  %v13759_v9 = vmax.f32 %v11360_v52, 0.0 }
 0x766   :  { %v3964_v40 = vmul.f32 1.442695, %v3961_v27  ;;  %v13763_v27 = vld [vmem:[#allocation31_spill] sm:$0xff] }
 0x767   :  { %10705 = vpow2.f32 %v3962_v53  ;;  %v13764_v53 = vmax.f32 %v13763_v27, 0.0  ;;  %v13767_v27 = vmax.f32 %v11375_v48, 0.0 }
 0x768   :  { %10707 = vpow2.f32 %v3964_v40  ;;  %v13765_v40 = vmax.f32 %v11363_v57, 0.0 }
 0x771   :  { %v10706_v62 = vpop.eup %10705 }
 0x772   :  { %v10708_v61 = vpop.eup %10707  ;;  %v3966_v34 = vadd.f32 1.0, %v10706_v62 }
 0x773   :  { %v3967_v25 = vadd.f32 1.0, %v10708_v61  ;;  %v13760_v61 = vmax.f32 %v11366_v0, 0.0 }
 0x774   :  { %10709 = vrcp.f32 %v3966_v34 }
 0x775   :  { %10711 = vrcp.f32 %v3967_v25  ;;  %v13761_v25 = vld [vmem:[#allocation30_spill] sm:$0xff] }
 0x776   :  { %v13762_v31 = vmax.f32 %v13761_v25, 0.0 }
 0x77e   :  { %v10710_v59 = vpop.eup %10709 }
 0x77f   :  { %v10712_v10 = vpop.eup %10711  ;;  %v3972_v23 = vadd.f32 1.0, %v10710_v59 }
 0x780   :  { %v3973_v47 = vadd.f32 1.0, %v10712_v10 }
 0x781   :  { %v3977_v4 = vrot.slane %v3972_v23, %v13755_v58 }
 0x782   :  { %v3981_v44 = vrot.slane %v3973_v47, %v13755_v58 }
 0x783   :  { %v3982_v49 = vmul.f32 %v3977_v4, %v13757_v2  ;;  %v3984_v22 = vmul.f32 %v3977_v4, %v13758_v20  ;;  %v3986_v62 = vmul.f32 %v3977_v4, %v13759_v9  ;;  %v3988_v34 = vmul.f32 %v3977_v4, %v13760_v61 }
 0x784   :  { %v3983_v59 = vmul.f32 %v3981_v44, %v13762_v31  ;;  %v3985_v23 = vmul.f32 %v3981_v44, %v13764_v53  ;;  %v3987_v10 = vmul.f32 %v3981_v44, %v13765_v40  ;;  %v3989_v47 = vmul.f32 %v3981_v44, %v13766_v17  ;;  %v10713_v53 = vld [vmem:[%s13675_s27] sm:$0xff]  }
 0x785   :  { %v3998_v33 = vpack.c.bf16 %v3982_v49, %v3982_v49  ;;  %v4000_v2 = vpack.c.bf16 %v3984_v22, %v3984_v22  ;;  %v4002_v9 = vpack.c.bf16 %v3986_v62, %v3986_v62  ;;  %v4004_v31 = vpack.c.bf16 %v3988_v34, %v3988_v34 }
 0x786   :  { %v3999_v20 = vpack.c.bf16 %v3983_v59, %v3983_v59  ;;  %v4001_v52 = vpack.c.bf16 %v3985_v23, %v3985_v23  ;;  %v4003_v25 = vpack.c.bf16 %v3987_v10, %v3987_v10  ;;  %v4005_v57 = vpack.c.bf16 %v3989_v47, %v3989_v47 }
 0x787   :  { %v4015_v0 = vsel %vm1623_vm0, %v3998_v33, 0  ;;  %v4064_v61 = vsel %vm1623_vm0, %v4000_v2, 0  ;;  %v3991_v8 = vmul.f32 %v3981_v44, %v13767_v27  ;;  %v13768_v49 = vmax.f32 %v11381_v56, 0.0 }
 0x788   :  { %9657 = vmatprep.subr.msk.bf16.mxu1 %vm1623_vm0, %v3999_v20  ;;  %9659 = vmatprep.subr.msk.bf16.mxu0 %vm1623_vm0, %v4001_v52  ;;  %v4113_v62 = vsel %vm1623_vm0, %v4002_v9, 0  ;;  %v13769_v34 = vmax.f32 %v11372_v36, 0.0  ;;  %v4162_v48 = vsel %vm1623_vm0, %v4004_v31, 0  ;;  %v13770_v40 = vmax.f32 %v13698_v50, 0.0 }
 0x789   :  { %v3993_v22 = vmul.f32 %v3981_v44, %v13768_v49  ;;  %4021 = vmatpush1.bf16.msra.mxu1 %v4015_v0  ;;  %4070 = vmatpush1.bf16.msra.mxu0 %v4064_v61  ;;  %v4007_v56 = vpack.c.bf16 %v3991_v8, %v3991_v8  ;;  %v13771_v36 = vmax.f32 %v11387_v30, 0.0  ;;  %v13772_v47 = vmax.f32 %v11393_v43, 0.0 }
 0x78a   :  { %9661 = vmatprep.subr.msk.bf16.mxu1 %vm1623_vm0, %v4003_v25  ;;  %9663 = vmatprep.subr.msk.bf16.mxu0 %vm1623_vm0, %v4005_v57  ;;  %v3990_v59 = vmul.f32 %v3977_v4, %v13769_v34  ;;  %v3992_v10 = vmul.f32 %v3977_v4, %v13770_v40  ;;  %v13773_v61 = vmax.f32 %v13699_v38, 0.0  ;;  %v13774_v30 = vmax.f32 %v13700_v3, 0.0 }
 0x78b   :  { %v4009_v23 = vpack.c.bf16 %v3993_v22, %v3993_v22  ;;  %v3995_v17 = vmul.f32 %v3981_v44, %v13771_v36  ;;  %v3997_v33 = vmul.f32 %v3981_v44, %v13772_v47 }
 0x78c   :  { %9658 = vmatmul.mubr.msk.bf16.vlgmr.msra.gmra.mrb[72].mxu1 %vm1619_vm1, %v10713_v53  ;;  %9660 = vmatmul.mubr.msk.bf16.vlgmr.msra.gmra.mrb[72].mxu0 %vm1619_vm1, %v10713_v53  ;;  %v4006_v2 = vpack.c.bf16 %v3990_v59, %v3990_v59  ;;  %v4008_v20 = vpack.c.bf16 %v3992_v10, %v3992_v10  ;;  %v3994_v25 = vmul.f32 %v3977_v4, %v13773_v61 }
 0x78d   :  { %4119 = vmatpush1.bf16.msra.mxu1 %v4113_v62  ;;  %4168 = vmatpush1.bf16.msra.mxu0 %v4162_v48  ;;  %v4011_v50 = vpack.c.bf16 %v3995_v17, %v3995_v17  ;;  %v4013_v52 = vpack.c.bf16 %v3997_v33, %v3997_v33  ;;  %v3996_v31 = vmul.f32 %v3977_v4, %v13774_v30 }
 0x78e   :  { %9665 = vmatprep.subr.msk.bf16.mxu1 %vm1623_vm0, %v4007_v56  ;;  %9667 = vmatprep.subr.msk.bf16.mxu0 %vm1623_vm0, %v4009_v23  ;;  %v4211_v9 = vsel %vm1623_vm0, %v4006_v2, 0  ;;  %v4260_v0 = vsel %vm1623_vm0, %v4008_v20, 0  ;;  %v4010_v43 = vpack.c.bf16 %v3994_v25, %v3994_v25 }
 0x78f   :  { %4150 = vmatprep.mubr.bf16.mxu1 %v13689_v24  ;;  %4199 = vmatprep.mubr.bf16.mxu0 %v13689_v24  ;;  %v4012_v44 = vpack.c.bf16 %v3996_v31, %v3996_v31 }
 0x790   :  { %v4309_v38 = vsel %vm1623_vm0, %v4010_v43, 0 }
 0x791   :  { %v4358_v3 = vsel %vm1623_vm0, %v4012_v44, 0 }
 0x794   :  { %9662 = vmatmul.mubr.msk.bf16.vlgmr.msra.gmra.mrb[76].mxu1 %vm1619_vm1, %v10713_v53  ;;  %9664 = vmatmul.mubr.msk.bf16.vlgmr.msra.gmra.mrb[76].mxu0 %vm1619_vm1, %v10713_v53 }
 0x795   :  { %4217 = vmatpush1.bf16.msra.mxu1 %v4211_v9  ;;  %4266 = vmatpush1.bf16.msra.mxu0 %v4260_v0 }
 0x796   :  { %9669 = vmatprep.subr.msk.bf16.mxu1 %vm1623_vm0, %v4011_v50  ;;  %9671 = vmatprep.subr.msk.bf16.mxu0 %vm1623_vm0, %v4013_v52  ;;  %v13775_v52 = vld [vmem:[#allocation35_spill] sm:$0xff] }
 0x797   :  { %4248 = vmatprep.mubr.bf16.mxu1 %v13689_v24  ;;  %4297 = vmatprep.mubr.bf16.mxu0 %v13689_v24 }
 0x79c   :  { %9666 = vmatmul.mubr.msk.bf16.vlgmr.msra.gmra.mrb[80].mxu1 %vm1619_vm1, %v10713_v53  ;;  %9668 = vmatmul.mubr.msk.bf16.vlgmr.msra.gmra.mrb[80].mxu0 %vm1619_vm1, %v10713_v53 }
 0x79d   :  { %4315 = vmatpush1.bf16.msra.mxu1 %v4309_v38  ;;  %4364 = vmatpush1.bf16.msra.mxu0 %v4358_v3 }
 0x79e   :  { %4346 = vmatprep.mubr.bf16.mxu1 %v13689_v24  ;;  %4395 = vmatprep.mubr.bf16.mxu0 %v13689_v24 }
 0x7a4   :  { %9670 = vmatmul.mubr.msk.bf16.vlgmr.msra.gmra.mrb[84].mxu1 %vm1619_vm1, %v10713_v53  ;;  %9672 = vmatmul.mubr.msk.bf16.vlgmr.msra.gmra.mrb[84].mxu0 %vm1619_vm1, %v10713_v53 }
 0x7a5   :  { %5020 = vmatprep.mubr.bf16.mxu1 %v13689_v24  ;;  %5069 = vmatprep.mubr.bf16.mxu0 %v13689_v24 }
 0x85f   :  { %v4054_v4 = vpop.f32.mrb[72].mxu1  ;;  %v4103_v57 = vpop.f32.mrb[72].mxu0 }
 0x860   :  { %v4056_v27 = vpop.f32.mrb[73].mxu1  ;;  %v4105_v8 = vpop.f32.mrb[73].mxu0 }
 0x861   :  { %v4058_v49 = vpop.f32.mrb[74].mxu1  ;;  %v4107_v22 = vpop.f32.mrb[74].mxu0 }
 0x862   :  { %v4060_v62 = vpop.f32.mrb[75].mxu1  ;;  %v4109_v34 = vpop.f32.mrb[75].mxu0 }
 0x867   :  { %v4152_v59 = vpop.f32.mrb[76].mxu1  ;;  %v4201_v48 = vpop.f32.mrb[76].mxu0 }
 0x868   :  { %v4406_v56 = vcombine.low %v4054_v4, %v4152_v59  ;;  %v4407_v23 = vcombine.high %v4054_v4, %v4152_v59  ;;  %v4422_v40 = vcombine.low %v4103_v57, %v4201_v48  ;;  %v4423_v10 = vcombine.high %v4103_v57, %v4201_v48  ;;  %v4154_v36 = vpop.f32.mrb[77].mxu1  ;;  %v4203_v53 = vpop.f32.mrb[77].mxu0 }
 0x869   :  { %v4678_v17 = vcombine.low %v4056_v27, %v4154_v36  ;;  %v4679_v47 = vcombine.high %v4056_v27, %v4154_v36  ;;  %v4694_v33 = vcombine.low %v4105_v8, %v4203_v53  ;;  %v4695_v2 = vcombine.high %v4105_v8, %v4203_v53  ;;  %v4156_v20 = vpop.f32.mrb[78].mxu1  ;;  %v4205_v50 = vpop.f32.mrb[78].mxu0 }
 0x86a   :  { %v4414_v9 = vrot.slane %v4406_v56, %v13775_v52  ;;  %v12172_v0 = vrot.slane %v4407_v23, %v13775_v52  ;;  %v4430_v61 = vrot.slane %v4422_v40, %v13775_v52  ;;  %v12176_v25 = vrot.slane %v4423_v10, %v13775_v52  ;;  %v4158_v30 = vpop.f32.mrb[79].mxu1  ;;  %v4207_v31 = vpop.f32.mrb[79].mxu0 }
 0x86b   :  { %v4686_v43 = vrot.slane %v4678_v17, %v13775_v52  ;;  %v4693_v44 = vrot.slane %v4679_v47, %v13775_v52  ;;  %v4702_v38 = vrot.slane %v4694_v33, %v13775_v52  ;;  %v4709_v3 = vrot.slane %v4695_v2, %v13775_v52 }
 0x86c   :  { %v4470_v4 = vcombine.low %v4414_v9, %v4430_v61  ;;  %v4471_v57 = vcombine.high %v4414_v9, %v4430_v61  ;;  %v4486_v27 = vcombine.low %v12172_v0, %v12176_v25  ;;  %v4542_v40 = vcombine.low %v4058_v49, %v4156_v20 }
 0x86d   :  { %v4742_v59 = vcombine.low %v4686_v43, %v4702_v38  ;;  %v4743_v48 = vcombine.high %v4686_v43, %v4702_v38  ;;  %v4758_v56 = vcombine.low %v4693_v44, %v4709_v3  ;;  %v4759_v23 = vcombine.high %v4693_v44, %v4709_v3 }
 0x86e   :  { %v4543_v10 = vcombine.high %v4058_v49, %v4156_v20  ;;  %v4558_v36 = vcombine.low %v4107_v22, %v4205_v50  ;;  %v4559_v53 = vcombine.high %v4107_v22, %v4205_v50  ;;  %v4814_v17 = vcombine.low %v4060_v62, %v4158_v30 }
 0x86f   :  { %v4815_v47 = vcombine.high %v4060_v62, %v4158_v30  ;;  %v4830_v33 = vcombine.low %v4109_v34, %v4207_v31  ;;  %v4831_v2 = vcombine.high %v4109_v34, %v4207_v31  ;;  %v4250_v58 = vpop.f32.mrb[80].mxu1  ;;  %v4299_v9 = vpop.f32.mrb[80].mxu0  ;;  %v12187_v61 = vrot.slane %v4542_v40, %v13775_v52 }
 0x870   :  { %v12190_v60 = vrot.slane %v4543_v10, %v13775_v52  ;;  %v12193_v43 = vrot.slane %v4558_v36, %v13775_v52  ;;  %v12196_v44 = vrot.slane %v4559_v53, %v13775_v52  ;;  %v4252_v49 = vpop.f32.mrb[81].mxu1  ;;  %v4301_v22 = vpop.f32.mrb[81].mxu0  ;;  %v12199_v62 = vrot.slane %v4814_v17, %v13775_v52 }
 0x871   :  { %v12202_v34 = vrot.slane %v4815_v47, %v13775_v52  ;;  %v12205_v20 = vrot.slane %v4830_v33, %v13775_v52  ;;  %v12208_v50 = vrot.slane %v4831_v2, %v13775_v52  ;;  %v4254_v30 = vpop.f32.mrb[82].mxu1  ;;  %v4303_v31 = vpop.f32.mrb[82].mxu0  ;;  %v12227_v3 = vrot.slane %v4742_v59, %v11563_v18 }
 0x872   :  { %v4256_v36 = vpop.f32.mrb[83].mxu1  ;;  %v4305_v53 = vpop.f32.mrb[83].mxu0  ;;  %v12230_v40 = vrot.slane %v4470_v4, %v11563_v18  ;;  %v12233_v10 = vrot.slane %v4743_v48, %v11563_v18  ;;  %v12236_v8 = vrot.slane %v4471_v57, %v11563_v18  ;;  %v12239_v47 = vrot.slane %v4758_v56, %v11563_v18 }
 0x873   :  { %v12242_v33 = vrot.slane %v4486_v27, %v11563_v18  ;;  %v12245_v59 = vrot.slane %v4759_v23, %v11563_v18 }
 0x877   :  { %v4348_v38 = vpop.f32.mrb[84].mxu1  ;;  %v4397_v17 = vpop.f32.mrb[84].mxu0 }
 0x878   :  { %v4438_v2 = vcombine.low %v4250_v58, %v4348_v38  ;;  %v4439_v4 = vcombine.high %v4250_v58, %v4348_v38  ;;  %v4454_v1 = vcombine.low %v4299_v9, %v4397_v17  ;;  %v4455_v15 = vcombine.high %v4299_v9, %v4397_v17  ;;  %v4350_v48 = vpop.f32.mrb[85].mxu1  ;;  %v4399_v19 = vpop.f32.mrb[85].mxu0 }
 0x879   :  { %v4710_v29 = vcombine.low %v4252_v49, %v4350_v48  ;;  %v4711_v55 = vcombine.high %v4252_v49, %v4350_v48  ;;  %v4726_v6 = vcombine.low %v4301_v22, %v4399_v19  ;;  %v4727_v57 = vcombine.high %v4301_v22, %v4399_v19  ;;  %v4352_v35 = vpop.f32.mrb[86].mxu1  ;;  %v4401_v32 = vpop.f32.mrb[86].mxu0 }
 0x87a   :  { %v4446_v56 = vrot.slane %v4438_v2, %v13775_v52  ;;  %v4453_v27 = vrot.slane %v4439_v4, %v13775_v52  ;;  %v4462_v14 = vrot.slane %v4454_v1, %v13775_v52  ;;  %v4469_v23 = vrot.slane %v4455_v15, %v13775_v52  ;;  %v4354_v26 = vpop.f32.mrb[87].mxu1  ;;  %v4403_v58 = vpop.f32.mrb[87].mxu0 }
 0x87b   :  { %v4718_v9 = vrot.slane %v4710_v29, %v13775_v52  ;;  %v4725_v38 = vrot.slane %v4711_v55, %v13775_v52  ;;  %v4734_v49 = vrot.slane %v4726_v6, %v13775_v52  ;;  %v4741_v19 = vrot.slane %v4727_v57, %v13775_v52 }
 0x87c   :  { %v4502_v22 = vcombine.low %v4446_v56, %v4462_v14  ;;  %v4503_v17 = vcombine.high %v4446_v56, %v4462_v14  ;;  %v4518_v48 = vcombine.low %v4453_v27, %v4469_v23  ;;  %v4519_v2 = vcombine.high %v4453_v27, %v4469_v23 }
 0x87d   :  { %v4774_v12 = vcombine.low %v4718_v9, %v4734_v49  ;;  %v4775_v4 = vcombine.high %v4718_v9, %v4734_v49  ;;  %v4790_v28 = vcombine.low %v4725_v38, %v4741_v19  ;;  %v4791_v1 = vcombine.high %v4725_v38, %v4741_v19 }
 0x87e   :  { %v4574_v46 = vcombine.low %v4254_v30, %v4352_v35  ;;  %v4575_v15 = vcombine.high %v4254_v30, %v4352_v35  ;;  %v4590_v45 = vcombine.low %v4303_v31, %v4401_v32  ;;  %v4591_v39 = vcombine.high %v4303_v31, %v4401_v32 }
 0x87f   :  { %v4846_v13 = vcombine.low %v4256_v36, %v4354_v26  ;;  %v4847_v29 = vcombine.high %v4256_v36, %v4354_v26  ;;  %v4862_v54 = vcombine.low %v4305_v53, %v4403_v58  ;;  %v4863_v55 = vcombine.high %v4305_v53, %v4403_v58 }
 0x880   :  { %v12256_v6 = vrot.slane %v4574_v46, %v13775_v52  ;;  %v12259_v57 = vrot.slane %v4575_v15, %v13775_v52  ;;  %v12262_v14 = vrot.slane %v4590_v45, %v13775_v52  ;;  %v12265_v56 = vrot.slane %v4591_v39, %v13775_v52 }
 0x881   :  { %v12268_v35 = vrot.slane %v4846_v13, %v13775_v52  ;;  %v12271_v32 = vrot.slane %v4847_v29, %v13775_v52  ;;  %v12274_v26 = vrot.slane %v4862_v54, %v13775_v52  ;;  %v12277_v46 = vrot.slane %v4863_v55, %v13775_v52 }
 0x882   :  { %v4638_v30 = vcombine.low %v12256_v6, %v12262_v14  ;;  %v4639_v45 = vcombine.high %v12256_v6, %v12262_v14  ;;  %v4782_v53 = vrot.slane %v4774_v12, %v11563_v18  ;;  %v4510_v27 = vrot.slane %v4502_v22, %v11563_v18 }
 0x883   :  { %v4910_v31 = vcombine.low %v12268_v35, %v12274_v26  ;;  %v4911_v54 = vcombine.high %v12268_v35, %v12274_v26  ;;  %v4789_v23 = vrot.slane %v4775_v4, %v11563_v18  ;;  %v4517_v58 = vrot.slane %v4503_v17, %v11563_v18 }
 0x884   :  { %v4798_v9 = vrot.slane %v4790_v28, %v11563_v18  ;;  %v4526_v38 = vrot.slane %v4518_v48, %v11563_v18  ;;  %v4805_v49 = vrot.slane %v4791_v1, %v11563_v18  ;;  %v4533_v19 = vrot.slane %v4519_v2, %v11563_v18 }
 0x885   :  { %v4806_v15 = vcombine.low %v12227_v3, %v4782_v53  ;;  %v4807_v29 = vcombine.high %v12227_v3, %v4782_v53  ;;  %v4534_v12 = vcombine.low %v12230_v40, %v4510_v27  ;;  %v4535_v22 = vcombine.high %v12230_v40, %v4510_v27 }
 0x886   :  { %v4808_v4 = vcombine.low %v12233_v10, %v4789_v23  ;;  %v4809_v17 = vcombine.high %v12233_v10, %v4789_v23  ;;  %v4536_v28 = vcombine.low %v12236_v8, %v4517_v58  ;;  %v4537_v48 = vcombine.high %v12236_v8, %v4517_v58 }
 0x887   :  { %v4951_v55 = vpack.c.bf16 %v4806_v15, %v4806_v15  ;;  %v4953_v1 = vpack.c.bf16 %v4807_v29, %v4807_v29  ;;  %v4950_v13 = vpack.c.bf16 %v4534_v12, %v4534_v12  ;;  %v4952_v2 = vpack.c.bf16 %v4535_v22, %v4535_v22 }
 0x888   :  { %v4955_v36 = vpack.c.bf16 %v4808_v4, %v4808_v4  ;;  %v4957_v39 = vpack.c.bf16 %v4809_v17, %v4809_v17  ;;  %v4954_v52 = vpack.c.bf16 %v4536_v28, %v4536_v28  ;;  %v4956_v3 = vpack.c.bf16 %v4537_v48, %v4537_v48 }
 0x889   :  { %9673 = vmatprep.subr.msk.bf16.mxu1 %vm1623_vm0, %v4951_v55  ;;  %9675 = vmatprep.subr.msk.bf16.mxu0 %vm1623_vm0, %v4953_v1  ;;  %v4983_v40 = vsel %vm1623_vm0, %v4950_v13, 0  ;;  %v5032_v10 = vsel %vm1623_vm0, %v4952_v2, 0  ;;  %v4810_v53 = vcombine.low %v12239_v47, %v4798_v9  ;;  %v4811_v8 = vcombine.high %v12239_v47, %v4798_v9 }
 0x88a   :  { %4989 = vmatpush1.bf16.msra.mxu1 %v4983_v40  ;;  %5038 = vmatpush1.bf16.msra.mxu0 %v5032_v10  ;;  %v4538_v27 = vcombine.low %v12242_v33, %v4526_v38  ;;  %v4539_v23 = vcombine.high %v12242_v33, %v4526_v38  ;;  %v13776_v58 = vcombine.high %v12172_v0, %v12176_v25  ;;  %v5081_v29 = vsel %vm1623_vm0, %v4954_v52, 0  ;;  %v12337_v0 = vld [vmem:[%s13519_s3] sm:$0xff]  }
 0x88b   :  { %9677 = vmatprep.subr.msk.bf16.mxu1 %vm1623_vm0, %v4955_v36  ;;  %9679 = vmatprep.subr.msk.bf16.mxu0 %vm1623_vm0, %v4957_v39  ;;  %v4812_v13 = vcombine.low %v12245_v59, %v4805_v49  ;;  %v13777_v47 = vcombine.low %v12199_v62, %v12205_v20  ;;  %v4959_v12 = vpack.c.bf16 %v4810_v53, %v4810_v53  ;;  %v5130_v25 = vsel %vm1623_vm0, %v4956_v3, 0 }
 0x88c   :  { %v4501_v15 = vrot.slane %v13776_v58, %v11563_v18  ;;  %v4813_v33 = vcombine.high %v12245_v59, %v4805_v49  ;;  %v4961_v39 = vpack.c.bf16 %v4811_v8, %v4811_v8  ;;  %v4918_v36 = vrot.slane %v4910_v31, %v11563_v18 }
 0x88d   :  { %v4886_v9 = vrot.slane %v13777_v47, %v11563_v18  ;;  %9674 = vmatmul.mubr.msk.bf16.vlgmr.msra.gmra.mrb[88].mxu1 %vm1619_vm1, %v12337_v0  ;;  %9676 = vmatmul.mubr.msk.bf16.vlgmr.msra.gmra.mrb[88].mxu0 %vm1619_vm1, %v12337_v0  ;;  %v13778_v59 = vcombine.low %v12187_v61, %v12193_v43  ;;  %v13779_v22 = vcombine.high %v12199_v62, %v12205_v20 }
 0x88e   :  { %v12332_v38 = vcombine.low %v4501_v15, %v4533_v19  ;;  %v4541_v52 = vcombine.high %v4501_v15, %v4533_v19  ;;  %5087 = vmatpush1.bf16.msra.mxu1 %v5081_v29  ;;  %5136 = vmatpush1.bf16.msra.mxu0 %v5130_v25  ;;  %v13780_v31 = vcombine.high %v12187_v61, %v12193_v43 }
 0x88f   :  { %v4614_v49 = vrot.slane %v13778_v59, %v11563_v18  ;;  %v4893_v4 = vrot.slane %v13779_v22, %v11563_v18  ;;  %9681 = vmatprep.subr.msk.bf16.mxu1 %vm1623_vm0, %v4959_v12  ;;  %9683 = vmatprep.subr.msk.bf16.mxu0 %vm1623_vm0, %v4961_v39  ;;  %v4942_v17 = vcombine.low %v4886_v9, %v4918_v36 }
 0x890   :  { %v4943_v19 = vcombine.high %v4886_v9, %v4918_v36  ;;  %v4621_v28 = vrot.slane %v13780_v31, %v11563_v18  ;;  %5118 = vmatprep.mubr.bf16.mxu1 %v13689_v24  ;;  %5167 = vmatprep.mubr.bf16.mxu0 %v13689_v24  ;;  %v4646_v62 = vrot.slane %v4638_v30, %v11563_v18 }
 0x891   :  { %v4925_v20 = vrot.slane %v4911_v54, %v11563_v18  ;;  %v4653_v61 = vrot.slane %v4639_v45, %v11563_v18  ;;  %v4958_v43 = vpack.c.bf16 %v4538_v27, %v4538_v27  ;;  %v4960_v48 = vpack.c.bf16 %v4539_v23, %v4539_v23 }
 0x892   :  { %v13781_v55 = vcombine.low %v12202_v34, %v12208_v50  ;;  %v13782_v30 = vcombine.low %v12271_v32, %v12277_v46  ;;  %v4670_v3 = vcombine.low %v4614_v49, %v4646_v62  ;;  %v4671_v35 = vcombine.high %v4614_v49, %v4646_v62 }
 0x893   :  { %v4944_v26 = vcombine.low %v4893_v4, %v4925_v20  ;;  %v4945_v54 = vcombine.high %v4893_v4, %v4925_v20  ;;  %v4672_v40 = vcombine.low %v4621_v28, %v4653_v61  ;;  %v4673_v10 = vcombine.high %v4621_v28, %v4653_v61 }
 0x894   :  { %v4902_v1 = vrot.slane %v13781_v55, %v11563_v18  ;;  %v4934_v2 = vrot.slane %v13782_v30, %v11563_v18  ;;  %v13783_v45 = vcombine.low %v12190_v60, %v12196_v44  ;;  %v5179_v8 = vsel %vm1623_vm0, %v4958_v43, 0 }
 0x895   :  { %9678 = vmatmul.mubr.msk.bf16.vlgmr.msra.gmra.mrb[92].mxu1 %vm1619_vm1, %v12337_v0  ;;  %9680 = vmatmul.mubr.msk.bf16.vlgmr.msra.gmra.mrb[92].mxu0 %vm1619_vm1, %v12337_v0  ;;  %v5228_v27 = vsel %vm1623_vm0, %v4960_v48, 0  ;;  %v4963_v23 = vpack.c.bf16 %v4812_v13, %v4812_v13  ;;  %v4965_v58 = vpack.c.bf16 %v4813_v33, %v4813_v33  ;;  %v13784_v15 = vcombine.low %v12259_v57, %v12265_v56 }
 0x896   :  { %v12381_v6 = vcombine.low %v4902_v1, %v4934_v2  ;;  %v12383_v14 = vcombine.high %v4902_v1, %v4934_v2  ;;  %v4630_v53 = vrot.slane %v13783_v45, %v11563_v18  ;;  %5185 = vmatpush1.bf16.msra.mxu1 %v5179_v8  ;;  %5234 = vmatpush1.bf16.msra.mxu0 %v5228_v27  ;;  %v10450_v45 = vld [vmem:[#allocation12 + $0x8] sm:$0xff]   ;;  %v10452_v8 = vld [vmem:[#allocation12 + $0x18] sm:$0xff]   ;;  %v10453_v27 = vld [vmem:[#allocation12 + $0x20] sm:$0xff]  }
 0x897   :  { %v4662_v47 = vrot.slane %v13784_v15, %v11563_v18  ;;  %v13785_v9 = vcombine.high %v12202_v34, %v12208_v50  ;;  %v13786_v12 = vcombine.high %v12190_v60, %v12196_v44  ;;  %9685 = vmatprep.subr.msk.bf16.mxu1 %vm1623_vm0, %v4963_v23  ;;  %9687 = vmatprep.subr.msk.bf16.mxu0 %vm1623_vm0, %v4965_v58  ;;  %v10455_v23 = vld [vmem:[#allocation12 + $0x30] sm:$0xff]   ;;  %v10456_v58 = vld [vmem:[#allocation12 + $0x38] sm:$0xff]   ;;  %v10457_v15 = vld [vmem:[#allocation12 + $0x40] sm:$0xff]  }
 0x898   :  { %v4962_v13 = vpack.c.bf16 %v12332_v38, %v12332_v38  ;;  %v13787_v33 = vcombine.high %v12271_v32, %v12277_v46  ;;  %v13788_v34 = vcombine.high %v12259_v57, %v12265_v56  ;;  %5216 = vmatprep.mubr.bf16.mxu1 %v13689_v24  ;;  %5265 = vmatprep.mubr.bf16.mxu0 %v13689_v24 }
 0x899   :  { %v4909_v29 = vrot.slane %v13785_v9, %v11563_v18  ;;  %v4637_v25 = vrot.slane %v13786_v12, %v11563_v18  ;;  %v4964_v60 = vpack.c.bf16 %v4541_v52, %v4541_v52  ;;  %v4674_v44 = vcombine.low %v4630_v53, %v4662_v47  ;;  %v10459_v9 = vld [vmem:[#allocation12 + $0x50] sm:$0xff]   ;;  %v10461_v12 = vld [vmem:[#allocation12 + $0x60] sm:$0xff]  }
 0x89a   :  { %v4941_v39 = vrot.slane %v13787_v33, %v11563_v18  ;;  %v4669_v50 = vrot.slane %v13788_v34, %v11563_v18  ;;  %v4675_v36 = vcombine.high %v4630_v53, %v4662_v47  ;;  %v5277_v57 = vsel %vm1623_vm0, %v4962_v13, 0  ;;  %v10451_v53 = vld [vmem:[#allocation12 + $0x10] sm:$0xff]   ;;  %v10458_v47 = vld [vmem:[#allocation12 + $0x48] sm:$0xff]   ;;  %v10464_v33 = vld [vmem:[#allocation12 + $0x78] sm:$0xff]  }
 0x89b   :  { %v5326_v18 = vsel %vm1623_vm0, %v4964_v60, 0  ;;  %v4967_v56 = vpack.c.bf16 %v4942_v17, %v4942_v17  ;;  %v4969_v32 = vpack.c.bf16 %v4943_v19, %v4943_v19  ;;  %v4966_v46 = vpack.c.bf16 %v4670_v3, %v4670_v3  ;;  %v10463_v13 = vld [vmem:[#allocation12 + $0x70] sm:$0xff]   ;;  %v10471_v60 = vld [vmem:[#allocation6 + $0x24] ss:$8 sps:$4 sm:$0xff]  }
 0x89c   :  { %v4948_v59 = vcombine.low %v4909_v29, %v4941_v39  ;;  %v4949_v49 = vcombine.high %v4909_v29, %v4941_v39  ;;  %v4676_v38 = vcombine.low %v4637_v25, %v4669_v50  ;;  %v4677_v22 = vcombine.high %v4637_v25, %v4669_v50  ;;  %v10460_v29 = vld [vmem:[#allocation12 + $0x58] sm:$0xff]   ;;  %v10462_v25 = vld [vmem:[#allocation12 + $0x68] sm:$0xff]  }
 0x89d   :  { %9682 = vmatmul.mubr.msk.bf16.vlgmr.msra.gmra.mrb[96].mxu1 %vm1619_vm1, %v12337_v0  ;;  %9684 = vmatmul.mubr.msk.bf16.vlgmr.msra.gmra.mrb[96].mxu0 %vm1619_vm1, %v12337_v0  ;;  %v4968_v52 = vpack.c.bf16 %v4671_v35, %v4671_v35  ;;  %v5375_v4 = vsel %vm1623_vm0, %v4966_v46, 0  ;;  %v4971_v19 = vpack.c.bf16 %v4944_v26, %v4944_v26  ;;  %v4973_v31 = vpack.c.bf16 %v4945_v54, %v4945_v54  ;;  %v10465_v39 = vld [vmem:[#allocation6] ss:$8 sps:$4 sm:$0xff]   ;;  %v10468_v34 = vld [vmem:[#allocation6 + $0x14] ss:$8 sps:$4 sm:$0xff]  }
 0x89e   :  { %5283 = vmatpush1.bf16.msra.mxu1 %v5277_v57  ;;  %5332 = vmatpush1.bf16.msra.mxu0 %v5326_v18  ;;  %v4970_v28 = vpack.c.bf16 %v4672_v40, %v4672_v40  ;;  %v4972_v62 = vpack.c.bf16 %v4673_v10, %v4673_v10  ;;  %v4975_v43 = vpack.c.bf16 %v12381_v6, %v12381_v6  ;;  %v10449_v6 = vld [vmem:[#allocation12] sm:$0xff]   ;;  %v10470_v50 = vld [vmem:[#allocation6 + $0x10] ss:$8 sps:$4 sm:$0xff]   ;;  %v10524_v57 = vld [vmem:[#allocation15 + $0x14] ss:$8 sps:$4 sm:$0xff]  }
 0x89f   :  { %9689 = vmatprep.subr.msk.bf16.mxu1 %vm1623_vm0, %v4967_v56  ;;  %9691 = vmatprep.subr.msk.bf16.mxu0 %vm1623_vm0, %v4969_v32  ;;  %v5424_v17 = vsel %vm1623_vm0, %v4968_v52, 0  ;;  %v4977_v48 = vpack.c.bf16 %v12383_v14, %v12383_v14  ;;  %v4974_v55 = vpack.c.bf16 %v4674_v44, %v4674_v44  ;;  %v4976_v1 = vpack.c.bf16 %v4675_v36, %v4675_v36  ;;  %v10467_v14 = vld [vmem:[#allocation6 + $0x4] ss:$8 sps:$4 sm:$0xff]   ;;  %v10473_v44 = vld [vmem:[#allocation6 + $0x20] ss:$8 sps:$4 sm:$0xff]  }
 0x8a0   :  { %5314 = vmatprep.mubr.bf16.mxu1 %v13689_v24  ;;  %5363 = vmatprep.mubr.bf16.mxu0 %v13689_v24  ;;  %v5473_v20 = vsel %vm1623_vm0, %v4970_v28, 0  ;;  %v5522_v61 = vsel %vm1623_vm0, %v4972_v62, 0  ;;  %v4979_v3 = vpack.c.bf16 %v4948_v59, %v4948_v59  ;;  %v4981_v35 = vpack.c.bf16 %v4949_v49, %v4949_v49  ;;  %v10474_v36 = vld [vmem:[#allocation6 + $0x34] ss:$8 sps:$4 sm:$0xff]   ;;  %v10476_v59 = vld [vmem:[#allocation6 + $0x30] ss:$8 sps:$4 sm:$0xff]  }
 0x8a1   :  { %v5571_v30 = vsel %vm1623_vm0, %v4974_v55, 0  ;;  %v5620_v2 = vsel %vm1623_vm0, %v4976_v1, 0  ;;  %v4978_v26 = vpack.c.bf16 %v4676_v38, %v4676_v38  ;;  %v4980_v54 = vpack.c.bf16 %v4677_v22, %v4677_v22  ;;  %v10477_v49 = vld [vmem:[#allocation6 + $0x44] ss:$8 sps:$4 sm:$0xff]   ;;  %v10519_v38 = vld [vmem:[#allocation15] ss:$8 sps:$4 sm:$0xff]  }
 0x8a2   :  { %v10521_v22 = vld [vmem:[#allocation15 + $0x4] ss:$8 sps:$4 sm:$0xff]   ;;  %v10522_v18 = vld [vmem:[#allocation15 + $0x10] ss:$8 sps:$4 sm:$0xff]   ;;  %v10479_v32 = vld [vmem:[#allocation6 + $0x40] ss:$8 sps:$4 sm:$0xff]  }
 0x8a3   :  { %v5669_v40 = vsel %vm1623_vm0, %v4978_v26, 0  ;;  %v5718_v10 = vsel %vm1623_vm0, %v4980_v54, 0  ;;  %v10527_v56 = vld [vmem:[#allocation15 + $0x24] ss:$8 sps:$4 sm:$0xff]   ;;  %v10480_v46 = vld [vmem:[#allocation6 + $0x54] ss:$8 sps:$4 sm:$0xff]  }
 0x8a4   :  { %v10525_v52 = vld [vmem:[#allocation15 + $0x20] ss:$8 sps:$4 sm:$0xff]   ;;  %v10483_v28 = vld [vmem:[#allocation6 + $0x64] ss:$8 sps:$4 sm:$0xff]   ;;  %v10488_v55 = vld [vmem:[#allocation6 + $0x70] ss:$8 sps:$4 sm:$0xff]  }
 0x8a5   :  { %9686 = vmatmul.mubr.msk.bf16.vlgmr.msra.gmra.mrb[100].mxu1 %vm1619_vm1, %v12337_v0  ;;  %9688 = vmatmul.mubr.msk.bf16.vlgmr.msra.gmra.mrb[100].mxu0 %vm1619_vm1, %v12337_v0  ;;  %v10531_v62 = vld [vmem:[#allocation15 + $0x40] ss:$8 sps:$4 sm:$0xff]   ;;  %v10489_v1 = vld [vmem:[#allocation6 + $0x84] ss:$8 sps:$4 sm:$0xff]   ;;  %v10498_v54 = vld [vmem:[#allocation6 + $0xb4] ss:$8 sps:$4 sm:$0xff]  }
 0x8a6   :  { %5381 = vmatpush1.bf16.msra.mxu1 %v5375_v4  ;;  %5430 = vmatpush1.bf16.msra.mxu0 %v5424_v17  ;;  %v10530_v4 = vld [vmem:[#allocation15 + $0x34] ss:$8 sps:$4 sm:$0xff]   ;;  %v10528_v17 = vld [vmem:[#allocation15 + $0x30] ss:$8 sps:$4 sm:$0xff]   ;;  %v10497_v26 = vld [vmem:[#allocation6 + $0xa0] ss:$8 sps:$4 sm:$0xff]  }
 0x8a7   :  { %9693 = vmatprep.subr.msk.bf16.mxu1 %vm1623_vm0, %v4971_v19  ;;  %9695 = vmatprep.subr.msk.bf16.mxu0 %vm1623_vm0, %v4973_v31  ;;  %v10533_v19 = vld [vmem:[#allocation15 + $0x44] ss:$8 sps:$4 sm:$0xff]   ;;  %v10482_v31 = vld [vmem:[#allocation6 + $0x50] ss:$8 sps:$4 sm:$0xff]  }
 0x8a8   :  { %5412 = vmatprep.mubr.bf16.mxu1 %v13689_v24  ;;  %5461 = vmatprep.mubr.bf16.mxu0 %v13689_v24 }
 0x8ad   :  { %9690 = vmatmul.mubr.msk.bf16.vlgmr.msra.gmra.mrb[104].mxu1 %vm1619_vm1, %v12337_v0  ;;  %9692 = vmatmul.mubr.msk.bf16.vlgmr.msra.gmra.mrb[104].mxu0 %vm1619_vm1, %v12337_v0 }
 0x8ae   :  { %5479 = vmatpush1.bf16.msra.mxu1 %v5473_v20  ;;  %5528 = vmatpush1.bf16.msra.mxu0 %v5522_v61  ;;  %v10536_v20 = vld [vmem:[#allocation15 + $0x54] ss:$8 sps:$4 sm:$0xff]   ;;  %v10534_v61 = vld [vmem:[#allocation15 + $0x50] ss:$8 sps:$4 sm:$0xff]  }
 0x8af   :  { %9697 = vmatprep.subr.msk.bf16.mxu1 %vm1623_vm0, %v4975_v43  ;;  %9699 = vmatprep.subr.msk.bf16.mxu0 %vm1623_vm0, %v4977_v48  ;;  %v10485_v43 = vld [vmem:[#allocation6 + $0x60] ss:$8 sps:$4 sm:$0xff]   ;;  %v10486_v48 = vld [vmem:[#allocation6 + $0x74] ss:$8 sps:$4 sm:$0xff]  }
 0x8b0   :  { %5510 = vmatprep.mubr.bf16.mxu1 %v13689_v24  ;;  %5559 = vmatprep.mubr.bf16.mxu0 %v13689_v24 }
 0x8b5   :  { %9694 = vmatmul.mubr.msk.bf16.vlgmr.msra.gmra.mrb[108].mxu1 %vm1619_vm1, %v12337_v0  ;;  %9696 = vmatmul.mubr.msk.bf16.vlgmr.msra.gmra.mrb[108].mxu0 %vm1619_vm1, %v12337_v0 }
 0x8b6   :  { %5577 = vmatpush1.bf16.msra.mxu1 %v5571_v30  ;;  %5626 = vmatpush1.bf16.msra.mxu0 %v5620_v2  ;;  %v10491_v30 = vld [vmem:[#allocation6 + $0x80] ss:$8 sps:$4 sm:$0xff]   ;;  %v10492_v2 = vld [vmem:[#allocation6 + $0x94] ss:$8 sps:$4 sm:$0xff]  }
 0x8b7   :  { %9701 = vmatprep.subr.msk.bf16.mxu1 %vm1623_vm0, %v4979_v3  ;;  %9703 = vmatprep.subr.msk.bf16.mxu0 %vm1623_vm0, %v4981_v35  ;;  %v10494_v3 = vld [vmem:[#allocation6 + $0x90] ss:$8 sps:$4 sm:$0xff]   ;;  %v10495_v35 = vld [vmem:[#allocation6 + $0xa4] ss:$8 sps:$4 sm:$0xff]  }
 0x8b8   :  { %5608 = vmatprep.mubr.bf16.mxu1 %v13689_v24  ;;  %5657 = vmatprep.mubr.bf16.mxu0 %v13689_v24 }
 0x8bd   :  { %9698 = vmatmul.mubr.msk.bf16.vlgmr.msra.gmra.mrb[112].mxu1 %vm1619_vm1, %v12337_v0  ;;  %9700 = vmatmul.mubr.msk.bf16.vlgmr.msra.gmra.mrb[112].mxu0 %vm1619_vm1, %v12337_v0 }
 0x8be   :  { %5675 = vmatpush1.bf16.msra.mxu1 %v5669_v40  ;;  %5724 = vmatpush1.bf16.msra.mxu0 %v5718_v10  ;;  %v10500_v40 = vld [vmem:[#allocation6 + $0xb0] ss:$8 sps:$4 sm:$0xff]   ;;  %v10501_v10 = vld [vmem:[#allocation6 + $0xc4] ss:$8 sps:$4 sm:$0xff]  }
 0x8bf   :  { %5706 = vmatprep.mubr.bf16.mxu1 %v13689_v24  ;;  %6349 = vmatprep.subr.bf16.mxu1 %v13689_v24 }
 0x8c0   :  { %5755 = vmatprep.mubr.bf16.mxu0 %v13689_v24  ;;  %6926 = vmatprep.subr.bf16.mxu0 %v10521_v22 }
 0x8c5   :  { %9702 = vmatmul.mubr.msk.bf16.vlgmr.msra.gmra.mrb[116].mxu1 %vm1619_vm1, %v12337_v0  ;;  %9704 = vmatmul.mubr.msk.bf16.vlgmr.msra.gmra.mrb[116].mxu0 %vm1619_vm1, %v12337_v0  ;;  %v10454_v0 = vld [vmem:[#allocation12 + $0x28] sm:$0xff]  }
 0x8c6   :  { %6350 = vmatpush1.bf16.msra.mxu1 %v10449_v6  ;;  %6381 = vmatprep.mubr.bf16.mxu1 %v10467_v14  ;;  %v10537_v6 = vld [vmem:[#allocation15 + $0x60] ss:$8 sps:$4 sm:$0xff]   ;;  %v10539_v14 = vld [vmem:[#allocation15 + $0x64] ss:$8 sps:$4 sm:$0xff]  }
 0x8c7   :  { %6351 = vmatprep.subr.bf16.mxu1 %v13689_v24  ;;  %6958 = vmatprep.mubr.bf16.mxu0 %v13689_v24 }
 0x8c8   :  { %6927 = vmatpush1.bf16.msra.mxu0 %v10519_v38 }
 0x8c9   :  { %6928 = vmatprep.subr.bf16.mxu0 %v10524_v57 }
 0x8ca   :  { %6352 = vmatpush1.bf16.msra.mxu1 %v10450_v45  ;;  %v10540_v45 = vld [vmem:[#allocation15 + $0x70] ss:$8 sps:$4 sm:$0xff]  }
 0x8cb   :  { %6353 = vmatprep.subr.bf16.mxu1 %v13689_v24 }
 0x8cc   :  { %6929 = vmatpush1.bf16.msra.mxu0 %v10522_v18 }
 0x8cd   :  { %6930 = vmatprep.subr.bf16.mxu0 %v10527_v56 }
 0x8ce   :  { %6354 = vmatpush1.bf16.msra.mxu1 %v10451_v53  ;;  %v10542_v53 = vld [vmem:[#allocation15 + $0x74] ss:$8 sps:$4 sm:$0xff]  }
 0x8cf   :  { %6355 = vmatprep.subr.bf16.mxu1 %v13689_v24 }
 0x8d0   :  { %6931 = vmatpush1.bf16.msra.mxu0 %v10525_v52 }
 0x8d1   :  { %6932 = vmatprep.subr.bf16.mxu0 %v10530_v4 }
 0x8d2   :  { %6356 = vmatpush1.bf16.msra.mxu1 %v10452_v8 }
 0x8d3   :  { %6357 = vmatprep.subr.bf16.mxu1 %v13689_v24 }
 0x8d4   :  { %6933 = vmatpush1.bf16.msra.mxu0 %v10528_v17 }
 0x8d5   :  { %6934 = vmatprep.subr.bf16.mxu0 %v10533_v19 }
 0x8d6   :  { %6358 = vmatpush1.bf16.msra.mxu1 %v10453_v27  ;;  %v10503_v27 = vld [vmem:[#allocation6 + $0xc0] ss:$8 sps:$4 sm:$0xff]  }
 0x8d7   :  { %6359 = vmatprep.subr.bf16.mxu1 %v13689_v24 }
 0x8d8   :  { %6935 = vmatpush1.bf16.msra.mxu0 %v10531_v62 }
 0x8d9   :  { %6936 = vmatprep.subr.bf16.mxu0 %v10536_v20 }
 0x8da   :  { %6360 = vmatpush1.bf16.msra.mxu1 %v10454_v0 }
 0x8db   :  { %6361 = vmatprep.subr.bf16.mxu1 %v13689_v24 }
 0x8dc   :  { %6937 = vmatpush1.bf16.msra.mxu0 %v10534_v61 }
 0x8dd   :  { %6938 = vmatprep.subr.bf16.mxu0 %v10539_v14 }
 0x8de   :  { %6362 = vmatpush1.bf16.msra.mxu1 %v10455_v23  ;;  %v10504_v23 = vld [vmem:[#allocation6 + $0xd4] ss:$8 sps:$4 sm:$0xff]  }
 0x8df   :  { %6363 = vmatprep.subr.bf16.mxu1 %v13689_v24 }
 0x8e0   :  { %6939 = vmatpush1.bf16.msra.mxu0 %v10537_v6 }
 0x8e1   :  { %6940 = vmatprep.subr.bf16.mxu0 %v10542_v53 }
 0x8e2   :  { %6364 = vmatpush1.bf16.msra.mxu1 %v10456_v58 }
 0x8e3   :  { %6365 = vmatprep.subr.bf16.mxu1 %v13689_v24 }
 0x8e4   :  { %6941 = vmatpush1.bf16.msra.mxu0 %v10540_v45 }
 0x8e6   :  { %6366 = vmatpush1.bf16.msra.mxu1 %v10457_v15 }
 0x8e7   :  { %6367 = vmatprep.subr.bf16.mxu1 %v13689_v24 }
 0x8ea   :  { %6368 = vmatpush1.bf16.msra.mxu1 %v10458_v47 }
 0x8eb   :  { %6369 = vmatprep.subr.bf16.mxu1 %v13689_v24 }
 0x8ee   :  { %6370 = vmatpush1.bf16.msra.mxu1 %v10459_v9 }
 0x8ef   :  { %6371 = vmatprep.subr.bf16.mxu1 %v13689_v24 }
 0x8f2   :  { %6372 = vmatpush1.bf16.msra.mxu1 %v10460_v29 }
 0x8f3   :  { %6373 = vmatprep.subr.bf16.mxu1 %v13689_v24 }
 0x8f6   :  { %6374 = vmatpush1.bf16.msra.mxu1 %v10461_v12  ;;  %v10506_v12 = vld [vmem:[#allocation6 + $0xd0] ss:$8 sps:$4 sm:$0xff]  }
 0x8f7   :  { %6375 = vmatprep.subr.bf16.mxu1 %v13689_v24 }
 0x8fa   :  { %6376 = vmatpush1.bf16.msra.mxu1 %v10462_v25 }
 0x8fb   :  { %6377 = vmatprep.subr.bf16.mxu1 %v13689_v24 }
 0x8fe   :  { %6378 = vmatpush1.bf16.msra.mxu1 %v10463_v13  ;;  %v10507_v13 = vld [vmem:[#allocation6 + $0xe4] ss:$8 sps:$4 sm:$0xff]  }
 0x8ff   :  { %6379 = vmatprep.subr.bf16.mxu1 %v13689_v24 }
 0x902   :  { %6380 = vmatpush1.bf16.msra.mxu1 %v10464_v33 }
 0x903   :  { %9883 = vmatprep.subr.bf16.mxu1 %v10521_v22 }
 0x905   :  { %6382 = vmatmul.mubr.bf16.vlgmr.msra.gmra.mrb[120].mxu1 %v10465_v39  ;;  %v10546_v39 = vld [vmem:[#allocation14 + $0x10] ss:$8 sps:$4 sm:$0xff]  }
 0x906   :  { %6389 = vmatprep.mubr.bf16.mxu1 %v10468_v34  ;;  %9891 = vmatpush1.bf16.msra.mxu1 %v10519_v38 }
 0x907   :  { %9884 = vmatprep.subr.bf16.mxu1 %v10524_v57 }
 0x90a   :  { %9892 = vmatpush1.bf16.msra.mxu1 %v10522_v18 }
 0x90b   :  { %9885 = vmatprep.subr.bf16.mxu1 %v10527_v56 }
 0x90d   :  { %6390 = vmatmul.mubr.bf16.gmra.mrb[124].mxu1 %v10470_v50 }
 0x90e   :  { %6397 = vmatprep.mubr.bf16.mxu1 %v10471_v60  ;;  %9893 = vmatpush1.bf16.msra.mxu1 %v10525_v52  ;;  %v10545_v60 = vld [vmem:[#allocation14 + $0x4] ss:$8 sps:$4 sm:$0xff]  }
 0x90f   :  { %9886 = vmatprep.subr.bf16.mxu1 %v10530_v4  ;;  %7439 = vmatprep.subr.bf16.mxu0 %v10545_v60  ;;  %v10513_v52 = vld [vmem:[#allocation6 + $0x104] ss:$8 sps:$4 sm:$0xff]  }
 0x912   :  { %9894 = vmatpush1.bf16.msra.mxu1 %v10528_v17 }
 0x913   :  { %9887 = vmatprep.subr.bf16.mxu1 %v10533_v19 }
 0x915   :  { %6398 = vmatmul.mubr.bf16.gmra.mrb[128].mxu1 %v10473_v44 }
 0x916   :  { %6405 = vmatprep.mubr.bf16.mxu1 %v10474_v36  ;;  %9895 = vmatpush1.bf16.msra.mxu1 %v10531_v62  ;;  %v10509_v36 = vld [vmem:[#allocation6 + $0xe0] ss:$8 sps:$4 sm:$0xff]  }
 0x917   :  { %9888 = vmatprep.subr.bf16.mxu1 %v10536_v20  ;;  %v10515_v62 = vld [vmem:[#allocation6 + $0x100] ss:$8 sps:$4 sm:$0xff]  }
 0x91a   :  { %9896 = vmatpush1.bf16.msra.mxu1 %v10534_v61  ;;  %v10516_v61 = vld [vmem:[#allocation6 + $0x114] ss:$8 sps:$4 sm:$0xff]  }
 0x91b   :  { %9889 = vmatprep.subr.bf16.mxu1 %v10539_v14 }
 0x91d   :  { %6406 = vmatmul.mubr.bf16.gmra.mrb[132].mxu1 %v10476_v59 }
 0x91e   :  { %6413 = vmatprep.mubr.bf16.mxu1 %v10477_v49  ;;  %9897 = vmatpush1.bf16.msra.mxu1 %v10537_v6  ;;  %v10510_v49 = vld [vmem:[#allocation6 + $0xf4] ss:$8 sps:$4 sm:$0xff]  }
 0x91f   :  { %9890 = vmatprep.subr.bf16.mxu1 %v10542_v53 }
 0x922   :  { %9898 = vmatpush1.bf16.msra.mxu1 %v10540_v45  ;;  %v10554_v45 = vld [vmem:[#allocation6 + $0x120] ss:$8 sps:$4 sm:$0xff]  }
 0x925   :  { %6414 = vmatmul.mubr.bf16.gmra.mrb[136].mxu1 %v10479_v32  ;;  %v10512_v32 = vld [vmem:[#allocation6 + $0xf0] ss:$8 sps:$4 sm:$0xff]  }
 0x926   :  { %6421 = vmatprep.mubr.bf16.mxu1 %v10480_v46 }
 0x92d   :  { %6422 = vmatmul.mubr.bf16.gmra.mrb[140].mxu1 %v10482_v31  ;;  %v10548_v31 = vld [vmem:[#allocation14 + $0x14] ss:$8 sps:$4 sm:$0xff]  }
 0x92e   :  { %6429 = vmatprep.mubr.bf16.mxu1 %v10483_v28 }
 0x935   :  { %6430 = vmatmul.mubr.bf16.gmra.mrb[144].mxu1 %v10485_v43 }
 0x936   :  { %6437 = vmatprep.mubr.bf16.mxu1 %v10486_v48  ;;  %v10587_v48 = vld [vmem:[#allocation6 + $0x180] ss:$8 sps:$4 sm:$0xff]  }
 0x93d   :  { %6438 = vmatmul.mubr.bf16.gmra.mrb[148].mxu1 %v10488_v55 }
 0x93e   :  { %6445 = vmatprep.mubr.bf16.mxu1 %v10489_v1 }
 0x945   :  { %6446 = vmatmul.mubr.bf16.gmra.mrb[152].mxu1 %v10491_v30 }
 0x946   :  { %6453 = vmatprep.mubr.bf16.mxu1 %v10492_v2  ;;  %v10518_v2 = vld [vmem:[#allocation6 + $0x110] ss:$8 sps:$4 sm:$0xff]  }
 0x94d   :  { %6454 = vmatmul.mubr.bf16.gmra.mrb[156].mxu1 %v10494_v3 }
 0x94e   :  { %6461 = vmatprep.mubr.bf16.mxu1 %v10495_v35 }
 0x955   :  { %6462 = vmatmul.mubr.bf16.gmra.mrb[160].mxu1 %v10497_v26  ;;  %v10552_v26 = vld [vmem:[#allocation6 + $0x124] ss:$8 sps:$4 sm:$0xff]  }
 0x956   :  { %6469 = vmatprep.mubr.bf16.mxu1 %v10498_v54  ;;  %v10579_v54 = vld [vmem:[#allocation6 + $0x174] ss:$8 sps:$4 sm:$0xff]  }
 0x95d   :  { %6470 = vmatmul.mubr.bf16.gmra.mrb[164].mxu1 %v10500_v40 }
 0x95e   :  { %6477 = vmatprep.mubr.bf16.mxu1 %v10501_v10  ;;  %v10585_v10 = vld [vmem:[#allocation6 + $0x184] ss:$8 sps:$4 sm:$0xff]  }
 0x960   :  { %v12494_v8 = vpop.f32.mrb[88].mxu1 }
 0x961   :  { %v12496_v0 = vpop.f32.mrb[89].mxu1 }
 0x962   :  { %v12498_v58 = vpop.f32.mrb[90].mxu1 }
 0x963   :  { %v12502_v47 = vpop.f32.mrb[91].mxu1 }
 0x965   :  { %6478 = vmatmul.mubr.bf16.gmra.mrb[168].mxu1 %v10503_v27  ;;  %v10558_v27 = vld [vmem:[#allocation6 + $0x134] ss:$8 sps:$4 sm:$0xff]  }
 0x966   :  { %6485 = vmatprep.mubr.bf16.mxu1 %v10504_v23  ;;  %v10573_v23 = vld [vmem:[#allocation6 + $0x164] ss:$8 sps:$4 sm:$0xff]  }
 0x968   :  { %v12506_v29 = vpop.f32.mrb[92].mxu1 }
 0x969   :  { %v12508_v25 = vpop.f32.mrb[93].mxu1 }
 0x96a   :  { %v12510_v33 = vpop.f32.mrb[94].mxu1 }
 0x96b   :  { %v12514_v34 = vpop.f32.mrb[95].mxu1 }
 0x96d   :  { %6486 = vmatmul.mubr.bf16.gmra.mrb[172].mxu1 %v10506_v12 }
 0x96e   :  { %6493 = vmatprep.mubr.bf16.mxu1 %v10507_v13  ;;  %v10575_v13 = vld [vmem:[#allocation6 + $0x160] ss:$8 sps:$4 sm:$0xff]  }
 0x970   :  { %v12518_v44 = vpop.f32.mrb[96].mxu1 }
 0x971   :  { %v12520_v59 = vpop.f32.mrb[97].mxu1 }
 0x972   :  { %v12522_v38 = vpop.f32.mrb[98].mxu1 }
 0x973   :  { %v12526_v57 = vpop.f32.mrb[99].mxu1 }
 0x975   :  { %6494 = vmatmul.mubr.bf16.gmra.mrb[176].mxu1 %v10509_v36 }
 0x976   :  { %6501 = vmatprep.mubr.bf16.mxu1 %v10510_v49  ;;  %v10560_v49 = vld [vmem:[#allocation6 + $0x130] ss:$8 sps:$4 sm:$0xff]  }
 0x978   :  { %v12530_v56 = vpop.f32.mrb[100].mxu1 }
 0x979   :  { %v12532_v46 = vpop.f32.mrb[101].mxu1 }
 0x97a   :  { %v12534_v4 = vpop.f32.mrb[102].mxu1 }
 0x97b   :  { %v12538_v19 = vpop.f32.mrb[103].mxu1 }
 0x97d   :  { %6502 = vmatmul.mubr.bf16.gmra.mrb[180].mxu1 %v10512_v32 }
 0x97e   :  { %6509 = vmatprep.mubr.bf16.mxu1 %v10513_v52  ;;  %v10564_v52 = vld [vmem:[#allocation6 + $0x144] ss:$8 sps:$4 sm:$0xff]  }
 0x980   :  { %v12542_v28 = vpop.f32.mrb[104].mxu1 }
 0x981   :  { %13789 = vst [vmem:[#allocation30_spill] sm:$0xff] %v12542_v28  ;;  %v12544_v20 = vpop.f32.mrb[105].mxu1 }
 0x982   :  { %v12546_v43 = vpop.f32.mrb[106].mxu1 }
 0x983   :  { %13790 = vst [vmem:[#allocation31_spill] sm:$0xff] %v12546_v43  ;;  %v12550_v55 = vpop.f32.mrb[107].mxu1 }
 0x985   :  { %6510 = vmatmul.mubr.bf16.gmra.mrb[184].mxu1 %v10515_v62  ;;  %v10581_v62 = vld [vmem:[#allocation6 + $0x170] ss:$8 sps:$4 sm:$0xff]  }
 0x986   :  { %6517 = vmatprep.mubr.bf16.mxu1 %v10516_v61 }
 0x988   :  { %v12554_v30 = vpop.f32.mrb[108].mxu1 }
 0x989   :  { %13791 = vst [vmem:[#allocation35_spill] sm:$0xff] %v12554_v30  ;;  %v12556_v3 = vpop.f32.mrb[109].mxu1 }
 0x98a   :  { %13792 = vst [vmem:[#allocation87_spill] sm:$0xff] %v12556_v3  ;;  %v12558_v35 = vpop.f32.mrb[110].mxu1  ;;  %v10602_v3 = vld [vmem:[#allocation14 + $0xa4] ss:$8 sps:$4 sm:$0xff]  }
 0x98b   :  { %13793 = vst [vmem:[#allocation88_spill] sm:$0xff] %v12558_v35  ;;  %v12562_v40 = vpop.f32.mrb[111].mxu1 }
 0x98c   :  { %13794 = vst [vmem:[#allocation89_spill] sm:$0xff] %v12562_v40  ;;  %v10614_v40 = vld [vmem:[#allocation14 + $0xc4] ss:$8 sps:$4 sm:$0xff]  }
 0x98d   :  { %6518 = vmatmul.mubr.bf16.gmra.mrb[188].mxu1 %v10518_v2  ;;  %v10591_v2 = vld [vmem:[#allocation6 + $0x194] ss:$8 sps:$4 sm:$0xff]  }
 0x98e   :  { %6525 = vmatprep.mubr.bf16.mxu1 %v10552_v26  ;;  %v10566_v26 = vld [vmem:[#allocation6 + $0x140] ss:$8 sps:$4 sm:$0xff]  }
 0x990   :  { %v12566_v6 = vpop.f32.mrb[112].mxu1 }
 0x991   :  { %13795 = vst [vmem:[#allocation90_spill] sm:$0xff] %v12566_v6  ;;  %v12568_v14 = vpop.f32.mrb[113].mxu1  ;;  %v10576_v6 = vld [vmem:[#allocation14 + $0x60] ss:$8 sps:$4 sm:$0xff]  }
 0x992   :  { %13796 = vst [vmem:[#allocation91_spill] sm:$0xff] %v12568_v14  ;;  %v12570_v53 = vpop.f32.mrb[114].mxu1 }
 0x993   :  { %13797 = vst [vmem:[#allocation92_spill] sm:$0xff] %v12570_v53  ;;  %v12574_v12 = vpop.f32.mrb[115].mxu1 }
 0x994   :  { %13798 = vst [vmem:[#allocation93_spill] sm:$0xff] %v12574_v12 }
 0x995   :  { %6526 = vmatmul.mubr.bf16.gmra.mrb[192].mxu1 %v10554_v45  ;;  %v10567_v45 = vld [vmem:[#allocation6 + $0x154] ss:$8 sps:$4 sm:$0xff]  }
 0x996   :  { %6533 = vmatprep.mubr.bf16.mxu1 %v10558_v27  ;;  %v10572_v27 = vld [vmem:[#allocation6 + $0x150] ss:$8 sps:$4 sm:$0xff]  }
 0x998   :  { %v12578_v60 = vpop.f32.mrb[116].mxu1 }
 0x999   :  { %13799 = vst [vmem:[#allocation94_spill] sm:$0xff] %v12578_v60  ;;  %v12580_v36 = vpop.f32.mrb[117].mxu1 }
 0x99a   :  { %13800 = vst [vmem:[#allocation95_spill] sm:$0xff] %v12580_v36  ;;  %v12582_v32 = vpop.f32.mrb[118].mxu1  ;;  %v10578_v36 = vld [vmem:[#allocation14 + $0x64] ss:$8 sps:$4 sm:$0xff]  }
 0x99b   :  { %13801 = vst [vmem:[#allocation96_spill] sm:$0xff] %v12582_v32  ;;  %v12586_v61 = vpop.f32.mrb[119].mxu1 }
 0x99c   :  { %13802 = vst [vmem:[#allocation97_spill] sm:$0xff] %v12586_v61 }
 0x99d   :  { %6534 = vmatmul.mubr.bf16.gmra.mrb[196].mxu1 %v10560_v49  ;;  %v10593_v49 = vld [vmem:[#allocation6 + $0x190] ss:$8 sps:$4 sm:$0xff]  }
 0x99e   :  { %6541 = vmatprep.mubr.bf16.mxu1 %v10564_v52  ;;  %v10597_v52 = vld [vmem:[#allocation6 + $0x1a4] ss:$8 sps:$4 sm:$0xff]  }
 0x9a5   :  { %6542 = vmatmul.mubr.bf16.gmra.mrb[200].mxu1 %v10566_v26  ;;  %v10599_v26 = vld [vmem:[#allocation6 + $0x1a0] ss:$8 sps:$4 sm:$0xff]  }
 0x9a6   :  { %6549 = vmatprep.mubr.bf16.mxu1 %v10567_v45  ;;  %v10603_v45 = vld [vmem:[#allocation6 + $0x1b4] ss:$8 sps:$4 sm:$0xff]  }
 0x9ad   :  { %6550 = vmatmul.mubr.bf16.gmra.mrb[204].mxu1 %v10572_v27 }
 0x9ae   :  { %6557 = vmatprep.mubr.bf16.mxu1 %v10573_v23  ;;  %v12593_v23 = vld [vmem:[%s13526_s10] ss:$0 sm:$0xff] }
 0x9b5   :  { %6558 = vmatmul.mubr.bf16.gmra.mrb[208].mxu1 %v10575_v13 }
 0x9b6   :  { %6565 = vmatprep.mubr.bf16.mxu1 %v10579_v54 }
 0x9bd   :  { %6566 = vmatmul.mubr.bf16.gmra.mrb[212].mxu1 %v10581_v62  ;;  %v10605_v62 = vld [vmem:[#allocation6 + $0x1b0] ss:$8 sps:$4 sm:$0xff]  }
 0x9be   :  { %6573 = vmatprep.mubr.bf16.mxu1 %v10585_v10 }
 0x9c5   :  { %6574 = vmatmul.mubr.bf16.gmra.mrb[216].mxu1 %v10587_v48 }
 0x9c6   :  { %6581 = vmatprep.mubr.bf16.mxu1 %v10591_v2  ;;  %v10609_v2 = vld [vmem:[#allocation6 + $0x1c4] ss:$8 sps:$4 sm:$0xff]  }
 0x9cd   :  { %6582 = vmatmul.mubr.bf16.gmra.mrb[220].mxu1 %v10593_v49 }
 0x9ce   :  { %6589 = vmatprep.mubr.bf16.mxu1 %v10597_v52 }
 0x9d5   :  { %6590 = vmatmul.mubr.bf16.gmra.mrb[224].mxu1 %v10599_v26  ;;  %v10543_v26 = vld [vmem:[#allocation14] ss:$8 sps:$4 sm:$0xff]  }
 0x9d6   :  { %6597 = vmatprep.mubr.bf16.mxu1 %v10603_v45 }
 0x9d8   :  { %v6383_v54 = vpop.f32.mrb[120].mxu1 }
 0x9d9   :  { %v6384_v10 = vadd.f32 %v12593_v23, %v6383_v54  ;;  %v6385_v13 = vpop.f32.mrb[121].mxu1  ;;  %v10611_v54 = vld [vmem:[#allocation6 + $0x1c0] ss:$8 sps:$4 sm:$0xff]  }
 0x9da   :  { %v6386_v48 = vpop.f32.mrb[122].mxu1 }
 0x9db   :  { %v6387_v27 = vadd.f32 %v12593_v23, %v6386_v48  ;;  %v6388_v49 = vpop.f32.mrb[123].mxu1  ;;  %v6638_v52 = vmax.f32 %v6384_v10, 0.0  ;;  %v10615_v48 = vld [vmem:[#allocation6 + $0x1d4] ss:$8 sps:$4 sm:$0xff]  }
 0x9dc   :  { %v10549_v49 = vld [vmem:[#allocation14 + $0x20] ss:$8 sps:$4 sm:$0xff]  }
 0x9dd   :  { %v6639_v1 = vmax.f32 %v6387_v27, 0.0  ;;  %6598 = vmatmul.mubr.bf16.gmra.mrb[228].mxu1 %v10605_v62  ;;  %v10551_v62 = vld [vmem:[#allocation14 + $0x24] ss:$8 sps:$4 sm:$0xff]  }
 0x9de   :  { %6605 = vmatprep.mubr.bf16.mxu1 %v10609_v2 }
 0x9df   :  { %v6702_v17 = vpack.c.bf16 %v6639_v1, %v6638_v52  ;;  %v12600_v52 = vpop.f32.mrb[88].mxu0 }
 0x9e0   :  { %v6391_v22 = vpop.f32.mrb[124].mxu1 }
 0x9e1   :  { %v6392_v45 = vadd.f32 %v12593_v23, %v6391_v22  ;;  %v6393_v18 = vpop.f32.mrb[125].mxu1  ;;  %6959 = vmatmul.mubr.bf16.vlgmr.msra.gmra.mrb[120].mxu0 %v6702_v17 }
 0x9e2   :  { %v6394_v13 = vpop.f32.mrb[126].mxu1  ;;  %6968 = vmatprep.mubr.bf16.mxu0 %v13689_v24  ;;  %7440 = vmatpush1.bf16.msra.mxu0 %v10543_v26  ;;  %v10557_v18 = vld [vmem:[#allocation14 + $0x34] ss:$8 sps:$4 sm:$0xff]  }
 0x9e3   :  { %v6395_v10 = vadd.f32 %v12593_v23, %v6394_v13  ;;  %v6396_v27 = vpop.f32.mrb[127].mxu1  ;;  %7441 = vmatprep.subr.bf16.mxu0 %v10548_v31  ;;  %v6640_v2 = vmax.f32 %v6392_v45, 0.0  ;;  %v10617_v13 = vld [vmem:[#allocation6 + $0x1d0] ss:$8 sps:$4 sm:$0xff]   ;;  %v10618_v45 = vld [vmem:[#allocation6 + $0x1e4] ss:$8 sps:$4 sm:$0xff]  }
 0x9e4   :  { %v12603_v27 = vpop.f32.mrb[89].mxu0 }
 0x9e5   :  { %v6641_v1 = vmax.f32 %v6395_v10, 0.0  ;;  %6606 = vmatmul.mubr.bf16.gmra.mrb[232].mxu1 %v10611_v54  ;;  %v12606_v54 = vpop.f32.mrb[90].mxu0 }
 0x9e6   :  { %7442 = vmatpush1.bf16.msra.mxu0 %v10546_v39  ;;  %6613 = vmatprep.mubr.bf16.mxu1 %v10615_v48  ;;  %v10555_v39 = vld [vmem:[#allocation14 + $0x30] ss:$8 sps:$4 sm:$0xff]  }
 0x9e7   :  { %v6703_v22 = vpack.c.bf16 %v6641_v1, %v6640_v2  ;;  %7443 = vmatprep.subr.bf16.mxu0 %v10551_v62  ;;  %v10563_v62 = vld [vmem:[#allocation14 + $0x44] ss:$8 sps:$4 sm:$0xff]   ;;  %v12611_v2 = vpop.f32.mrb[91].mxu0 }
 0x9e8   :  { %v6399_v17 = vpop.f32.mrb[128].mxu1 }
 0x9e9   :  { %v6400_v26 = vadd.f32 %v12593_v23, %v6399_v17  ;;  %v6401_v50 = vpop.f32.mrb[129].mxu1  ;;  %6969 = vmatmul.mubr.bf16.gmra.mrb[124].mxu0 %v6703_v22  ;;  %v12615_v22 = vpop.f32.mrb[92].mxu0 }
 0x9ea   :  { %v6402_v31 = vpop.f32.mrb[130].mxu1  ;;  %6978 = vmatprep.mubr.bf16.mxu0 %v13689_v24  ;;  %7444 = vmatpush1.bf16.msra.mxu0 %v10549_v49  ;;  %v12617_v15 = vpop.f32.mrb[93].mxu0  ;;  %v10571_v50 = vld [vmem:[#allocation14 + $0x54] ss:$8 sps:$4 sm:$0xff]  }
 0x9eb   :  { %v6403_v48 = vadd.f32 %v12593_v23, %v6402_v31  ;;  %v6404_v10 = vpop.f32.mrb[131].mxu1  ;;  %7445 = vmatprep.subr.bf16.mxu0 %v10557_v18  ;;  %v6642_v49 = vmax.f32 %v6400_v26, 0.0  ;;  %v10561_v31 = vld [vmem:[#allocation14 + $0x40] ss:$8 sps:$4 sm:$0xff]   ;;  %v12619_v18 = vpop.f32.mrb[94].mxu0 }
 0x9ec   :  { %v12623_v60 = vpop.f32.mrb[95].mxu0 }
 0x9ed   :  { %v6643_v17 = vmax.f32 %v6403_v48, 0.0  ;;  %6614 = vmatmul.mubr.bf16.gmra.mrb[236].mxu1 %v10617_v13 }
 0x9ee   :  { %7446 = vmatpush1.bf16.msra.mxu0 %v10555_v39  ;;  %6621 = vmatprep.mubr.bf16.mxu1 %v10618_v45  ;;  %v10623_v39 = vld [vmem:[#allocation6 + $0x1e0] ss:$8 sps:$4 sm:$0xff]  }
 0x9ef   :  { %v6704_v10 = vpack.c.bf16 %v6643_v17, %v6642_v49  ;;  %7447 = vmatprep.subr.bf16.mxu0 %v10563_v62  ;;  %v10569_v62 = vld [vmem:[#allocation14 + $0x50] ss:$8 sps:$4 sm:$0xff]   ;;  %v10627_v49 = vld [vmem:[#allocation6 + $0x1f4] ss:$8 sps:$4 sm:$0xff]   ;;  %v12629_v17 = vpop.f32.mrb[96].mxu0 }
 0x9f0   :  { %v6407_v1 = vpop.f32.mrb[132].mxu1  ;;  %v12632_v61 = vpop.f32.mrb[97].mxu0 }
 0x9f1   :  { %v6408_v13 = vadd.f32 %v12593_v23, %v6407_v1  ;;  %v6409_v48 = vpop.f32.mrb[133].mxu1  ;;  %6979 = vmatmul.mubr.bf16.gmra.mrb[128].mxu0 %v6704_v10  ;;  %v12634_v26 = vpop.f32.mrb[98].mxu0 }
 0x9f2   :  { %v6410_v45 = vpop.f32.mrb[134].mxu1  ;;  %6988 = vmatprep.mubr.bf16.mxu0 %v13689_v24  ;;  %7448 = vmatpush1.bf16.msra.mxu0 %v10561_v31  ;;  %v12638_v31 = vpop.f32.mrb[99].mxu0  ;;  %v10582_v48 = vld [vmem:[#allocation14 + $0x70] ss:$8 sps:$4 sm:$0xff]  }
 0x9f3   :  { %v6411_v9 = vadd.f32 %v12593_v23, %v6410_v45  ;;  %v6412_v32 = vpop.f32.mrb[135].mxu1  ;;  %7449 = vmatprep.subr.bf16.mxu0 %v10571_v50  ;;  %v6644_v1 = vmax.f32 %v6408_v13, 0.0  ;;  %v10584_v45 = vld [vmem:[#allocation14 + $0x74] ss:$8 sps:$4 sm:$0xff]  }
 0x9f5   :  { %v6645_v10 = vmax.f32 %v6411_v9, 0.0  ;;  %6622 = vmatmul.mubr.bf16.gmra.mrb[240].mxu1 %v10623_v39  ;;  %v10629_v9 = vld [vmem:[#allocation6 + $0x1f0] ss:$8 sps:$4 sm:$0xff]  }
 0x9f6   :  { %7450 = vmatpush1.bf16.msra.mxu0 %v10569_v62  ;;  %6629 = vmatprep.mubr.bf16.mxu1 %v10627_v49  ;;  %v12644_v62 = vpop.f32.mrb[100].mxu0 }
 0x9f7   :  { %v6705_v50 = vpack.c.bf16 %v6645_v10, %v6644_v1  ;;  %7451 = vmatprep.subr.bf16.mxu0 %v10578_v36  ;;  %v10590_v1 = vld [vmem:[#allocation14 + $0x84] ss:$8 sps:$4 sm:$0xff]   ;;  %v12647_v36 = vpop.f32.mrb[101].mxu0 }
 0x9f8   :  { %v6415_v53 = vpop.f32.mrb[136].mxu1  ;;  %v12649_v10 = vpop.f32.mrb[102].mxu0 }
 0x9f9   :  { %v6416_v14 = vadd.f32 %v12593_v23, %v6415_v53  ;;  %v6417_v13 = vpop.f32.mrb[137].mxu1  ;;  %6989 = vmatmul.mubr.bf16.gmra.mrb[132].mxu0 %v6705_v50  ;;  %v12653_v32 = vpop.f32.mrb[103].mxu0  ;;  %v10594_v50 = vld [vmem:[#allocation14 + $0x90] ss:$8 sps:$4 sm:$0xff]  }
 0x9fa   :  { %v6418_v39 = vpop.f32.mrb[138].mxu1  ;;  %6998 = vmatprep.mubr.bf16.mxu0 %v13689_v24  ;;  %7452 = vmatpush1.bf16.msra.mxu0 %v10576_v6  ;;  %v10588_v6 = vld [vmem:[#allocation14 + $0x80] ss:$8 sps:$4 sm:$0xff]  }
 0x9fb   :  { %v6419_v49 = vadd.f32 %v12593_v23, %v6418_v39  ;;  %v6420_v12 = vpop.f32.mrb[139].mxu1  ;;  %7453 = vmatprep.subr.bf16.mxu0 %v10584_v45  ;;  %v6646_v53 = vmax.f32 %v6416_v14, 0.0  ;;  %v10596_v45 = vld [vmem:[#allocation14 + $0x94] ss:$8 sps:$4 sm:$0xff]  }
 0x9fd   :  { %v6647_v13 = vmax.f32 %v6419_v49, 0.0  ;;  %6630 = vmatmul.mubr.bf16.gmra.mrb[244].mxu1 %v10629_v9 }
 0x9fe   :  { %7454 = vmatpush1.bf16.msra.mxu0 %v10582_v48  ;;  %7138 = vmatprep.mubr.bf16.mxu1 %v13689_v24  ;;  %v12660_v48 = vpop.f32.mrb[104].mxu0 }
 0x9ff   :  { %v6706_v12 = vpack.c.bf16 %v6647_v13, %v6646_v53  ;;  %7455 = vmatprep.subr.bf16.mxu0 %v10590_v1  ;;  %13803 = vst [vmem:[#allocation98_spill] sm:$0xff] %v12660_v48  ;;  %v12663_v53 = vpop.f32.mrb[105].mxu0 }
 0xa00   :  { %v6423_v30 = vpop.f32.mrb[140].mxu1  ;;  %13804 = vst [vmem:[#allocation99_spill] sm:$0xff] %v12663_v53  ;;  %v12665_v1 = vpop.f32.mrb[106].mxu0 }
 0xa01   :  { %v6424_v14 = vadd.f32 %v12593_v23, %v6423_v30  ;;  %v6425_v49 = vpop.f32.mrb[141].mxu1  ;;  %6999 = vmatmul.mubr.bf16.gmra.mrb[136].mxu0 %v6706_v12  ;;  %13805 = vst [vmem:[#allocation100_spill] sm:$0xff] %v12665_v1  ;;  %v10626_v1 = vld [vmem:[#allocation14 + $0xe4] ss:$8 sps:$4 sm:$0xff]  }
 0xa02   :  { %v6426_v9 = vpop.f32.mrb[142].mxu1  ;;  %7008 = vmatprep.mubr.bf16.mxu0 %v13689_v24  ;;  %7456 = vmatpush1.bf16.msra.mxu0 %v10588_v6  ;;  %v12669_v49 = vpop.f32.mrb[107].mxu0  ;;  %v10600_v6 = vld [vmem:[#allocation14 + $0xa0] ss:$8 sps:$4 sm:$0xff]  }
 0xa03   :  { %v6427_v35 = vadd.f32 %v12593_v23, %v6426_v9  ;;  %v6428_v39 = vpop.f32.mrb[143].mxu1  ;;  %7457 = vmatprep.subr.bf16.mxu0 %v10596_v45  ;;  %v6648_v13 = vmax.f32 %v6424_v14, 0.0  ;;  %13806 = vst [vmem:[#allocation101_spill] sm:$0xff] %v12669_v49  ;;  %v12675_v12 = vpop.f32.mrb[108].mxu0 }
 0xa04   :  { %v10608_v39 = vld [vmem:[#allocation14 + $0xb4] ss:$8 sps:$4 sm:$0xff]   ;;  %13807 = vst [vmem:[#allocation102_spill] sm:$0xff] %v12675_v12 }
 0xa05   :  { %v6649_v30 = vmax.f32 %v6427_v35, 0.0  ;;  %v10606_v35 = vld [vmem:[#allocation14 + $0xb0] ss:$8 sps:$4 sm:$0xff]  }
 0xa06   :  { %7458 = vmatpush1.bf16.msra.mxu0 %v10594_v50 }
 0xa07   :  { %v6707_v9 = vpack.c.bf16 %v6649_v30, %v6648_v13  ;;  %7459 = vmatprep.subr.bf16.mxu0 %v10602_v3  ;;  %v12678_v13 = vpop.f32.mrb[109].mxu0 }
 0xa08   :  { %v6431_v45 = vpop.f32.mrb[144].mxu1  ;;  %13808 = vst [vmem:[#allocation103_spill] sm:$0xff] %v12678_v13  ;;  %v12680_v3 = vpop.f32.mrb[110].mxu0 }
 0xa09   :  { %v6432_v28 = vadd.f32 %v12593_v23, %v6431_v45  ;;  %v6433_v43 = vpop.f32.mrb[145].mxu1  ;;  %7009 = vmatmul.mubr.bf16.gmra.mrb[140].mxu0 %v6707_v9  ;;  %13809 = vst [vmem:[#allocation104_spill] sm:$0xff] %v12680_v3  ;;  %v12684_v9 = vpop.f32.mrb[111].mxu0 }
 0xa0a   :  { %v6434_v14 = vpop.f32.mrb[146].mxu1  ;;  %7018 = vmatprep.mubr.bf16.mxu0 %v13689_v24  ;;  %7460 = vmatpush1.bf16.msra.mxu0 %v10600_v6  ;;  %13810 = vst [vmem:[#allocation105_spill] sm:$0xff] %v12684_v9  ;;  %v10612_v6 = vld [vmem:[#allocation14 + $0xc0] ss:$8 sps:$4 sm:$0xff]   ;;  %v12690_v43 = vpop.f32.mrb[112].mxu0 }
 0xa0b   :  { %v6435_v50 = vadd.f32 %v12593_v23, %v6434_v14  ;;  %v6436_v48 = vpop.f32.mrb[147].mxu1  ;;  %7461 = vmatprep.subr.bf16.mxu0 %v10608_v39  ;;  %v6650_v30 = vmax.f32 %v6432_v28, 0.0  ;;  %13811 = vst [vmem:[#allocation106_spill] sm:$0xff] %v12690_v43 }
 0xa0c   :  { %v10622_v48 = vld [vmem:[#allocation14 + $0xd4] ss:$8 sps:$4 sm:$0xff]  }
 0xa0d   :  { %v6651_v45 = vmax.f32 %v6435_v50, 0.0  ;;  %v10620_v50 = vld [vmem:[#allocation14 + $0xd0] ss:$8 sps:$4 sm:$0xff]  }
 0xa0e   :  { %7462 = vmatpush1.bf16.msra.mxu0 %v10606_v35 }
 0xa0f   :  { %v6708_v14 = vpack.c.bf16 %v6651_v45, %v6650_v30  ;;  %7463 = vmatprep.subr.bf16.mxu0 %v10614_v40  ;;  %v12693_v30 = vpop.f32.mrb[113].mxu0 }
 0xa10   :  { %v6439_v39 = vpop.f32.mrb[148].mxu1  ;;  %13812 = vst [vmem:[#allocation107_spill] sm:$0xff] %v12693_v30  ;;  %v12695_v40 = vpop.f32.mrb[114].mxu0 }
 0xa11   :  { %v6440_v53 = vadd.f32 %v12593_v23, %v6439_v39  ;;  %v6441_v49 = vpop.f32.mrb[149].mxu1  ;;  %7019 = vmatmul.mubr.bf16.gmra.mrb[144].mxu0 %v6708_v14  ;;  %13813 = vst [vmem:[#allocation108_spill] sm:$0xff] %v12695_v40  ;;  %v12699_v14 = vpop.f32.mrb[115].mxu0 }
 0xa12   :  { %v6442_v28 = vpop.f32.mrb[150].mxu1  ;;  %7028 = vmatprep.mubr.bf16.mxu0 %v13689_v24  ;;  %7464 = vmatpush1.bf16.msra.mxu0 %v10612_v6  ;;  %v10624_v6 = vld [vmem:[#allocation14 + $0xe0] ss:$8 sps:$4 sm:$0xff]   ;;  %v12705_v49 = vpop.f32.mrb[116].mxu0 }
 0xa13   :  { %v6443_v35 = vadd.f32 %v12593_v23, %v6442_v28  ;;  %v6444_v12 = vpop.f32.mrb[151].mxu1  ;;  %7465 = vmatprep.subr.bf16.mxu0 %v10622_v48  ;;  %v6652_v45 = vmax.f32 %v6440_v53, 0.0  ;;  %13814 = vst [vmem:[#allocation109_spill] sm:$0xff] %v12705_v49  ;;  %v12708_v3 = vpop.f32.mrb[117].mxu0 }
 0xa14   :  { %v10632_v12 = vld [vmem:[#allocation14 + $0xf4] ss:$8 sps:$4 sm:$0xff]   ;;  %13815 = vst [vmem:[#allocation110_spill] sm:$0xff] %v12708_v3 }
 0xa15   :  { %v6653_v39 = vmax.f32 %v6443_v35, 0.0  ;;  %v10630_v35 = vld [vmem:[#allocation14 + $0xf0] ss:$8 sps:$4 sm:$0xff]  }
 0xa16   :  { %7466 = vmatpush1.bf16.msra.mxu0 %v10620_v50 }
 0xa17   :  { %v6709_v28 = vpack.c.bf16 %v6653_v39, %v6652_v45  ;;  %7467 = vmatprep.subr.bf16.mxu0 %v10626_v1  ;;  %v12710_v1 = vpop.f32.mrb[118].mxu0 }
 0xa18   :  { %v6447_v48 = vpop.f32.mrb[152].mxu1  ;;  %13816 = vst [vmem:[#allocation111_spill] sm:$0xff] %v12710_v1 }
 0xa19   :  { %v6448_v13 = vadd.f32 %v12593_v23, %v6447_v48  ;;  %v6449_v9 = vpop.f32.mrb[153].mxu1  ;;  %7029 = vmatmul.mubr.bf16.gmra.mrb[148].mxu0 %v6709_v28  ;;  %v12714_v28 = vpop.f32.mrb[119].mxu0 }
 0xa1a   :  { %v6450_v53 = vpop.f32.mrb[154].mxu1  ;;  %7038 = vmatprep.mubr.bf16.mxu0 %v13689_v24  ;;  %7468 = vmatpush1.bf16.msra.mxu0 %v10624_v6  ;;  %13817 = vst [vmem:[#allocation112_spill] sm:$0xff] %v12714_v28 }
 0xa1b   :  { %v6451_v50 = vadd.f32 %v12593_v23, %v6450_v53  ;;  %v6452_v43 = vpop.f32.mrb[155].mxu1  ;;  %7469 = vmatprep.subr.bf16.mxu0 %v10632_v12  ;;  %v6654_v45 = vmax.f32 %v6448_v13, 0.0 }
 0xa1d   :  { %v6655_v39 = vmax.f32 %v6451_v50, 0.0 }
 0xa1e   :  { %7470 = vmatpush1.bf16.msra.mxu0 %v10630_v35 }
 0xa1f   :  { %v6710_v48 = vpack.c.bf16 %v6655_v39, %v6654_v45  ;;  %9008 = vmatprep.subr.bf16.mxu0 %v13689_v24 }
 0xa20   :  { %v6455_v43 = vpop.f32.mrb[156].mxu1 }
 0xa21   :  { %v6456_v12 = vadd.f32 %v12593_v23, %v6455_v43  ;;  %v6457_v53 = vpop.f32.mrb[157].mxu1  ;;  %7039 = vmatmul.mubr.bf16.gmra.mrb[152].mxu0 %v6710_v48 }
 0xa22   :  { %v6458_v40 = vpop.f32.mrb[158].mxu1  ;;  %7048 = vmatprep.mubr.bf16.mxu0 %v13689_v24 }
 0xa23   :  { %v6459_v13 = vadd.f32 %v12593_v23, %v6458_v40  ;;  %v6460_v50 = vpop.f32.mrb[159].mxu1  ;;  %v6656_v9 = vmax.f32 %v6456_v12, 0.0 }
 0xa25   :  { %v6657_v49 = vmax.f32 %v6459_v13, 0.0 }
 0xa27   :  { %v6711_v35 = vpack.c.bf16 %v6657_v49, %v6656_v9 }
 0xa28   :  { %v6463_v1 = vpop.f32.mrb[160].mxu1 }
 0xa29   :  { %v6464_v6 = vadd.f32 %v12593_v23, %v6463_v1  ;;  %v6465_v45 = vpop.f32.mrb[161].mxu1  ;;  %7049 = vmatmul.mubr.bf16.gmra.mrb[156].mxu0 %v6711_v35 }
 0xa2a   :  { %v6466_v39 = vpop.f32.mrb[162].mxu1  ;;  %7058 = vmatprep.mubr.bf16.mxu0 %v13689_v24 }
 0xa2b   :  { %v6467_v43 = vadd.f32 %v12593_v23, %v6466_v39  ;;  %v6468_v48 = vpop.f32.mrb[163].mxu1  ;;  %v6658_v53 = vmax.f32 %v6464_v6, 0.0 }
 0xa2d   :  { %v6659_v3 = vmax.f32 %v6467_v43, 0.0 }
 0xa2f   :  { %v6712_v28 = vpack.c.bf16 %v6659_v3, %v6658_v53 }
 0xa30   :  { %v6471_v30 = vpop.f32.mrb[164].mxu1 }
 0xa31   :  { %v6472_v40 = vadd.f32 %v12593_v23, %v6471_v30  ;;  %v6473_v12 = vpop.f32.mrb[165].mxu1  ;;  %7059 = vmatmul.mubr.bf16.gmra.mrb[160].mxu0 %v6712_v28 }
 0xa32   :  { %v6474_v49 = vpop.f32.mrb[166].mxu1  ;;  %7068 = vmatprep.mubr.bf16.mxu0 %v13689_v24 }
 0xa33   :  { %v6475_v1 = vadd.f32 %v12593_v23, %v6474_v49  ;;  %v6476_v9 = vpop.f32.mrb[167].mxu1  ;;  %v6660_v13 = vmax.f32 %v6472_v40, 0.0 }
 0xa35   :  { %v6661_v50 = vmax.f32 %v6475_v1, 0.0 }
 0xa37   :  { %v6713_v35 = vpack.c.bf16 %v6661_v50, %v6660_v13 }
 0xa38   :  { %v6479_v45 = vpop.f32.mrb[168].mxu1 }
 0xa39   :  { %v6480_v39 = vadd.f32 %v12593_v23, %v6479_v45  ;;  %v6481_v6 = vpop.f32.mrb[169].mxu1  ;;  %7069 = vmatmul.mubr.bf16.gmra.mrb[164].mxu0 %v6713_v35 }
 0xa3a   :  { %v6482_v3 = vpop.f32.mrb[170].mxu1  ;;  %7078 = vmatprep.mubr.bf16.mxu0 %v13689_v24 }
 0xa3b   :  { %v6483_v30 = vadd.f32 %v12593_v23, %v6482_v3  ;;  %v6484_v28 = vpop.f32.mrb[171].mxu1  ;;  %v6662_v43 = vmax.f32 %v6480_v39, 0.0 }
 0xa3d   :  { %v6663_v48 = vmax.f32 %v6483_v30, 0.0 }
 0xa3f   :  { %v6714_v53 = vpack.c.bf16 %v6663_v48, %v6662_v43 }
 0xa40   :  { %v6487_v12 = vpop.f32.mrb[172].mxu1 }
 0xa41   :  { %v6488_v49 = vadd.f32 %v12593_v23, %v6487_v12  ;;  %v6489_v40 = vpop.f32.mrb[173].mxu1  ;;  %7079 = vmatmul.mubr.bf16.gmra.mrb[168].mxu0 %v6714_v53 }
 0xa42   :  { %v6490_v1 = vpop.f32.mrb[174].mxu1  ;;  %7088 = vmatprep.mubr.bf16.mxu0 %v13689_v24 }
 0xa43   :  { %v6491_v9 = vadd.f32 %v12593_v23, %v6490_v1  ;;  %v6492_v13 = vpop.f32.mrb[175].mxu1  ;;  %v6664_v50 = vmax.f32 %v6488_v49, 0.0 }
 0xa45   :  { %v6665_v35 = vmax.f32 %v6491_v9, 0.0 }
 0xa47   :  { %v6715_v45 = vpack.c.bf16 %v6665_v35, %v6664_v50 }
 0xa48   :  { %v6495_v6 = vpop.f32.mrb[176].mxu1 }
 0xa49   :  { %v6496_v3 = vadd.f32 %v12593_v23, %v6495_v6  ;;  %v6497_v39 = vpop.f32.mrb[177].mxu1  ;;  %7089 = vmatmul.mubr.bf16.gmra.mrb[172].mxu0 %v6715_v45 }
 0xa4a   :  { %v6498_v30 = vpop.f32.mrb[178].mxu1  ;;  %7098 = vmatprep.mubr.bf16.mxu0 %v13689_v24 }
 0xa4b   :  { %v6499_v28 = vadd.f32 %v12593_v23, %v6498_v30  ;;  %v6500_v43 = vpop.f32.mrb[179].mxu1  ;;  %v6666_v48 = vmax.f32 %v6496_v3, 0.0 }
 0xa4d   :  { %v6667_v53 = vmax.f32 %v6499_v28, 0.0 }
 0xa4f   :  { %v6716_v12 = vpack.c.bf16 %v6667_v53, %v6666_v48 }
 0xa50   :  { %v6503_v40 = vpop.f32.mrb[180].mxu1 }
 0xa51   :  { %v6504_v1 = vadd.f32 %v12593_v23, %v6503_v40  ;;  %v6505_v49 = vpop.f32.mrb[181].mxu1  ;;  %7099 = vmatmul.mubr.bf16.gmra.mrb[176].mxu0 %v6716_v12 }
 0xa52   :  { %v6506_v9 = vpop.f32.mrb[182].mxu1  ;;  %7108 = vmatprep.mubr.bf16.mxu0 %v13689_v24 }
 0xa53   :  { %v6507_v13 = vadd.f32 %v12593_v23, %v6506_v9  ;;  %v6508_v50 = vpop.f32.mrb[183].mxu1  ;;  %v6668_v35 = vmax.f32 %v6504_v1, 0.0 }
 0xa55   :  { %v6669_v45 = vmax.f32 %v6507_v13, 0.0 }
 0xa57   :  { %v6717_v6 = vpack.c.bf16 %v6669_v45, %v6668_v35 }
 0xa58   :  { %v6511_v39 = vpop.f32.mrb[184].mxu1 }
 0xa59   :  { %v6512_v30 = vadd.f32 %v12593_v23, %v6511_v39  ;;  %v6513_v3 = vpop.f32.mrb[185].mxu1  ;;  %7109 = vmatmul.mubr.bf16.gmra.mrb[180].mxu0 %v6717_v6 }
 0xa5a   :  { %v6514_v28 = vpop.f32.mrb[186].mxu1  ;;  %7118 = vmatprep.mubr.bf16.mxu0 %v13689_v24 }
 0xa5b   :  { %v6515_v43 = vadd.f32 %v12593_v23, %v6514_v28  ;;  %v6516_v48 = vpop.f32.mrb[187].mxu1  ;;  %v6670_v53 = vmax.f32 %v6512_v30, 0.0 }
 0xa5d   :  { %v6671_v12 = vmax.f32 %v6515_v43, 0.0  ;;  %v13818_v43 = vpack.c.bf16 %v11917_v16, %v11907_v5  ;;  %v13820_v5 = vpack.c.bf16 %v11921_v21, %v11909_v11 }
 0xa5f   :  { %v6718_v40 = vpack.c.bf16 %v6671_v12, %v6670_v53  ;;  %v10635_v53 = vld [vmem:[#allocation17 + $0x4] ss:$8 sps:$4 sm:$0xff]  }
 0xa60   :  { %v6519_v49 = vpop.f32.mrb[188].mxu1  ;;  %8328 = vmatprep.subr.bf16.mxu1 %v10635_v53  ;;  %v13821_v53 = vpack.c.bf16 %v11913_v37, %v11905_v51 }
 0xa61   :  { %v6520_v9 = vadd.f32 %v12593_v23, %v6519_v49  ;;  %v6521_v1 = vpop.f32.mrb[189].mxu1  ;;  %7119 = vmatmul.mubr.bf16.gmra.mrb[184].mxu0 %v6718_v40 }
 0xa62   :  { %v6522_v13 = vpop.f32.mrb[190].mxu1  ;;  %7128 = vmatprep.mubr.bf16.mxu0 %v13689_v24 }
 0xa63   :  { %v6523_v50 = vadd.f32 %v12593_v23, %v6522_v13  ;;  %v6524_v35 = vpop.f32.mrb[191].mxu1  ;;  %v6672_v45 = vmax.f32 %v6520_v9, 0.0  ;;  %v10633_v13 = vld [vmem:[#allocation17] ss:$8 sps:$4 sm:$0xff]  }
 0xa64   :  { %v13819_v35 = vpack.c.bf16 %v11911_v42, %v11903_v41 }
 0xa65   :  { %v6673_v6 = vmax.f32 %v6523_v50, 0.0 }
 0xa67   :  { %v6719_v39 = vpack.c.bf16 %v6673_v6, %v6672_v45 }
 0xa68   :  { %v6527_v3 = vpop.f32.mrb[192].mxu1 }
 0xa69   :  { %7129 = vmatmul.mubr.bf16.gmra.mrb[188].mxu0 %v6719_v39  ;;  %v6528_v30 = vadd.f32 %v12593_v23, %v6527_v3  ;;  %v6529_v28 = vpop.f32.mrb[193].mxu1  ;;  %v10638_v39 = vld [vmem:[#allocation17 + $0x14] ss:$8 sps:$4 sm:$0xff]  }
 0xa6a   :  { %7471 = vmatprep.mubr.bf16.mxu0 %v13818_v43  ;;  %v6530_v48 = vpop.f32.mrb[194].mxu1  ;;  %v10636_v43 = vld [vmem:[#allocation17 + $0x10] ss:$8 sps:$4 sm:$0xff]  }
 0xa6b   :  { %v6674_v12 = vmax.f32 %v6528_v30, 0.0  ;;  %v6531_v40 = vadd.f32 %v12593_v23, %v6530_v48  ;;  %v6532_v49 = vpop.f32.mrb[195].mxu1 }
 0xa6c   :  { %v10639_v49 = vld [vmem:[#allocation17 + $0x20] ss:$8 sps:$4 sm:$0xff]  }
 0xa6d   :  { %v6675_v1 = vmax.f32 %v6531_v40, 0.0 }
 0xa6f   :  { %v6720_v9 = vpack.c.bf16 %v6675_v1, %v6674_v12  ;;  %v13822_v12 = vpack.c.bf16 %v11941_v63, %v11931_v7  ;;  %v10641_v1 = vld [vmem:[#allocation17 + $0x24] ss:$8 sps:$4 sm:$0xff]  }
 0xa70   :  { %v6535_v50 = vpop.f32.mrb[196].mxu1 }
 0xa71   :  { %7472 = vmatmul.mubr.bf16.vlgmr.msra.gmra.mrb[120].mxu0 %v13819_v35  ;;  %v6536_v45 = vadd.f32 %v12593_v23, %v6535_v50  ;;  %v6537_v6 = vpop.f32.mrb[197].mxu1  ;;  %7139 = vmatmul.mubr.bf16.vlgmr.msra.gmra.mrb[248].mxu1 %v6720_v9 }
 0xa72   :  { %7481 = vmatprep.mubr.bf16.mxu0 %v13820_v5  ;;  %v6538_v16 = vpop.f32.mrb[198].mxu1  ;;  %7148 = vmatprep.mubr.bf16.mxu1 %v13689_v24  ;;  %v13824_v6 = vld [vmem:[#allocation32_spill] sm:$0xff] }
 0xa73   :  { %v6676_v3 = vmax.f32 %v6536_v45, 0.0  ;;  %v6539_v30 = vadd.f32 %v12593_v23, %v6538_v16  ;;  %v6540_v28 = vpop.f32.mrb[199].mxu1  ;;  %8329 = vmatpush1.bf16.msra.mxu1 %v10633_v13  ;;  %v13823_v45 = vld [vmem:[#allocation36_spill] sm:$0xff]  ;;  %v13826_v16 = vld [vmem:[#allocation38_spill] sm:$0xff] }
 0xa74   :  { %8330 = vmatprep.subr.bf16.mxu1 %v10638_v39  ;;  %v13825_v5 = vpack.c.bf16 %v13823_v45, %v13824_v6  ;;  %v13827_v39 = vld [vmem:[#allocation34_spill] sm:$0xff] }
 0xa75   :  { %v6677_v41 = vmax.f32 %v6539_v30, 0.0  ;;  %v10642_v28 = vld [vmem:[#allocation17 + $0x30] ss:$8 sps:$4 sm:$0xff]   ;;  %v10650_v6 = vld [vmem:[#allocation17 + $0x54] ss:$8 sps:$4 sm:$0xff]  }
 0xa77   :  { %v6721_v42 = vpack.c.bf16 %v6677_v41, %v6676_v3  ;;  %8331 = vmatpush1.bf16.msra.mxu1 %v10636_v43  ;;  %v13828_v3 = vpack.c.bf16 %v13826_v16, %v13827_v39  ;;  %v10644_v43 = vld [vmem:[#allocation17 + $0x34] ss:$8 sps:$4 sm:$0xff]   ;;  %v10648_v16 = vld [vmem:[#allocation17 + $0x50] ss:$8 sps:$4 sm:$0xff]  }
 0xa78   :  { %v6543_v48 = vpop.f32.mrb[200].mxu1  ;;  %8332 = vmatprep.subr.bf16.mxu1 %v10641_v1 }
 0xa79   :  { %7482 = vmatmul.mubr.bf16.gmra.mrb[124].mxu0 %v13821_v53  ;;  %v6544_v11 = vadd.f32 %v12593_v23, %v6543_v48  ;;  %v6545_v21 = vpop.f32.mrb[201].mxu1  ;;  %7149 = vmatmul.mubr.bf16.gmra.mrb[252].mxu1 %v6721_v42 }
 0xa7a   :  { %7491 = vmatprep.mubr.bf16.mxu0 %v13822_v12  ;;  %v6546_v40 = vpop.f32.mrb[202].mxu1  ;;  %7158 = vmatprep.mubr.bf16.mxu1 %v13689_v24  ;;  %v13829_v12 = vld [vmem:[#allocation37_spill] sm:$0xff] }
 0xa7b   :  { %v6678_v9 = vmax.f32 %v6544_v11, 0.0  ;;  %v6547_v13 = vadd.f32 %v12593_v23, %v6546_v40  ;;  %v6548_v50 = vpop.f32.mrb[203].mxu1  ;;  %8333 = vmatpush1.bf16.msra.mxu1 %v10639_v49  ;;  %v13830_v40 = vld [vmem:[#allocation33_spill] sm:$0xff] }
 0xa7c   :  { %8334 = vmatprep.subr.bf16.mxu1 %v10644_v43  ;;  %v13831_v49 = vpack.c.bf16 %v13829_v12, %v13830_v40  ;;  %v10647_v50 = vld [vmem:[#allocation17 + $0x44] ss:$8 sps:$4 sm:$0xff]   ;;  %v13836_v43 = vld [vmem:[#allocation39_spill] sm:$0xff]  ;;  %v10651_v40 = vld [vmem:[#allocation17 + $0x60] ss:$8 sps:$4 sm:$0xff]  }
 0xa7d   :  { %v6679_v51 = vmax.f32 %v6547_v13, 0.0  ;;  %v10645_v13 = vld [vmem:[#allocation17 + $0x40] ss:$8 sps:$4 sm:$0xff]  }
 0xa7f   :  { %v6722_v37 = vpack.c.bf16 %v6679_v51, %v6678_v9  ;;  %8335 = vmatpush1.bf16.msra.mxu1 %v10642_v28  ;;  %v13832_v51 = vld [vmem:[#allocation45_spill] sm:$0xff]  ;;  %v13835_v28 = vld [vmem:[#allocation43_spill] sm:$0xff] }
 0xa80   :  { %v6551_v35 = vpop.f32.mrb[204].mxu1  ;;  %8336 = vmatprep.subr.bf16.mxu1 %v10647_v50 }
 0xa81   :  { %7492 = vmatmul.mubr.bf16.gmra.mrb[128].mxu0 %v13825_v5  ;;  %v6552_v7 = vadd.f32 %v12593_v23, %v6551_v35  ;;  %v6553_v63 = vpop.f32.mrb[205].mxu1  ;;  %7159 = vmatmul.mubr.bf16.gmra.mrb[0].mxu1 %v6722_v37  ;;  %v13833_v37 = vld [vmem:[#allocation41_spill] sm:$0xff] }
 0xa82   :  { %7501 = vmatprep.mubr.bf16.mxu0 %v13828_v3  ;;  %v6554_v30 = vpop.f32.mrb[206].mxu1  ;;  %7168 = vmatprep.mubr.bf16.mxu1 %v13689_v24  ;;  %v13834_v35 = vpack.c.bf16 %v13832_v51, %v13833_v37 }
 0xa83   :  { %v6680_v41 = vmax.f32 %v6552_v7, 0.0  ;;  %v6555_v42 = vadd.f32 %v12593_v23, %v6554_v30  ;;  %v6556_v48 = vpop.f32.mrb[207].mxu1  ;;  %8337 = vmatpush1.bf16.msra.mxu1 %v10645_v13 }
 0xa84   :  { %8338 = vmatprep.subr.bf16.mxu1 %v10650_v6 }
 0xa85   :  { %v6681_v53 = vmax.f32 %v6555_v42, 0.0 }
 0xa87   :  { %v6723_v11 = vpack.c.bf16 %v6681_v53, %v6680_v41  ;;  %8339 = vmatpush1.bf16.msra.mxu1 %v10648_v16  ;;  %v13837_v41 = vpack.c.bf16 %v13835_v28, %v13836_v43  ;;  %v13838_v53 = vld [vmem:[#allocation46_spill] sm:$0xff]  ;;  %v13845_v16 = vld [vmem:[#allocation49_spill] sm:$0xff] }
 0xa88   :  { %v6559_v21 = vpop.f32.mrb[208].mxu1  ;;  %v10656_v28 = vld [vmem:[#allocation17 + $0x74] ss:$8 sps:$4 sm:$0xff]  }
 0xa89   :  { %7502 = vmatmul.mubr.bf16.gmra.mrb[132].mxu0 %v13831_v49  ;;  %v6560_v1 = vadd.f32 %v12593_v23, %v6559_v21  ;;  %v6561_v9 = vpop.f32.mrb[209].mxu1  ;;  %7169 = vmatmul.mubr.bf16.gmra.mrb[4].mxu1 %v6723_v11  ;;  %v13839_v11 = vld [vmem:[#allocation42_spill] sm:$0xff]  ;;  %v10653_v49 = vld [vmem:[#allocation17 + $0x64] ss:$8 sps:$4 sm:$0xff]  }
 0xa8a   :  { %7511 = vmatprep.mubr.bf16.mxu0 %v13834_v35  ;;  %v6562_v45 = vpop.f32.mrb[210].mxu1  ;;  %7178 = vmatprep.mubr.bf16.mxu1 %v13689_v24  ;;  %v13840_v21 = vpack.c.bf16 %v13838_v53, %v13839_v11  ;;  %v13841_v35 = vld [vmem:[#allocation44_spill] sm:$0xff] }
 0xa8b   :  { %v6682_v5 = vmax.f32 %v6560_v1, 0.0  ;;  %v6563_v7 = vadd.f32 %v12593_v23, %v6562_v45  ;;  %v6564_v63 = vpop.f32.mrb[211].mxu1  ;;  %8340 = vmatprep.subr.bf16.mxu1 %v10653_v49  ;;  %v13842_v45 = vld [vmem:[#allocation40_spill] sm:$0xff] }
 0xa8c   :  { %8341 = vmatpush1.bf16.msra.mxu1 %v10651_v40  ;;  %v13843_v6 = vpack.c.bf16 %v13841_v35, %v13842_v45  ;;  %v13844_v63 = vld [vmem:[#allocation53_spill] sm:$0xff] }
 0xa8d   :  { %v6683_v39 = vmax.f32 %v6563_v7, 0.0  ;;  %8342 = vmatprep.subr.bf16.mxu1 %v10656_v28  ;;  %v10659_v35 = vld [vmem:[#allocation17 + $0x84] ss:$8 sps:$4 sm:$0xff]  }
 0xa8f   :  { %v6724_v3 = vpack.c.bf16 %v6683_v39, %v6682_v5  ;;  %v13846_v39 = vpack.c.bf16 %v13844_v63, %v13845_v16 }
 0xa90   :  { %v6567_v30 = vpop.f32.mrb[212].mxu1 }
 0xa91   :  { %7512 = vmatmul.mubr.bf16.gmra.mrb[136].mxu0 %v13837_v41  ;;  %v6568_v42 = vadd.f32 %v12593_v23, %v6567_v30  ;;  %v6569_v48 = vpop.f32.mrb[213].mxu1  ;;  %7179 = vmatmul.mubr.bf16.gmra.mrb[8].mxu1 %v6724_v3  ;;  %v10654_v30 = vld [vmem:[#allocation17 + $0x70] ss:$8 sps:$4 sm:$0xff]  }
 0xa92   :  { %7521 = vmatprep.mubr.bf16.mxu0 %v13840_v21  ;;  %v6570_v12 = vpop.f32.mrb[214].mxu1  ;;  %7188 = vmatprep.mubr.bf16.mxu1 %v13689_v24  ;;  %v13847_v21 = vld [vmem:[#allocation51_spill] sm:$0xff] }
 0xa93   :  { %v6684_v1 = vmax.f32 %v6568_v42, 0.0  ;;  %v6571_v9 = vadd.f32 %v12593_v23, %v6570_v12  ;;  %v6572_v13 = vpop.f32.mrb[215].mxu1  ;;  %8343 = vmatpush1.bf16.msra.mxu1 %v10654_v30  ;;  %v13848_v12 = vld [vmem:[#allocation47_spill] sm:$0xff] }
 0xa94   :  { %v13849_v40 = vpack.c.bf16 %v13847_v21, %v13848_v12  ;;  %v13851_v13 = vld [vmem:[#allocation50_spill] sm:$0xff]  ;;  %8344 = vmatprep.subr.bf16.mxu1 %v10659_v35 }
 0xa95   :  { %v6685_v50 = vmax.f32 %v6571_v9, 0.0  ;;  %v13850_v9 = vld [vmem:[#allocation54_spill] sm:$0xff] }
 0xa96   :  { %v10662_v21 = vld [vmem:[#allocation17 + $0x94] ss:$8 sps:$4 sm:$0xff]  }
 0xa97   :  { %v6725_v51 = vpack.c.bf16 %v6685_v50, %v6684_v1  ;;  %v13852_v50 = vpack.c.bf16 %v13850_v9, %v13851_v13 }
 0xa98   :  { %v6575_v37 = vpop.f32.mrb[216].mxu1 }
 0xa99   :  { %7522 = vmatmul.mubr.bf16.gmra.mrb[140].mxu0 %v13843_v6  ;;  %v6576_v5 = vadd.f32 %v12593_v23, %v6575_v37  ;;  %v6577_v7 = vpop.f32.mrb[217].mxu1  ;;  %7189 = vmatmul.mubr.bf16.gmra.mrb[12].mxu1 %v6725_v51  ;;  %v10657_v37 = vld [vmem:[#allocation17 + $0x80] ss:$8 sps:$4 sm:$0xff]  }
 0xa9a   :  { %7531 = vmatprep.mubr.bf16.mxu0 %v13846_v39  ;;  %v6578_v3 = vpop.f32.mrb[218].mxu1  ;;  %7198 = vmatprep.mubr.bf16.mxu1 %v13689_v24  ;;  %v13853_v39 = vld [vmem:[#allocation52_spill] sm:$0xff] }
 0xa9b   :  { %v6686_v43 = vmax.f32 %v6576_v5, 0.0  ;;  %v6579_v41 = vadd.f32 %v12593_v23, %v6578_v3  ;;  %v6580_v42 = vpop.f32.mrb[219].mxu1  ;;  %8345 = vmatpush1.bf16.msra.mxu1 %v10657_v37  ;;  %v13854_v3 = vld [vmem:[#allocation48_spill] sm:$0xff] }
 0xa9c   :  { %v13855_v30 = vpack.c.bf16 %v13853_v39, %v13854_v3  ;;  %v13857_v42 = vld [vmem:[#allocation57_spill] sm:$0xff]  ;;  %8346 = vmatprep.subr.bf16.mxu1 %v10662_v21 }
 0xa9d   :  { %v6687_v48 = vmax.f32 %v6579_v41, 0.0  ;;  %v13856_v41 = vld [vmem:[#allocation61_spill] sm:$0xff] }
 0xa9e   :  { %v10665_v39 = vld [vmem:[#allocation17 + $0xa4] ss:$8 sps:$4 sm:$0xff]  }
 0xa9f   :  { %v6726_v53 = vpack.c.bf16 %v6687_v48, %v6686_v43  ;;  %v13858_v48 = vpack.c.bf16 %v13856_v41, %v13857_v42 }
 0xaa0   :  { %v6583_v11 = vpop.f32.mrb[220].mxu1 }
 0xaa1   :  { %7532 = vmatmul.mubr.bf16.gmra.mrb[144].mxu0 %v13849_v40  ;;  %v6584_v49 = vadd.f32 %v12593_v23, %v6583_v11  ;;  %v6585_v1 = vpop.f32.mrb[221].mxu1  ;;  %7199 = vmatmul.mubr.bf16.gmra.mrb[16].mxu1 %v6726_v53  ;;  %v10660_v11 = vld [vmem:[#allocation17 + $0x90] ss:$8 sps:$4 sm:$0xff]  }
 0xaa2   :  { %7541 = vmatprep.mubr.bf16.mxu0 %v13852_v50  ;;  %v6586_v51 = vpop.f32.mrb[222].mxu1  ;;  %7208 = vmatprep.mubr.bf16.mxu1 %v13689_v24  ;;  %v13859_v50 = vld [vmem:[#allocation59_spill] sm:$0xff] }
 0xaa3   :  { %v6688_v45 = vmax.f32 %v6584_v49, 0.0  ;;  %v6587_v6 = vadd.f32 %v12593_v23, %v6586_v51  ;;  %v6588_v5 = vpop.f32.mrb[223].mxu1  ;;  %8347 = vmatpush1.bf16.msra.mxu1 %v10660_v11  ;;  %v13860_v51 = vld [vmem:[#allocation55_spill] sm:$0xff] }
 0xaa4   :  { %v13861_v37 = vpack.c.bf16 %v13859_v50, %v13860_v51  ;;  %v13863_v5 = vld [vmem:[#allocation58_spill] sm:$0xff]  ;;  %8348 = vmatprep.subr.bf16.mxu1 %v10665_v39  ;;  %v10669_v51 = vld [vmem:[#allocation18] sm:$0xff]   ;;  %v13871_v39 = vld [vmem:[#allocation67_spill] sm:$0xff] }
 0xaa5   :  { %v6689_v7 = vmax.f32 %v6587_v6, 0.0  ;;  %v13862_v6 = vld [vmem:[#allocation62_spill] sm:$0xff]  ;;  %9009 = vmatpush1.bf16.msra.mxu0 %v10669_v51  ;;  %v13878_v51 = vld [vmem:[#allocation64_spill] sm:$0xff] }
 0xaa6   :  { %v10668_v50 = vld [vmem:[#allocation17 + $0xb4] ss:$8 sps:$4 sm:$0xff]   ;;  %9010 = vmatprep.subr.bf16.mxu0 %v13689_v24 }
 0xaa7   :  { %v6727_v63 = vpack.c.bf16 %v6689_v7, %v6688_v45  ;;  %v13864_v7 = vpack.c.bf16 %v13862_v6, %v13863_v5 }
 0xaa8   :  { %v6591_v16 = vpop.f32.mrb[224].mxu1 }
 0xaa9   :  { %7542 = vmatmul.mubr.bf16.gmra.mrb[148].mxu0 %v13855_v30  ;;  %v6592_v28 = vadd.f32 %v12593_v23, %v6591_v16  ;;  %v6593_v43 = vpop.f32.mrb[225].mxu1  ;;  %7209 = vmatmul.mubr.bf16.gmra.mrb[20].mxu1 %v6727_v63  ;;  %v10663_v16 = vld [vmem:[#allocation17 + $0xa0] ss:$8 sps:$4 sm:$0xff]  }
 0xaaa   :  { %7551 = vmatprep.mubr.bf16.mxu0 %v13858_v48  ;;  %v6594_v53 = vpop.f32.mrb[226].mxu1  ;;  %7218 = vmatprep.mubr.bf16.mxu1 %v13689_v24  ;;  %v13865_v48 = vld [vmem:[#allocation60_spill] sm:$0xff] }
 0xaab   :  { %v6690_v12 = vmax.f32 %v6592_v28, 0.0  ;;  %v6595_v40 = vadd.f32 %v12593_v23, %v6594_v53  ;;  %v6596_v49 = vpop.f32.mrb[227].mxu1  ;;  %8349 = vmatpush1.bf16.msra.mxu1 %v10663_v16  ;;  %v13866_v53 = vld [vmem:[#allocation56_spill] sm:$0xff] }
 0xaac   :  { %v13867_v11 = vpack.c.bf16 %v13865_v48, %v13866_v53  ;;  %v13869_v49 = vld [vmem:[#allocation65_spill] sm:$0xff]  ;;  %8350 = vmatprep.subr.bf16.mxu1 %v10668_v50  ;;  %v13877_v50 = vld [vmem:[#allocation68_spill] sm:$0xff] }
 0xaad   :  { %v6691_v1 = vmax.f32 %v6595_v40, 0.0  ;;  %v13868_v40 = vld [vmem:[#allocation69_spill] sm:$0xff] }
 0xaaf   :  { %v6728_v9 = vpack.c.bf16 %v6691_v1, %v6690_v12  ;;  %v13870_v1 = vpack.c.bf16 %v13868_v40, %v13869_v49  ;;  %v10673_v49 = vld [vmem:[#allocation17 + $0xd0] ss:$8 sps:$4 sm:$0xff]  }
 0xab0   :  { %v6599_v13 = vpop.f32.mrb[228].mxu1 }
 0xab1   :  { %7552 = vmatmul.mubr.bf16.gmra.mrb[152].mxu0 %v13861_v37  ;;  %v6600_v35 = vadd.f32 %v12593_v23, %v6599_v13  ;;  %v6601_v45 = vpop.f32.mrb[229].mxu1  ;;  %7219 = vmatmul.mubr.bf16.gmra.mrb[24].mxu1 %v6728_v9  ;;  %v10666_v13 = vld [vmem:[#allocation17 + $0xb0] ss:$8 sps:$4 sm:$0xff]  }
 0xab2   :  { %7561 = vmatprep.mubr.bf16.mxu0 %v13864_v7  ;;  %v6602_v63 = vpop.f32.mrb[230].mxu1  ;;  %7228 = vmatprep.mubr.bf16.mxu1 %v13689_v24 }
 0xab3   :  { %v6692_v3 = vmax.f32 %v6600_v35, 0.0  ;;  %v6603_v30 = vadd.f32 %v12593_v23, %v6602_v63  ;;  %v6604_v28 = vpop.f32.mrb[231].mxu1  ;;  %v10715_v35 = vld [vmem:[%s13526_s10] ss:$0 sm:$0xff]  ;;  %8351 = vmatpush1.bf16.msra.mxu1 %v10666_v13 }
 0xab4   :  { %v10670_v63 = vld [vmem:[#allocation17 + $0xc0] ss:$8 sps:$4 sm:$0xff]  }
 0xab5   :  { %v6693_v43 = vmax.f32 %v6603_v30, 0.0 }
 0xab7   :  { %v6729_v41 = vpack.c.bf16 %v6693_v43, %v6692_v3  ;;  %v13872_v3 = vld [vmem:[#allocation63_spill] sm:$0xff] }
 0xab8   :  { %v6607_v42 = vpop.f32.mrb[232].mxu1  ;;  %v13873_v30 = vpack.c.bf16 %v13871_v39, %v13872_v3 }
 0xab9   :  { %7562 = vmatmul.mubr.bf16.gmra.mrb[156].mxu0 %v13867_v11  ;;  %v6608_v21 = vadd.f32 %v12593_v23, %v6607_v42  ;;  %v6609_v12 = vpop.f32.mrb[233].mxu1  ;;  %7229 = vmatmul.mubr.bf16.gmra.mrb[28].mxu1 %v6729_v41  ;;  %v10672_v23 = vld [vmem:[#allocation17 + $0xc4] ss:$8 sps:$4 sm:$0xff]   ;;  %v13874_v41 = vld [vmem:[#allocation70_spill] sm:$0xff] }
 0xaba   :  { %7571 = vmatprep.mubr.bf16.mxu0 %v13870_v1  ;;  %v6610_v9 = vpop.f32.mrb[234].mxu1  ;;  %7238 = vmatprep.mubr.bf16.mxu1 %v13689_v24  ;;  %v13875_v42 = vld [vmem:[#allocation66_spill] sm:$0xff] }
 0xabb   :  { %v6694_v37 = vmax.f32 %v6608_v21, 0.0  ;;  %v6611_v45 = vadd.f32 %v10715_v35, %v6610_v9  ;;  %v6612_v6 = vpop.f32.mrb[235].mxu1  ;;  %8352 = vmatprep.subr.bf16.mxu1 %v10672_v23  ;;  %v13876_v48 = vpack.c.bf16 %v13874_v41, %v13875_v42  ;;  %v10675_v11 = vld [vmem:[#allocation17 + $0xd4] ss:$8 sps:$4 sm:$0xff]   ;;  %v13880_v23 = vld [vmem:[#allocation77_spill] sm:$0xff] }
 0xabc   :  { %8353 = vmatpush1.bf16.msra.mxu1 %v10670_v63  ;;  %v10681_v41 = vld [vmem:[#allocation17 + $0xf4] ss:$8 sps:$4 sm:$0xff]  }
 0xabd   :  { %v6695_v5 = vmax.f32 %v6611_v45, 0.0  ;;  %8354 = vmatprep.subr.bf16.mxu1 %v10675_v11 }
 0xabf   :  { %v6730_v7 = vpack.c.bf16 %v6695_v5, %v6694_v37  ;;  %v13879_v37 = vpack.c.bf16 %v13877_v50, %v13878_v51  ;;  %v13881_v5 = vld [vmem:[#allocation73_spill] sm:$0xff] }
 0xac0   :  { %v6615_v16 = vpop.f32.mrb[236].mxu1  ;;  %8355 = vmatpush1.bf16.msra.mxu1 %v10673_v49 }
 0xac1   :  { %7572 = vmatmul.mubr.bf16.gmra.mrb[160].mxu0 %v13873_v30  ;;  %v6616_v28 = vadd.f32 %v10715_v35, %v6615_v16  ;;  %v6617_v43 = vpop.f32.mrb[237].mxu1  ;;  %7239 = vmatmul.mubr.bf16.gmra.mrb[32].mxu1 %v6730_v7  ;;  %v13882_v7 = vpack.c.bf16 %v13880_v23, %v13881_v5  ;;  %v10676_v30 = vld [vmem:[#allocation17 + $0xe0] ss:$8 sps:$4 sm:$0xff]  }
 0xac2   :  { %7581 = vmatprep.mubr.bf16.mxu0 %v13876_v48  ;;  %v6618_v53 = vpop.f32.mrb[238].mxu1  ;;  %7248 = vmatprep.mubr.bf16.mxu1 %v13689_v24  ;;  %v10679_v48 = vld [vmem:[#allocation17 + $0xf0] ss:$8 sps:$4 sm:$0xff]  }
 0xac3   :  { %v6696_v21 = vmax.f32 %v6616_v28, 0.0  ;;  %v6619_v12 = vadd.f32 %v10715_v35, %v6618_v53  ;;  %v6620_v40 = vpop.f32.mrb[239].mxu1  ;;  %v10678_v28 = vld [vmem:[#allocation17 + $0xe4] ss:$8 sps:$4 sm:$0xff]  }
 0xac4   :  { %8356 = vmatprep.subr.bf16.mxu1 %v10678_v28  ;;  %v10682_v53 = vld [vmem:[#allocation18 + $0x8] sm:$0xff]   ;;  %v10683_v28 = vld [vmem:[#allocation18 + $0x10] sm:$0xff]  }
 0xac5   :  { %v6697_v1 = vmax.f32 %v6619_v12, 0.0  ;;  %8357 = vmatpush1.bf16.msra.mxu1 %v10676_v30  ;;  %v13884_v12 = vld [vmem:[#allocation71_spill] sm:$0xff]  ;;  %9011 = vmatpush1.bf16.msra.mxu0 %v10682_v53 }
 0xac6   :  { %8358 = vmatprep.subr.bf16.mxu1 %v10681_v41  ;;  %9012 = vmatprep.subr.bf16.mxu0 %v13689_v24  ;;  %v13896_v41 = vld [vmem:[#allocation79_spill] sm:$0xff] }
 0xac7   :  { %v6731_v9 = vpack.c.bf16 %v6697_v1, %v6696_v21  ;;  %v13883_v21 = vld [vmem:[#allocation75_spill] sm:$0xff] }
 0xac8   :  { %v6623_v13 = vpop.f32.mrb[240].mxu1  ;;  %v13885_v40 = vpack.c.bf16 %v13883_v21, %v13884_v12  ;;  %v13902_v21 = vld [vmem:[#allocation80_spill] sm:$0xff] }
 0xac9   :  { %7582 = vmatmul.mubr.bf16.gmra.mrb[164].mxu0 %v13879_v37  ;;  %v6624_v45 = vadd.f32 %v10715_v35, %v6623_v13  ;;  %v6625_v6 = vpop.f32.mrb[241].mxu1  ;;  %7249 = vmatmul.mubr.bf16.gmra.mrb[36].mxu1 %v6731_v9  ;;  %v13886_v9 = vld [vmem:[#allocation78_spill] sm:$0xff] }
 0xaca   :  { %7591 = vmatprep.mubr.bf16.mxu0 %v13882_v7  ;;  %v6626_v16 = vpop.f32.mrb[242].mxu1  ;;  %7258 = vmatprep.mubr.bf16.mxu1 %v13689_v24  ;;  %v13887_v13 = vld [vmem:[#allocation74_spill] sm:$0xff]  ;;  %v13889_v7 = vld [vmem:[#allocation76_spill] sm:$0xff] }
 0xacb   :  { %v6698_v63 = vmax.f32 %v6624_v45, 0.0  ;;  %v6627_v39 = vadd.f32 %v10715_v35, %v6626_v16  ;;  %v6628_v3 = vpop.f32.mrb[243].mxu1  ;;  %v13888_v50 = vpack.c.bf16 %v13886_v9, %v13887_v13  ;;  %8359 = vmatpush1.bf16.msra.mxu1 %v10679_v48  ;;  %v13890_v16 = vld [vmem:[#allocation72_spill] sm:$0xff]  ;;  %v13899_v48 = vld [vmem:[#allocation82_spill] sm:$0xff]  ;;  %9013 = vmatpush1.bf16.msra.mxu0 %v10683_v28  ;;  %v13906_v9 = vpack.c.bf16 %v12611_v2, %v12603_v27 }
 0xacc   :  { %v13893_v3 = vld [vmem:[#allocation81_spill] sm:$0xff]  ;;  %9014 = vmatprep.subr.bf16.mxu0 %v13689_v24  ;;  %v13907_v13 = vpack.c.bf16 %v12606_v54, %v12600_v52  ;;  %v13911_v52 = vpack.c.bf16 %v12619_v18, %v12615_v22  ;;  %v13922_v27 = vld [vmem:[#allocation30_spill] sm:$0xff]  ;;  %v13925_v54 = vld [vmem:[#allocation99_spill] sm:$0xff] }
 0xacd   :  { %v6699_v43 = vmax.f32 %v6627_v39, 0.0  ;;  %v13892_v39 = vld [vmem:[#allocation85_spill] sm:$0xff]  ;;  %v13927_v22 = vld [vmem:[#allocation100_spill] sm:$0xff]  ;;  %v13928_v18 = vld [vmem:[#allocation98_spill] sm:$0xff] }
 0xace   :  { %v13894_v30 = vpack.c.bf16 %v13892_v39, %v13893_v3 }
 0xacf   :  { %v6732_v42 = vpack.c.bf16 %v6699_v43, %v6698_v63  ;;  %v13891_v63 = vpack.c.bf16 %v13889_v7, %v13890_v16  ;;  %v13895_v43 = vld [vmem:[#allocation83_spill] sm:$0xff] }
 0xad0   :  { %v6631_v11 = vpop.f32.mrb[244].mxu1 }
 0xad1   :  { %7592 = vmatmul.mubr.bf16.gmra.mrb[168].mxu0 %v13885_v40  ;;  %v6632_v49 = vadd.f32 %v10715_v35, %v6631_v11  ;;  %v6633_v1 = vpop.f32.mrb[245].mxu1  ;;  %7259 = vmatmul.mubr.bf16.gmra.mrb[40].mxu1 %v6732_v42  ;;  %v13898_v42 = vld [vmem:[#allocation86_spill] sm:$0xff]  ;;  %v13901_v11 = vld [vmem:[#allocation84_spill] sm:$0xff]  ;;  %v13904_v40 = vpack.c.bf16 %v12502_v47, %v12496_v0  ;;  %v13908_v0 = vpack.c.bf16 %v12514_v34, %v12508_v25  ;;  %v10686_v34 = vld [vmem:[#allocation18 + $0x28] sm:$0xff]  }
 0xad2   :  { %7601 = vmatprep.mubr.bf16.mxu0 %v13888_v50  ;;  %v6634_v51 = vpop.f32.mrb[246].mxu1  ;;  %7268 = vmatprep.mubr.bf16.mxu1 %v13689_v24  ;;  %v13900_v53 = vpack.c.bf16 %v13898_v42, %v13899_v48  ;;  %v13903_v12 = vpack.c.bf16 %v13901_v11, %v13902_v21  ;;  %v13905_v1 = vpack.c.bf16 %v12498_v58, %v12494_v8  ;;  %v10685_v47 = vld [vmem:[#allocation18 + $0x20] sm:$0xff]   ;;  %v13935_v50 = vld [vmem:[#allocation35_spill] sm:$0xff] }
 0xad3   :  { %v6700_v37 = vmax.f32 %v6632_v49, 0.0  ;;  %v6635_v45 = vadd.f32 %v10715_v35, %v6634_v51  ;;  %v6636_v6 = vpop.f32.mrb[247].mxu1  ;;  %v13897_v35 = vpack.c.bf16 %v13895_v43, %v13896_v41  ;;  %v10684_v49 = vld [vmem:[#allocation18 + $0x18] sm:$0xff]   ;;  %v13909_v8 = vpack.c.bf16 %v12510_v33, %v12506_v29  ;;  %v13941_v21 = vld [vmem:[#allocation104_spill] sm:$0xff] }
 0xad4   :  { %9015 = vmatpush1.bf16.msra.mxu0 %v10684_v49  ;;  %v13910_v58 = vpack.c.bf16 %v12623_v60, %v12617_v15  ;;  %v13912_v25 = vpack.c.bf16 %v12526_v57, %v12520_v59  ;;  %v13913_v29 = vpack.c.bf16 %v12522_v38, %v12518_v44  ;;  %v13914_v15 = vpack.c.bf16 %v12638_v31, %v12632_v61  ;;  %v10687_v57 = vld [vmem:[#allocation18 + $0x30] sm:$0xff]   ;;  %v13921_v61 = vld [vmem:[#allocation31_spill] sm:$0xff]  ;;  %v13938_v6 = vld [vmem:[#allocation105_spill] sm:$0xff] }
 0xad5   :  { %v6701_v23 = vmax.f32 %v6635_v45, 0.0  ;;  %9016 = vmatprep.subr.bf16.mxu0 %v13689_v24  ;;  %v13915_v33 = vpack.c.bf16 %v12634_v26, %v12629_v17  ;;  %v13916_v59 = vpack.c.bf16 %v12538_v19, %v12532_v46  ;;  %v13917_v44 = vpack.c.bf16 %v12534_v4, %v12530_v56  ;;  %v10688_v19 = vld [vmem:[#allocation18 + $0x38] sm:$0xff]   ;;  %v13924_v4 = vld [vmem:[#allocation101_spill] sm:$0xff] }
 0xad6   :  { %v13918_v38 = vpack.c.bf16 %v12653_v32, %v12647_v36  ;;  %v13919_v60 = vpack.c.bf16 %v12649_v10, %v12644_v62  ;;  %v13920_v46 = vpack.c.bf16 %v12550_v55, %v12544_v20  ;;  %v13923_v56 = vpack.c.bf16 %v13921_v61, %v13922_v27  ;;  %v13930_v17 = vld [vmem:[#allocation89_spill] sm:$0xff]  ;;  %v13931_v31 = vld [vmem:[#allocation87_spill] sm:$0xff]  ;;  %v7792_v55 = vld [vmem:[%s13529_s13] sm:$0x3] }
 0xad7   :  { %v6733_v5 = vpack.c.bf16 %v6701_v23, %v6700_v37  ;;  %v13926_v2 = vpack.c.bf16 %v13924_v4, %v13925_v54  ;;  %v13929_v26 = vpack.c.bf16 %v13927_v22, %v13928_v18  ;;  %v13932_v20 = vpack.c.bf16 %v13930_v17, %v13931_v31  ;;  %v10689_v32 = vld [vmem:[#allocation18 + $0x40] sm:$0xff]   ;;  %v13937_v37 = vld [vmem:[#allocation29_spill] sm:$0xff]  ;;  %v13939_v23 = vld [vmem:[#allocation103_spill] sm:$0xff] }
 0xad8   :  { %9017 = vmatpush1.bf16.msra.mxu0 %v10685_v47  ;;  %v13933_v62 = vld [vmem:[#allocation28_spill] sm:$0xff]  ;;  %v12960_v45 = vrot.slane %v7792_v55, %v13937_v37  ;;  %v13950_v22 = vld [vmem:[#allocation107_spill] sm:$0xff] }
 0xad9   :  { %7602 = vmatmul.mubr.bf16.gmra.mrb[172].mxu0 %v13891_v63  ;;  %7269 = vmatmul.mubr.bf16.gmra.mrb[44].mxu1 %v6733_v5  ;;  %v12954_v36 = vrot.slane %v7792_v55, %v13933_v62  ;;  %v13934_v10 = vld [vmem:[#allocation88_spill] sm:$0xff]  ;;  %v13940_v5 = vpack.c.bf16 %v13938_v6, %v13939_v23  ;;  %v13951_v18 = vpack.c.bf16 %v12699_v14, %v13950_v22 }
 0xada   :  { %7611 = vmatprep.mubr.bf16.mxu0 %v13894_v30  ;;  %9018 = vmatprep.subr.bf16.mxu0 %v13689_v24  ;;  %v13936_v51 = vpack.c.bf16 %v13934_v10, %v13935_v50  ;;  %v13947_v27 = vld [vmem:[#allocation92_spill] sm:$0xff] }
 0xadc   :  { %9019 = vmatpush1.bf16.msra.mxu0 %v10686_v34 }
 0xadd   :  { %9020 = vmatprep.subr.bf16.mxu0 %v13689_v24 }
 0xae0   :  { %9021 = vmatpush1.bf16.msra.mxu0 %v10687_v57 }
 0xae1   :  { %7612 = vmatmul.mubr.bf16.gmra.mrb[176].mxu0 %v13897_v35  ;;  %9022 = vmatprep.subr.bf16.mxu0 %v13689_v24 }
 0xae2   :  { %7621 = vmatprep.mubr.bf16.mxu0 %v13900_v53 }
 0xae4   :  { %9023 = vmatpush1.bf16.msra.mxu0 %v10688_v19 }
 0xae5   :  { %9024 = vmatprep.subr.bf16.mxu0 %v13689_v24 }
 0xae8   :  { %9025 = vmatpush1.bf16.msra.mxu0 %v10689_v32 }
 0xae9   :  { %7622 = vmatmul.mubr.bf16.gmra.mrb[180].mxu0 %v13903_v12  ;;  %9026 = vmatprep.subr.bf16.mxu0 %v13689_v24  ;;  %v13942_v12 = vld [vmem:[#allocation102_spill] sm:$0xff] }
 0xaea   :  { %7631 = vmatprep.mubr.bf16.mxu0 %v13904_v40  ;;  %v13943_v40 = vpack.c.bf16 %v13941_v21, %v13942_v12 }
 0xaf1   :  { %7632 = vmatmul.mubr.bf16.gmra.mrb[184].mxu0 %v13905_v1 }
 0xaf2   :  { %7641 = vmatprep.mubr.bf16.mxu0 %v13906_v9  ;;  %v13944_v9 = vld [vmem:[#allocation93_spill] sm:$0xff] }
 0xaf9   :  { %7642 = vmatmul.mubr.bf16.gmra.mrb[188].mxu0 %v13907_v13  ;;  %v13945_v13 = vld [vmem:[#allocation91_spill] sm:$0xff] }
 0xafa   :  { %7651 = vmatprep.mubr.bf16.mxu0 %v13908_v0  ;;  %v13946_v0 = vpack.c.bf16 %v13944_v9, %v13945_v13 }
 0xb01   :  { %7652 = vmatmul.mubr.bf16.gmra.mrb[192].mxu0 %v13909_v8 }
 0xb02   :  { %7661 = vmatprep.mubr.bf16.mxu0 %v13910_v58 }
 0xb09   :  { %7662 = vmatmul.mubr.bf16.gmra.mrb[196].mxu0 %v13911_v52 }
 0xb0a   :  { %7671 = vmatprep.mubr.bf16.mxu0 %v13912_v25 }
 0xb11   :  { %7672 = vmatmul.mubr.bf16.gmra.mrb[200].mxu0 %v13913_v29 }
 0xb12   :  { %7681 = vmatprep.mubr.bf16.mxu0 %v13914_v15 }
 0xb19   :  { %7682 = vmatmul.mubr.bf16.gmra.mrb[204].mxu0 %v13915_v33 }
 0xb1a   :  { %7691 = vmatprep.mubr.bf16.mxu0 %v13916_v59 }
 0xb21   :  { %7692 = vmatmul.mubr.bf16.gmra.mrb[208].mxu0 %v13917_v44 }
 0xb22   :  { %7701 = vmatprep.mubr.bf16.mxu0 %v13918_v38 }
 0xb29   :  { %7702 = vmatmul.mubr.bf16.gmra.mrb[212].mxu0 %v13919_v60  ;;  %v10690_v60 = vld [vmem:[#allocation18 + $0x48] sm:$0xff]  }
 0xb2a   :  { %7711 = vmatprep.mubr.bf16.mxu0 %v13920_v46  ;;  %9027 = vmatpush1.bf16.msra.mxu0 %v10690_v60  ;;  %v13958_v60 = vld [vmem:[#allocation96_spill] sm:$0xff] }
 0xb2b   :  { %9028 = vmatprep.subr.bf16.mxu0 %v13689_v24 }
 0xb31   :  { %7712 = vmatmul.mubr.bf16.gmra.mrb[216].mxu0 %v13923_v56  ;;  %v13948_v56 = vld [vmem:[#allocation90_spill] sm:$0xff] }
 0xb32   :  { %7721 = vmatprep.mubr.bf16.mxu0 %v13926_v2  ;;  %v13949_v4 = vpack.c.bf16 %v13947_v27, %v13948_v56 }
 0xb39   :  { %7722 = vmatmul.mubr.bf16.gmra.mrb[220].mxu0 %v13929_v26 }
 0xb3a   :  { %7731 = vmatprep.mubr.bf16.mxu0 %v13932_v20 }
 0xb41   :  { %7732 = vmatmul.mubr.bf16.gmra.mrb[224].mxu0 %v13936_v51 }
 0xb42   :  { %7741 = vmatprep.mubr.bf16.mxu0 %v13940_v5 }
 0xb44   :  { %v7473_v7 = vpop.f32.mrb[120].mxu0  ;;  %v12966_v16 = vpop.f32.mrb[248].mxu1 }
 0xb45   :  { %v7804_v63 = vadd.f32 %v12954_v36, %v7473_v7  ;;  %v7475_v39 = vpop.f32.mrb[121].mxu0  ;;  %v12969_v3 = vpop.f32.mrb[249].mxu1 }
 0xb46   :  { %v7805_v30 = vadd.f32 %v12960_v45, %v7475_v39  ;;  %v7477_v28 = vpop.f32.mrb[122].mxu0  ;;  %v12972_v43 = vpop.f32.mrb[250].mxu1 }
 0xb47   :  { %v7806_v41 = vadd.f32 %v12954_v36, %v7477_v28  ;;  %v7479_v35 = vpop.f32.mrb[123].mxu0  ;;  %v12975_v42 = vpop.f32.mrb[251].mxu1  ;;  %v7932_v53 = vmax.f32 %v7804_v63, 0.0  ;;  %v13953_v28 = vld [vmem:[#allocation106_spill] sm:$0xff] }
 0xb48   :  { %v7807_v48 = vadd.f32 %v12960_v45, %v7479_v35  ;;  %v7933_v49 = vmax.f32 %v7805_v30, 0.0  ;;  %v13952_v30 = vld [vmem:[#allocation108_spill] sm:$0xff] }
 0xb49   :  { %v7934_v11 = vmax.f32 %v7806_v41, 0.0  ;;  %7742 = vmatmul.mubr.bf16.gmra.mrb[228].mxu0 %v13943_v40  ;;  %v13954_v41 = vpack.c.bf16 %v13952_v30, %v13953_v28 }
 0xb4a   :  { %v7935_v1 = vmax.f32 %v7807_v48, 0.0  ;;  %7751 = vmatprep.mubr.bf16.mxu0 %v13946_v0 }
 0xb4b   :  { %v8060_v47 = vpack.c.bf16 %v7934_v11, %v7932_v53  ;;  %v13955_v53 = vld [vmem:[#allocation97_spill] sm:$0xff]  ;;  %v13956_v11 = vld [vmem:[#allocation95_spill] sm:$0xff] }
 0xb4c   :  { %v8061_v8 = vpack.c.bf16 %v7935_v1, %v7933_v49  ;;  %v7483_v58 = vpop.f32.mrb[124].mxu0  ;;  %v12984_v52 = vpop.f32.mrb[252].mxu1  ;;  %v13957_v21 = vpack.c.bf16 %v13955_v53, %v13956_v11 }
 0xb4d   :  { %v7808_v25 = vadd.f32 %v12954_v36, %v7483_v58  ;;  %v7485_v34 = vpop.f32.mrb[125].mxu0  ;;  %v12987_v29 = vpop.f32.mrb[253].mxu1 }
 0xb4e   :  { %v7809_v15 = vadd.f32 %v12960_v45, %v7485_v34  ;;  %v7487_v33 = vpop.f32.mrb[126].mxu0  ;;  %8360 = vmatprep.mubr.bf16.mxu1 %v8061_v8  ;;  %v12990_v59 = vpop.f32.mrb[254].mxu1 }
 0xb4f   :  { %v7810_v57 = vadd.f32 %v12954_v36, %v7487_v33  ;;  %v7489_v44 = vpop.f32.mrb[127].mxu0  ;;  %8361 = vmatmul.mubr.bf16.vlgmr.msra.gmra.mrb[48].mxu1 %v8060_v47  ;;  %v12993_v38 = vpop.f32.mrb[255].mxu1  ;;  %v7936_v19 = vmax.f32 %v7808_v25, 0.0 }
 0xb50   :  { %v7811_v46 = vadd.f32 %v12960_v45, %v7489_v44  ;;  %v7937_v54 = vmax.f32 %v7809_v15, 0.0 }
 0xb51   :  { %v7938_v61 = vmax.f32 %v7810_v57, 0.0  ;;  %7752 = vmatmul.mubr.bf16.gmra.mrb[232].mxu0 %v13949_v4  ;;  %v13961_v4 = vld [vmem:[#allocation112_spill] sm:$0xff] }
 0xb52   :  { %v7939_v2 = vmax.f32 %v7811_v46, 0.0  ;;  %7761 = vmatprep.mubr.bf16.mxu0 %v13951_v18  ;;  %v13959_v46 = vld [vmem:[#allocation94_spill] sm:$0xff] }
 0xb53   :  { %v8062_v26 = vpack.c.bf16 %v7938_v61, %v7936_v19  ;;  %v13960_v19 = vpack.c.bf16 %v13958_v60, %v13959_v46  ;;  %v10691_v61 = vld [vmem:[#allocation18 + $0x50] sm:$0xff]  }
 0xb54   :  { %v8063_v17 = vpack.c.bf16 %v7939_v2, %v7937_v54  ;;  %v7493_v31 = vpop.f32.mrb[128].mxu0  ;;  %v13003_v20 = vpop.f32.mrb[0].mxu1  ;;  %v13962_v54 = vld [vmem:[#allocation110_spill] sm:$0xff]  ;;  %9029 = vmatpush1.bf16.msra.mxu0 %v10691_v61  ;;  %v10692_v61 = vld [vmem:[#allocation18 + $0x58] sm:$0xff]  }
 0xb55   :  { %v7812_v55 = vadd.f32 %v12954_v36, %v7493_v31  ;;  %v7495_v32 = vpop.f32.mrb[129].mxu0  ;;  %v13006_v10 = vpop.f32.mrb[1].mxu1  ;;  %v13963_v2 = vpack.c.bf16 %v13961_v4, %v13962_v54  ;;  %9030 = vmatprep.subr.bf16.mxu0 %v13689_v24 }
 0xb56   :  { %v7813_v50 = vadd.f32 %v12960_v45, %v7495_v32  ;;  %v7497_v51 = vpop.f32.mrb[130].mxu0  ;;  %8370 = vmatprep.mubr.bf16.mxu1 %v8063_v17  ;;  %v13009_v6 = vpop.f32.mrb[2].mxu1 }
 0xb57   :  { %v7814_v14 = vadd.f32 %v12954_v36, %v7497_v51  ;;  %v7499_v23 = vpop.f32.mrb[131].mxu0  ;;  %8371 = vmatmul.mubr.bf16.gmra.mrb[52].mxu1 %v8062_v26  ;;  %v13012_v5 = vpop.f32.mrb[3].mxu1  ;;  %v7940_v63 = vmax.f32 %v7812_v55, 0.0 }
 0xb58   :  { %v7815_v7 = vadd.f32 %v12960_v45, %v7499_v23  ;;  %v7941_v35 = vmax.f32 %v7813_v50, 0.0  ;;  %9031 = vmatpush1.bf16.msra.mxu0 %v10692_v61 }
 0xb59   :  { %v7942_v39 = vmax.f32 %v7814_v14, 0.0  ;;  %7762 = vmatmul.mubr.bf16.gmra.mrb[236].mxu0 %v13954_v41  ;;  %v13964_v41 = vld [vmem:[#allocation111_spill] sm:$0xff]  ;;  %9032 = vmatprep.subr.bf16.mxu0 %v13689_v24 }
 0xb5a   :  { %v7943_v48 = vmax.f32 %v7815_v7, 0.0  ;;  %7771 = vmatprep.mubr.bf16.mxu0 %v13957_v21 }
 0xb5b   :  { %v8064_v12 = vpack.c.bf16 %v7942_v39, %v7940_v63 }
 0xb5c   :  { %v8065_v40 = vpack.c.bf16 %v7943_v48, %v7941_v35  ;;  %v7503_v49 = vpop.f32.mrb[132].mxu0  ;;  %v13021_v1 = vpop.f32.mrb[4].mxu1  ;;  %v13965_v35 = vld [vmem:[#allocation109_spill] sm:$0xff] }
 0xb5d   :  { %v7816_v9 = vadd.f32 %v12954_v36, %v7503_v49  ;;  %v7505_v13 = vpop.f32.mrb[133].mxu0  ;;  %v13024_v0 = vpop.f32.mrb[5].mxu1  ;;  %v13966_v48 = vpack.c.bf16 %v13964_v41, %v13965_v35 }
 0xb5e   :  { %v7817_v47 = vadd.f32 %v12960_v45, %v7505_v13  ;;  %v7507_v8 = vpop.f32.mrb[134].mxu0  ;;  %8380 = vmatprep.mubr.bf16.mxu1 %v8065_v40  ;;  %v13027_v58 = vpop.f32.mrb[6].mxu1 }
 0xb5f   :  { %v7818_v25 = vadd.f32 %v12954_v36, %v7507_v8  ;;  %v7509_v34 = vpop.f32.mrb[135].mxu0  ;;  %8381 = vmatmul.mubr.bf16.gmra.mrb[56].mxu1 %v8064_v12  ;;  %v13030_v15 = vpop.f32.mrb[7].mxu1  ;;  %v7944_v57 = vmax.f32 %v7816_v9, 0.0 }
 0xb60   :  { %v7819_v33 = vadd.f32 %v12960_v45, %v7509_v34  ;;  %v7945_v27 = vmax.f32 %v7817_v47, 0.0 }
 0xb61   :  { %v7946_v44 = vmax.f32 %v7818_v25, 0.0  ;;  %7772 = vmatmul.mubr.bf16.gmra.mrb[240].mxu0 %v13960_v19 }
 0xb62   :  { %v7947_v56 = vmax.f32 %v7819_v33, 0.0  ;;  %7781 = vmatprep.mubr.bf16.mxu0 %v13963_v2 }
 0xb63   :  { %v8066_v22 = vpack.c.bf16 %v7946_v44, %v7944_v57 }
 0xb64   :  { %v8067_v18 = vpack.c.bf16 %v7947_v56, %v7945_v27  ;;  %v7513_v26 = vpop.f32.mrb[136].mxu0  ;;  %v13039_v17 = vpop.f32.mrb[8].mxu1 }
 0xb65   :  { %v7820_v31 = vadd.f32 %v12954_v36, %v7513_v26  ;;  %v7515_v55 = vpop.f32.mrb[137].mxu0  ;;  %v13043_v32 = vpop.f32.mrb[9].mxu1 }
 0xb66   :  { %v7821_v50 = vadd.f32 %v12960_v45, %v7515_v55  ;;  %v7517_v51 = vpop.f32.mrb[138].mxu0  ;;  %8390 = vmatprep.mubr.bf16.mxu1 %v8067_v18  ;;  %v13046_v14 = vpop.f32.mrb[10].mxu1 }
 0xb67   :  { %v7822_v23 = vadd.f32 %v12954_v36, %v7517_v51  ;;  %v7519_v7 = vpop.f32.mrb[139].mxu0  ;;  %8391 = vmatmul.mubr.bf16.gmra.mrb[60].mxu1 %v8066_v22  ;;  %v13049_v63 = vpop.f32.mrb[11].mxu1  ;;  %v7948_v30 = vmax.f32 %v7820_v31, 0.0 }
 0xb68   :  { %v7823_v39 = vadd.f32 %v12960_v45, %v7519_v7  ;;  %v7949_v53 = vmax.f32 %v7821_v50, 0.0 }
 0xb69   :  { %v7950_v28 = vmax.f32 %v7822_v23, 0.0  ;;  %7782 = vmatmul.mubr.bf16.gmra.mrb[244].mxu0 %v13966_v48 }
 0xb6a   :  { %v7951_v11 = vmax.f32 %v7823_v39, 0.0 }
 0xb6b   :  { %v8068_v21 = vpack.c.bf16 %v7950_v28, %v7948_v30 }
 0xb6c   :  { %v8069_v12 = vpack.c.bf16 %v7951_v11, %v7949_v53  ;;  %v7523_v40 = vpop.f32.mrb[140].mxu0  ;;  %v13055_v49 = vpop.f32.mrb[12].mxu1 }
 0xb6d   :  { %v7824_v9 = vadd.f32 %v12954_v36, %v7523_v40  ;;  %v7525_v13 = vpop.f32.mrb[141].mxu0  ;;  %v13058_v47 = vpop.f32.mrb[13].mxu1 }
 0xb6e   :  { %v7825_v8 = vadd.f32 %v12960_v45, %v7525_v13  ;;  %v7527_v25 = vpop.f32.mrb[142].mxu0  ;;  %8400 = vmatprep.mubr.bf16.mxu1 %v8069_v12  ;;  %v13061_v34 = vpop.f32.mrb[14].mxu1 }
 0xb6f   :  { %v7826_v33 = vadd.f32 %v12954_v36, %v7527_v25  ;;  %v7529_v57 = vpop.f32.mrb[143].mxu0  ;;  %8401 = vmatmul.mubr.bf16.gmra.mrb[64].mxu1 %v8068_v21  ;;  %v13064_v44 = vpop.f32.mrb[15].mxu1  ;;  %v7952_v46 = vmax.f32 %v7824_v9, 0.0 }
 0xb70   :  { %v7827_v60 = vadd.f32 %v12960_v45, %v7529_v57  ;;  %v7953_v27 = vmax.f32 %v7825_v8, 0.0 }
 0xb71   :  { %v7954_v19 = vmax.f32 %v7826_v33, 0.0 }
 0xb72   :  { %v7955_v56 = vmax.f32 %v7827_v60, 0.0 }
 0xb73   :  { %v8070_v4 = vpack.c.bf16 %v7954_v19, %v7952_v46 }
 0xb74   :  { %v8071_v54 = vpack.c.bf16 %v7955_v56, %v7953_v27  ;;  %v7533_v2 = vpop.f32.mrb[144].mxu0  ;;  %v13067_v22 = vpop.f32.mrb[16].mxu1  ;;  %v10693_v56 = vld [vmem:[#allocation18 + $0x60] sm:$0xff]  }
 0xb75   :  { %v7828_v18 = vadd.f32 %v12954_v36, %v7533_v2  ;;  %v7535_v26 = vpop.f32.mrb[145].mxu0  ;;  %v13071_v31 = vpop.f32.mrb[17].mxu1  ;;  %9033 = vmatpush1.bf16.msra.mxu0 %v10693_v56 }
 0xb76   :  { %v7829_v55 = vadd.f32 %v12960_v45, %v7535_v26  ;;  %v7537_v50 = vpop.f32.mrb[146].mxu0  ;;  %8410 = vmatprep.mubr.bf16.mxu1 %v8071_v54  ;;  %v13074_v51 = vpop.f32.mrb[18].mxu1  ;;  %9034 = vmatprep.subr.bf16.mxu0 %v13689_v24 }
 0xb77   :  { %v7830_v23 = vadd.f32 %v12954_v36, %v7537_v50  ;;  %v7539_v7 = vpop.f32.mrb[147].mxu0  ;;  %8411 = vmatmul.mubr.bf16.gmra.mrb[68].mxu1 %v8070_v4  ;;  %v13077_v39 = vpop.f32.mrb[19].mxu1  ;;  %v7956_v28 = vmax.f32 %v7828_v18, 0.0 }
 0xb78   :  { %v7831_v30 = vadd.f32 %v12960_v45, %v7539_v7  ;;  %v7957_v35 = vmax.f32 %v7829_v55, 0.0 }
 0xb79   :  { %v7958_v41 = vmax.f32 %v7830_v23, 0.0 }
 0xb7a   :  { %v7959_v48 = vmax.f32 %v7831_v30, 0.0 }
 0xb7b   :  { %v8072_v53 = vpack.c.bf16 %v7958_v41, %v7956_v28 }
 0xb7c   :  { %v8073_v11 = vpack.c.bf16 %v7959_v48, %v7957_v35  ;;  %v7543_v21 = vpop.f32.mrb[148].mxu0  ;;  %v13080_v12 = vpop.f32.mrb[20].mxu1 }
 0xb7d   :  { %v7832_v40 = vadd.f32 %v12954_v36, %v7543_v21  ;;  %v7545_v9 = vpop.f32.mrb[149].mxu0  ;;  %v13083_v13 = vpop.f32.mrb[21].mxu1 }
 0xb7e   :  { %v7833_v8 = vadd.f32 %v12960_v45, %v7545_v9  ;;  %v7547_v25 = vpop.f32.mrb[150].mxu0  ;;  %8420 = vmatprep.mubr.bf16.mxu1 %v8073_v11  ;;  %v13086_v33 = vpop.f32.mrb[22].mxu1 }
 0xb7f   :  { %v7834_v57 = vadd.f32 %v12954_v36, %v7547_v25  ;;  %v7549_v60 = vpop.f32.mrb[151].mxu0  ;;  %8421 = vmatmul.mubr.bf16.gmra.mrb[72].mxu1 %v8072_v53  ;;  %v13089_v46 = vpop.f32.mrb[23].mxu1  ;;  %v7960_v61 = vmax.f32 %v7832_v40, 0.0 }
 0xb80   :  { %v7835_v19 = vadd.f32 %v12960_v45, %v7549_v60  ;;  %v7961_v4 = vmax.f32 %v7833_v8, 0.0 }
 0xb81   :  { %v7962_v27 = vmax.f32 %v7834_v57, 0.0 }
 0xb82   :  { %v7963_v54 = vmax.f32 %v7835_v19, 0.0 }
 0xb83   :  { %v8074_v2 = vpack.c.bf16 %v7962_v27, %v7960_v61 }
 0xb84   :  { %v8075_v18 = vpack.c.bf16 %v7963_v54, %v7961_v4  ;;  %v7553_v26 = vpop.f32.mrb[152].mxu0  ;;  %v13092_v55 = vpop.f32.mrb[24].mxu1 }
 0xb85   :  { %v7836_v50 = vadd.f32 %v12954_v36, %v7553_v26  ;;  %v7555_v23 = vpop.f32.mrb[153].mxu0  ;;  %v13096_v7 = vpop.f32.mrb[25].mxu1 }
 0xb86   :  { %v7837_v30 = vadd.f32 %v12960_v45, %v7555_v23  ;;  %v7557_v28 = vpop.f32.mrb[154].mxu0  ;;  %8430 = vmatprep.mubr.bf16.mxu1 %v8075_v18  ;;  %v13099_v41 = vpop.f32.mrb[26].mxu1 }
 0xb87   :  { %v7838_v35 = vadd.f32 %v12954_v36, %v7557_v28  ;;  %v7559_v48 = vpop.f32.mrb[155].mxu0  ;;  %8431 = vmatmul.mubr.bf16.gmra.mrb[76].mxu1 %v8074_v2  ;;  %v13102_v53 = vpop.f32.mrb[27].mxu1  ;;  %v7964_v21 = vmax.f32 %v7836_v50, 0.0 }
 0xb88   :  { %v7839_v11 = vadd.f32 %v12960_v45, %v7559_v48  ;;  %v7965_v9 = vmax.f32 %v7837_v30, 0.0 }
 0xb89   :  { %v7966_v40 = vmax.f32 %v7838_v35, 0.0  ;;  %v10694_v35 = vld [vmem:[#allocation18 + $0x68] sm:$0xff]  }
 0xb8a   :  { %v7967_v8 = vmax.f32 %v7839_v11, 0.0  ;;  %9035 = vmatpush1.bf16.msra.mxu0 %v10694_v35 }
 0xb8b   :  { %v8076_v25 = vpack.c.bf16 %v7966_v40, %v7964_v21  ;;  %9036 = vmatprep.subr.bf16.mxu0 %v13689_v24 }
 0xb8c   :  { %v8077_v57 = vpack.c.bf16 %v7967_v8, %v7965_v9  ;;  %v7563_v60 = vpop.f32.mrb[156].mxu0  ;;  %v13105_v19 = vpop.f32.mrb[28].mxu1 }
 0xb8d   :  { %v7840_v61 = vadd.f32 %v12954_v36, %v7563_v60  ;;  %v7565_v27 = vpop.f32.mrb[157].mxu0  ;;  %v13108_v56 = vpop.f32.mrb[29].mxu1 }
 0xb8e   :  { %v7841_v4 = vadd.f32 %v12960_v45, %v7565_v27  ;;  %v7567_v54 = vpop.f32.mrb[158].mxu0  ;;  %8440 = vmatprep.mubr.bf16.mxu1 %v8077_v57  ;;  %v13111_v2 = vpop.f32.mrb[30].mxu1 }
 0xb8f   :  { %v7842_v18 = vadd.f32 %v12954_v36, %v7567_v54  ;;  %v7569_v26 = vpop.f32.mrb[159].mxu0  ;;  %8441 = vmatmul.mubr.bf16.gmra.mrb[80].mxu1 %v8076_v25  ;;  %v13114_v50 = vpop.f32.mrb[31].mxu1  ;;  %v7968_v30 = vmax.f32 %v7840_v61, 0.0 }
 0xb90   :  { %v7843_v23 = vadd.f32 %v12960_v45, %v7569_v26  ;;  %v7969_v48 = vmax.f32 %v7841_v4, 0.0 }
 0xb91   :  { %v7970_v28 = vmax.f32 %v7842_v18, 0.0 }
 0xb92   :  { %v7971_v11 = vmax.f32 %v7843_v23, 0.0 }
 0xb93   :  { %v8078_v21 = vpack.c.bf16 %v7970_v28, %v7968_v30 }
 0xb94   :  { %v8079_v40 = vpack.c.bf16 %v7971_v11, %v7969_v48  ;;  %v7573_v9 = vpop.f32.mrb[160].mxu0  ;;  %v13117_v8 = vpop.f32.mrb[32].mxu1 }
 0xb95   :  { %13967 = vst [vmem:[#allocation36_spill] sm:$0xff] %v13117_v8  ;;  %v7844_v57 = vadd.f32 %v12954_v36, %v7573_v9  ;;  %v7575_v25 = vpop.f32.mrb[161].mxu0  ;;  %v13121_v60 = vpop.f32.mrb[33].mxu1 }
 0xb96   :  { %13968 = vst [vmem:[#allocation32_spill] sm:$0xff] %v13121_v60  ;;  %v7845_v27 = vadd.f32 %v12960_v45, %v7575_v25  ;;  %v7577_v61 = vpop.f32.mrb[162].mxu0  ;;  %8450 = vmatprep.mubr.bf16.mxu1 %v8079_v40  ;;  %v13124_v54 = vpop.f32.mrb[34].mxu1 }
 0xb97   :  { %13969 = vst [vmem:[#allocation38_spill] sm:$0xff] %v13124_v54  ;;  %v7846_v4 = vadd.f32 %v12954_v36, %v7577_v61  ;;  %v7579_v18 = vpop.f32.mrb[163].mxu0  ;;  %8451 = vmatmul.mubr.bf16.gmra.mrb[84].mxu1 %v8078_v21  ;;  %v13127_v26 = vpop.f32.mrb[35].mxu1  ;;  %v7972_v30 = vmax.f32 %v7844_v57, 0.0 }
 0xb98   :  { %13970 = vst [vmem:[#allocation34_spill] sm:$0xff] %v13127_v26  ;;  %v7847_v23 = vadd.f32 %v12960_v45, %v7579_v18  ;;  %v7973_v35 = vmax.f32 %v7845_v27, 0.0 }
 0xb99   :  { %v7974_v28 = vmax.f32 %v7846_v4, 0.0 }
 0xb9a   :  { %v7975_v48 = vmax.f32 %v7847_v23, 0.0 }
 0xb9b   :  { %v8080_v11 = vpack.c.bf16 %v7974_v28, %v7972_v30 }
 0xb9c   :  { %v8081_v9 = vpack.c.bf16 %v7975_v48, %v7973_v35  ;;  %v7583_v60 = vpop.f32.mrb[164].mxu0  ;;  %v13130_v25 = vpop.f32.mrb[36].mxu1 }
 0xb9d   :  { %v7848_v40 = vadd.f32 %v12954_v36, %v7583_v60  ;;  %v7585_v54 = vpop.f32.mrb[165].mxu0  ;;  %v13133_v8 = vpop.f32.mrb[37].mxu1  ;;  %v10695_v60 = vld [vmem:[#allocation18 + $0x70] sm:$0xff]  }
 0xb9e   :  { %13971 = vst [vmem:[#allocation37_spill] sm:$0xff] %v13133_v8  ;;  %v7849_v21 = vadd.f32 %v12960_v45, %v7585_v54  ;;  %v7587_v61 = vpop.f32.mrb[166].mxu0  ;;  %8460 = vmatprep.mubr.bf16.mxu1 %v8081_v9  ;;  %v13136_v26 = vpop.f32.mrb[38].mxu1  ;;  %9037 = vmatpush1.bf16.msra.mxu0 %v10695_v60 }
 0xb9f   :  { %13972 = vst [vmem:[#allocation33_spill] sm:$0xff] %v13136_v26  ;;  %v7850_v57 = vadd.f32 %v12954_v36, %v7587_v61  ;;  %v7589_v27 = vpop.f32.mrb[167].mxu0  ;;  %8461 = vmatmul.mubr.bf16.gmra.mrb[88].mxu1 %v8080_v11  ;;  %v13139_v4 = vpop.f32.mrb[39].mxu1  ;;  %v7976_v23 = vmax.f32 %v7848_v40, 0.0  ;;  %9038 = vmatprep.subr.bf16.mxu0 %v13689_v24 }
 0xba0   :  { %13973 = vst [vmem:[#allocation45_spill] sm:$0xff] %v13139_v4  ;;  %v7851_v18 = vadd.f32 %v12960_v45, %v7589_v27  ;;  %v7977_v28 = vmax.f32 %v7849_v21, 0.0 }
 0xba1   :  { %v7978_v30 = vmax.f32 %v7850_v57, 0.0 }
 0xba2   :  { %v7979_v35 = vmax.f32 %v7851_v18, 0.0 }
 0xba3   :  { %v8082_v48 = vpack.c.bf16 %v7978_v30, %v7976_v23 }
 0xba4   :  { %v8083_v54 = vpack.c.bf16 %v7979_v35, %v7977_v28  ;;  %v7593_v8 = vpop.f32.mrb[168].mxu0  ;;  %v13142_v9 = vpop.f32.mrb[40].mxu1 }
 0xba5   :  { %13974 = vst [vmem:[#allocation41_spill] sm:$0xff] %v13142_v9  ;;  %v7852_v61 = vadd.f32 %v12954_v36, %v7593_v8  ;;  %v7595_v11 = vpop.f32.mrb[169].mxu0  ;;  %v13146_v26 = vpop.f32.mrb[41].mxu1 }
 0xba6   :  { %13975 = vst [vmem:[#allocation43_spill] sm:$0xff] %v13146_v26  ;;  %v7853_v27 = vadd.f32 %v12960_v45, %v7595_v11  ;;  %v7597_v40 = vpop.f32.mrb[170].mxu0  ;;  %8470 = vmatprep.mubr.bf16.mxu1 %v8083_v54  ;;  %v13149_v57 = vpop.f32.mrb[42].mxu1 }
 0xba7   :  { %13976 = vst [vmem:[#allocation39_spill] sm:$0xff] %v13149_v57  ;;  %v7854_v21 = vadd.f32 %v12954_v36, %v7597_v40  ;;  %v7599_v18 = vpop.f32.mrb[171].mxu0  ;;  %8471 = vmatmul.mubr.bf16.gmra.mrb[92].mxu1 %v8082_v48  ;;  %v13152_v23 = vpop.f32.mrb[43].mxu1  ;;  %v7980_v24 = vmax.f32 %v7852_v61, 0.0  ;;  %v10696_v40 = vld [vmem:[#allocation18 + $0x78] sm:$0xff]  }
 0xba8   :  { %13977 = vst [vmem:[#allocation46_spill] sm:$0xff] %v13152_v23  ;;  %v7855_v30 = vadd.f32 %v12960_v45, %v7599_v18  ;;  %v7981_v8 = vmax.f32 %v7853_v27, 0.0  ;;  %9039 = vmatpush1.bf16.msra.mxu0 %v10696_v40 }
 0xba9   :  { %v7982_v60 = vmax.f32 %v7854_v21, 0.0 }
 0xbaa   :  { %v7983_v28 = vmax.f32 %v7855_v30, 0.0 }
 0xbab   :  { %v8084_v35 = vpack.c.bf16 %v7982_v60, %v7980_v24 }
 0xbac   :  { %v8085_v26 = vpack.c.bf16 %v7983_v28, %v7981_v8  ;;  %v7603_v9 = vpop.f32.mrb[172].mxu0  ;;  %v13155_v11 = vpop.f32.mrb[44].mxu1 }
 0xbad   :  { %13978 = vst [vmem:[#allocation42_spill] sm:$0xff] %v13155_v11  ;;  %v7856_v54 = vadd.f32 %v12954_v36, %v7603_v9  ;;  %v7605_v57 = vpop.f32.mrb[173].mxu0  ;;  %v13158_v4 = vpop.f32.mrb[45].mxu1 }
 0xbae   :  { %13979 = vst [vmem:[#allocation44_spill] sm:$0xff] %v13158_v4  ;;  %v7857_v48 = vadd.f32 %v12960_v45, %v7605_v57  ;;  %v7607_v23 = vpop.f32.mrb[174].mxu0  ;;  %8480 = vmatprep.mubr.bf16.mxu1 %v8085_v26  ;;  %v13161_v18 = vpop.f32.mrb[46].mxu1 }
 0xbaf   :  { %13980 = vst [vmem:[#allocation40_spill] sm:$0xff] %v13161_v18  ;;  %v7858_v61 = vadd.f32 %v12954_v36, %v7607_v23  ;;  %v7609_v27 = vpop.f32.mrb[175].mxu0  ;;  %8481 = vmatmul.mubr.bf16.gmra.mrb[96].mxu1 %v8084_v35  ;;  %v13164_v21 = vpop.f32.mrb[47].mxu1  ;;  %v7984_v9 = vmax.f32 %v7856_v54, 0.0 }
 0xbb0   :  { %13981 = vst [vmem:[#allocation53_spill] sm:$0xff] %v13164_v21  ;;  %v7859_v30 = vadd.f32 %v12960_v45, %v7609_v27  ;;  %v7985_v60 = vmax.f32 %v7857_v48, 0.0 }
 0xbb1   :  { %v7986_v24 = vmax.f32 %v7858_v61, 0.0 }
 0xbb2   :  { %v7987_v8 = vmax.f32 %v7859_v30, 0.0 }
 0xbb3   :  { %v8086_v28 = vpack.c.bf16 %v7986_v24, %v7984_v9 }
 0xbb4   :  { %v8087_v4 = vpack.c.bf16 %v7987_v8, %v7985_v60  ;;  %v7613_v57 = vpop.f32.mrb[176].mxu0 }
 0xbb5   :  { %v7860_v26 = vadd.f32 %v12954_v36, %v7613_v57  ;;  %v7615_v11 = vpop.f32.mrb[177].mxu0 }
 0xbb6   :  { %v7861_v18 = vadd.f32 %v12960_v45, %v7615_v11  ;;  %v7617_v23 = vpop.f32.mrb[178].mxu0  ;;  %8490 = vmatprep.mubr.bf16.mxu1 %v8087_v4 }
 0xbb7   :  { %v7862_v35 = vadd.f32 %v12954_v36, %v7617_v23  ;;  %v7619_v21 = vpop.f32.mrb[179].mxu0  ;;  %8491 = vmatmul.mubr.bf16.gmra.mrb[100].mxu1 %v8086_v28  ;;  %v7988_v54 = vmax.f32 %v7860_v26, 0.0 }
 0xbb8   :  { %v7863_v40 = vadd.f32 %v12960_v45, %v7619_v21  ;;  %v7989_v48 = vmax.f32 %v7861_v18, 0.0 }
 0xbb9   :  { %v7990_v61 = vmax.f32 %v7862_v35, 0.0 }
 0xbba   :  { %v7991_v27 = vmax.f32 %v7863_v40, 0.0 }
 0xbbb   :  { %v8088_v30 = vpack.c.bf16 %v7990_v61, %v7988_v54 }
 0xbbc   :  { %v8089_v9 = vpack.c.bf16 %v7991_v27, %v7989_v48  ;;  %v7623_v24 = vpop.f32.mrb[180].mxu0 }
 0xbbd   :  { %v7864_v60 = vadd.f32 %v12954_v36, %v7623_v24  ;;  %v7625_v8 = vpop.f32.mrb[181].mxu0 }
 0xbbe   :  { %v7865_v11 = vadd.f32 %v12960_v45, %v7625_v8  ;;  %v7627_v57 = vpop.f32.mrb[182].mxu0  ;;  %8500 = vmatprep.mubr.bf16.mxu1 %v8089_v9 }
 0xbbf   :  { %v7866_v4 = vadd.f32 %v12954_v36, %v7627_v57  ;;  %v7629_v23 = vpop.f32.mrb[183].mxu0  ;;  %8501 = vmatmul.mubr.bf16.gmra.mrb[104].mxu1 %v8088_v30  ;;  %v7992_v28 = vmax.f32 %v7864_v60, 0.0 }
 0xbc0   :  { %v7867_v21 = vadd.f32 %v12960_v45, %v7629_v23  ;;  %v7993_v18 = vmax.f32 %v7865_v11, 0.0 }
 0xbc1   :  { %v7994_v26 = vmax.f32 %v7866_v4, 0.0 }
 0xbc2   :  { %v7995_v35 = vmax.f32 %v7867_v21, 0.0 }
 0xbc3   :  { %v8090_v40 = vpack.c.bf16 %v7994_v26, %v7992_v28 }
 0xbc4   :  { %v8091_v54 = vpack.c.bf16 %v7995_v35, %v7993_v18  ;;  %v7633_v61 = vpop.f32.mrb[184].mxu0 }
 0xbc5   :  { %v7868_v48 = vadd.f32 %v12954_v36, %v7633_v61  ;;  %v7635_v27 = vpop.f32.mrb[185].mxu0 }
 0xbc6   :  { %v7869_v24 = vadd.f32 %v12960_v45, %v7635_v27  ;;  %v7637_v8 = vpop.f32.mrb[186].mxu0  ;;  %8510 = vmatprep.mubr.bf16.mxu1 %v8091_v54 }
 0xbc7   :  { %v7870_v9 = vadd.f32 %v12954_v36, %v7637_v8  ;;  %v7639_v57 = vpop.f32.mrb[187].mxu0  ;;  %8511 = vmatmul.mubr.bf16.gmra.mrb[108].mxu1 %v8090_v40  ;;  %v7996_v60 = vmax.f32 %v7868_v48, 0.0 }
 0xbc8   :  { %v7871_v30 = vadd.f32 %v12960_v45, %v7639_v57  ;;  %v7997_v11 = vmax.f32 %v7869_v24, 0.0 }
 0xbc9   :  { %v7998_v4 = vmax.f32 %v7870_v9, 0.0 }
 0xbca   :  { %v7999_v23 = vmax.f32 %v7871_v30, 0.0 }
 0xbcb   :  { %v8092_v21 = vpack.c.bf16 %v7998_v4, %v7996_v60 }
 0xbcc   :  { %v8093_v28 = vpack.c.bf16 %v7999_v23, %v7997_v11  ;;  %v7643_v26 = vpop.f32.mrb[188].mxu0 }
 0xbcd   :  { %v7872_v18 = vadd.f32 %v12954_v36, %v7643_v26  ;;  %v7645_v35 = vpop.f32.mrb[189].mxu0 }
 0xbce   :  { %v7873_v61 = vadd.f32 %v12960_v45, %v7645_v35  ;;  %v7647_v27 = vpop.f32.mrb[190].mxu0  ;;  %8520 = vmatprep.mubr.bf16.mxu1 %v8093_v28 }
 0xbcf   :  { %v7874_v54 = vadd.f32 %v12954_v36, %v7647_v27  ;;  %v7649_v8 = vpop.f32.mrb[191].mxu0  ;;  %8521 = vmatmul.mubr.bf16.gmra.mrb[112].mxu1 %v8092_v21  ;;  %v8000_v48 = vmax.f32 %v7872_v18, 0.0 }
 0xbd0   :  { %v7875_v40 = vadd.f32 %v12960_v45, %v7649_v8  ;;  %v8001_v24 = vmax.f32 %v7873_v61, 0.0 }
 0xbd1   :  { %v8002_v9 = vmax.f32 %v7874_v54, 0.0 }
 0xbd2   :  { %v8003_v57 = vmax.f32 %v7875_v40, 0.0 }
 0xbd3   :  { %v8094_v30 = vpack.c.bf16 %v8002_v9, %v8000_v48 }
 0xbd4   :  { %v8095_v60 = vpack.c.bf16 %v8003_v57, %v8001_v24  ;;  %v7653_v4 = vpop.f32.mrb[192].mxu0 }
 0xbd5   :  { %v7654_v11 = vadd.f32 %v7653_v4, %v12966_v16  ;;  %v7655_v23 = vpop.f32.mrb[193].mxu0 }
 0xbd6   :  { %v7656_v26 = vadd.f32 %v7655_v23, %v12969_v3  ;;  %v7657_v35 = vpop.f32.mrb[194].mxu0  ;;  %8530 = vmatprep.mubr.bf16.mxu1 %v8095_v60 }
 0xbd7   :  { %v7876_v28 = vadd.f32 %v12954_v36, %v7654_v11  ;;  %v7658_v21 = vadd.f32 %v7657_v35, %v12972_v43  ;;  %v7659_v27 = vpop.f32.mrb[195].mxu0  ;;  %8531 = vmatmul.mubr.bf16.gmra.mrb[116].mxu1 %v8094_v30 }
 0xbd8   :  { %v7877_v18 = vadd.f32 %v12960_v45, %v7656_v26  ;;  %v7660_v61 = vadd.f32 %v7659_v27, %v12975_v42 }
 0xbd9   :  { %v7878_v54 = vadd.f32 %v12954_v36, %v7658_v21  ;;  %v8004_v16 = vmax.f32 %v7876_v28, 0.0 }
 0xbda   :  { %v7879_v8 = vadd.f32 %v12960_v45, %v7660_v61  ;;  %v8005_v48 = vmax.f32 %v7877_v18, 0.0 }
 0xbdb   :  { %v8006_v40 = vmax.f32 %v7878_v54, 0.0 }
 0xbdc   :  { %v8007_v3 = vmax.f32 %v7879_v8, 0.0  ;;  %v7663_v9 = vpop.f32.mrb[196].mxu0 }
 0xbdd   :  { %v8096_v24 = vpack.c.bf16 %v8006_v40, %v8004_v16  ;;  %v7664_v57 = vadd.f32 %v7663_v9, %v12984_v52  ;;  %v7665_v60 = vpop.f32.mrb[197].mxu0 }
 0xbde   :  { %v7666_v43 = vadd.f32 %v7665_v60, %v12987_v29  ;;  %v7667_v30 = vpop.f32.mrb[198].mxu0  ;;  %v8097_v4 = vpack.c.bf16 %v8007_v3, %v8005_v48 }
 0xbdf   :  { %v7880_v11 = vadd.f32 %v12954_v36, %v7664_v57  ;;  %v7668_v42 = vadd.f32 %v7667_v30, %v12990_v59  ;;  %v7669_v23 = vpop.f32.mrb[199].mxu0 }
 0xbe0   :  { %v7881_v26 = vadd.f32 %v12960_v45, %v7666_v43  ;;  %v7670_v35 = vadd.f32 %v7669_v23, %v12993_v38  ;;  %8540 = vmatprep.mubr.bf16.mxu1 %v8097_v4 }
 0xbe1   :  { %v7882_v28 = vadd.f32 %v12954_v36, %v7668_v42  ;;  %8541 = vmatmul.mubr.bf16.gmra.mrb[120].mxu1 %v8096_v24  ;;  %v8008_v21 = vmax.f32 %v7880_v11, 0.0 }
 0xbe2   :  { %v7883_v52 = vadd.f32 %v12960_v45, %v7670_v35  ;;  %v8009_v29 = vmax.f32 %v7881_v26, 0.0 }
 0xbe3   :  { %v8010_v27 = vmax.f32 %v7882_v28, 0.0 }
 0xbe4   :  { %v8011_v18 = vmax.f32 %v7883_v52, 0.0  ;;  %v7673_v61 = vpop.f32.mrb[200].mxu0 }
 0xbe5   :  { %v8098_v54 = vpack.c.bf16 %v8010_v27, %v8008_v21  ;;  %v7674_v8 = vadd.f32 %v7673_v61, %v13003_v20  ;;  %v7675_v59 = vpop.f32.mrb[201].mxu0 }
 0xbe6   :  { %v7676_v16 = vadd.f32 %v7675_v59, %v13006_v10  ;;  %v7677_v40 = vpop.f32.mrb[202].mxu0  ;;  %v8099_v48 = vpack.c.bf16 %v8011_v18, %v8009_v29 }
 0xbe7   :  { %v7884_v38 = vadd.f32 %v12954_v36, %v7674_v8  ;;  %v7678_v3 = vadd.f32 %v7677_v40, %v13009_v6  ;;  %v7679_v9 = vpop.f32.mrb[203].mxu0 }
 0xbe8   :  { %v7885_v24 = vadd.f32 %v12960_v45, %v7676_v16  ;;  %v7680_v57 = vadd.f32 %v7679_v9, %v13012_v5  ;;  %8550 = vmatprep.mubr.bf16.mxu1 %v8099_v48 }
 0xbe9   :  { %v7886_v60 = vadd.f32 %v12954_v36, %v7678_v3  ;;  %8551 = vmatmul.mubr.bf16.gmra.mrb[124].mxu1 %v8098_v54  ;;  %v8012_v43 = vmax.f32 %v7884_v38, 0.0 }
 0xbea   :  { %v7887_v20 = vadd.f32 %v12960_v45, %v7680_v57  ;;  %v8013_v10 = vmax.f32 %v7885_v24, 0.0 }
 0xbeb   :  { %v8014_v30 = vmax.f32 %v7886_v60, 0.0 }
 0xbec   :  { %v8015_v4 = vmax.f32 %v7887_v20, 0.0  ;;  %v7683_v11 = vpop.f32.mrb[204].mxu0 }
 0xbed   :  { %v8100_v42 = vpack.c.bf16 %v8014_v30, %v8012_v43  ;;  %v7684_v23 = vadd.f32 %v7683_v11, %v13021_v1  ;;  %v7685_v6 = vpop.f32.mrb[205].mxu0 }
 0xbee   :  { %v7686_v26 = vadd.f32 %v7685_v6, %v13024_v0  ;;  %v7687_v35 = vpop.f32.mrb[206].mxu0  ;;  %v8101_v28 = vpack.c.bf16 %v8015_v4, %v8013_v10 }
 0xbef   :  { %v7888_v5 = vadd.f32 %v12954_v36, %v7684_v23  ;;  %v7688_v52 = vadd.f32 %v7687_v35, %v13027_v58  ;;  %v7689_v21 = vpop.f32.mrb[207].mxu0 }
 0xbf0   :  { %v7889_v27 = vadd.f32 %v12960_v45, %v7686_v26  ;;  %v7690_v29 = vadd.f32 %v7689_v21, %v13030_v15  ;;  %8560 = vmatprep.mubr.bf16.mxu1 %v8101_v28 }
 0xbf1   :  { %v7890_v18 = vadd.f32 %v12954_v36, %v7688_v52  ;;  %8561 = vmatmul.mubr.bf16.gmra.mrb[128].mxu1 %v8100_v42  ;;  %v8016_v61 = vmax.f32 %v7888_v5, 0.0 }
 0xbf2   :  { %v7891_v1 = vadd.f32 %v12960_v45, %v7690_v29  ;;  %v8017_v0 = vmax.f32 %v7889_v27, 0.0 }
 0xbf3   :  { %v8018_v54 = vmax.f32 %v7890_v18, 0.0 }
 0xbf4   :  { %v8019_v8 = vmax.f32 %v7891_v1, 0.0  ;;  %v7693_v59 = vpop.f32.mrb[208].mxu0 }
 0xbf5   :  { %v8102_v16 = vpack.c.bf16 %v8018_v54, %v8016_v61  ;;  %v7694_v40 = vadd.f32 %v7693_v59, %v13039_v17  ;;  %v7695_v58 = vpop.f32.mrb[209].mxu0 }
 0xbf6   :  { %v7696_v48 = vadd.f32 %v7695_v58, %v13043_v32  ;;  %v7697_v38 = vpop.f32.mrb[210].mxu0  ;;  %v8103_v3 = vpack.c.bf16 %v8019_v8, %v8017_v0 }
 0xbf7   :  { %v7892_v15 = vadd.f32 %v12954_v36, %v7694_v40  ;;  %v7698_v9 = vadd.f32 %v7697_v38, %v13046_v14  ;;  %v7699_v24 = vpop.f32.mrb[211].mxu0 }
 0xbf8   :  { %v7893_v57 = vadd.f32 %v12960_v45, %v7696_v48  ;;  %v7700_v60 = vadd.f32 %v7699_v24, %v13049_v63  ;;  %8570 = vmatprep.mubr.bf16.mxu1 %v8103_v3 }
 0xbf9   :  { %v7894_v20 = vadd.f32 %v12954_v36, %v7698_v9  ;;  %8571 = vmatmul.mubr.bf16.gmra.mrb[132].mxu1 %v8102_v16  ;;  %v8020_v43 = vmax.f32 %v7892_v15, 0.0 }
 0xbfa   :  { %v7895_v17 = vadd.f32 %v12960_v45, %v7700_v60  ;;  %v8021_v32 = vmax.f32 %v7893_v57, 0.0 }
 0xbfb   :  { %v8022_v30 = vmax.f32 %v7894_v20, 0.0 }
 0xbfc   :  { %v8023_v10 = vmax.f32 %v7895_v17, 0.0  ;;  %v7703_v4 = vpop.f32.mrb[212].mxu0 }
 0xbfd   :  { %v8104_v11 = vpack.c.bf16 %v8022_v30, %v8020_v43  ;;  %v7704_v42 = vadd.f32 %v7703_v4, %v13055_v49  ;;  %v7705_v14 = vpop.f32.mrb[213].mxu0 }
 0xbfe   :  { %v7706_v23 = vadd.f32 %v7705_v14, %v13058_v47  ;;  %v7707_v6 = vpop.f32.mrb[214].mxu0  ;;  %v8105_v26 = vpack.c.bf16 %v8023_v10, %v8021_v32 }
 0xbff   :  { %v7896_v63 = vadd.f32 %v12954_v36, %v7704_v42  ;;  %v7708_v35 = vadd.f32 %v7707_v6, %v13061_v34  ;;  %v7709_v28 = vpop.f32.mrb[215].mxu0 }
 0xc00   :  { %v7897_v5 = vadd.f32 %v12960_v45, %v7706_v23  ;;  %v7710_v52 = vadd.f32 %v7709_v28, %v13064_v44  ;;  %8580 = vmatprep.mubr.bf16.mxu1 %v8105_v26 }
 0xc01   :  { %v7898_v21 = vadd.f32 %v12954_v36, %v7708_v35  ;;  %8581 = vmatmul.mubr.bf16.gmra.mrb[136].mxu1 %v8104_v11  ;;  %v8024_v27 = vmax.f32 %v7896_v63, 0.0 }
 0xc02   :  { %v7899_v49 = vadd.f32 %v12960_v45, %v7710_v52  ;;  %v8025_v47 = vmax.f32 %v7897_v5, 0.0 }
 0xc03   :  { %v8026_v29 = vmax.f32 %v7898_v21, 0.0 }
 0xc04   :  { %v8027_v18 = vmax.f32 %v7899_v49, 0.0  ;;  %v7713_v1 = vpop.f32.mrb[216].mxu0 }
 0xc05   :  { %v8106_v61 = vpack.c.bf16 %v8026_v29, %v8024_v27  ;;  %v7714_v54 = vadd.f32 %v7713_v1, %v13067_v22  ;;  %v7715_v34 = vpop.f32.mrb[217].mxu0 }
 0xc06   :  { %v7716_v0 = vadd.f32 %v7715_v34, %v13071_v31  ;;  %v7717_v8 = vpop.f32.mrb[218].mxu0  ;;  %v8107_v59 = vpack.c.bf16 %v8027_v18, %v8025_v47 }
 0xc07   :  { %v7900_v44 = vadd.f32 %v12954_v36, %v7714_v54  ;;  %v7718_v16 = vadd.f32 %v7717_v8, %v13074_v51  ;;  %v7719_v40 = vpop.f32.mrb[219].mxu0 }
 0xc08   :  { %v7901_v58 = vadd.f32 %v12960_v45, %v7716_v0  ;;  %v7720_v48 = vadd.f32 %v7719_v40, %v13077_v39  ;;  %8590 = vmatprep.mubr.bf16.mxu1 %v8107_v59 }
 0xc09   :  { %v7902_v38 = vadd.f32 %v12954_v36, %v7718_v16  ;;  %8591 = vmatmul.mubr.bf16.gmra.mrb[140].mxu1 %v8106_v61  ;;  %v8028_v3 = vmax.f32 %v7900_v44, 0.0 }
 0xc0a   :  { %v7903_v22 = vadd.f32 %v12960_v45, %v7720_v48  ;;  %v8029_v31 = vmax.f32 %v7901_v58, 0.0 }
 0xc0b   :  { %v8030_v15 = vmax.f32 %v7902_v38, 0.0 }
 0xc0c   :  { %v8031_v9 = vmax.f32 %v7903_v22, 0.0  ;;  %v7723_v24 = vpop.f32.mrb[220].mxu0 }
 0xc0d   :  { %v8108_v57 = vpack.c.bf16 %v8030_v15, %v8028_v3  ;;  %v7724_v60 = vadd.f32 %v7723_v24, %v13080_v12  ;;  %v7725_v51 = vpop.f32.mrb[221].mxu0 }
 0xc0e   :  { %v7726_v20 = vadd.f32 %v7725_v51, %v13083_v13  ;;  %v7727_v17 = vpop.f32.mrb[222].mxu0  ;;  %v8109_v43 = vpack.c.bf16 %v8031_v9, %v8029_v31 }
 0xc0f   :  { %v7904_v39 = vadd.f32 %v12954_v36, %v7724_v60  ;;  %v7728_v30 = vadd.f32 %v7727_v17, %v13086_v33  ;;  %v7729_v32 = vpop.f32.mrb[223].mxu0 }
 0xc10   :  { %v7905_v10 = vadd.f32 %v12960_v45, %v7726_v20  ;;  %v7730_v4 = vadd.f32 %v7729_v32, %v13089_v46  ;;  %8600 = vmatprep.mubr.bf16.mxu1 %v8109_v43 }
 0xc11   :  { %v7906_v11 = vadd.f32 %v12954_v36, %v7728_v30  ;;  %8601 = vmatmul.mubr.bf16.gmra.mrb[144].mxu1 %v8108_v57  ;;  %v8032_v42 = vmax.f32 %v7904_v39, 0.0  ;;  %v13983_v30 = vld [vmem:[#allocation32_spill] sm:$0xff] }
 0xc12   :  { %v7907_v12 = vadd.f32 %v12960_v45, %v7730_v4  ;;  %v8033_v13 = vmax.f32 %v7905_v10, 0.0 }
 0xc13   :  { %v8034_v14 = vmax.f32 %v7906_v11, 0.0 }
 0xc14   :  { %v8035_v23 = vmax.f32 %v7907_v12, 0.0  ;;  %v7733_v6 = vpop.f32.mrb[224].mxu0 }
 0xc15   :  { %v8110_v26 = vpack.c.bf16 %v8034_v14, %v8032_v42  ;;  %v7734_v63 = vadd.f32 %v7733_v6, %v13092_v55  ;;  %v7735_v33 = vpop.f32.mrb[225].mxu0 }
 0xc16   :  { %v7736_v35 = vadd.f32 %v7735_v33, %v13096_v7  ;;  %v7737_v28 = vpop.f32.mrb[226].mxu0  ;;  %v8111_v5 = vpack.c.bf16 %v8035_v23, %v8033_v13  ;;  %v8156_v7 = vld [vmem:[%s13531_s15] sm:$0x3]  ;;  %v13984_v13 = vld [vmem:[#allocation38_spill] sm:$0xff] }
 0xc17   :  { %v7908_v46 = vadd.f32 %v12954_v36, %v7734_v63  ;;  %v7738_v52 = vadd.f32 %v7737_v28, %v13099_v41  ;;  %v7739_v21 = vpop.f32.mrb[227].mxu0  ;;  %v13261_v44 = vrot.slane %v8156_v7, %v13933_v62  ;;  %v13266_v48 = vrot.slane %v8156_v7, %v13937_v37 }
 0xc18   :  { %v7909_v49 = vadd.f32 %v12960_v45, %v7736_v35  ;;  %v7740_v27 = vadd.f32 %v7739_v21, %v13102_v53  ;;  %8610 = vmatprep.mubr.bf16.mxu1 %v8111_v5  ;;  %v13985_v35 = vld [vmem:[#allocation34_spill] sm:$0xff] }
 0xc19   :  { %v7910_v29 = vadd.f32 %v12954_v36, %v7738_v52  ;;  %8611 = vmatmul.mubr.bf16.gmra.mrb[148].mxu1 %v8110_v26  ;;  %v8036_v47 = vmax.f32 %v7908_v46, 0.0 }
 0xc1a   :  { %v7911_v55 = vadd.f32 %v12960_v45, %v7740_v27  ;;  %v8037_v1 = vmax.f32 %v7909_v49, 0.0 }
 0xc1b   :  { %v8038_v18 = vmax.f32 %v7910_v29, 0.0 }
 0xc1c   :  { %v8039_v61 = vmax.f32 %v7911_v55, 0.0  ;;  %v7743_v41 = vpop.f32.mrb[228].mxu0 }
 0xc1d   :  { %v8112_v54 = vpack.c.bf16 %v8038_v18, %v8036_v47  ;;  %v7744_v34 = vadd.f32 %v7743_v41, %v13105_v19  ;;  %v7745_v0 = vpop.f32.mrb[229].mxu0 }
 0xc1e   :  { %v7746_v53 = vadd.f32 %v7745_v0, %v13108_v56  ;;  %v7747_v8 = vpop.f32.mrb[230].mxu0  ;;  %v8113_v59 = vpack.c.bf16 %v8039_v61, %v8037_v1 }
 0xc1f   :  { %v7912_v16 = vadd.f32 %v12954_v36, %v7744_v34  ;;  %v7748_v40 = vadd.f32 %v7747_v8, %v13111_v2  ;;  %v7749_v58 = vpop.f32.mrb[231].mxu0 }
 0xc20   :  { %v7913_v38 = vadd.f32 %v12960_v45, %v7746_v53  ;;  %v7750_v19 = vadd.f32 %v7749_v58, %v13114_v50  ;;  %8620 = vmatprep.mubr.bf16.mxu1 %v8113_v59  ;;  %v13982_v50 = vld [vmem:[#allocation36_spill] sm:$0xff]  ;;  %v13986_v59 = vld [vmem:[#allocation37_spill] sm:$0xff] }
 0xc21   :  { %v7914_v56 = vadd.f32 %v12954_v36, %v7748_v40  ;;  %8621 = vmatmul.mubr.bf16.gmra.mrb[152].mxu1 %v8112_v54  ;;  %v8040_v3 = vmax.f32 %v7912_v16, 0.0 }
 0xc22   :  { %v7915_v22 = vadd.f32 %v12960_v45, %v7750_v19  ;;  %v8362_v62 = vpop.f32.mrb[48].mxu1  ;;  %v8041_v9 = vmax.f32 %v7913_v38, 0.0 }
 0xc23   :  { %v8042_v15 = vmax.f32 %v7914_v56, 0.0  ;;  %v8363_v31 = vadd.f32 %v8362_v62, %v13261_v44  ;;  %v8364_v2 = vpop.f32.mrb[49].mxu1  ;;  %v13987_v62 = vld [vmem:[#allocation33_spill] sm:$0xff] }
 0xc24   :  { %v8043_v24 = vmax.f32 %v7915_v22, 0.0  ;;  %v8365_v37 = vadd.f32 %v8364_v2, %v13266_v48  ;;  %v7753_v57 = vpop.f32.mrb[232].mxu0  ;;  %v8366_v60 = vpop.f32.mrb[50].mxu1 }
 0xc25   :  { %v8114_v51 = vpack.c.bf16 %v8042_v15, %v8040_v3  ;;  %v7754_v20 = vadd.f32 %v7753_v57, %v13982_v50  ;;  %v8367_v17 = vadd.f32 %v8366_v60, %v13261_v44  ;;  %v7755_v43 = vpop.f32.mrb[233].mxu0  ;;  %v8368_v39 = vpop.f32.mrb[51].mxu1  ;;  %v8681_v12 = vmax.f32 %v8363_v31, 0.0 }
 0xc26   :  { %v7756_v32 = vadd.f32 %v7755_v43, %v13983_v30  ;;  %v8369_v10 = vadd.f32 %v8368_v39, %v13266_v48  ;;  %v7757_v4 = vpop.f32.mrb[234].mxu0  ;;  %v8115_v11 = vpack.c.bf16 %v8043_v24, %v8041_v9  ;;  %v8682_v26 = vmax.f32 %v8365_v37, 0.0  ;;  %v13988_v9 = vld [vmem:[#allocation45_spill] sm:$0xff] }
 0xc27   :  { %v7916_v42 = vadd.f32 %v12954_v36, %v7754_v20  ;;  %v8683_v14 = vmax.f32 %v8367_v17, 0.0  ;;  %v7758_v23 = vadd.f32 %v7757_v4, %v13984_v13  ;;  %v7759_v6 = vpop.f32.mrb[235].mxu0 }
 0xc28   :  { %v7917_v63 = vadd.f32 %v12960_v45, %v7756_v32  ;;  %v8684_v33 = vmax.f32 %v8369_v10, 0.0  ;;  %v7760_v28 = vadd.f32 %v7759_v6, %v13985_v35  ;;  %8630 = vmatprep.mubr.bf16.mxu1 %v8115_v11 }
 0xc29   :  { %v8809_v5 = vpack.c.bf16 %v8683_v14, %v8681_v12  ;;  %v7918_v46 = vadd.f32 %v12954_v36, %v7758_v23  ;;  %8631 = vmatmul.mubr.bf16.gmra.mrb[156].mxu1 %v8114_v51  ;;  %v8044_v27 = vmax.f32 %v7916_v42, 0.0  ;;  %v13989_v42 = vld [vmem:[#allocation41_spill] sm:$0xff] }
 0xc2a   :  { %v8810_v52 = vpack.c.bf16 %v8684_v33, %v8682_v26  ;;  %v7919_v21 = vadd.f32 %v12960_v45, %v7760_v28  ;;  %v8372_v49 = vpop.f32.mrb[52].mxu1  ;;  %v8045_v18 = vmax.f32 %v7917_v63, 0.0  ;;  %v13990_v26 = vld [vmem:[#allocation43_spill] sm:$0xff] }
 0xc2b   :  { %v8046_v29 = vmax.f32 %v7918_v46, 0.0  ;;  %v8373_v55 = vadd.f32 %v8372_v49, %v13261_v44  ;;  %v8374_v47 = vpop.f32.mrb[53].mxu1 }
 0xc2c   :  { %v8047_v7 = vmax.f32 %v7919_v21, 0.0  ;;  %v8375_v1 = vadd.f32 %v8374_v47, %v13266_v48  ;;  %v7763_v61 = vpop.f32.mrb[236].mxu0  ;;  %v8376_v41 = vpop.f32.mrb[54].mxu1  ;;  %9040 = vmatprep.mubr.bf16.mxu0 %v8810_v52  ;;  %v13991_v21 = vld [vmem:[#allocation39_spill] sm:$0xff] }
 0xc2d   :  { %v8116_v54 = vpack.c.bf16 %v8046_v29, %v8044_v27  ;;  %v7764_v34 = vadd.f32 %v7763_v61, %v13130_v25  ;;  %v8377_v0 = vadd.f32 %v8376_v41, %v13261_v44  ;;  %v7765_v53 = vpop.f32.mrb[237].mxu0  ;;  %v8378_v8 = vpop.f32.mrb[55].mxu1  ;;  %9041 = vmatmul.mubr.bf16.vlgmr.msra.gmra.mrb[248].mxu0 %v8809_v5  ;;  %v8685_v19 = vmax.f32 %v8373_v55, 0.0 }
 0xc2e   :  { %v7766_v16 = vadd.f32 %v7765_v53, %v13986_v59  ;;  %v8379_v40 = vadd.f32 %v8378_v8, %v13266_v48  ;;  %v7767_v58 = vpop.f32.mrb[238].mxu0  ;;  %v8117_v38 = vpack.c.bf16 %v8047_v7, %v8045_v18  ;;  %v8686_v31 = vmax.f32 %v8375_v1, 0.0  ;;  %v13992_v18 = vld [vmem:[#allocation46_spill] sm:$0xff] }
 0xc2f   :  { %v7920_v56 = vadd.f32 %v12954_v36, %v7764_v34  ;;  %v8687_v22 = vmax.f32 %v8377_v0, 0.0  ;;  %v7768_v3 = vadd.f32 %v7767_v58, %v13987_v62  ;;  %v7769_v15 = vpop.f32.mrb[239].mxu0 }
 0xc30   :  { %v7921_v25 = vadd.f32 %v12960_v45, %v7766_v16  ;;  %v8688_v2 = vmax.f32 %v8379_v40, 0.0  ;;  %v7770_v24 = vadd.f32 %v7769_v15, %v13988_v9  ;;  %8640 = vmatprep.mubr.bf16.mxu1 %v8117_v38 }
 0xc31   :  { %v8811_v37 = vpack.c.bf16 %v8687_v22, %v8685_v19  ;;  %v7922_v57 = vadd.f32 %v12954_v36, %v7768_v3  ;;  %8641 = vmatmul.mubr.bf16.gmra.mrb[160].mxu1 %v8116_v54  ;;  %v8048_v20 = vmax.f32 %v7920_v56, 0.0  ;;  %v13993_v22 = vld [vmem:[#allocation42_spill] sm:$0xff] }
 0xc32   :  { %v8812_v60 = vpack.c.bf16 %v8688_v2, %v8686_v31  ;;  %v7923_v51 = vadd.f32 %v12960_v45, %v7770_v24  ;;  %v8382_v50 = vpop.f32.mrb[56].mxu1  ;;  %v8049_v30 = vmax.f32 %v7921_v25, 0.0  ;;  %v13994_v25 = vld [vmem:[#allocation44_spill] sm:$0xff] }
 0xc33   :  { %v8050_v17 = vmax.f32 %v7922_v57, 0.0  ;;  %v8383_v43 = vadd.f32 %v8382_v50, %v13261_v44  ;;  %v8384_v39 = vpop.f32.mrb[57].mxu1  ;;  %v13995_v50 = vld [vmem:[#allocation40_spill] sm:$0xff] }
 0xc34   :  { %v8051_v32 = vmax.f32 %v7923_v51, 0.0  ;;  %v8385_v10 = vadd.f32 %v8384_v39, %v13266_v48  ;;  %v7773_v4 = vpop.f32.mrb[240].mxu0  ;;  %v8386_v11 = vpop.f32.mrb[58].mxu1  ;;  %9048 = vmatprep.mubr.bf16.mxu0 %v8812_v60 }
 0xc35   :  { %v8118_v12 = vpack.c.bf16 %v8050_v17, %v8048_v20  ;;  %v7774_v14 = vadd.f32 %v7773_v4, %v13989_v42  ;;  %v8387_v13 = vadd.f32 %v8386_v11, %v13261_v44  ;;  %v7775_v23 = vpop.f32.mrb[241].mxu0  ;;  %v8388_v6 = vpop.f32.mrb[59].mxu1  ;;  %9049 = vmatmul.mubr.bf16.gmra.mrb[252].mxu0 %v8811_v37  ;;  %v8689_v5 = vmax.f32 %v8383_v43, 0.0 }
 0xc36   :  { %v7776_v63 = vadd.f32 %v7775_v23, %v13990_v26  ;;  %v8389_v33 = vadd.f32 %v8388_v6, %v13266_v48  ;;  %v7777_v35 = vpop.f32.mrb[242].mxu0  ;;  %v8119_v28 = vpack.c.bf16 %v8051_v32, %v8049_v30  ;;  %v8690_v29 = vmax.f32 %v8385_v10, 0.0  ;;  %v13996_v32 = vld [vmem:[#allocation53_spill] sm:$0xff] }
 0xc37   :  { %v7924_v46 = vadd.f32 %v12954_v36, %v7774_v14  ;;  %v8691_v52 = vmax.f32 %v8387_v13, 0.0  ;;  %v7778_v49 = vadd.f32 %v7777_v35, %v13991_v21  ;;  %v7779_v27 = vpop.f32.mrb[243].mxu0 }
 0xc38   :  { %v7925_v55 = vadd.f32 %v12960_v45, %v7776_v63  ;;  %v8692_v47 = vmax.f32 %v8389_v33, 0.0  ;;  %v7780_v7 = vadd.f32 %v7779_v27, %v13992_v18  ;;  %8650 = vmatprep.mubr.bf16.mxu1 %v8119_v28 }
 0xc39   :  { %v8813_v1 = vpack.c.bf16 %v8691_v52, %v8689_v5  ;;  %v7926_v61 = vadd.f32 %v12954_v36, %v7778_v49  ;;  %8651 = vmatmul.mubr.bf16.gmra.mrb[164].mxu1 %v8118_v12  ;;  %v8052_v0 = vmax.f32 %v7924_v46, 0.0 }
 0xc3a   :  { %v8814_v41 = vpack.c.bf16 %v8692_v47, %v8690_v29  ;;  %v7927_v54 = vadd.f32 %v12960_v45, %v7780_v7  ;;  %v8392_v34 = vpop.f32.mrb[60].mxu1  ;;  %v8053_v16 = vmax.f32 %v7925_v55, 0.0 }
 0xc3b   :  { %v8054_v53 = vmax.f32 %v7926_v61, 0.0  ;;  %v8393_v8 = vadd.f32 %v8392_v34, %v13261_v44  ;;  %v8394_v59 = vpop.f32.mrb[61].mxu1 }
 0xc3c   :  { %v8055_v40 = vmax.f32 %v7927_v54, 0.0  ;;  %v8395_v58 = vadd.f32 %v8394_v59, %v13266_v48  ;;  %v7783_v38 = vpop.f32.mrb[244].mxu0  ;;  %v8396_v19 = vpop.f32.mrb[62].mxu1  ;;  %9056 = vmatprep.mubr.bf16.mxu0 %v8814_v41 }
 0xc3d   :  { %v8120_v56 = vpack.c.bf16 %v8054_v53, %v8052_v0  ;;  %v7784_v62 = vadd.f32 %v7783_v38, %v13993_v22  ;;  %v8397_v3 = vadd.f32 %v8396_v19, %v13261_v44  ;;  %v7785_v15 = vpop.f32.mrb[245].mxu0  ;;  %v8398_v31 = vpop.f32.mrb[63].mxu1  ;;  %9057 = vmatmul.mubr.bf16.gmra.mrb[0].mxu0 %v8813_v1  ;;  %v8693_v57 = vmax.f32 %v8393_v8, 0.0 }
 0xc3e   :  { %v7786_v2 = vadd.f32 %v7785_v15, %v13994_v25  ;;  %v8399_v9 = vadd.f32 %v8398_v31, %v13266_v48  ;;  %v7787_v24 = vpop.f32.mrb[246].mxu0  ;;  %v8121_v37 = vpack.c.bf16 %v8055_v40, %v8053_v16  ;;  %v8694_v43 = vmax.f32 %v8395_v58, 0.0 }
 0xc3f   :  { %v7928_v60 = vadd.f32 %v12954_v36, %v7784_v62  ;;  %v8695_v51 = vmax.f32 %v8397_v3, 0.0  ;;  %v7788_v20 = vadd.f32 %v7787_v24, %v13995_v50  ;;  %v7789_v17 = vpop.f32.mrb[247].mxu0 }
 0xc40   :  { %v7929_v39 = vadd.f32 %v12960_v45, %v7786_v2  ;;  %v8696_v30 = vmax.f32 %v8399_v9, 0.0  ;;  %v7790_v10 = vadd.f32 %v7789_v17, %v13996_v32  ;;  %8660 = vmatprep.mubr.bf16.mxu1 %v8121_v37 }
 0xc41   :  { %v8815_v4 = vpack.c.bf16 %v8695_v51, %v8693_v57  ;;  %v7930_v11 = vadd.f32 %v12954_v36, %v7788_v20  ;;  %8661 = vmatmul.mubr.bf16.gmra.mrb[168].mxu1 %v8120_v56  ;;  %v8056_v13 = vmax.f32 %v7928_v60, 0.0 }
 0xc42   :  { %v8816_v12 = vpack.c.bf16 %v8696_v30, %v8694_v43  ;;  %v7931_v42 = vadd.f32 %v12960_v45, %v7790_v10  ;;  %v8402_v14 = vpop.f32.mrb[64].mxu1  ;;  %v8057_v63 = vmax.f32 %v7929_v39, 0.0 }
 0xc43   :  { %v8058_v23 = vmax.f32 %v7930_v11, 0.0  ;;  %v8403_v6 = vadd.f32 %v8402_v14, %v13261_v44  ;;  %v8404_v26 = vpop.f32.mrb[65].mxu1 }
 0xc44   :  { %v8059_v33 = vmax.f32 %v7931_v42, 0.0  ;;  %v8405_v35 = vadd.f32 %v8404_v26, %v13266_v48  ;;  %v8406_v28 = vpop.f32.mrb[66].mxu1  ;;  %9064 = vmatprep.mubr.bf16.mxu0 %v8816_v12 }
 0xc45   :  { %v8122_v5 = vpack.c.bf16 %v8058_v23, %v8056_v13  ;;  %v8407_v46 = vadd.f32 %v8406_v28, %v13261_v44  ;;  %v8408_v36 = vpop.f32.mrb[67].mxu1  ;;  %9065 = vmatmul.mubr.bf16.gmra.mrb[4].mxu0 %v8815_v4  ;;  %v8697_v21 = vmax.f32 %v8403_v6, 0.0 }
 0xc46   :  { %v8409_v52 = vadd.f32 %v8408_v36, %v13266_v48  ;;  %v8123_v45 = vpack.c.bf16 %v8059_v33, %v8057_v63  ;;  %v8698_v27 = vmax.f32 %v8405_v35, 0.0 }
 0xc47   :  { %v8699_v49 = vmax.f32 %v8407_v46, 0.0 }
 0xc48   :  { %v8700_v29 = vmax.f32 %v8409_v52, 0.0  ;;  %8670 = vmatprep.mubr.bf16.mxu1 %v8123_v45 }
 0xc49   :  { %v8817_v55 = vpack.c.bf16 %v8699_v49, %v8697_v21  ;;  %8671 = vmatmul.mubr.bf16.gmra.mrb[172].mxu1 %v8122_v5 }
 0xc4a   :  { %v8818_v47 = vpack.c.bf16 %v8700_v29, %v8698_v27  ;;  %v8412_v18 = vpop.f32.mrb[68].mxu1 }
 0xc4b   :  { %v8413_v7 = vadd.f32 %v8412_v18, %v13261_v44  ;;  %v8414_v1 = vpop.f32.mrb[69].mxu1 }
 0xc4c   :  { %v8415_v61 = vadd.f32 %v8414_v1, %v13266_v48  ;;  %v8416_v41 = vpop.f32.mrb[70].mxu1  ;;  %9072 = vmatprep.mubr.bf16.mxu0 %v8818_v47 }
 0xc4d   :  { %v8417_v54 = vadd.f32 %v8416_v41, %v13261_v44  ;;  %v8418_v34 = vpop.f32.mrb[71].mxu1  ;;  %9073 = vmatmul.mubr.bf16.gmra.mrb[8].mxu0 %v8817_v55  ;;  %v8701_v53 = vmax.f32 %v8413_v7, 0.0 }
 0xc4e   :  { %v8419_v0 = vadd.f32 %v8418_v34, %v13266_v48  ;;  %v8702_v59 = vmax.f32 %v8415_v61, 0.0 }
 0xc4f   :  { %v8703_v8 = vmax.f32 %v8417_v54, 0.0 }
 0xc50   :  { %v8704_v16 = vmax.f32 %v8419_v0, 0.0 }
 0xc51   :  { %v8819_v40 = vpack.c.bf16 %v8703_v8, %v8701_v53 }
 0xc52   :  { %v8820_v58 = vpack.c.bf16 %v8704_v16, %v8702_v59  ;;  %v8422_v38 = vpop.f32.mrb[72].mxu1 }
 0xc53   :  { %v8423_v19 = vadd.f32 %v8422_v38, %v13261_v44  ;;  %v8424_v56 = vpop.f32.mrb[73].mxu1 }
 0xc54   :  { %v8425_v22 = vadd.f32 %v8424_v56, %v13266_v48  ;;  %v8426_v62 = vpop.f32.mrb[74].mxu1  ;;  %9080 = vmatprep.mubr.bf16.mxu0 %v8820_v58 }
 0xc55   :  { %v8427_v3 = vadd.f32 %v8426_v62, %v13261_v44  ;;  %v8428_v15 = vpop.f32.mrb[75].mxu1  ;;  %9081 = vmatmul.mubr.bf16.gmra.mrb[12].mxu0 %v8819_v40  ;;  %v8705_v25 = vmax.f32 %v8423_v19, 0.0 }
 0xc56   :  { %v8429_v31 = vadd.f32 %v8428_v15, %v13266_v48  ;;  %v8706_v9 = vmax.f32 %v8425_v22, 0.0 }
 0xc57   :  { %v8707_v2 = vmax.f32 %v8427_v3, 0.0 }
 0xc58   :  { %v8708_v24 = vmax.f32 %v8429_v31, 0.0 }
 0xc59   :  { %v8821_v37 = vpack.c.bf16 %v8707_v2, %v8705_v25 }
 0xc5a   :  { %v8822_v57 = vpack.c.bf16 %v8708_v24, %v8706_v9  ;;  %v8432_v60 = vpop.f32.mrb[76].mxu1 }
 0xc5b   :  { %v8433_v51 = vadd.f32 %v8432_v60, %v13261_v44  ;;  %v8434_v50 = vpop.f32.mrb[77].mxu1 }
 0xc5c   :  { %v8435_v20 = vadd.f32 %v8434_v50, %v13266_v48  ;;  %v8436_v17 = vpop.f32.mrb[78].mxu1  ;;  %9088 = vmatprep.mubr.bf16.mxu0 %v8822_v57 }
 0xc5d   :  { %v8437_v43 = vadd.f32 %v8436_v17, %v13261_v44  ;;  %v8438_v39 = vpop.f32.mrb[79].mxu1  ;;  %9089 = vmatmul.mubr.bf16.gmra.mrb[16].mxu0 %v8821_v37  ;;  %v8709_v32 = vmax.f32 %v8433_v51, 0.0 }
 0xc5e   :  { %v8439_v30 = vadd.f32 %v8438_v39, %v13266_v48  ;;  %v8710_v4 = vmax.f32 %v8435_v20, 0.0 }
 0xc5f   :  { %v8711_v10 = vmax.f32 %v8437_v43, 0.0 }
 0xc60   :  { %v8712_v11 = vmax.f32 %v8439_v30, 0.0 }
 0xc61   :  { %v8823_v12 = vpack.c.bf16 %v8711_v10, %v8709_v32 }
 0xc62   :  { %v8824_v42 = vpack.c.bf16 %v8712_v11, %v8710_v4  ;;  %v8442_v14 = vpop.f32.mrb[80].mxu1 }
 0xc63   :  { %v8443_v13 = vadd.f32 %v8442_v14, %v13261_v44  ;;  %v8444_v23 = vpop.f32.mrb[81].mxu1 }
 0xc64   :  { %v8445_v6 = vadd.f32 %v8444_v23, %v13266_v48  ;;  %v8446_v26 = vpop.f32.mrb[82].mxu1  ;;  %9096 = vmatprep.mubr.bf16.mxu0 %v8824_v42 }
 0xc65   :  { %v8447_v63 = vadd.f32 %v8446_v26, %v13261_v44  ;;  %v8448_v33 = vpop.f32.mrb[83].mxu1  ;;  %9097 = vmatmul.mubr.bf16.gmra.mrb[20].mxu0 %v8823_v12  ;;  %v8713_v28 = vmax.f32 %v8443_v13, 0.0 }
 0xc66   :  { %v8449_v35 = vadd.f32 %v8448_v33, %v13266_v48  ;;  %v8714_v46 = vmax.f32 %v8445_v6, 0.0 }
 0xc67   :  { %v8715_v5 = vmax.f32 %v8447_v63, 0.0 }
 0xc68   :  { %v8716_v36 = vmax.f32 %v8449_v35, 0.0 }
 0xc69   :  { %v8825_v52 = vpack.c.bf16 %v8715_v5, %v8713_v28 }
 0xc6a   :  { %v8826_v45 = vpack.c.bf16 %v8716_v36, %v8714_v46  ;;  %v8452_v21 = vpop.f32.mrb[84].mxu1 }
 0xc6b   :  { %v8453_v49 = vadd.f32 %v8452_v21, %v13261_v44  ;;  %v8454_v27 = vpop.f32.mrb[85].mxu1 }
 0xc6c   :  { %v8455_v29 = vadd.f32 %v8454_v27, %v13266_v48  ;;  %v8456_v55 = vpop.f32.mrb[86].mxu1  ;;  %9104 = vmatprep.mubr.bf16.mxu0 %v8826_v45 }
 0xc6d   :  { %v8457_v47 = vadd.f32 %v8456_v55, %v13261_v44  ;;  %v8458_v18 = vpop.f32.mrb[87].mxu1  ;;  %9105 = vmatmul.mubr.bf16.gmra.mrb[24].mxu0 %v8825_v52  ;;  %v8717_v1 = vmax.f32 %v8453_v49, 0.0 }
 0xc6e   :  { %v8459_v7 = vadd.f32 %v8458_v18, %v13266_v48  ;;  %v8718_v41 = vmax.f32 %v8455_v29, 0.0 }
 0xc6f   :  { %v8719_v61 = vmax.f32 %v8457_v47, 0.0 }
 0xc70   :  { %v8720_v54 = vmax.f32 %v8459_v7, 0.0 }
 0xc71   :  { %v8827_v34 = vpack.c.bf16 %v8719_v61, %v8717_v1 }
 0xc72   :  { %v8828_v0 = vpack.c.bf16 %v8720_v54, %v8718_v41  ;;  %v8462_v53 = vpop.f32.mrb[88].mxu1 }
 0xc73   :  { %v8463_v8 = vadd.f32 %v8462_v53, %v13261_v44  ;;  %v8464_v59 = vpop.f32.mrb[89].mxu1 }
 0xc74   :  { %v8465_v16 = vadd.f32 %v8464_v59, %v13266_v48  ;;  %v8466_v40 = vpop.f32.mrb[90].mxu1  ;;  %9112 = vmatprep.mubr.bf16.mxu0 %v8828_v0 }
 0xc75   :  { %v8467_v58 = vadd.f32 %v8466_v40, %v13261_v44  ;;  %v8468_v38 = vpop.f32.mrb[91].mxu1  ;;  %9113 = vmatmul.mubr.bf16.gmra.mrb[28].mxu0 %v8827_v34  ;;  %v8721_v56 = vmax.f32 %v8463_v8, 0.0 }
 0xc76   :  { %v8469_v19 = vadd.f32 %v8468_v38, %v13266_v48  ;;  %v8722_v62 = vmax.f32 %v8465_v16, 0.0 }
 0xc77   :  { %v8723_v22 = vmax.f32 %v8467_v58, 0.0 }
 0xc78   :  { %v8724_v3 = vmax.f32 %v8469_v19, 0.0 }
 0xc79   :  { %v8829_v15 = vpack.c.bf16 %v8723_v22, %v8721_v56 }
 0xc7a   :  { %v8830_v31 = vpack.c.bf16 %v8724_v3, %v8722_v62  ;;  %v8472_v25 = vpop.f32.mrb[92].mxu1 }
 0xc7b   :  { %v8473_v2 = vadd.f32 %v8472_v25, %v13261_v44  ;;  %v8474_v9 = vpop.f32.mrb[93].mxu1 }
 0xc7c   :  { %v8475_v24 = vadd.f32 %v8474_v9, %v13266_v48  ;;  %v8476_v37 = vpop.f32.mrb[94].mxu1  ;;  %9120 = vmatprep.mubr.bf16.mxu0 %v8830_v31 }
 0xc7d   :  { %v8477_v57 = vadd.f32 %v8476_v37, %v13261_v44  ;;  %v8478_v60 = vpop.f32.mrb[95].mxu1  ;;  %9121 = vmatmul.mubr.bf16.gmra.mrb[32].mxu0 %v8829_v15  ;;  %v8725_v50 = vmax.f32 %v8473_v2, 0.0 }
 0xc7e   :  { %v8479_v51 = vadd.f32 %v8478_v60, %v13266_v48  ;;  %v8726_v17 = vmax.f32 %v8475_v24, 0.0 }
 0xc7f   :  { %v8727_v20 = vmax.f32 %v8477_v57, 0.0 }
 0xc80   :  { %v8728_v43 = vmax.f32 %v8479_v51, 0.0 }
 0xc81   :  { %v8831_v39 = vpack.c.bf16 %v8727_v20, %v8725_v50 }
 0xc82   :  { %v8832_v30 = vpack.c.bf16 %v8728_v43, %v8726_v17  ;;  %v8482_v32 = vpop.f32.mrb[96].mxu1 }
 0xc83   :  { %v8483_v10 = vadd.f32 %v8482_v32, %v13261_v44  ;;  %v8484_v4 = vpop.f32.mrb[97].mxu1 }
 0xc84   :  { %v8485_v11 = vadd.f32 %v8484_v4, %v13266_v48  ;;  %v8486_v12 = vpop.f32.mrb[98].mxu1  ;;  %9128 = vmatprep.mubr.bf16.mxu0 %v8832_v30 }
 0xc85   :  { %v8487_v42 = vadd.f32 %v8486_v12, %v13261_v44  ;;  %v8488_v14 = vpop.f32.mrb[99].mxu1  ;;  %9129 = vmatmul.mubr.bf16.gmra.mrb[36].mxu0 %v8831_v39  ;;  %v8729_v23 = vmax.f32 %v8483_v10, 0.0 }
 0xc86   :  { %v8489_v13 = vadd.f32 %v8488_v14, %v13266_v48  ;;  %v8730_v26 = vmax.f32 %v8485_v11, 0.0 }
 0xc87   :  { %v8731_v6 = vmax.f32 %v8487_v42, 0.0 }
 0xc88   :  { %v8732_v63 = vmax.f32 %v8489_v13, 0.0 }
 0xc89   :  { %v8833_v33 = vpack.c.bf16 %v8731_v6, %v8729_v23 }
 0xc8a   :  { %v8834_v35 = vpack.c.bf16 %v8732_v63, %v8730_v26  ;;  %v8492_v28 = vpop.f32.mrb[100].mxu1 }
 0xc8b   :  { %v8493_v5 = vadd.f32 %v8492_v28, %v13261_v44  ;;  %v8494_v46 = vpop.f32.mrb[101].mxu1 }
 0xc8c   :  { %v8495_v36 = vadd.f32 %v8494_v46, %v13266_v48  ;;  %v8496_v52 = vpop.f32.mrb[102].mxu1  ;;  %9136 = vmatprep.mubr.bf16.mxu0 %v8834_v35 }
 0xc8d   :  { %v8497_v45 = vadd.f32 %v8496_v52, %v13261_v44  ;;  %v8498_v21 = vpop.f32.mrb[103].mxu1  ;;  %9137 = vmatmul.mubr.bf16.gmra.mrb[40].mxu0 %v8833_v33  ;;  %v8733_v27 = vmax.f32 %v8493_v5, 0.0 }
 0xc8e   :  { %v8499_v49 = vadd.f32 %v8498_v21, %v13266_v48  ;;  %v8734_v55 = vmax.f32 %v8495_v36, 0.0 }
 0xc8f   :  { %v8735_v29 = vmax.f32 %v8497_v45, 0.0 }
 0xc90   :  { %v8736_v47 = vmax.f32 %v8499_v49, 0.0 }
 0xc91   :  { %v8835_v18 = vpack.c.bf16 %v8735_v29, %v8733_v27 }
 0xc92   :  { %v8836_v7 = vpack.c.bf16 %v8736_v47, %v8734_v55  ;;  %v8502_v1 = vpop.f32.mrb[104].mxu1 }
 0xc93   :  { %v8503_v61 = vadd.f32 %v8502_v1, %v13261_v44  ;;  %v8504_v41 = vpop.f32.mrb[105].mxu1 }
 0xc94   :  { %v8505_v54 = vadd.f32 %v8504_v41, %v13266_v48  ;;  %v8506_v34 = vpop.f32.mrb[106].mxu1  ;;  %9144 = vmatprep.mubr.bf16.mxu0 %v8836_v7 }
 0xc95   :  { %v8507_v0 = vadd.f32 %v8506_v34, %v13261_v44  ;;  %v8508_v53 = vpop.f32.mrb[107].mxu1  ;;  %9145 = vmatmul.mubr.bf16.gmra.mrb[44].mxu0 %v8835_v18  ;;  %v8737_v59 = vmax.f32 %v8503_v61, 0.0 }
 0xc96   :  { %v8509_v8 = vadd.f32 %v8508_v53, %v13266_v48  ;;  %v8738_v40 = vmax.f32 %v8505_v54, 0.0 }
 0xc97   :  { %v8739_v16 = vmax.f32 %v8507_v0, 0.0 }
 0xc98   :  { %v8740_v58 = vmax.f32 %v8509_v8, 0.0 }
 0xc99   :  { %v8837_v38 = vpack.c.bf16 %v8739_v16, %v8737_v59 }
 0xc9a   :  { %v8838_v19 = vpack.c.bf16 %v8740_v58, %v8738_v40  ;;  %v8512_v56 = vpop.f32.mrb[108].mxu1 }
 0xc9b   :  { %v8513_v22 = vadd.f32 %v8512_v56, %v13261_v44  ;;  %v8514_v62 = vpop.f32.mrb[109].mxu1 }
 0xc9c   :  { %v8515_v3 = vadd.f32 %v8514_v62, %v13266_v48  ;;  %v8516_v15 = vpop.f32.mrb[110].mxu1  ;;  %9152 = vmatprep.mubr.bf16.mxu0 %v8838_v19 }
 0xc9d   :  { %v8517_v31 = vadd.f32 %v8516_v15, %v13261_v44  ;;  %v8518_v25 = vpop.f32.mrb[111].mxu1  ;;  %9153 = vmatmul.mubr.bf16.gmra.mrb[48].mxu0 %v8837_v38  ;;  %v8741_v9 = vmax.f32 %v8513_v22, 0.0 }
 0xc9e   :  { %v8519_v2 = vadd.f32 %v8518_v25, %v13266_v48  ;;  %v8742_v37 = vmax.f32 %v8515_v3, 0.0 }
 0xc9f   :  { %v8743_v24 = vmax.f32 %v8517_v31, 0.0 }
 0xca0   :  { %v8744_v57 = vmax.f32 %v8519_v2, 0.0 }
 0xca1   :  { %v8839_v60 = vpack.c.bf16 %v8743_v24, %v8741_v9 }
 0xca2   :  { %v8840_v51 = vpack.c.bf16 %v8744_v57, %v8742_v37  ;;  %v8522_v50 = vpop.f32.mrb[112].mxu1 }
 0xca3   :  { %v8523_v20 = vadd.f32 %v8522_v50, %v13261_v44  ;;  %v8524_v17 = vpop.f32.mrb[113].mxu1 }
 0xca4   :  { %v8525_v43 = vadd.f32 %v8524_v17, %v13266_v48  ;;  %v8526_v39 = vpop.f32.mrb[114].mxu1  ;;  %9160 = vmatprep.mubr.bf16.mxu0 %v8840_v51 }
 0xca5   :  { %v8527_v30 = vadd.f32 %v8526_v39, %v13261_v44  ;;  %v8528_v32 = vpop.f32.mrb[115].mxu1  ;;  %9161 = vmatmul.mubr.bf16.gmra.mrb[52].mxu0 %v8839_v60  ;;  %v8745_v4 = vmax.f32 %v8523_v20, 0.0 }
 0xca6   :  { %v8529_v10 = vadd.f32 %v8528_v32, %v13266_v48  ;;  %v8746_v12 = vmax.f32 %v8525_v43, 0.0 }
 0xca7   :  { %v8747_v11 = vmax.f32 %v8527_v30, 0.0 }
 0xca8   :  { %v8748_v42 = vmax.f32 %v8529_v10, 0.0 }
 0xca9   :  { %v8841_v14 = vpack.c.bf16 %v8747_v11, %v8745_v4 }
 0xcaa   :  { %v8842_v13 = vpack.c.bf16 %v8748_v42, %v8746_v12  ;;  %v8532_v23 = vpop.f32.mrb[116].mxu1 }
 0xcab   :  { %v8533_v6 = vadd.f32 %v8532_v23, %v13261_v44  ;;  %v8534_v26 = vpop.f32.mrb[117].mxu1 }
 0xcac   :  { %v8535_v63 = vadd.f32 %v8534_v26, %v13266_v48  ;;  %v8536_v33 = vpop.f32.mrb[118].mxu1  ;;  %9168 = vmatprep.mubr.bf16.mxu0 %v8842_v13 }
 0xcad   :  { %v8537_v35 = vadd.f32 %v8536_v33, %v13261_v44  ;;  %v8538_v28 = vpop.f32.mrb[119].mxu1  ;;  %9169 = vmatmul.mubr.bf16.gmra.mrb[56].mxu0 %v8841_v14  ;;  %v8749_v46 = vmax.f32 %v8533_v6, 0.0 }
 0xcae   :  { %v8539_v5 = vadd.f32 %v8538_v28, %v13266_v48  ;;  %v8750_v52 = vmax.f32 %v8535_v63, 0.0 }
 0xcaf   :  { %v8751_v36 = vmax.f32 %v8537_v35, 0.0 }
 0xcb0   :  { %v8752_v45 = vmax.f32 %v8539_v5, 0.0 }
 0xcb1   :  { %v8843_v21 = vpack.c.bf16 %v8751_v36, %v8749_v46 }
 0xcb2   :  { %v8844_v49 = vpack.c.bf16 %v8752_v45, %v8750_v52 }
 0xcb4   :  { %v8542_v27 = vpop.f32.mrb[120].mxu1  ;;  %9176 = vmatprep.mubr.bf16.mxu0 %v8844_v49 }
 0xcb5   :  { %v8543_v29 = vadd.f32 %v8542_v27, %v13261_v44  ;;  %v8544_v55 = vpop.f32.mrb[121].mxu1  ;;  %9177 = vmatmul.mubr.bf16.gmra.mrb[60].mxu0 %v8843_v21 }
 0xcb6   :  { %v8545_v47 = vadd.f32 %v8544_v55, %v13266_v48  ;;  %v8546_v18 = vpop.f32.mrb[122].mxu1 }
 0xcb7   :  { %v8547_v7 = vadd.f32 %v8546_v18, %v13261_v44  ;;  %v8548_v1 = vpop.f32.mrb[123].mxu1  ;;  %v8753_v41 = vmax.f32 %v8543_v29, 0.0 }
 0xcb8   :  { %v8549_v61 = vadd.f32 %v8548_v1, %v13266_v48  ;;  %v8754_v34 = vmax.f32 %v8545_v47, 0.0 }
 0xcb9   :  { %v8755_v54 = vmax.f32 %v8547_v7, 0.0 }
 0xcba   :  { %v8756_v0 = vmax.f32 %v8549_v61, 0.0 }
 0xcbb   :  { %v8845_v53 = vpack.c.bf16 %v8755_v54, %v8753_v41 }
 0xcbc   :  { %v8846_v8 = vpack.c.bf16 %v8756_v0, %v8754_v34  ;;  %v8552_v59 = vpop.f32.mrb[124].mxu1 }
 0xcbd   :  { %v8553_v16 = vadd.f32 %v8552_v59, %v13261_v44  ;;  %v8554_v40 = vpop.f32.mrb[125].mxu1 }
 0xcbe   :  { %v8555_v58 = vadd.f32 %v8554_v40, %v13266_v48  ;;  %v8556_v38 = vpop.f32.mrb[126].mxu1  ;;  %9184 = vmatprep.mubr.bf16.mxu0 %v8846_v8 }
 0xcbf   :  { %v8557_v19 = vadd.f32 %v8556_v38, %v13261_v44  ;;  %v8558_v56 = vpop.f32.mrb[127].mxu1  ;;  %9185 = vmatmul.mubr.bf16.gmra.mrb[64].mxu0 %v8845_v53  ;;  %v8757_v62 = vmax.f32 %v8553_v16, 0.0 }
 0xcc0   :  { %v8559_v22 = vadd.f32 %v8558_v56, %v13266_v48  ;;  %v8758_v15 = vmax.f32 %v8555_v58, 0.0 }
 0xcc1   :  { %v8759_v3 = vmax.f32 %v8557_v19, 0.0 }
 0xcc2   :  { %v8760_v31 = vmax.f32 %v8559_v22, 0.0 }
 0xcc3   :  { %v8847_v25 = vpack.c.bf16 %v8759_v3, %v8757_v62 }
 0xcc4   :  { %v8848_v2 = vpack.c.bf16 %v8760_v31, %v8758_v15  ;;  %v8562_v9 = vpop.f32.mrb[128].mxu1 }
 0xcc5   :  { %v8563_v24 = vadd.f32 %v8562_v9, %v13261_v44  ;;  %v8564_v37 = vpop.f32.mrb[129].mxu1 }
 0xcc6   :  { %v8565_v57 = vadd.f32 %v8564_v37, %v13266_v48  ;;  %v8566_v60 = vpop.f32.mrb[130].mxu1  ;;  %9192 = vmatprep.mubr.bf16.mxu0 %v8848_v2 }
 0xcc7   :  { %v8567_v51 = vadd.f32 %v8566_v60, %v13261_v44  ;;  %v8568_v50 = vpop.f32.mrb[131].mxu1  ;;  %9193 = vmatmul.mubr.bf16.gmra.mrb[68].mxu0 %v8847_v25  ;;  %v8761_v17 = vmax.f32 %v8563_v24, 0.0 }
 0xcc8   :  { %v8569_v20 = vadd.f32 %v8568_v50, %v13266_v48  ;;  %v8762_v39 = vmax.f32 %v8565_v57, 0.0 }
 0xcc9   :  { %v8763_v43 = vmax.f32 %v8567_v51, 0.0 }
 0xcca   :  { %v8764_v30 = vmax.f32 %v8569_v20, 0.0 }
 0xccb   :  { %v8849_v32 = vpack.c.bf16 %v8763_v43, %v8761_v17 }
 0xccc   :  { %v8850_v10 = vpack.c.bf16 %v8764_v30, %v8762_v39  ;;  %v8572_v4 = vpop.f32.mrb[132].mxu1 }
 0xccd   :  { %v8573_v11 = vadd.f32 %v8572_v4, %v13261_v44  ;;  %v8574_v12 = vpop.f32.mrb[133].mxu1 }
 0xcce   :  { %v8575_v42 = vadd.f32 %v8574_v12, %v13266_v48  ;;  %v8576_v14 = vpop.f32.mrb[134].mxu1  ;;  %9200 = vmatprep.mubr.bf16.mxu0 %v8850_v10 }
 0xccf   :  { %v8577_v13 = vadd.f32 %v8576_v14, %v13261_v44  ;;  %v8578_v23 = vpop.f32.mrb[135].mxu1  ;;  %9201 = vmatmul.mubr.bf16.gmra.mrb[72].mxu0 %v8849_v32  ;;  %v8765_v26 = vmax.f32 %v8573_v11, 0.0 }
 0xcd0   :  { %v8579_v6 = vadd.f32 %v8578_v23, %v13266_v48  ;;  %v8766_v33 = vmax.f32 %v8575_v42, 0.0 }
 0xcd1   :  { %v8767_v63 = vmax.f32 %v8577_v13, 0.0 }
 0xcd2   :  { %v8768_v35 = vmax.f32 %v8579_v6, 0.0 }
 0xcd3   :  { %v8851_v28 = vpack.c.bf16 %v8767_v63, %v8765_v26 }
 0xcd4   :  { %v8852_v5 = vpack.c.bf16 %v8768_v35, %v8766_v33  ;;  %v8582_v46 = vpop.f32.mrb[136].mxu1 }
 0xcd5   :  { %v8583_v36 = vadd.f32 %v8582_v46, %v13261_v44  ;;  %v8584_v52 = vpop.f32.mrb[137].mxu1 }
 0xcd6   :  { %v8585_v45 = vadd.f32 %v8584_v52, %v13266_v48  ;;  %v8586_v21 = vpop.f32.mrb[138].mxu1  ;;  %9208 = vmatprep.mubr.bf16.mxu0 %v8852_v5 }
 0xcd7   :  { %v8587_v49 = vadd.f32 %v8586_v21, %v13261_v44  ;;  %v8588_v27 = vpop.f32.mrb[139].mxu1  ;;  %9209 = vmatmul.mubr.bf16.gmra.mrb[76].mxu0 %v8851_v28  ;;  %v8769_v55 = vmax.f32 %v8583_v36, 0.0 }
 0xcd8   :  { %v8589_v29 = vadd.f32 %v8588_v27, %v13266_v48  ;;  %v8770_v18 = vmax.f32 %v8585_v45, 0.0 }
 0xcd9   :  { %v8771_v47 = vmax.f32 %v8587_v49, 0.0 }
 0xcda   :  { %v8772_v7 = vmax.f32 %v8589_v29, 0.0 }
 0xcdb   :  { %v8853_v1 = vpack.c.bf16 %v8771_v47, %v8769_v55 }
 0xcdc   :  { %v8854_v61 = vpack.c.bf16 %v8772_v7, %v8770_v18  ;;  %v8592_v41 = vpop.f32.mrb[140].mxu1 }
 0xcdd   :  { %v8593_v54 = vadd.f32 %v8592_v41, %v13261_v44  ;;  %v8594_v34 = vpop.f32.mrb[141].mxu1 }
 0xcde   :  { %v8595_v0 = vadd.f32 %v8594_v34, %v13266_v48  ;;  %v8596_v53 = vpop.f32.mrb[142].mxu1  ;;  %9216 = vmatprep.mubr.bf16.mxu0 %v8854_v61  ;;  %v13417_v61 = vld [vmem:[%s13997_s2] ss:$0 sm:$0xff] }
 0xcdf   :  { %v8597_v8 = vadd.f32 %v8596_v53, %v13261_v44  ;;  %v8598_v59 = vpop.f32.mrb[143].mxu1  ;;  %9217 = vmatmul.mubr.bf16.gmra.mrb[80].mxu0 %v8853_v1  ;;  %v8773_v40 = vmax.f32 %v8593_v54, 0.0 }
 0xce0   :  { %v8599_v16 = vadd.f32 %v8598_v59, %v13266_v48  ;;  %v8774_v38 = vmax.f32 %v8595_v0, 0.0 }
 0xce1   :  { %v8775_v58 = vmax.f32 %v8597_v8, 0.0 }
 0xce2   :  { %v8776_v19 = vmax.f32 %v8599_v16, 0.0 }
 0xce3   :  { %v8855_v56 = vpack.c.bf16 %v8775_v58, %v8773_v40 }
 0xce4   :  { %v8856_v22 = vpack.c.bf16 %v8776_v19, %v8774_v38  ;;  %v8602_v62 = vpop.f32.mrb[144].mxu1 }
 0xce5   :  { %v8603_v3 = vadd.f32 %v8602_v62, %v13261_v44  ;;  %v8604_v15 = vpop.f32.mrb[145].mxu1 }
 0xce6   :  { %v8605_v31 = vadd.f32 %v8604_v15, %v13266_v48  ;;  %v8606_v25 = vpop.f32.mrb[146].mxu1  ;;  %9224 = vmatprep.mubr.bf16.mxu0 %v8856_v22 }
 0xce7   :  { %v8607_v2 = vadd.f32 %v8606_v25, %v13261_v44  ;;  %v8608_v9 = vpop.f32.mrb[147].mxu1  ;;  %9225 = vmatmul.mubr.bf16.gmra.mrb[84].mxu0 %v8855_v56  ;;  %v8777_v37 = vmax.f32 %v8603_v3, 0.0 }
 0xce8   :  { %v8609_v24 = vadd.f32 %v8608_v9, %v13266_v48  ;;  %v8778_v60 = vmax.f32 %v8605_v31, 0.0 }
 0xce9   :  { %v8779_v57 = vmax.f32 %v8607_v2, 0.0 }
 0xcea   :  { %v8780_v51 = vmax.f32 %v8609_v24, 0.0 }
 0xceb   :  { %v8857_v50 = vpack.c.bf16 %v8779_v57, %v8777_v37 }
 0xcec   :  { %v8858_v20 = vpack.c.bf16 %v8780_v51, %v8778_v60  ;;  %v8612_v17 = vpop.f32.mrb[148].mxu1 }
 0xced   :  { %v8613_v43 = vadd.f32 %v8612_v17, %v13261_v44  ;;  %v8614_v39 = vpop.f32.mrb[149].mxu1 }
 0xcee   :  { %v8615_v30 = vadd.f32 %v8614_v39, %v13266_v48  ;;  %v8616_v32 = vpop.f32.mrb[150].mxu1  ;;  %9232 = vmatprep.mubr.bf16.mxu0 %v8858_v20 }
 0xcef   :  { %v8617_v10 = vadd.f32 %v8616_v32, %v13261_v44  ;;  %v8618_v4 = vpop.f32.mrb[151].mxu1  ;;  %9233 = vmatmul.mubr.bf16.gmra.mrb[88].mxu0 %v8857_v50  ;;  %v8781_v12 = vmax.f32 %v8613_v43, 0.0 }
 0xcf0   :  { %v8619_v11 = vadd.f32 %v8618_v4, %v13266_v48  ;;  %v8782_v14 = vmax.f32 %v8615_v30, 0.0 }
 0xcf1   :  { %v8783_v42 = vmax.f32 %v8617_v10, 0.0 }
 0xcf2   :  { %v8784_v13 = vmax.f32 %v8619_v11, 0.0 }
 0xcf3   :  { %v8859_v23 = vpack.c.bf16 %v8783_v42, %v8781_v12 }
 0xcf4   :  { %v8860_v6 = vpack.c.bf16 %v8784_v13, %v8782_v14  ;;  %v8622_v26 = vpop.f32.mrb[152].mxu1 }
 0xcf5   :  { %v8623_v63 = vadd.f32 %v8622_v26, %v13261_v44  ;;  %v8624_v33 = vpop.f32.mrb[153].mxu1 }
 0xcf6   :  { %v8625_v35 = vadd.f32 %v8624_v33, %v13266_v48  ;;  %v8626_v28 = vpop.f32.mrb[154].mxu1  ;;  %9240 = vmatprep.mubr.bf16.mxu0 %v8860_v6 }
 0xcf7   :  { %v8627_v5 = vadd.f32 %v8626_v28, %v13261_v44  ;;  %v8628_v46 = vpop.f32.mrb[155].mxu1  ;;  %9241 = vmatmul.mubr.bf16.gmra.mrb[92].mxu0 %v8859_v23  ;;  %v8785_v52 = vmax.f32 %v8623_v63, 0.0 }
 0xcf8   :  { %v8629_v36 = vadd.f32 %v8628_v46, %v13266_v48  ;;  %v8786_v21 = vmax.f32 %v8625_v35, 0.0 }
 0xcf9   :  { %v8787_v45 = vmax.f32 %v8627_v5, 0.0 }
 0xcfa   :  { %v8788_v49 = vmax.f32 %v8629_v36, 0.0 }
 0xcfb   :  { %v8861_v27 = vpack.c.bf16 %v8787_v45, %v8785_v52 }
 0xcfc   :  { %v8862_v29 = vpack.c.bf16 %v8788_v49, %v8786_v21  ;;  %v8632_v55 = vpop.f32.mrb[156].mxu1 }
 0xcfd   :  { %v8633_v47 = vadd.f32 %v8632_v55, %v13261_v44  ;;  %v8634_v18 = vpop.f32.mrb[157].mxu1 }
 0xcfe   :  { %v8635_v7 = vadd.f32 %v8634_v18, %v13266_v48  ;;  %v8636_v1 = vpop.f32.mrb[158].mxu1  ;;  %9248 = vmatprep.mubr.bf16.mxu0 %v8862_v29 }
 0xcff   :  { %v8637_v41 = vadd.f32 %v8636_v1, %v13261_v44  ;;  %v8638_v54 = vpop.f32.mrb[159].mxu1  ;;  %9249 = vmatmul.mubr.bf16.gmra.mrb[96].mxu0 %v8861_v27  ;;  %v8789_v53 = vmax.f32 %v8633_v47, 0.0 }
 0xd00   :  { %v8639_v34 = vadd.f32 %v8638_v54, %v13266_v48  ;;  %v9042_v0 = vpop.f32.mrb[248].mxu0  ;;  %v8790_v40 = vmax.f32 %v8635_v7, 0.0 }
 0xd01   :  { %v8791_v8 = vmax.f32 %v8637_v41, 0.0  ;;  %v9043_v59 = vadd.f32 %v13417_v61, %v9042_v0  ;;  %v9044_v16 = vpop.f32.mrb[249].mxu0 }
 0xd02   :  { %v8792_v58 = vmax.f32 %v8639_v34, 0.0  ;;  %v9045_v38 = vpop.f32.mrb[250].mxu0 }
 0xd03   :  { %v8863_v19 = vpack.c.bf16 %v8791_v8, %v8789_v53  ;;  %9297 = vst [vmem:[#allocation20] sm:$0xff] %v9043_v59  ;;  %v9046_v56 = vadd.f32 %v13417_v61, %v9045_v38  ;;  %v9047_v22 = vpop.f32.mrb[251].mxu0 }
 0xd04   :  { %v8864_v62 = vpack.c.bf16 %v8792_v58, %v8790_v40  ;;  %v8642_v3 = vpop.f32.mrb[160].mxu1 }
 0xd05   :  { %9298 = vst [vmem:[#allocation20 + $0x8] sm:$0xff] %v9046_v56  ;;  %v8643_v15 = vadd.f32 %v8642_v3, %v13261_v44  ;;  %v8644_v31 = vpop.f32.mrb[161].mxu1 }
 0xd06   :  { %v8645_v25 = vadd.f32 %v8644_v31, %v13266_v48  ;;  %v8646_v2 = vpop.f32.mrb[162].mxu1  ;;  %9256 = vmatprep.mubr.bf16.mxu0 %v8864_v62 }
 0xd07   :  { %v8647_v9 = vadd.f32 %v8646_v2, %v13261_v44  ;;  %v8648_v24 = vpop.f32.mrb[163].mxu1  ;;  %9257 = vmatmul.mubr.bf16.gmra.mrb[100].mxu0 %v8863_v19  ;;  %v8793_v60 = vmax.f32 %v8643_v15, 0.0 }
 0xd08   :  { %v8649_v37 = vadd.f32 %v8648_v24, %v13266_v48  ;;  %v9050_v57 = vpop.f32.mrb[252].mxu0  ;;  %v8794_v17 = vmax.f32 %v8645_v25, 0.0 }
 0xd09   :  { %v8795_v51 = vmax.f32 %v8647_v9, 0.0  ;;  %v9051_v50 = vadd.f32 %v13417_v61, %v9050_v57  ;;  %v9052_v20 = vpop.f32.mrb[253].mxu0 }
 0xd0a   :  { %v8796_v43 = vmax.f32 %v8649_v37, 0.0  ;;  %v9053_v39 = vpop.f32.mrb[254].mxu0 }
 0xd0b   :  { %v8865_v30 = vpack.c.bf16 %v8795_v51, %v8793_v60  ;;  %9299 = vst [vmem:[#allocation20 + $0x10] sm:$0xff] %v9051_v50  ;;  %v9054_v32 = vadd.f32 %v13417_v61, %v9053_v39  ;;  %v9055_v10 = vpop.f32.mrb[255].mxu0 }
 0xd0c   :  { %v8866_v4 = vpack.c.bf16 %v8796_v43, %v8794_v17  ;;  %v8652_v11 = vpop.f32.mrb[164].mxu1 }
 0xd0d   :  { %9300 = vst [vmem:[#allocation20 + $0x18] sm:$0xff] %v9054_v32  ;;  %v8653_v12 = vadd.f32 %v8652_v11, %v13261_v44  ;;  %v8654_v42 = vpop.f32.mrb[165].mxu1 }
 0xd0e   :  { %v8655_v14 = vadd.f32 %v8654_v42, %v13266_v48  ;;  %v8656_v13 = vpop.f32.mrb[166].mxu1  ;;  %9264 = vmatprep.mubr.bf16.mxu0 %v8866_v4 }
 0xd0f   :  { %v8657_v23 = vadd.f32 %v8656_v13, %v13261_v44  ;;  %v8658_v6 = vpop.f32.mrb[167].mxu1  ;;  %9265 = vmatmul.mubr.bf16.gmra.mrb[104].mxu0 %v8865_v30  ;;  %v8797_v33 = vmax.f32 %v8653_v12, 0.0 }
 0xd10   :  { %v8659_v26 = vadd.f32 %v8658_v6, %v13266_v48  ;;  %v9058_v63 = vpop.f32.mrb[0].mxu0  ;;  %v8798_v46 = vmax.f32 %v8655_v14, 0.0 }
 0xd11   :  { %v8799_v35 = vmax.f32 %v8657_v23, 0.0  ;;  %v9059_v28 = vadd.f32 %v13417_v61, %v9058_v63  ;;  %v9060_v5 = vpop.f32.mrb[1].mxu0 }
 0xd12   :  { %v8800_v36 = vmax.f32 %v8659_v26, 0.0  ;;  %v9061_v52 = vpop.f32.mrb[2].mxu0 }
 0xd13   :  { %v8867_v45 = vpack.c.bf16 %v8799_v35, %v8797_v33  ;;  %9301 = vst [vmem:[#allocation20 + $0x20] sm:$0xff] %v9059_v28  ;;  %v9062_v21 = vadd.f32 %v13417_v61, %v9061_v52  ;;  %v9063_v49 = vpop.f32.mrb[3].mxu0 }
 0xd14   :  { %v8868_v27 = vpack.c.bf16 %v8800_v36, %v8798_v46  ;;  %v8662_v29 = vpop.f32.mrb[168].mxu1 }
 0xd15   :  { %9302 = vst [vmem:[#allocation20 + $0x28] sm:$0xff] %v9062_v21  ;;  %v8663_v55 = vadd.f32 %v8662_v29, %v13261_v44  ;;  %v8664_v47 = vpop.f32.mrb[169].mxu1 }
 0xd16   :  { %v8665_v18 = vadd.f32 %v8664_v47, %v13266_v48  ;;  %v8666_v7 = vpop.f32.mrb[170].mxu1  ;;  %9272 = vmatprep.mubr.bf16.mxu0 %v8868_v27 }
 0xd17   :  { %v8667_v1 = vadd.f32 %v8666_v7, %v13261_v44  ;;  %v8668_v41 = vpop.f32.mrb[171].mxu1  ;;  %9273 = vmatmul.mubr.bf16.gmra.mrb[108].mxu0 %v8867_v45  ;;  %v8801_v0 = vmax.f32 %v8663_v55, 0.0 }
 0xd18   :  { %v8669_v54 = vadd.f32 %v8668_v41, %v13266_v48  ;;  %v9066_v34 = vpop.f32.mrb[4].mxu0  ;;  %v8802_v16 = vmax.f32 %v8665_v18, 0.0 }
 0xd19   :  { %v8803_v53 = vmax.f32 %v8667_v1, 0.0  ;;  %v9067_v8 = vadd.f32 %v13417_v61, %v9066_v34  ;;  %v9068_v59 = vpop.f32.mrb[5].mxu0 }
 0xd1a   :  { %v8804_v40 = vmax.f32 %v8669_v54, 0.0  ;;  %v9069_v58 = vpop.f32.mrb[6].mxu0 }
 0xd1b   :  { %v8869_v38 = vpack.c.bf16 %v8803_v53, %v8801_v0  ;;  %9303 = vst [vmem:[#allocation20 + $0x30] sm:$0xff] %v9067_v8  ;;  %v9070_v19 = vadd.f32 %v13417_v61, %v9069_v58  ;;  %v9071_v56 = vpop.f32.mrb[7].mxu0 }
 0xd1c   :  { %v8870_v22 = vpack.c.bf16 %v8804_v40, %v8802_v16  ;;  %v8672_v62 = vpop.f32.mrb[172].mxu1 }
 0xd1d   :  { %9304 = vst [vmem:[#allocation20 + $0x38] sm:$0xff] %v9070_v19  ;;  %v8673_v3 = vadd.f32 %v8672_v62, %v13261_v44  ;;  %v8674_v15 = vpop.f32.mrb[173].mxu1 }
 0xd1e   :  { %v8675_v31 = vadd.f32 %v8674_v15, %v13266_v48  ;;  %v8676_v25 = vpop.f32.mrb[174].mxu1  ;;  %9280 = vmatprep.mubr.bf16.mxu0 %v8870_v22 }
 0xd1f   :  { %v8677_v2 = vadd.f32 %v8676_v25, %v13261_v44  ;;  %v8678_v9 = vpop.f32.mrb[175].mxu1  ;;  %9281 = vmatmul.mubr.bf16.gmra.mrb[112].mxu0 %v8869_v38  ;;  %v8805_v57 = vmax.f32 %v8673_v3, 0.0 }
 0xd20   :  { %v8679_v24 = vadd.f32 %v8678_v9, %v13266_v48  ;;  %v9074_v37 = vpop.f32.mrb[8].mxu0  ;;  %v8806_v20 = vmax.f32 %v8675_v31, 0.0 }
 0xd21   :  { %v8807_v60 = vmax.f32 %v8677_v2, 0.0  ;;  %v9075_v51 = vadd.f32 %v13417_v61, %v9074_v37  ;;  %v9076_v50 = vpop.f32.mrb[9].mxu0 }
 0xd22   :  { %v8808_v17 = vmax.f32 %v8679_v24, 0.0  ;;  %v9077_v43 = vpop.f32.mrb[10].mxu0 }
 0xd23   :  { %v8871_v39 = vpack.c.bf16 %v8807_v60, %v8805_v57  ;;  %9305 = vst [vmem:[#allocation20 + $0x40] sm:$0xff] %v9075_v51  ;;  %v9078_v30 = vadd.f32 %v13417_v61, %v9077_v43  ;;  %v9079_v32 = vpop.f32.mrb[11].mxu0 }
 0xd24   :  { %v8872_v10 = vpack.c.bf16 %v8808_v17, %v8806_v20 }
 0xd25   :  { %9306 = vst [vmem:[#allocation20 + $0x48] sm:$0xff] %v9078_v30 }
 0xd26   :  { %9288 = vmatprep.mubr.bf16.mxu0 %v8872_v10 }
 0xd27   :  { %9289 = vmatmul.mubr.bf16.gmra.mrb[116].mxu0 %v8871_v39 }
 0xd28   :  { %v9082_v44 = vpop.f32.mrb[12].mxu0 }
 0xd29   :  { %v9083_v48 = vadd.f32 %v13417_v61, %v9082_v44  ;;  %v9084_v4 = vpop.f32.mrb[13].mxu0 }
 0xd2a   :  { %v9085_v11 = vpop.f32.mrb[14].mxu0 }
 0xd2b   :  { %9307 = vst [vmem:[#allocation20 + $0x50] sm:$0xff] %v9083_v48  ;;  %v9086_v12 = vadd.f32 %v13417_v61, %v9085_v11  ;;  %v9087_v42 = vpop.f32.mrb[15].mxu0 }
 0xd2d   :  { %9308 = vst [vmem:[#allocation20 + $0x58] sm:$0xff] %v9086_v12 }
 0xd30   :  { %v9090_v14 = vpop.f32.mrb[16].mxu0 }
 0xd31   :  { %v9091_v13 = vadd.f32 %v13417_v61, %v9090_v14  ;;  %v9092_v23 = vpop.f32.mrb[17].mxu0 }
 0xd32   :  { %v9093_v6 = vpop.f32.mrb[18].mxu0 }
 0xd33   :  { %9309 = vst [vmem:[#allocation20 + $0x60] sm:$0xff] %v9091_v13  ;;  %v9094_v26 = vadd.f32 %v13417_v61, %v9093_v6  ;;  %v9095_v63 = vpop.f32.mrb[19].mxu0 }
 0xd35   :  { %9310 = vst [vmem:[#allocation20 + $0x68] sm:$0xff] %v9094_v26 }
 0xd38   :  { %v9098_v33 = vpop.f32.mrb[20].mxu0 }
 0xd39   :  { %v9099_v35 = vadd.f32 %v13417_v61, %v9098_v33  ;;  %v9100_v28 = vpop.f32.mrb[21].mxu0 }
 0xd3a   :  { %v9101_v5 = vpop.f32.mrb[22].mxu0 }
 0xd3b   :  { %9311 = vst [vmem:[#allocation20 + $0x70] sm:$0xff] %v9099_v35  ;;  %v9102_v46 = vadd.f32 %v13417_v61, %v9101_v5  ;;  %v9103_v36 = vpop.f32.mrb[23].mxu0 }
 0xd3d   :  { %9312 = vst [vmem:[#allocation20 + $0x78] sm:$0xff] %v9102_v46 }
 0xd40   :  { %v9106_v52 = vpop.f32.mrb[24].mxu0 }
 0xd41   :  { %v9107_v45 = vadd.f32 %v13417_v61, %v9106_v52  ;;  %v9108_v21 = vpop.f32.mrb[25].mxu0 }
 0xd42   :  { %v9109_v49 = vpop.f32.mrb[26].mxu0 }
 0xd43   :  { %9313 = vst [vmem:[#allocation20 + $0x80] sm:$0xff] %v9107_v45  ;;  %v9110_v27 = vadd.f32 %v13417_v61, %v9109_v49  ;;  %v9111_v29 = vpop.f32.mrb[27].mxu0 }
 0xd45   :  { %9314 = vst [vmem:[#allocation20 + $0x88] sm:$0xff] %v9110_v27 }
 0xd48   :  { %v9114_v55 = vpop.f32.mrb[28].mxu0 }
 0xd49   :  { %v9115_v47 = vadd.f32 %v13417_v61, %v9114_v55  ;;  %v9116_v18 = vpop.f32.mrb[29].mxu0 }
 0xd4a   :  { %v9117_v7 = vpop.f32.mrb[30].mxu0 }
 0xd4b   :  { %9315 = vst [vmem:[#allocation20 + $0x90] sm:$0xff] %v9115_v47  ;;  %v9118_v1 = vadd.f32 %v13417_v61, %v9117_v7  ;;  %v9119_v41 = vpop.f32.mrb[31].mxu0 }
 0xd4d   :  { %9316 = vst [vmem:[#allocation20 + $0x98] sm:$0xff] %v9118_v1 }
 0xd50   :  { %v9122_v54 = vpop.f32.mrb[32].mxu0 }
 0xd51   :  { %v9123_v34 = vadd.f32 %v13417_v61, %v9122_v54  ;;  %v9124_v0 = vpop.f32.mrb[33].mxu0 }
 0xd52   :  { %v9125_v53 = vpop.f32.mrb[34].mxu0 }
 0xd53   :  { %9317 = vst [vmem:[#allocation20 + $0xa0] sm:$0xff] %v9123_v34  ;;  %v9126_v8 = vadd.f32 %v13417_v61, %v9125_v53  ;;  %v9127_v59 = vpop.f32.mrb[35].mxu0 }
 0xd55   :  { %9318 = vst [vmem:[#allocation20 + $0xa8] sm:$0xff] %v9126_v8 }
 0xd58   :  { %v9130_v16 = vpop.f32.mrb[36].mxu0 }
 0xd59   :  { %v9131_v40 = vadd.f32 %v13417_v61, %v9130_v16  ;;  %v9132_v58 = vpop.f32.mrb[37].mxu0 }
 0xd5a   :  { %v9133_v38 = vpop.f32.mrb[38].mxu0 }
 0xd5b   :  { %9319 = vst [vmem:[#allocation20 + $0xb0] sm:$0xff] %v9131_v40  ;;  %v9134_v19 = vadd.f32 %v13417_v61, %v9133_v38  ;;  %v9135_v56 = vpop.f32.mrb[39].mxu0 }
 0xd5d   :  { %9320 = vst [vmem:[#allocation20 + $0xb8] sm:$0xff] %v9134_v19 }
 0xd60   :  { %v9138_v22 = vpop.f32.mrb[40].mxu0 }
 0xd61   :  { %v9139_v62 = vadd.f32 %v13417_v61, %v9138_v22  ;;  %v9140_v3 = vpop.f32.mrb[41].mxu0 }
 0xd62   :  { %v9141_v15 = vpop.f32.mrb[42].mxu0 }
 0xd63   :  { %9321 = vst [vmem:[#allocation20 + $0xc0] sm:$0xff] %v9139_v62  ;;  %v9142_v31 = vadd.f32 %v13417_v61, %v9141_v15  ;;  %v9143_v25 = vpop.f32.mrb[43].mxu0 }
 0xd65   :  { %9322 = vst [vmem:[#allocation20 + $0xc8] sm:$0xff] %v9142_v31 }
 0xd68   :  { %v9146_v2 = vpop.f32.mrb[44].mxu0 }
 0xd69   :  { %v9147_v9 = vadd.f32 %v13417_v61, %v9146_v2  ;;  %v9148_v24 = vpop.f32.mrb[45].mxu0 }
 0xd6a   :  { %v9149_v37 = vpop.f32.mrb[46].mxu0 }
 0xd6b   :  { %9323 = vst [vmem:[#allocation20 + $0xd0] sm:$0xff] %v9147_v9  ;;  %v9150_v57 = vadd.f32 %v13417_v61, %v9149_v37  ;;  %v9151_v60 = vpop.f32.mrb[47].mxu0 }
 0xd6d   :  { %9324 = vst [vmem:[#allocation20 + $0xd8] sm:$0xff] %v9150_v57 }
 0xd70   :  { %v9154_v51 = vpop.f32.mrb[48].mxu0 }
 0xd71   :  { %v9155_v50 = vadd.f32 %v13417_v61, %v9154_v51  ;;  %v9156_v20 = vpop.f32.mrb[49].mxu0 }
 0xd72   :  { %v9157_v17 = vpop.f32.mrb[50].mxu0 }
 0xd73   :  { %9325 = vst [vmem:[#allocation20 + $0xe0] sm:$0xff] %v9155_v50  ;;  %v9158_v43 = vadd.f32 %v13417_v61, %v9157_v17  ;;  %v9159_v39 = vpop.f32.mrb[51].mxu0 }
 0xd75   :  { %9326 = vst [vmem:[#allocation20 + $0xe8] sm:$0xff] %v9158_v43 }
 0xd78   :  { %v9162_v30 = vpop.f32.mrb[52].mxu0 }
 0xd79   :  { %v9163_v32 = vadd.f32 %v13417_v61, %v9162_v30  ;;  %v9164_v10 = vpop.f32.mrb[53].mxu0 }
 0xd7a   :  { %v9165_v44 = vpop.f32.mrb[54].mxu0 }
 0xd7b   :  { %9327 = vst [vmem:[#allocation20 + $0xf0] sm:$0xff] %v9163_v32  ;;  %v9166_v48 = vadd.f32 %v13417_v61, %v9165_v44  ;;  %v9167_v4 = vpop.f32.mrb[55].mxu0 }
 0xd7d   :  { %9328 = vst [vmem:[#allocation20 + $0xf8] sm:$0xff] %v9166_v48 }
 0xd80   :  { %v9170_v11 = vpop.f32.mrb[56].mxu0 }
 0xd81   :  { %v9171_v12 = vadd.f32 %v13417_v61, %v9170_v11  ;;  %v9172_v42 = vpop.f32.mrb[57].mxu0 }
 0xd82   :  { %v9173_v14 = vpop.f32.mrb[58].mxu0 }
 0xd83   :  { %9329 = vst [vmem:[#allocation20 + $0x100] sm:$0xff] %v9171_v12  ;;  %v9174_v13 = vadd.f32 %v13417_v61, %v9173_v14  ;;  %v9175_v23 = vpop.f32.mrb[59].mxu0 }
 0xd85   :  { %9330 = vst [vmem:[#allocation20 + $0x108] sm:$0xff] %v9174_v13 }
 0xd88   :  { %v9178_v6 = vpop.f32.mrb[60].mxu0 }
 0xd89   :  { %v9179_v26 = vadd.f32 %v13417_v61, %v9178_v6  ;;  %v9180_v63 = vpop.f32.mrb[61].mxu0 }
 0xd8a   :  { %v9181_v33 = vpop.f32.mrb[62].mxu0 }
 0xd8b   :  { %9331 = vst [vmem:[#allocation20 + $0x110] sm:$0xff] %v9179_v26  ;;  %v9182_v35 = vadd.f32 %v13417_v61, %v9181_v33  ;;  %v9183_v28 = vpop.f32.mrb[63].mxu0 }
 0xd8d   :  { %9332 = vst [vmem:[#allocation20 + $0x118] sm:$0xff] %v9182_v35 }
 0xd92   :  { %v9186_v5 = vpop.f32.mrb[64].mxu0 }
 0xd93   :  { %v9187_v46 = vadd.f32 %v13417_v61, %v9186_v5  ;;  %v9188_v36 = vpop.f32.mrb[65].mxu0 }
 0xd94   :  { %v9189_v52 = vpop.f32.mrb[66].mxu0 }
 0xd95   :  { %9333 = vst [vmem:[#allocation20 + $0x120] sm:$0xff] %v9187_v46  ;;  %v9190_v45 = vadd.f32 %v13417_v61, %v9189_v52  ;;  %v9191_v21 = vpop.f32.mrb[67].mxu0 }
 0xd97   :  { %9334 = vst [vmem:[#allocation20 + $0x128] sm:$0xff] %v9190_v45 }
 0xd9a   :  { %v9194_v49 = vpop.f32.mrb[68].mxu0 }
 0xd9b   :  { %v9195_v27 = vadd.f32 %v13417_v61, %v9194_v49  ;;  %v9196_v29 = vpop.f32.mrb[69].mxu0 }
 0xd9c   :  { %v9197_v55 = vpop.f32.mrb[70].mxu0 }
 0xd9d   :  { %9335 = vst [vmem:[#allocation20 + $0x130] sm:$0xff] %v9195_v27  ;;  %v9198_v47 = vadd.f32 %v13417_v61, %v9197_v55  ;;  %v9199_v18 = vpop.f32.mrb[71].mxu0 }
 0xd9f   :  { %9336 = vst [vmem:[#allocation20 + $0x138] sm:$0xff] %v9198_v47 }
 0xda2   :  { %v9202_v7 = vpop.f32.mrb[72].mxu0 }
 0xda3   :  { %v9203_v1 = vadd.f32 %v13417_v61, %v9202_v7  ;;  %v9204_v41 = vpop.f32.mrb[73].mxu0 }
 0xda4   :  { %v9205_v54 = vpop.f32.mrb[74].mxu0 }
 0xda5   :  { %9337 = vst [vmem:[#allocation20 + $0x140] sm:$0xff] %v9203_v1  ;;  %v9206_v34 = vadd.f32 %v13417_v61, %v9205_v54  ;;  %v9207_v0 = vpop.f32.mrb[75].mxu0 }
 0xda7   :  { %9338 = vst [vmem:[#allocation20 + $0x148] sm:$0xff] %v9206_v34 }
 0xdaa   :  { %v9210_v53 = vpop.f32.mrb[76].mxu0 }
 0xdab   :  { %v9211_v8 = vadd.f32 %v13417_v61, %v9210_v53  ;;  %v9212_v59 = vpop.f32.mrb[77].mxu0 }
 0xdac   :  { %v9213_v16 = vpop.f32.mrb[78].mxu0 }
 0xdad   :  { %9339 = vst [vmem:[#allocation20 + $0x150] sm:$0xff] %v9211_v8  ;;  %v9214_v40 = vadd.f32 %v13417_v61, %v9213_v16  ;;  %v9215_v58 = vpop.f32.mrb[79].mxu0 }
 0xdaf   :  { %9340 = vst [vmem:[#allocation20 + $0x158] sm:$0xff] %v9214_v40 }
 0xdb2   :  { %v9218_v38 = vpop.f32.mrb[80].mxu0 }
 0xdb3   :  { %v9219_v19 = vadd.f32 %v13417_v61, %v9218_v38  ;;  %v9220_v56 = vpop.f32.mrb[81].mxu0 }
 0xdb4   :  { %v9221_v22 = vpop.f32.mrb[82].mxu0 }
 0xdb5   :  { %9341 = vst [vmem:[#allocation20 + $0x160] sm:$0xff] %v9219_v19  ;;  %v9222_v62 = vadd.f32 %v13417_v61, %v9221_v22  ;;  %v9223_v3 = vpop.f32.mrb[83].mxu0 }
 0xdb7   :  { %9342 = vst [vmem:[#allocation20 + $0x168] sm:$0xff] %v9222_v62 }
 0xdba   :  { %v9226_v15 = vpop.f32.mrb[84].mxu0 }
 0xdbb   :  { %v9227_v31 = vadd.f32 %v13417_v61, %v9226_v15  ;;  %v9228_v25 = vpop.f32.mrb[85].mxu0 }
 0xdbc   :  { %v9229_v2 = vpop.f32.mrb[86].mxu0 }
 0xdbd   :  { %9343 = vst [vmem:[#allocation20 + $0x170] sm:$0xff] %v9227_v31  ;;  %v9230_v9 = vadd.f32 %v13417_v61, %v9229_v2  ;;  %v9231_v24 = vpop.f32.mrb[87].mxu0 }
 0xdbf   :  { %9344 = vst [vmem:[#allocation20 + $0x178] sm:$0xff] %v9230_v9 }
 0xdc2   :  { %v9234_v37 = vpop.f32.mrb[88].mxu0 }
 0xdc3   :  { %v9235_v57 = vadd.f32 %v13417_v61, %v9234_v37  ;;  %v9236_v60 = vpop.f32.mrb[89].mxu0 }
 0xdc4   :  { %v9237_v51 = vpop.f32.mrb[90].mxu0 }
 0xdc5   :  { %9345 = vst [vmem:[#allocation20 + $0x180] sm:$0xff] %v9235_v57  ;;  %v9238_v50 = vadd.f32 %v13417_v61, %v9237_v51  ;;  %v9239_v20 = vpop.f32.mrb[91].mxu0 }
 0xdc7   :  { %9346 = vst [vmem:[#allocation20 + $0x188] sm:$0xff] %v9238_v50 }
 0xdca   :  { %v9242_v17 = vpop.f32.mrb[92].mxu0 }
 0xdcb   :  { %v9243_v43 = vadd.f32 %v13417_v61, %v9242_v17  ;;  %v9244_v39 = vpop.f32.mrb[93].mxu0 }
 0xdcc   :  { %v9245_v30 = vpop.f32.mrb[94].mxu0 }
 0xdcd   :  { %9347 = vst [vmem:[#allocation20 + $0x190] sm:$0xff] %v9243_v43  ;;  %v9246_v32 = vadd.f32 %v13417_v61, %v9245_v30  ;;  %v9247_v10 = vpop.f32.mrb[95].mxu0 }
 0xdcf   :  { %9348 = vst [vmem:[#allocation20 + $0x198] sm:$0xff] %v9246_v32 }
 0xdd2   :  { %v9250_v44 = vpop.f32.mrb[96].mxu0 }
 0xdd3   :  { %v9251_v48 = vadd.f32 %v13417_v61, %v9250_v44  ;;  %v9252_v4 = vpop.f32.mrb[97].mxu0 }
 0xdd4   :  { %v9253_v11 = vpop.f32.mrb[98].mxu0 }
 0xdd5   :  { %9349 = vst [vmem:[#allocation20 + $0x1a0] sm:$0xff] %v9251_v48  ;;  %v9254_v12 = vadd.f32 %v13417_v61, %v9253_v11  ;;  %v9255_v42 = vpop.f32.mrb[99].mxu0 }
 0xdd7   :  { %9350 = vst [vmem:[#allocation20 + $0x1a8] sm:$0xff] %v9254_v12 }
 0xdda   :  { %v9258_v14 = vpop.f32.mrb[100].mxu0 }
 0xddb   :  { %v9259_v13 = vadd.f32 %v13417_v61, %v9258_v14  ;;  %v9260_v23 = vpop.f32.mrb[101].mxu0 }
 0xddc   :  { %v9261_v6 = vpop.f32.mrb[102].mxu0 }
 0xddd   :  { %9351 = vst [vmem:[#allocation20 + $0x1b0] sm:$0xff] %v9259_v13  ;;  %v9262_v26 = vadd.f32 %v13417_v61, %v9261_v6  ;;  %v9263_v63 = vpop.f32.mrb[103].mxu0 }
 0xddf   :  { %9352 = vst [vmem:[#allocation20 + $0x1b8] sm:$0xff] %v9262_v26 }
 0xde2   :  { %v9266_v33 = vpop.f32.mrb[104].mxu0 }
 0xde3   :  { %v9267_v35 = vadd.f32 %v13417_v61, %v9266_v33  ;;  %v9268_v28 = vpop.f32.mrb[105].mxu0 }
 0xde4   :  { %v9269_v5 = vpop.f32.mrb[106].mxu0 }
 0xde5   :  { %9353 = vst [vmem:[#allocation20 + $0x1c0] sm:$0xff] %v9267_v35  ;;  %v9270_v46 = vadd.f32 %v13417_v61, %v9269_v5  ;;  %v9271_v36 = vpop.f32.mrb[107].mxu0 }
 0xde7   :  { %9354 = vst [vmem:[#allocation20 + $0x1c8] sm:$0xff] %v9270_v46 }
 0xdea   :  { %v9274_v52 = vpop.f32.mrb[108].mxu0 }
 0xdeb   :  { %v9275_v45 = vadd.f32 %v13417_v61, %v9274_v52  ;;  %v9276_v21 = vpop.f32.mrb[109].mxu0 }
 0xdec   :  { %v9277_v49 = vpop.f32.mrb[110].mxu0 }
 0xded   :  { %9355 = vst [vmem:[#allocation20 + $0x1d0] sm:$0xff] %v9275_v45  ;;  %v9278_v27 = vadd.f32 %v13417_v61, %v9277_v49  ;;  %v9279_v29 = vpop.f32.mrb[111].mxu0 }
 0xdef   :  { %9356 = vst [vmem:[#allocation20 + $0x1d8] sm:$0xff] %v9278_v27 }
 0xdf2   :  { %v9282_v55 = vpop.f32.mrb[112].mxu0 }
 0xdf3   :  { %v9283_v47 = vadd.f32 %v13417_v61, %v9282_v55  ;;  %v9284_v18 = vpop.f32.mrb[113].mxu0 }
 0xdf4   :  { %v9285_v7 = vpop.f32.mrb[114].mxu0 }
 0xdf5   :  { %9357 = vst [vmem:[#allocation20 + $0x1e0] sm:$0xff] %v9283_v47  ;;  %v9286_v1 = vadd.f32 %v13417_v61, %v9285_v7  ;;  %v9287_v41 = vpop.f32.mrb[115].mxu0 }
 0xdf7   :  { %9358 = vst [vmem:[#allocation20 + $0x1e8] sm:$0xff] %v9286_v1 }
 0xdfa   :  { %v9290_v54 = vpop.f32.mrb[116].mxu0 }
 0xdfb   :  { %v9291_v34 = vadd.f32 %v13417_v61, %v9290_v54  ;;  %v9292_v0 = vpop.f32.mrb[117].mxu0 }
 0xdfc   :  { %v9293_v53 = vpop.f32.mrb[118].mxu0 }
 0xdfd   :  { %9359 = vst [vmem:[#allocation20 + $0x1f0] sm:$0xff] %v9291_v34  ;;  %v9294_v8 = vadd.f32 %v13417_v61, %v9293_v53  ;;  %v9295_v59 = vpop.f32.mrb[119].mxu0 }
 0xdff   :  { %9360 = vst [vmem:[#allocation20 + $0x1f8] sm:$0xff] %v9294_v8 }
 0xe00   :  { %10947 = shalt.err (!%p10944_p0)
}
 0xe01   :  { %s13998_s5 = sld [smem:[#allocation117_spill]] }
 0xe07   :  { %s10948_s18 = scalar_lea.hbm %s13998_s5, 8192 }
 0xe08   :  { %p10949_p1 = scmp.ne.s32.totalorder %s13998_s5, %s10948_s18  ;;  %p10952_p2 = scmp.lt.u32.totalorder %s10948_s18, %s13998_s5 }
 0xe0a   :  { %p10954_p3 = pnand %p10952_p2, %p10949_p1 }
 0xe0c   :  { %10957 = shalt.err (!%p10954_p3)
}
 0xe0d   :  { %9372 = dma.vmem_to_hbm [thread:$0]  %s9367_s20, 8192, %s13998_s5, [#allocation5], %s10973_s23, %s10973_s23, %s10974_s24  }
 0xe0e   :  { %10970 = dma.done.wait [#allocation5], 8192  }
 0xe0f   :  { %10971 = vsyncadd [#allocation5], 4294959104 }
 0xe10   :  { %9376 = vsyncpa [#allocation4], 1 }
 0xe11   :  { %9377 = vsyncpa [#allocation7], 1 }
 0xe12   :  { %9378 = vsyncpa [#allocation10], 1 }
 0xe13   :  { %9379 = vsyncpa [#allocation13], 1 }
 0xe14   :  { %9380 = vsyncpa [#allocation16], 1 }
 0xe15   :  { %9381 = vsyncpa [#allocation19], 1 }
 0xe16   :  { %9382 = vsyncpa [#allocation5], 1 }

</bundles_post_ra>
